<compile_context>
chip_gen: v7x
topology: tpu7x:2x2x1
jax: 0.10.0
libtpu: 0.0.40
codegen_flags: <defaults>
</compile_context>

<pallas_src>
import functools

import jax
import jax.numpy as jnp
import numpy as np
from jax.experimental import pallas as pl
from jax.experimental.pallas import tpu as pltpu

EPS = 1e-5
KSS = (7, 5, 3)
# MXU input dtype (accumulation is always f32). Set to jnp.float32 for full precision.
MXU_DTYPE = jnp.bfloat16


# ---------------------------------------------------------------------------
# Fused Pallas kernel: whole ResNet body, B_TILE batch elements per grid step
# ---------------------------------------------------------------------------
def _dense(x2d, w_ref, b_ref, act, residual=None):
    """Plain matmul conv (K already packed): x2d (M, K) -> (M, co) f32."""
    acc = jnp.dot(x2d.astype(w_ref.dtype), w_ref[...],
                  preferred_element_type=jnp.float32)
    acc = acc + b_ref[...]
    if residual is not None:
        acc = acc + residual
    if act:
        acc = jnp.maximum(acc, 0.0)
    return acc


def _conv_taps(x_flat, w_ref, b_ref, ks, B, L, act, residual=None):
    """'same' conv1d via per-tap K=ci accumulating dots.

    x_flat:  (B*L, ci) f32 value (VMEM-resident activation)
    w_ref:   (ks*ci, co) Ref, BN-folded weight, MXU_DTYPE
    b_ref:   (1, co)  Ref, BN-folded bias, f32
    Returns  (B*L, co) f32.
    """
    BL, ci = x_flat.shape
    co = w_ref.shape[-1]
    pad = ks // 2
    # Cast to the MXU dtype ONCE, before padding, so all copies are bf16.
    xb = x_flat.astype(w_ref.dtype).reshape(B, L, ci)
    if pad:
        z = jnp.zeros((B, pad, ci), xb.dtype)
        xb = jnp.concatenate([z, xb, z], axis=1)           # (B, L+2*pad, ci) bf16
    acc = jnp.zeros((BL, co), jnp.float32)
    for k in range(ks):                                     # per-tap accumulation
        tap = xb[:, k:k + L, :].reshape(BL, ci)
        acc = acc + jnp.dot(tap, w_ref[k * ci:(k + 1) * ci, :],
                            preferred_element_type=jnp.float32)
    acc = acc + b_ref[...]
    if residual is not None:
        acc = acc + residual
    if act:
        acc = jnp.maximum(acc, 0.0)
    return acc


def _body_kernel(xcol_ref,
                 w11, b11, w12, b12, w13, b13, wsc1, bsc1,
                 w21, b21, w22, b22, w23, b23, wsc2, bsc2,
                 w31, b31, w32, b32, w33, b33, ssc3, tsc3,
                 o_ref):
    k1, k2, k3 = KSS
    B, L, K1 = xcol_ref.shape
    xcol = xcol_ref[...].reshape(B * L, K1)                 # bf16, im2col'd input

    # ResBlock 1: c_in -> nf, shortcut = 1x1 ConvBlock (no act, K=28 zero-expanded)
    h = _dense(xcol, w11, b11, act=True)                                 # (B*L, nf)
    h = _conv_taps(h, w12, b12, k2, B, L, act=True)
    sc = _dense(xcol, wsc1, bsc1, act=False)
    x1 = _conv_taps(h, w13, b13, k3, B, L, act=True, residual=sc)

    # ResBlock 2: nf -> 2nf, shortcut = 1x1 ConvBlock (no act)
    h = _conv_taps(x1, w21, b21, k1, B, L, act=True)
    h = _conv_taps(h, w22, b22, k2, B, L, act=True)
    sc = _dense(x1, wsc2, bsc2, act=False)
    x2 = _conv_taps(h, w23, b23, k3, B, L, act=True, residual=sc)

    # ResBlock 3: 2nf -> 2nf, shortcut = BatchNorm1d (eval) affine
    h = _conv_taps(x2, w31, b31, k1, B, L, act=True)
    h = _conv_taps(h, w32, b32, k2, B, L, act=True)
    sc = x2 * ssc3[...] + tsc3[...]
    x3 = _conv_taps(h, w33, b33, k3, B, L, act=True, residual=sc)

    co_out = x3.shape[-1]
    o_ref[...] = x3.reshape(B, L, co_out).astype(o_ref.dtype)


# ---------------------------------------------------------------------------
# Parameters (deterministic, synthetic) and BN folding (plain-JAX glue)
# ---------------------------------------------------------------------------
def init_conv_bn(key, ci, co, ks):
    kw, kg, kb, km, kv = jax.random.split(key, 5)
    return dict(
        w=jax.random.normal(kw, (ks, ci, co), jnp.float32) / np.sqrt(ci * ks),
        gamma=1.0 + 0.1 * jax.random.normal(kg, (co,), jnp.float32),
        beta=0.1 * jax.random.normal(kb, (co,), jnp.float32),
        mean=0.1 * jax.random.normal(km, (co,), jnp.float32),
        var=1.0 + 0.5 * jax.random.uniform(kv, (co,), jnp.float32),
    )


def init_bn(key, c):
    kg, kb, km, kv = jax.random.split(key, 4)
    return dict(
        gamma=1.0 + 0.1 * jax.random.normal(kg, (c,), jnp.float32),
        beta=0.1 * jax.random.normal(kb, (c,), jnp.float32),
        mean=0.1 * jax.random.normal(km, (c,), jnp.float32),
        var=1.0 + 0.5 * jax.random.uniform(kv, (c,), jnp.float32),
    )


def init_resblock(key, ni, nf, kss=KSS):
    k1, k2, k3, ksc = jax.random.split(key, 4)
    return dict(
        cb1=init_conv_bn(k1, ni, nf, kss[0]),
        cb2=init_conv_bn(k2, nf, nf, kss[1]),
        cb3=init_conv_bn(k3, nf, nf, kss[2]),
        sc=init_bn(ksc, ni) if ni == nf else init_conv_bn(ksc, ni, nf, 1),
    )


def init_model(key, c_in, nf=64):
    k1, k2, k3 = jax.random.split(key, 3)
    return dict(
        rb1=init_resblock(k1, c_in, nf),
        rb2=init_resblock(k2, nf, nf * 2),
        rb3=init_resblock(k3, nf * 2, nf * 2),
    )


def fold_bn_only(p):
    s = p["gamma"] / jnp.sqrt(p["var"] + EPS)
    return s, p["beta"] - s * p["mean"]


def fold_conv_bn(p):
    s, shift = fold_bn_only(p)
    return p["w"] * s[None, None, :], shift


def _pack_conv(p):
    """Fold BN into conv, reshape weight to (ks*ci, co) per-tap layout."""
    w, b = fold_conv_bn(p)                       # (ks, ci, co), (co,)
    ks, ci, co = w.shape
    return (w.reshape(ks * ci, co).astype(MXU_DTYPE),
            b.reshape(1, co).astype(jnp.float32))


def _pack_params(params, c_in, nf):
    arrs = []
    # --- Block 1 ---
    for name in ("cb1", "cb2", "cb3"):
        w, b = _pack_conv(params["rb1"][name]); arrs += [w, b]
    # 1x1 shortcut zero-expanded to the first conv's im2col K (= ks1*c_in):
    # only the center-tap rows are nonzero, so it reads the original input.
    wsc, bsc = fold_conv_bn(params["rb1"]["sc"])            # (1, c_in, nf), (nf,)
    k1 = KSS[0]
    pad1 = k1 // 2
    wsc_exp = jnp.zeros((k1 * c_in, nf), jnp.float32)
    wsc_exp = wsc_exp.at[pad1 * c_in:(pad1 + 1) * c_in, :].set(wsc[0])
    arrs += [wsc_exp.astype(MXU_DTYPE), bsc.reshape(1, nf).astype(jnp.float32)]
    # --- Block 2 ---
    for name in ("cb1", "cb2", "cb3", "sc"):
        w, b = _pack_conv(params["rb2"][name]); arrs += [w, b]
    # --- Block 3 ---
    for name in ("cb1", "cb2", "cb3"):
        w, b = _pack_conv(params["rb3"][name]); arrs += [w, b]
    s, t = fold_bn_only(params["rb3"]["sc"])
    c = s.shape[0]
    arrs += [s.reshape(1, c).astype(jnp.float32), t.reshape(1, c).astype(jnp.float32)]
    return arrs


def _im2col(x, ks):
    """x: (N, L, ci) -> (N, L, ks*ci) for 'same' padding (XLA side, tiny)."""
    N, L, ci = x.shape
    pad = ks // 2
    xp = jnp.pad(x, ((0, 0), (pad, pad), (0, 0)))
    return jnp.concatenate([xp[:, k:k + L, :] for k in range(ks)], axis=-1)


# ---------------------------------------------------------------------------
# Fused forward (single pallas_call, jitted end to end)
# ---------------------------------------------------------------------------
def resnet_body_pallas(x_col, params, c_in, nf=64, b_tile=4):
    """x_col: (N, L, ks1*c_in) MXU_DTYPE (im2col'd input). Returns (N, L, 2nf) f32."""
    N, L, K1 = x_col.shape
    co_out = 2 * nf

    # Keep >=2 grid steps whenever N >= 2 so both v7x TensorCores get work.
    if N >= 2:
        b_tile = max(1, min(b_tile, N // 2))
    else:
        b_tile = 1
    n_pad = (-N) % b_tile
    if n_pad:
        x_col = jnp.concatenate(
            [x_col, jnp.zeros((n_pad, L, K1), x_col.dtype)], axis=0)
    Np = N + n_pad

    arrs = _pack_params(params, c_in, nf)

    # Advisory cost estimate for XLA's scheduler (matmul weights are the
    # MXU_DTYPE 2-D arrays packed at even indices 0..20).
    mm_k_co = sum(arrs[i].shape[0] * arrs[i].shape[1] for i in range(0, 22, 2))
    flops = int(2 * L * mm_k_co) * Np
    bytes_accessed = int(
        x_col.size * x_col.dtype.itemsize
        + Np * L * co_out * 4
        + sum(a.size * a.dtype.itemsize for a in arrs))

    in_specs = [pl.BlockSpec((b_tile, L, K1), lambda n: (n, 0, 0))]
    # Weights/biases: full-array blocks, constant index map -> fetched once,
    # not re-DMA'd per grid step.
    in_specs += [pl.BlockSpec(a.shape, lambda n: (0, 0)) for a in arrs]

    y = pl.pallas_call(
        _body_kernel,
        out_shape=jax.ShapeDtypeStruct((Np, L, co_out), jnp.float32),
        grid=(Np // b_tile,),
        in_specs=in_specs,
        out_specs=pl.BlockSpec((b_tile, L, co_out), lambda n: (n, 0, 0)),
        compiler_params=pltpu.CompilerParams(
            dimension_semantics=("parallel",),  # batch axis -> both TCs on v7x
        ),
        cost_estimate=pl.CostEstimate(flops=flops, transcendentals=0,
                                      bytes_accessed=bytes_accessed),
    )(x_col, *arrs)
    return y[:N]


@functools.partial(jax.jit, static_argnames=("c_in", "nf", "b_tile"))
def resnet_body_forward_ncl(x_ncl, params, *, c_in, nf=64, b_tile=4):
    """PyTorch-facing entry point: NCL in -> NCL out, one fused pallas_call."""
    x_nlc = jnp.transpose(x_ncl, (0, 2, 1))                 # NCL -> NLC (channels on lanes)
    # First conv's im2col (ci=4, ks=7 -> K=28) hoisted to XLA; bf16 for the MXU.
    x_col = _im2col(x_nlc.astype(MXU_DTYPE), KSS[0])
    y_nlc = resnet_body_pallas(x_col, params, c_in, nf, b_tile)
    return jnp.transpose(y_nlc, (0, 2, 1))                  # back to NCL


# ---------------------------------------------------------------------------
# Pure-JAX reference (same mixed precision: bf16 MXU inputs, f32 accumulate)
# ---------------------------------------------------------------------------
def conv_bn_ref(x, w_f, b_f, act):
    ks = w_f.shape[0]
    pad = ks // 2
    L = x.shape[1]
    xp = jnp.pad(x.astype(MXU_DTYPE), ((0, 0), (pad, pad), (0, 0)))
    w = w_f.astype(MXU_DTYPE)
    y = jnp.zeros((x.shape[0], L, w_f.shape[-1]), jnp.float32) + b_f[None, None, :]
    for k in range(ks):
        y = y + jnp.einsum("nlc,cd->nld", xp[:, k:k + L, :], w[k],
                           preferred_element_type=jnp.float32)
    return jnp.maximum(y, 0.0) if act else y


def resblock_ref(x, prm, ni, nf):
    w1, b1 = fold_conv_bn(prm["cb1"])
    w2, b2 = fold_conv_bn(prm["cb2"])
    w3, b3 = fold_conv_bn(prm["cb3"])
    h = conv_bn_ref(x, w1, b1, True)
    h = conv_bn_ref(h, w2, b2, True)
    h = conv_bn_ref(h, w3, b3, False)
    if ni == nf:
        s, b = fold_bn_only(prm["sc"])
        sc = x * s[None, None, :] + b[None, None, :]
    else:
        ws, bs = fold_conv_bn(prm["sc"])
        sc = conv_bn_ref(x, ws, bs, False)
    return jnp.maximum(h + sc, 0.0)


def resnet_body_ref(x_nlc, params, c_in, nf=64):
    x = resblock_ref(x_nlc, params["rb1"], c_in, nf)
    x = resblock_ref(x, params["rb2"], nf, nf * 2)
    x = resblock_ref(x, params["rb3"], nf * 2, nf * 2)
    return x


# ---------------------------------------------------------------------------
if __name__ == "__main__":
    key = jax.random.PRNGKey(0)
    kx, kp = jax.random.split(key)

    N, c_in, L = 8, 4, 64                       # PyTorch NCL input (N, C, L)
    x_ncl = jax.random.normal(kx, (N, c_in, L), jnp.float32)
    params = init_model(kp, c_in)

    out_ncl = resnet_body_forward_ncl(x_ncl, params, c_in=c_in)
    jax.block_until_ready(out_ncl)

    x_nlc = jnp.transpose(x_ncl, (0, 2, 1))
    ref_ncl = jnp.transpose(resnet_body_ref(x_nlc, params, c_in), (0, 2, 1))

    assert out_ncl.shape == (N, 128, L), out_ncl.shape
    np.testing.assert_allclose(np.asarray(out_ncl), np.asarray(ref_ncl),
                               rtol=2e-2, atol=2e-2)
    print("KERNEL_OK")
</pallas_src>

<mosaic_0001>
module attributes {stable_mosaic.version = 11 : i64} {
  func.func @_body_kernel(%arg0: i32, %arg1: memref<4x64x28xbf16, #tpu.memory_space<vmem>>, %arg2: memref<28x64xbf16, #tpu.memory_space<vmem>>, %arg3: memref<1x64xf32, #tpu.memory_space<vmem>>, %arg4: memref<320x64xbf16, #tpu.memory_space<vmem>>, %arg5: memref<1x64xf32, #tpu.memory_space<vmem>>, %arg6: memref<192x64xbf16, #tpu.memory_space<vmem>>, %arg7: memref<1x64xf32, #tpu.memory_space<vmem>>, %arg8: memref<28x64xbf16, #tpu.memory_space<vmem>>, %arg9: memref<1x64xf32, #tpu.memory_space<vmem>>, %arg10: memref<448x128xbf16, #tpu.memory_space<vmem>>, %arg11: memref<1x128xf32, #tpu.memory_space<vmem>>, %arg12: memref<640x128xbf16, #tpu.memory_space<vmem>>, %arg13: memref<1x128xf32, #tpu.memory_space<vmem>>, %arg14: memref<384x128xbf16, #tpu.memory_space<vmem>>, %arg15: memref<1x128xf32, #tpu.memory_space<vmem>>, %arg16: memref<64x128xbf16, #tpu.memory_space<vmem>>, %arg17: memref<1x128xf32, #tpu.memory_space<vmem>>, %arg18: memref<896x128xbf16, #tpu.memory_space<vmem>>, %arg19: memref<1x128xf32, #tpu.memory_space<vmem>>, %arg20: memref<640x128xbf16, #tpu.memory_space<vmem>>, %arg21: memref<1x128xf32, #tpu.memory_space<vmem>>, %arg22: memref<384x128xbf16, #tpu.memory_space<vmem>>, %arg23: memref<1x128xf32, #tpu.memory_space<vmem>>, %arg24: memref<1x128xf32, #tpu.memory_space<vmem>>, %arg25: memref<1x128xf32, #tpu.memory_space<vmem>>, %arg26: memref<4x64x128xf32, #tpu.memory_space<vmem>>) attributes {dimension_semantics = [#tpu.dimension_semantics<parallel>], iteration_bounds = array<i64: 2>, scalar_prefetch = 0 : i64, scratch_operands = 0 : i64, tpu.core_type = #tpu.core_type<tc>, window_params = [{transform_indices = @transform_0, window_bounds = array<i64: 4, 64, 28>}, {pipeline_mode = #tpu.pipeline_mode<synchronous>, transform_indices = @transform_1, window_bounds = array<i64: 28, 64>}, {pipeline_mode = #tpu.pipeline_mode<synchronous>, transform_indices = @transform_2, window_bounds = array<i64: 1, 64>}, {pipeline_mode = #tpu.pipeline_mode<synchronous>, transform_indices = @transform_3, window_bounds = array<i64: 320, 64>}, {pipeline_mode = #tpu.pipeline_mode<synchronous>, transform_indices = @transform_4, window_bounds = array<i64: 1, 64>}, {pipeline_mode = #tpu.pipeline_mode<synchronous>, transform_indices = @transform_5, window_bounds = array<i64: 192, 64>}, {pipeline_mode = #tpu.pipeline_mode<synchronous>, transform_indices = @transform_6, window_bounds = array<i64: 1, 64>}, {pipeline_mode = #tpu.pipeline_mode<synchronous>, transform_indices = @transform_7, window_bounds = array<i64: 28, 64>}, {pipeline_mode = #tpu.pipeline_mode<synchronous>, transform_indices = @transform_8, window_bounds = array<i64: 1, 64>}, {pipeline_mode = #tpu.pipeline_mode<synchronous>, transform_indices = @transform_9, window_bounds = array<i64: 448, 128>}, {pipeline_mode = #tpu.pipeline_mode<synchronous>, transform_indices = @transform_10, window_bounds = array<i64: 1, 128>}, {pipeline_mode = #tpu.pipeline_mode<synchronous>, transform_indices = @transform_11, window_bounds = array<i64: 640, 128>}, {pipeline_mode = #tpu.pipeline_mode<synchronous>, transform_indices = @transform_12, window_bounds = array<i64: 1, 128>}, {pipeline_mode = #tpu.pipeline_mode<synchronous>, transform_indices = @transform_13, window_bounds = array<i64: 384, 128>}, {pipeline_mode = #tpu.pipeline_mode<synchronous>, transform_indices = @transform_14, window_bounds = array<i64: 1, 128>}, {pipeline_mode = #tpu.pipeline_mode<synchronous>, transform_indices = @transform_15, window_bounds = array<i64: 64, 128>}, {pipeline_mode = #tpu.pipeline_mode<synchronous>, transform_indices = @transform_16, window_bounds = array<i64: 1, 128>}, {pipeline_mode = #tpu.pipeline_mode<synchronous>, transform_indices = @transform_17, window_bounds = array<i64: 896, 128>}, {pipeline_mode = #tpu.pipeline_mode<synchronous>, transform_indices = @transform_18, window_bounds = array<i64: 1, 128>}, {pipeline_mode = #tpu.pipeline_mode<synchronous>, transform_indices = @transform_19, window_bounds = array<i64: 640, 128>}, {pipeline_mode = #tpu.pipeline_mode<synchronous>, transform_indices = @transform_20, window_bounds = array<i64: 1, 128>}, {pipeline_mode = #tpu.pipeline_mode<synchronous>, transform_indices = @transform_21, window_bounds = array<i64: 384, 128>}, {pipeline_mode = #tpu.pipeline_mode<synchronous>, transform_indices = @transform_22, window_bounds = array<i64: 1, 128>}, {pipeline_mode = #tpu.pipeline_mode<synchronous>, transform_indices = @transform_23, window_bounds = array<i64: 1, 128>}, {pipeline_mode = #tpu.pipeline_mode<synchronous>, transform_indices = @transform_24, window_bounds = array<i64: 1, 128>}, {transform_indices = @transform_25, window_bounds = array<i64: 4, 64, 128>}]} {
    %c0 = arith.constant 0 : index
    %c0_0 = arith.constant 0 : index
    %c0_1 = arith.constant 0 : index
    %0 = vector.load %arg1[%c0, %c0_0, %c0_1] : memref<4x64x28xbf16, #tpu.memory_space<vmem>>, vector<4x64x28xbf16>
    %1 = vector.shape_cast %0 : vector<4x64x28xbf16> to vector<256x28xbf16>
    %c0_2 = arith.constant 0 : index
    %c0_3 = arith.constant 0 : index
    %2 = vector.load %arg2[%c0_2, %c0_3] : memref<28x64xbf16, #tpu.memory_space<vmem>>, vector<28x64xbf16>
    %cst = arith.constant dense<0.000000e+00> : vector<256x64xf32>
    %3 = tpu.matmul %1, %2, %cst {dimension_numbers = #tpu.dot_dimension_numbers<[1], [0], [0], [1], [0, 0, 1, 1], [], []>} : vector<256x28xbf16>, vector<28x64xbf16>, vector<256x64xf32> -> vector<256x64xf32>
    %c0_4 = arith.constant 0 : index
    %c0_5 = arith.constant 0 : index
    %4 = vector.load %arg3[%c0_4, %c0_5] : memref<1x64xf32, #tpu.memory_space<vmem>>, vector<1x64xf32>
    %5 = vector.broadcast %4 : vector<1x64xf32> to vector<256x64xf32>
    %6 = arith.addf %3, %5 : vector<256x64xf32>
    %cst_6 = arith.constant 0.000000e+00 : f32
    %7 = vector.broadcast %cst_6 : f32 to vector<256x64xf32>
    %8 = arith.maximumf %6, %7 : vector<256x64xf32>
    %9 = arith.truncf %8 : vector<256x64xf32> to vector<256x64xbf16>
    %10 = vector.shape_cast %9 : vector<256x64xbf16> to vector<4x64x64xbf16>
    %cst_7 = arith.constant 0.000000e+00 : bf16
    %11 = vector.broadcast %cst_7 : bf16 to vector<4x2x64xbf16>
    %12 = tpu.concatenate %11, %10, %11 in 1 : vector<4x2x64xbf16>, vector<4x64x64xbf16>, vector<4x2x64xbf16> -> vector<4x68x64xbf16>
    %cst_8 = arith.constant 0.000000e+00 : f32
    %13 = vector.broadcast %cst_8 : f32 to vector<256x64xf32>
    %14 = vector.extract_strided_slice %12 {offsets = [0, 0, 0], sizes = [4, 64, 64], strides = [1, 1, 1]} : vector<4x68x64xbf16> to vector<4x64x64xbf16>
    %15 = vector.shape_cast %14 : vector<4x64x64xbf16> to vector<256x64xbf16>
    %c0_9 = arith.constant 0 : index
    %c0_10 = arith.constant 0 : index
    %16 = vector.load %arg4[%c0_9, %c0_10] : memref<320x64xbf16, #tpu.memory_space<vmem>>, vector<64x64xbf16>
    %cst_11 = arith.constant dense<0.000000e+00> : vector<256x64xf32>
    %17 = tpu.matmul %15, %16, %cst_11 {dimension_numbers = #tpu.dot_dimension_numbers<[1], [0], [0], [1], [0, 0, 1, 1], [], []>} : vector<256x64xbf16>, vector<64x64xbf16>, vector<256x64xf32> -> vector<256x64xf32>
    %18 = arith.addf %13, %17 : vector<256x64xf32>
    %19 = vector.extract_strided_slice %12 {offsets = [0, 1, 0], sizes = [4, 64, 64], strides = [1, 1, 1]} : vector<4x68x64xbf16> to vector<4x64x64xbf16>
    %20 = vector.shape_cast %19 : vector<4x64x64xbf16> to vector<256x64xbf16>
    %c64 = arith.constant 64 : index
    %c0_12 = arith.constant 0 : index
    %21 = vector.load %arg4[%c64, %c0_12] : memref<320x64xbf16, #tpu.memory_space<vmem>>, vector<64x64xbf16>
    %cst_13 = arith.constant dense<0.000000e+00> : vector<256x64xf32>
    %22 = tpu.matmul %20, %21, %cst_13 {dimension_numbers = #tpu.dot_dimension_numbers<[1], [0], [0], [1], [0, 0, 1, 1], [], []>} : vector<256x64xbf16>, vector<64x64xbf16>, vector<256x64xf32> -> vector<256x64xf32>
    %23 = arith.addf %18, %22 : vector<256x64xf32>
    %24 = vector.extract_strided_slice %12 {offsets = [0, 2, 0], sizes = [4, 64, 64], strides = [1, 1, 1]} : vector<4x68x64xbf16> to vector<4x64x64xbf16>
    %25 = vector.shape_cast %24 : vector<4x64x64xbf16> to vector<256x64xbf16>
    %c128 = arith.constant 128 : index
    %c0_14 = arith.constant 0 : index
    %26 = vector.load %arg4[%c128, %c0_14] : memref<320x64xbf16, #tpu.memory_space<vmem>>, vector<64x64xbf16>
    %cst_15 = arith.constant dense<0.000000e+00> : vector<256x64xf32>
    %27 = tpu.matmul %25, %26, %cst_15 {dimension_numbers = #tpu.dot_dimension_numbers<[1], [0], [0], [1], [0, 0, 1, 1], [], []>} : vector<256x64xbf16>, vector<64x64xbf16>, vector<256x64xf32> -> vector<256x64xf32>
    %28 = arith.addf %23, %27 : vector<256x64xf32>
    %29 = vector.extract_strided_slice %12 {offsets = [0, 3, 0], sizes = [4, 64, 64], strides = [1, 1, 1]} : vector<4x68x64xbf16> to vector<4x64x64xbf16>
    %30 = vector.shape_cast %29 : vector<4x64x64xbf16> to vector<256x64xbf16>
    %c192 = arith.constant 192 : index
    %c0_16 = arith.constant 0 : index
    %31 = vector.load %arg4[%c192, %c0_16] : memref<320x64xbf16, #tpu.memory_space<vmem>>, vector<64x64xbf16>
    %cst_17 = arith.constant dense<0.000000e+00> : vector<256x64xf32>
    %32 = tpu.matmul %30, %31, %cst_17 {dimension_numbers = #tpu.dot_dimension_numbers<[1], [0], [0], [1], [0, 0, 1, 1], [], []>} : vector<256x64xbf16>, vector<64x64xbf16>, vector<256x64xf32> -> vector<256x64xf32>
    %33 = arith.addf %28, %32 : vector<256x64xf32>
    %34 = vector.extract_strided_slice %12 {offsets = [0, 4, 0], sizes = [4, 64, 64], strides = [1, 1, 1]} : vector<4x68x64xbf16> to vector<4x64x64xbf16>
    %35 = vector.shape_cast %34 : vector<4x64x64xbf16> to vector<256x64xbf16>
    %c256 = arith.constant 256 : index
    %c0_18 = arith.constant 0 : index
    %36 = vector.load %arg4[%c256, %c0_18] : memref<320x64xbf16, #tpu.memory_space<vmem>>, vector<64x64xbf16>
    %cst_19 = arith.constant dense<0.000000e+00> : vector<256x64xf32>
    %37 = tpu.matmul %35, %36, %cst_19 {dimension_numbers = #tpu.dot_dimension_numbers<[1], [0], [0], [1], [0, 0, 1, 1], [], []>} : vector<256x64xbf16>, vector<64x64xbf16>, vector<256x64xf32> -> vector<256x64xf32>
    %38 = arith.addf %33, %37 : vector<256x64xf32>
    %c0_20 = arith.constant 0 : index
    %c0_21 = arith.constant 0 : index
    %39 = vector.load %arg5[%c0_20, %c0_21] : memref<1x64xf32, #tpu.memory_space<vmem>>, vector<1x64xf32>
    %40 = vector.broadcast %39 : vector<1x64xf32> to vector<256x64xf32>
    %41 = arith.addf %38, %40 : vector<256x64xf32>
    %cst_22 = arith.constant 0.000000e+00 : f32
    %42 = vector.broadcast %cst_22 : f32 to vector<256x64xf32>
    %43 = arith.maximumf %41, %42 : vector<256x64xf32>
    %c0_23 = arith.constant 0 : index
    %c0_24 = arith.constant 0 : index
    %44 = vector.load %arg8[%c0_23, %c0_24] : memref<28x64xbf16, #tpu.memory_space<vmem>>, vector<28x64xbf16>
    %cst_25 = arith.constant dense<0.000000e+00> : vector<256x64xf32>
    %45 = tpu.matmul %1, %44, %cst_25 {dimension_numbers = #tpu.dot_dimension_numbers<[1], [0], [0], [1], [0, 0, 1, 1], [], []>} : vector<256x28xbf16>, vector<28x64xbf16>, vector<256x64xf32> -> vector<256x64xf32>
    %c0_26 = arith.constant 0 : index
    %c0_27 = arith.constant 0 : index
    %46 = vector.load %arg9[%c0_26, %c0_27] : memref<1x64xf32, #tpu.memory_space<vmem>>, vector<1x64xf32>
    %47 = vector.broadcast %46 : vector<1x64xf32> to vector<256x64xf32>
    %48 = arith.addf %45, %47 : vector<256x64xf32>
    %49 = arith.truncf %43 : vector<256x64xf32> to vector<256x64xbf16>
    %50 = vector.shape_cast %49 : vector<256x64xbf16> to vector<4x64x64xbf16>
    %cst_28 = arith.constant 0.000000e+00 : bf16
    %51 = vector.broadcast %cst_28 : bf16 to vector<4x1x64xbf16>
    %52 = tpu.concatenate %51, %50, %51 in 1 : vector<4x1x64xbf16>, vector<4x64x64xbf16>, vector<4x1x64xbf16> -> vector<4x66x64xbf16>
    %cst_29 = arith.constant 0.000000e+00 : f32
    %53 = vector.broadcast %cst_29 : f32 to vector<256x64xf32>
    %54 = vector.extract_strided_slice %52 {offsets = [0, 0, 0], sizes = [4, 64, 64], strides = [1, 1, 1]} : vector<4x66x64xbf16> to vector<4x64x64xbf16>
    %55 = vector.shape_cast %54 : vector<4x64x64xbf16> to vector<256x64xbf16>
    %c0_30 = arith.constant 0 : index
    %c0_31 = arith.constant 0 : index
    %56 = vector.load %arg6[%c0_30, %c0_31] : memref<192x64xbf16, #tpu.memory_space<vmem>>, vector<64x64xbf16>
    %cst_32 = arith.constant dense<0.000000e+00> : vector<256x64xf32>
    %57 = tpu.matmul %55, %56, %cst_32 {dimension_numbers = #tpu.dot_dimension_numbers<[1], [0], [0], [1], [0, 0, 1, 1], [], []>} : vector<256x64xbf16>, vector<64x64xbf16>, vector<256x64xf32> -> vector<256x64xf32>
    %58 = arith.addf %53, %57 : vector<256x64xf32>
    %59 = vector.extract_strided_slice %52 {offsets = [0, 1, 0], sizes = [4, 64, 64], strides = [1, 1, 1]} : vector<4x66x64xbf16> to vector<4x64x64xbf16>
    %60 = vector.shape_cast %59 : vector<4x64x64xbf16> to vector<256x64xbf16>
    %c64_33 = arith.constant 64 : index
    %c0_34 = arith.constant 0 : index
    %61 = vector.load %arg6[%c64_33, %c0_34] : memref<192x64xbf16, #tpu.memory_space<vmem>>, vector<64x64xbf16>
    %cst_35 = arith.constant dense<0.000000e+00> : vector<256x64xf32>
    %62 = tpu.matmul %60, %61, %cst_35 {dimension_numbers = #tpu.dot_dimension_numbers<[1], [0], [0], [1], [0, 0, 1, 1], [], []>} : vector<256x64xbf16>, vector<64x64xbf16>, vector<256x64xf32> -> vector<256x64xf32>
    %63 = arith.addf %58, %62 : vector<256x64xf32>
    %64 = vector.extract_strided_slice %52 {offsets = [0, 2, 0], sizes = [4, 64, 64], strides = [1, 1, 1]} : vector<4x66x64xbf16> to vector<4x64x64xbf16>
    %65 = vector.shape_cast %64 : vector<4x64x64xbf16> to vector<256x64xbf16>
    %c128_36 = arith.constant 128 : index
    %c0_37 = arith.constant 0 : index
    %66 = vector.load %arg6[%c128_36, %c0_37] : memref<192x64xbf16, #tpu.memory_space<vmem>>, vector<64x64xbf16>
    %cst_38 = arith.constant dense<0.000000e+00> : vector<256x64xf32>
    %67 = tpu.matmul %65, %66, %cst_38 {dimension_numbers = #tpu.dot_dimension_numbers<[1], [0], [0], [1], [0, 0, 1, 1], [], []>} : vector<256x64xbf16>, vector<64x64xbf16>, vector<256x64xf32> -> vector<256x64xf32>
    %68 = arith.addf %63, %67 : vector<256x64xf32>
    %c0_39 = arith.constant 0 : index
    %c0_40 = arith.constant 0 : index
    %69 = vector.load %arg7[%c0_39, %c0_40] : memref<1x64xf32, #tpu.memory_space<vmem>>, vector<1x64xf32>
    %70 = vector.broadcast %69 : vector<1x64xf32> to vector<256x64xf32>
    %71 = arith.addf %68, %70 : vector<256x64xf32>
    %72 = arith.addf %71, %48 : vector<256x64xf32>
    %cst_41 = arith.constant 0.000000e+00 : f32
    %73 = vector.broadcast %cst_41 : f32 to vector<256x64xf32>
    %74 = arith.maximumf %72, %73 : vector<256x64xf32>
    %75 = arith.truncf %74 : vector<256x64xf32> to vector<256x64xbf16>
    %76 = vector.shape_cast %75 : vector<256x64xbf16> to vector<4x64x64xbf16>
    %cst_42 = arith.constant 0.000000e+00 : bf16
    %77 = vector.broadcast %cst_42 : bf16 to vector<4x3x64xbf16>
    %78 = tpu.concatenate %77, %76, %77 in 1 : vector<4x3x64xbf16>, vector<4x64x64xbf16>, vector<4x3x64xbf16> -> vector<4x70x64xbf16>
    %cst_43 = arith.constant 0.000000e+00 : f32
    %79 = vector.broadcast %cst_43 : f32 to vector<256x128xf32>
    %80 = vector.extract_strided_slice %78 {offsets = [0, 0, 0], sizes = [4, 64, 64], strides = [1, 1, 1]} : vector<4x70x64xbf16> to vector<4x64x64xbf16>
    %81 = vector.shape_cast %80 : vector<4x64x64xbf16> to vector<256x64xbf16>
    %c0_44 = arith.constant 0 : index
    %c0_45 = arith.constant 0 : index
    %82 = vector.load %arg10[%c0_44, %c0_45] : memref<448x128xbf16, #tpu.memory_space<vmem>>, vector<64x128xbf16>
    %cst_46 = arith.constant dense<0.000000e+00> : vector<256x128xf32>
    %83 = tpu.matmul %81, %82, %cst_46 {dimension_numbers = #tpu.dot_dimension_numbers<[1], [0], [0], [1], [0, 0, 1, 1], [], []>} : vector<256x64xbf16>, vector<64x128xbf16>, vector<256x128xf32> -> vector<256x128xf32>
    %84 = arith.addf %79, %83 : vector<256x128xf32>
    %85 = vector.extract_strided_slice %78 {offsets = [0, 1, 0], sizes = [4, 64, 64], strides = [1, 1, 1]} : vector<4x70x64xbf16> to vector<4x64x64xbf16>
    %86 = vector.shape_cast %85 : vector<4x64x64xbf16> to vector<256x64xbf16>
    %c64_47 = arith.constant 64 : index
    %c0_48 = arith.constant 0 : index
    %87 = vector.load %arg10[%c64_47, %c0_48] : memref<448x128xbf16, #tpu.memory_space<vmem>>, vector<64x128xbf16>
    %cst_49 = arith.constant dense<0.000000e+00> : vector<256x128xf32>
    %88 = tpu.matmul %86, %87, %cst_49 {dimension_numbers = #tpu.dot_dimension_numbers<[1], [0], [0], [1], [0, 0, 1, 1], [], []>} : vector<256x64xbf16>, vector<64x128xbf16>, vector<256x128xf32> -> vector<256x128xf32>
    %89 = arith.addf %84, %88 : vector<256x128xf32>
    %90 = vector.extract_strided_slice %78 {offsets = [0, 2, 0], sizes = [4, 64, 64], strides = [1, 1, 1]} : vector<4x70x64xbf16> to vector<4x64x64xbf16>
    %91 = vector.shape_cast %90 : vector<4x64x64xbf16> to vector<256x64xbf16>
    %c128_50 = arith.constant 128 : index
    %c0_51 = arith.constant 0 : index
    %92 = vector.load %arg10[%c128_50, %c0_51] : memref<448x128xbf16, #tpu.memory_space<vmem>>, vector<64x128xbf16>
    %cst_52 = arith.constant dense<0.000000e+00> : vector<256x128xf32>
    %93 = tpu.matmul %91, %92, %cst_52 {dimension_numbers = #tpu.dot_dimension_numbers<[1], [0], [0], [1], [0, 0, 1, 1], [], []>} : vector<256x64xbf16>, vector<64x128xbf16>, vector<256x128xf32> -> vector<256x128xf32>
    %94 = arith.addf %89, %93 : vector<256x128xf32>
    %95 = vector.extract_strided_slice %78 {offsets = [0, 3, 0], sizes = [4, 64, 64], strides = [1, 1, 1]} : vector<4x70x64xbf16> to vector<4x64x64xbf16>
    %96 = vector.shape_cast %95 : vector<4x64x64xbf16> to vector<256x64xbf16>
    %c192_53 = arith.constant 192 : index
    %c0_54 = arith.constant 0 : index
    %97 = vector.load %arg10[%c192_53, %c0_54] : memref<448x128xbf16, #tpu.memory_space<vmem>>, vector<64x128xbf16>
    %cst_55 = arith.constant dense<0.000000e+00> : vector<256x128xf32>
    %98 = tpu.matmul %96, %97, %cst_55 {dimension_numbers = #tpu.dot_dimension_numbers<[1], [0], [0], [1], [0, 0, 1, 1], [], []>} : vector<256x64xbf16>, vector<64x128xbf16>, vector<256x128xf32> -> vector<256x128xf32>
    %99 = arith.addf %94, %98 : vector<256x128xf32>
    %100 = vector.extract_strided_slice %78 {offsets = [0, 4, 0], sizes = [4, 64, 64], strides = [1, 1, 1]} : vector<4x70x64xbf16> to vector<4x64x64xbf16>
    %101 = vector.shape_cast %100 : vector<4x64x64xbf16> to vector<256x64xbf16>
    %c256_56 = arith.constant 256 : index
    %c0_57 = arith.constant 0 : index
    %102 = vector.load %arg10[%c256_56, %c0_57] : memref<448x128xbf16, #tpu.memory_space<vmem>>, vector<64x128xbf16>
    %cst_58 = arith.constant dense<0.000000e+00> : vector<256x128xf32>
    %103 = tpu.matmul %101, %102, %cst_58 {dimension_numbers = #tpu.dot_dimension_numbers<[1], [0], [0], [1], [0, 0, 1, 1], [], []>} : vector<256x64xbf16>, vector<64x128xbf16>, vector<256x128xf32> -> vector<256x128xf32>
    %104 = arith.addf %99, %103 : vector<256x128xf32>
    %105 = vector.extract_strided_slice %78 {offsets = [0, 5, 0], sizes = [4, 64, 64], strides = [1, 1, 1]} : vector<4x70x64xbf16> to vector<4x64x64xbf16>
    %106 = vector.shape_cast %105 : vector<4x64x64xbf16> to vector<256x64xbf16>
    %c320 = arith.constant 320 : index
    %c0_59 = arith.constant 0 : index
    %107 = vector.load %arg10[%c320, %c0_59] : memref<448x128xbf16, #tpu.memory_space<vmem>>, vector<64x128xbf16>
    %cst_60 = arith.constant dense<0.000000e+00> : vector<256x128xf32>
    %108 = tpu.matmul %106, %107, %cst_60 {dimension_numbers = #tpu.dot_dimension_numbers<[1], [0], [0], [1], [0, 0, 1, 1], [], []>} : vector<256x64xbf16>, vector<64x128xbf16>, vector<256x128xf32> -> vector<256x128xf32>
    %109 = arith.addf %104, %108 : vector<256x128xf32>
    %110 = vector.extract_strided_slice %78 {offsets = [0, 6, 0], sizes = [4, 64, 64], strides = [1, 1, 1]} : vector<4x70x64xbf16> to vector<4x64x64xbf16>
    %111 = vector.shape_cast %110 : vector<4x64x64xbf16> to vector<256x64xbf16>
    %c384 = arith.constant 384 : index
    %c0_61 = arith.constant 0 : index
    %112 = vector.load %arg10[%c384, %c0_61] : memref<448x128xbf16, #tpu.memory_space<vmem>>, vector<64x128xbf16>
    %cst_62 = arith.constant dense<0.000000e+00> : vector<256x128xf32>
    %113 = tpu.matmul %111, %112, %cst_62 {dimension_numbers = #tpu.dot_dimension_numbers<[1], [0], [0], [1], [0, 0, 1, 1], [], []>} : vector<256x64xbf16>, vector<64x128xbf16>, vector<256x128xf32> -> vector<256x128xf32>
    %114 = arith.addf %109, %113 : vector<256x128xf32>
    %c0_63 = arith.constant 0 : index
    %c0_64 = arith.constant 0 : index
    %115 = vector.load %arg11[%c0_63, %c0_64] : memref<1x128xf32, #tpu.memory_space<vmem>>, vector<1x128xf32>
    %116 = vector.broadcast %115 : vector<1x128xf32> to vector<256x128xf32>
    %117 = arith.addf %114, %116 : vector<256x128xf32>
    %cst_65 = arith.constant 0.000000e+00 : f32
    %118 = vector.broadcast %cst_65 : f32 to vector<256x128xf32>
    %119 = arith.maximumf %117, %118 : vector<256x128xf32>
    %120 = arith.truncf %119 : vector<256x128xf32> to vector<256x128xbf16>
    %121 = vector.shape_cast %120 : vector<256x128xbf16> to vector<4x64x128xbf16>
    %cst_66 = arith.constant 0.000000e+00 : bf16
    %122 = vector.broadcast %cst_66 : bf16 to vector<4x2x128xbf16>
    %123 = tpu.concatenate %122, %121, %122 in 1 : vector<4x2x128xbf16>, vector<4x64x128xbf16>, vector<4x2x128xbf16> -> vector<4x68x128xbf16>
    %cst_67 = arith.constant 0.000000e+00 : f32
    %124 = vector.broadcast %cst_67 : f32 to vector<256x128xf32>
    %125 = vector.extract_strided_slice %123 {offsets = [0, 0, 0], sizes = [4, 64, 128], strides = [1, 1, 1]} : vector<4x68x128xbf16> to vector<4x64x128xbf16>
    %126 = vector.shape_cast %125 : vector<4x64x128xbf16> to vector<256x128xbf16>
    %c0_68 = arith.constant 0 : index
    %c0_69 = arith.constant 0 : index
    %127 = vector.load %arg12[%c0_68, %c0_69] : memref<640x128xbf16, #tpu.memory_space<vmem>>, vector<128x128xbf16>
    %cst_70 = arith.constant dense<0.000000e+00> : vector<256x128xf32>
    %128 = tpu.matmul %126, %127, %cst_70 {dimension_numbers = #tpu.dot_dimension_numbers<[1], [0], [0], [1], [0, 0, 1, 1], [], []>} : vector<256x128xbf16>, vector<128x128xbf16>, vector<256x128xf32> -> vector<256x128xf32>
    %129 = arith.addf %124, %128 : vector<256x128xf32>
    %130 = vector.extract_strided_slice %123 {offsets = [0, 1, 0], sizes = [4, 64, 128], strides = [1, 1, 1]} : vector<4x68x128xbf16> to vector<4x64x128xbf16>
    %131 = vector.shape_cast %130 : vector<4x64x128xbf16> to vector<256x128xbf16>
    %c128_71 = arith.constant 128 : index
    %c0_72 = arith.constant 0 : index
    %132 = vector.load %arg12[%c128_71, %c0_72] : memref<640x128xbf16, #tpu.memory_space<vmem>>, vector<128x128xbf16>
    %cst_73 = arith.constant dense<0.000000e+00> : vector<256x128xf32>
    %133 = tpu.matmul %131, %132, %cst_73 {dimension_numbers = #tpu.dot_dimension_numbers<[1], [0], [0], [1], [0, 0, 1, 1], [], []>} : vector<256x128xbf16>, vector<128x128xbf16>, vector<256x128xf32> -> vector<256x128xf32>
    %134 = arith.addf %129, %133 : vector<256x128xf32>
    %135 = vector.extract_strided_slice %123 {offsets = [0, 2, 0], sizes = [4, 64, 128], strides = [1, 1, 1]} : vector<4x68x128xbf16> to vector<4x64x128xbf16>
    %136 = vector.shape_cast %135 : vector<4x64x128xbf16> to vector<256x128xbf16>
    %c256_74 = arith.constant 256 : index
    %c0_75 = arith.constant 0 : index
    %137 = vector.load %arg12[%c256_74, %c0_75] : memref<640x128xbf16, #tpu.memory_space<vmem>>, vector<128x128xbf16>
    %cst_76 = arith.constant dense<0.000000e+00> : vector<256x128xf32>
    %138 = tpu.matmul %136, %137, %cst_76 {dimension_numbers = #tpu.dot_dimension_numbers<[1], [0], [0], [1], [0, 0, 1, 1], [], []>} : vector<256x128xbf16>, vector<128x128xbf16>, vector<256x128xf32> -> vector<256x128xf32>
    %139 = arith.addf %134, %138 : vector<256x128xf32>
    %140 = vector.extract_strided_slice %123 {offsets = [0, 3, 0], sizes = [4, 64, 128], strides = [1, 1, 1]} : vector<4x68x128xbf16> to vector<4x64x128xbf16>
    %141 = vector.shape_cast %140 : vector<4x64x128xbf16> to vector<256x128xbf16>
    %c384_77 = arith.constant 384 : index
    %c0_78 = arith.constant 0 : index
    %142 = vector.load %arg12[%c384_77, %c0_78] : memref<640x128xbf16, #tpu.memory_space<vmem>>, vector<128x128xbf16>
    %cst_79 = arith.constant dense<0.000000e+00> : vector<256x128xf32>
    %143 = tpu.matmul %141, %142, %cst_79 {dimension_numbers = #tpu.dot_dimension_numbers<[1], [0], [0], [1], [0, 0, 1, 1], [], []>} : vector<256x128xbf16>, vector<128x128xbf16>, vector<256x128xf32> -> vector<256x128xf32>
    %144 = arith.addf %139, %143 : vector<256x128xf32>
    %145 = vector.extract_strided_slice %123 {offsets = [0, 4, 0], sizes = [4, 64, 128], strides = [1, 1, 1]} : vector<4x68x128xbf16> to vector<4x64x128xbf16>
    %146 = vector.shape_cast %145 : vector<4x64x128xbf16> to vector<256x128xbf16>
    %c512 = arith.constant 512 : index
    %c0_80 = arith.constant 0 : index
    %147 = vector.load %arg12[%c512, %c0_80] : memref<640x128xbf16, #tpu.memory_space<vmem>>, vector<128x128xbf16>
    %cst_81 = arith.constant dense<0.000000e+00> : vector<256x128xf32>
    %148 = tpu.matmul %146, %147, %cst_81 {dimension_numbers = #tpu.dot_dimension_numbers<[1], [0], [0], [1], [0, 0, 1, 1], [], []>} : vector<256x128xbf16>, vector<128x128xbf16>, vector<256x128xf32> -> vector<256x128xf32>
    %149 = arith.addf %144, %148 : vector<256x128xf32>
    %c0_82 = arith.constant 0 : index
    %c0_83 = arith.constant 0 : index
    %150 = vector.load %arg13[%c0_82, %c0_83] : memref<1x128xf32, #tpu.memory_space<vmem>>, vector<1x128xf32>
    %151 = vector.broadcast %150 : vector<1x128xf32> to vector<256x128xf32>
    %152 = arith.addf %149, %151 : vector<256x128xf32>
    %cst_84 = arith.constant 0.000000e+00 : f32
    %153 = vector.broadcast %cst_84 : f32 to vector<256x128xf32>
    %154 = arith.maximumf %152, %153 : vector<256x128xf32>
    %155 = arith.truncf %74 : vector<256x64xf32> to vector<256x64xbf16>
    %c0_85 = arith.constant 0 : index
    %c0_86 = arith.constant 0 : index
    %156 = vector.load %arg16[%c0_85, %c0_86] : memref<64x128xbf16, #tpu.memory_space<vmem>>, vector<64x128xbf16>
    %cst_87 = arith.constant dense<0.000000e+00> : vector<256x128xf32>
    %157 = tpu.matmul %155, %156, %cst_87 {dimension_numbers = #tpu.dot_dimension_numbers<[1], [0], [0], [1], [0, 0, 1, 1], [], []>} : vector<256x64xbf16>, vector<64x128xbf16>, vector<256x128xf32> -> vector<256x128xf32>
    %c0_88 = arith.constant 0 : index
    %c0_89 = arith.constant 0 : index
    %158 = vector.load %arg17[%c0_88, %c0_89] : memref<1x128xf32, #tpu.memory_space<vmem>>, vector<1x128xf32>
    %159 = vector.broadcast %158 : vector<1x128xf32> to vector<256x128xf32>
    %160 = arith.addf %157, %159 : vector<256x128xf32>
    %161 = arith.truncf %154 : vector<256x128xf32> to vector<256x128xbf16>
    %162 = vector.shape_cast %161 : vector<256x128xbf16> to vector<4x64x128xbf16>
    %cst_90 = arith.constant 0.000000e+00 : bf16
    %163 = vector.broadcast %cst_90 : bf16 to vector<4x1x128xbf16>
    %164 = tpu.concatenate %163, %162, %163 in 1 : vector<4x1x128xbf16>, vector<4x64x128xbf16>, vector<4x1x128xbf16> -> vector<4x66x128xbf16>
    %cst_91 = arith.constant 0.000000e+00 : f32
    %165 = vector.broadcast %cst_91 : f32 to vector<256x128xf32>
    %166 = vector.extract_strided_slice %164 {offsets = [0, 0, 0], sizes = [4, 64, 128], strides = [1, 1, 1]} : vector<4x66x128xbf16> to vector<4x64x128xbf16>
    %167 = vector.shape_cast %166 : vector<4x64x128xbf16> to vector<256x128xbf16>
    %c0_92 = arith.constant 0 : index
    %c0_93 = arith.constant 0 : index
    %168 = vector.load %arg14[%c0_92, %c0_93] : memref<384x128xbf16, #tpu.memory_space<vmem>>, vector<128x128xbf16>
    %cst_94 = arith.constant dense<0.000000e+00> : vector<256x128xf32>
    %169 = tpu.matmul %167, %168, %cst_94 {dimension_numbers = #tpu.dot_dimension_numbers<[1], [0], [0], [1], [0, 0, 1, 1], [], []>} : vector<256x128xbf16>, vector<128x128xbf16>, vector<256x128xf32> -> vector<256x128xf32>
    %170 = arith.addf %165, %169 : vector<256x128xf32>
    %171 = vector.extract_strided_slice %164 {offsets = [0, 1, 0], sizes = [4, 64, 128], strides = [1, 1, 1]} : vector<4x66x128xbf16> to vector<4x64x128xbf16>
    %172 = vector.shape_cast %171 : vector<4x64x128xbf16> to vector<256x128xbf16>
    %c128_95 = arith.constant 128 : index
    %c0_96 = arith.constant 0 : index
    %173 = vector.load %arg14[%c128_95, %c0_96] : memref<384x128xbf16, #tpu.memory_space<vmem>>, vector<128x128xbf16>
    %cst_97 = arith.constant dense<0.000000e+00> : vector<256x128xf32>
    %174 = tpu.matmul %172, %173, %cst_97 {dimension_numbers = #tpu.dot_dimension_numbers<[1], [0], [0], [1], [0, 0, 1, 1], [], []>} : vector<256x128xbf16>, vector<128x128xbf16>, vector<256x128xf32> -> vector<256x128xf32>
    %175 = arith.addf %170, %174 : vector<256x128xf32>
    %176 = vector.extract_strided_slice %164 {offsets = [0, 2, 0], sizes = [4, 64, 128], strides = [1, 1, 1]} : vector<4x66x128xbf16> to vector<4x64x128xbf16>
    %177 = vector.shape_cast %176 : vector<4x64x128xbf16> to vector<256x128xbf16>
    %c256_98 = arith.constant 256 : index
    %c0_99 = arith.constant 0 : index
    %178 = vector.load %arg14[%c256_98, %c0_99] : memref<384x128xbf16, #tpu.memory_space<vmem>>, vector<128x128xbf16>
    %cst_100 = arith.constant dense<0.000000e+00> : vector<256x128xf32>
    %179 = tpu.matmul %177, %178, %cst_100 {dimension_numbers = #tpu.dot_dimension_numbers<[1], [0], [0], [1], [0, 0, 1, 1], [], []>} : vector<256x128xbf16>, vector<128x128xbf16>, vector<256x128xf32> -> vector<256x128xf32>
    %180 = arith.addf %175, %179 : vector<256x128xf32>
    %c0_101 = arith.constant 0 : index
    %c0_102 = arith.constant 0 : index
    %181 = vector.load %arg15[%c0_101, %c0_102] : memref<1x128xf32, #tpu.memory_space<vmem>>, vector<1x128xf32>
    %182 = vector.broadcast %181 : vector<1x128xf32> to vector<256x128xf32>
    %183 = arith.addf %180, %182 : vector<256x128xf32>
    %184 = arith.addf %183, %160 : vector<256x128xf32>
    %cst_103 = arith.constant 0.000000e+00 : f32
    %185 = vector.broadcast %cst_103 : f32 to vector<256x128xf32>
    %186 = arith.maximumf %184, %185 : vector<256x128xf32>
    %187 = arith.truncf %186 : vector<256x128xf32> to vector<256x128xbf16>
    %188 = vector.shape_cast %187 : vector<256x128xbf16> to vector<4x64x128xbf16>
    %cst_104 = arith.constant 0.000000e+00 : bf16
    %189 = vector.broadcast %cst_104 : bf16 to vector<4x3x128xbf16>
    %190 = tpu.concatenate %189, %188, %189 in 1 : vector<4x3x128xbf16>, vector<4x64x128xbf16>, vector<4x3x128xbf16> -> vector<4x70x128xbf16>
    %cst_105 = arith.constant 0.000000e+00 : f32
    %191 = vector.broadcast %cst_105 : f32 to vector<256x128xf32>
    %192 = vector.extract_strided_slice %190 {offsets = [0, 0, 0], sizes = [4, 64, 128], strides = [1, 1, 1]} : vector<4x70x128xbf16> to vector<4x64x128xbf16>
    %193 = vector.shape_cast %192 : vector<4x64x128xbf16> to vector<256x128xbf16>
    %c0_106 = arith.constant 0 : index
    %c0_107 = arith.constant 0 : index
    %194 = vector.load %arg18[%c0_106, %c0_107] : memref<896x128xbf16, #tpu.memory_space<vmem>>, vector<128x128xbf16>
    %cst_108 = arith.constant dense<0.000000e+00> : vector<256x128xf32>
    %195 = tpu.matmul %193, %194, %cst_108 {dimension_numbers = #tpu.dot_dimension_numbers<[1], [0], [0], [1], [0, 0, 1, 1], [], []>} : vector<256x128xbf16>, vector<128x128xbf16>, vector<256x128xf32> -> vector<256x128xf32>
    %196 = arith.addf %191, %195 : vector<256x128xf32>
    %197 = vector.extract_strided_slice %190 {offsets = [0, 1, 0], sizes = [4, 64, 128], strides = [1, 1, 1]} : vector<4x70x128xbf16> to vector<4x64x128xbf16>
    %198 = vector.shape_cast %197 : vector<4x64x128xbf16> to vector<256x128xbf16>
    %c128_109 = arith.constant 128 : index
    %c0_110 = arith.constant 0 : index
    %199 = vector.load %arg18[%c128_109, %c0_110] : memref<896x128xbf16, #tpu.memory_space<vmem>>, vector<128x128xbf16>
    %cst_111 = arith.constant dense<0.000000e+00> : vector<256x128xf32>
    %200 = tpu.matmul %198, %199, %cst_111 {dimension_numbers = #tpu.dot_dimension_numbers<[1], [0], [0], [1], [0, 0, 1, 1], [], []>} : vector<256x128xbf16>, vector<128x128xbf16>, vector<256x128xf32> -> vector<256x128xf32>
    %201 = arith.addf %196, %200 : vector<256x128xf32>
    %202 = vector.extract_strided_slice %190 {offsets = [0, 2, 0], sizes = [4, 64, 128], strides = [1, 1, 1]} : vector<4x70x128xbf16> to vector<4x64x128xbf16>
    %203 = vector.shape_cast %202 : vector<4x64x128xbf16> to vector<256x128xbf16>
    %c256_112 = arith.constant 256 : index
    %c0_113 = arith.constant 0 : index
    %204 = vector.load %arg18[%c256_112, %c0_113] : memref<896x128xbf16, #tpu.memory_space<vmem>>, vector<128x128xbf16>
    %cst_114 = arith.constant dense<0.000000e+00> : vector<256x128xf32>
    %205 = tpu.matmul %203, %204, %cst_114 {dimension_numbers = #tpu.dot_dimension_numbers<[1], [0], [0], [1], [0, 0, 1, 1], [], []>} : vector<256x128xbf16>, vector<128x128xbf16>, vector<256x128xf32> -> vector<256x128xf32>
    %206 = arith.addf %201, %205 : vector<256x128xf32>
    %207 = vector.extract_strided_slice %190 {offsets = [0, 3, 0], sizes = [4, 64, 128], strides = [1, 1, 1]} : vector<4x70x128xbf16> to vector<4x64x128xbf16>
    %208 = vector.shape_cast %207 : vector<4x64x128xbf16> to vector<256x128xbf16>
    %c384_115 = arith.constant 384 : index
    %c0_116 = arith.constant 0 : index
    %209 = vector.load %arg18[%c384_115, %c0_116] : memref<896x128xbf16, #tpu.memory_space<vmem>>, vector<128x128xbf16>
    %cst_117 = arith.constant dense<0.000000e+00> : vector<256x128xf32>
    %210 = tpu.matmul %208, %209, %cst_117 {dimension_numbers = #tpu.dot_dimension_numbers<[1], [0], [0], [1], [0, 0, 1, 1], [], []>} : vector<256x128xbf16>, vector<128x128xbf16>, vector<256x128xf32> -> vector<256x128xf32>
    %211 = arith.addf %206, %210 : vector<256x128xf32>
    %212 = vector.extract_strided_slice %190 {offsets = [0, 4, 0], sizes = [4, 64, 128], strides = [1, 1, 1]} : vector<4x70x128xbf16> to vector<4x64x128xbf16>
    %213 = vector.shape_cast %212 : vector<4x64x128xbf16> to vector<256x128xbf16>
    %c512_118 = arith.constant 512 : index
    %c0_119 = arith.constant 0 : index
    %214 = vector.load %arg18[%c512_118, %c0_119] : memref<896x128xbf16, #tpu.memory_space<vmem>>, vector<128x128xbf16>
    %cst_120 = arith.constant dense<0.000000e+00> : vector<256x128xf32>
    %215 = tpu.matmul %213, %214, %cst_120 {dimension_numbers = #tpu.dot_dimension_numbers<[1], [0], [0], [1], [0, 0, 1, 1], [], []>} : vector<256x128xbf16>, vector<128x128xbf16>, vector<256x128xf32> -> vector<256x128xf32>
    %216 = arith.addf %211, %215 : vector<256x128xf32>
    %217 = vector.extract_strided_slice %190 {offsets = [0, 5, 0], sizes = [4, 64, 128], strides = [1, 1, 1]} : vector<4x70x128xbf16> to vector<4x64x128xbf16>
    %218 = vector.shape_cast %217 : vector<4x64x128xbf16> to vector<256x128xbf16>
    %c640 = arith.constant 640 : index
    %c0_121 = arith.constant 0 : index
    %219 = vector.load %arg18[%c640, %c0_121] : memref<896x128xbf16, #tpu.memory_space<vmem>>, vector<128x128xbf16>
    %cst_122 = arith.constant dense<0.000000e+00> : vector<256x128xf32>
    %220 = tpu.matmul %218, %219, %cst_122 {dimension_numbers = #tpu.dot_dimension_numbers<[1], [0], [0], [1], [0, 0, 1, 1], [], []>} : vector<256x128xbf16>, vector<128x128xbf16>, vector<256x128xf32> -> vector<256x128xf32>
    %221 = arith.addf %216, %220 : vector<256x128xf32>
    %222 = vector.extract_strided_slice %190 {offsets = [0, 6, 0], sizes = [4, 64, 128], strides = [1, 1, 1]} : vector<4x70x128xbf16> to vector<4x64x128xbf16>
    %223 = vector.shape_cast %222 : vector<4x64x128xbf16> to vector<256x128xbf16>
    %c768 = arith.constant 768 : index
    %c0_123 = arith.constant 0 : index
    %224 = vector.load %arg18[%c768, %c0_123] : memref<896x128xbf16, #tpu.memory_space<vmem>>, vector<128x128xbf16>
    %cst_124 = arith.constant dense<0.000000e+00> : vector<256x128xf32>
    %225 = tpu.matmul %223, %224, %cst_124 {dimension_numbers = #tpu.dot_dimension_numbers<[1], [0], [0], [1], [0, 0, 1, 1], [], []>} : vector<256x128xbf16>, vector<128x128xbf16>, vector<256x128xf32> -> vector<256x128xf32>
    %226 = arith.addf %221, %225 : vector<256x128xf32>
    %c0_125 = arith.constant 0 : index
    %c0_126 = arith.constant 0 : index
    %227 = vector.load %arg19[%c0_125, %c0_126] : memref<1x128xf32, #tpu.memory_space<vmem>>, vector<1x128xf32>
    %228 = vector.broadcast %227 : vector<1x128xf32> to vector<256x128xf32>
    %229 = arith.addf %226, %228 : vector<256x128xf32>
    %cst_127 = arith.constant 0.000000e+00 : f32
    %230 = vector.broadcast %cst_127 : f32 to vector<256x128xf32>
    %231 = arith.maximumf %229, %230 : vector<256x128xf32>
    %232 = arith.truncf %231 : vector<256x128xf32> to vector<256x128xbf16>
    %233 = vector.shape_cast %232 : vector<256x128xbf16> to vector<4x64x128xbf16>
    %cst_128 = arith.constant 0.000000e+00 : bf16
    %234 = vector.broadcast %cst_128 : bf16 to vector<4x2x128xbf16>
    %235 = tpu.concatenate %234, %233, %234 in 1 : vector<4x2x128xbf16>, vector<4x64x128xbf16>, vector<4x2x128xbf16> -> vector<4x68x128xbf16>
    %cst_129 = arith.constant 0.000000e+00 : f32
    %236 = vector.broadcast %cst_129 : f32 to vector<256x128xf32>
    %237 = vector.extract_strided_slice %235 {offsets = [0, 0, 0], sizes = [4, 64, 128], strides = [1, 1, 1]} : vector<4x68x128xbf16> to vector<4x64x128xbf16>
    %238 = vector.shape_cast %237 : vector<4x64x128xbf16> to vector<256x128xbf16>
    %c0_130 = arith.constant 0 : index
    %c0_131 = arith.constant 0 : index
    %239 = vector.load %arg20[%c0_130, %c0_131] : memref<640x128xbf16, #tpu.memory_space<vmem>>, vector<128x128xbf16>
    %cst_132 = arith.constant dense<0.000000e+00> : vector<256x128xf32>
    %240 = tpu.matmul %238, %239, %cst_132 {dimension_numbers = #tpu.dot_dimension_numbers<[1], [0], [0], [1], [0, 0, 1, 1], [], []>} : vector<256x128xbf16>, vector<128x128xbf16>, vector<256x128xf32> -> vector<256x128xf32>
    %241 = arith.addf %236, %240 : vector<256x128xf32>
    %242 = vector.extract_strided_slice %235 {offsets = [0, 1, 0], sizes = [4, 64, 128], strides = [1, 1, 1]} : vector<4x68x128xbf16> to vector<4x64x128xbf16>
    %243 = vector.shape_cast %242 : vector<4x64x128xbf16> to vector<256x128xbf16>
    %c128_133 = arith.constant 128 : index
    %c0_134 = arith.constant 0 : index
    %244 = vector.load %arg20[%c128_133, %c0_134] : memref<640x128xbf16, #tpu.memory_space<vmem>>, vector<128x128xbf16>
    %cst_135 = arith.constant dense<0.000000e+00> : vector<256x128xf32>
    %245 = tpu.matmul %243, %244, %cst_135 {dimension_numbers = #tpu.dot_dimension_numbers<[1], [0], [0], [1], [0, 0, 1, 1], [], []>} : vector<256x128xbf16>, vector<128x128xbf16>, vector<256x128xf32> -> vector<256x128xf32>
    %246 = arith.addf %241, %245 : vector<256x128xf32>
    %247 = vector.extract_strided_slice %235 {offsets = [0, 2, 0], sizes = [4, 64, 128], strides = [1, 1, 1]} : vector<4x68x128xbf16> to vector<4x64x128xbf16>
    %248 = vector.shape_cast %247 : vector<4x64x128xbf16> to vector<256x128xbf16>
    %c256_136 = arith.constant 256 : index
    %c0_137 = arith.constant 0 : index
    %249 = vector.load %arg20[%c256_136, %c0_137] : memref<640x128xbf16, #tpu.memory_space<vmem>>, vector<128x128xbf16>
    %cst_138 = arith.constant dense<0.000000e+00> : vector<256x128xf32>
    %250 = tpu.matmul %248, %249, %cst_138 {dimension_numbers = #tpu.dot_dimension_numbers<[1], [0], [0], [1], [0, 0, 1, 1], [], []>} : vector<256x128xbf16>, vector<128x128xbf16>, vector<256x128xf32> -> vector<256x128xf32>
    %251 = arith.addf %246, %250 : vector<256x128xf32>
    %252 = vector.extract_strided_slice %235 {offsets = [0, 3, 0], sizes = [4, 64, 128], strides = [1, 1, 1]} : vector<4x68x128xbf16> to vector<4x64x128xbf16>
    %253 = vector.shape_cast %252 : vector<4x64x128xbf16> to vector<256x128xbf16>
    %c384_139 = arith.constant 384 : index
    %c0_140 = arith.constant 0 : index
    %254 = vector.load %arg20[%c384_139, %c0_140] : memref<640x128xbf16, #tpu.memory_space<vmem>>, vector<128x128xbf16>
    %cst_141 = arith.constant dense<0.000000e+00> : vector<256x128xf32>
    %255 = tpu.matmul %253, %254, %cst_141 {dimension_numbers = #tpu.dot_dimension_numbers<[1], [0], [0], [1], [0, 0, 1, 1], [], []>} : vector<256x128xbf16>, vector<128x128xbf16>, vector<256x128xf32> -> vector<256x128xf32>
    %256 = arith.addf %251, %255 : vector<256x128xf32>
    %257 = vector.extract_strided_slice %235 {offsets = [0, 4, 0], sizes = [4, 64, 128], strides = [1, 1, 1]} : vector<4x68x128xbf16> to vector<4x64x128xbf16>
    %258 = vector.shape_cast %257 : vector<4x64x128xbf16> to vector<256x128xbf16>
    %c512_142 = arith.constant 512 : index
    %c0_143 = arith.constant 0 : index
    %259 = vector.load %arg20[%c512_142, %c0_143] : memref<640x128xbf16, #tpu.memory_space<vmem>>, vector<128x128xbf16>
    %cst_144 = arith.constant dense<0.000000e+00> : vector<256x128xf32>
    %260 = tpu.matmul %258, %259, %cst_144 {dimension_numbers = #tpu.dot_dimension_numbers<[1], [0], [0], [1], [0, 0, 1, 1], [], []>} : vector<256x128xbf16>, vector<128x128xbf16>, vector<256x128xf32> -> vector<256x128xf32>
    %261 = arith.addf %256, %260 : vector<256x128xf32>
    %c0_145 = arith.constant 0 : index
    %c0_146 = arith.constant 0 : index
    %262 = vector.load %arg21[%c0_145, %c0_146] : memref<1x128xf32, #tpu.memory_space<vmem>>, vector<1x128xf32>
    %263 = vector.broadcast %262 : vector<1x128xf32> to vector<256x128xf32>
    %264 = arith.addf %261, %263 : vector<256x128xf32>
    %cst_147 = arith.constant 0.000000e+00 : f32
    %265 = vector.broadcast %cst_147 : f32 to vector<256x128xf32>
    %266 = arith.maximumf %264, %265 : vector<256x128xf32>
    %c0_148 = arith.constant 0 : index
    %c0_149 = arith.constant 0 : index
    %267 = vector.load %arg24[%c0_148, %c0_149] : memref<1x128xf32, #tpu.memory_space<vmem>>, vector<1x128xf32>
    %268 = vector.broadcast %267 : vector<1x128xf32> to vector<256x128xf32>
    %269 = arith.mulf %186, %268 : vector<256x128xf32>
    %c0_150 = arith.constant 0 : index
    %c0_151 = arith.constant 0 : index
    %270 = vector.load %arg25[%c0_150, %c0_151] : memref<1x128xf32, #tpu.memory_space<vmem>>, vector<1x128xf32>
    %271 = vector.broadcast %270 : vector<1x128xf32> to vector<256x128xf32>
    %272 = arith.addf %269, %271 : vector<256x128xf32>
    %273 = arith.truncf %266 : vector<256x128xf32> to vector<256x128xbf16>
    %274 = vector.shape_cast %273 : vector<256x128xbf16> to vector<4x64x128xbf16>
    %cst_152 = arith.constant 0.000000e+00 : bf16
    %275 = vector.broadcast %cst_152 : bf16 to vector<4x1x128xbf16>
    %276 = tpu.concatenate %275, %274, %275 in 1 : vector<4x1x128xbf16>, vector<4x64x128xbf16>, vector<4x1x128xbf16> -> vector<4x66x128xbf16>
    %cst_153 = arith.constant 0.000000e+00 : f32
    %277 = vector.broadcast %cst_153 : f32 to vector<256x128xf32>
    %278 = vector.extract_strided_slice %276 {offsets = [0, 0, 0], sizes = [4, 64, 128], strides = [1, 1, 1]} : vector<4x66x128xbf16> to vector<4x64x128xbf16>
    %279 = vector.shape_cast %278 : vector<4x64x128xbf16> to vector<256x128xbf16>
    %c0_154 = arith.constant 0 : index
    %c0_155 = arith.constant 0 : index
    %280 = vector.load %arg22[%c0_154, %c0_155] : memref<384x128xbf16, #tpu.memory_space<vmem>>, vector<128x128xbf16>
    %cst_156 = arith.constant dense<0.000000e+00> : vector<256x128xf32>
    %281 = tpu.matmul %279, %280, %cst_156 {dimension_numbers = #tpu.dot_dimension_numbers<[1], [0], [0], [1], [0, 0, 1, 1], [], []>} : vector<256x128xbf16>, vector<128x128xbf16>, vector<256x128xf32> -> vector<256x128xf32>
    %282 = arith.addf %277, %281 : vector<256x128xf32>
    %283 = vector.extract_strided_slice %276 {offsets = [0, 1, 0], sizes = [4, 64, 128], strides = [1, 1, 1]} : vector<4x66x128xbf16> to vector<4x64x128xbf16>
    %284 = vector.shape_cast %283 : vector<4x64x128xbf16> to vector<256x128xbf16>
    %c128_157 = arith.constant 128 : index
    %c0_158 = arith.constant 0 : index
    %285 = vector.load %arg22[%c128_157, %c0_158] : memref<384x128xbf16, #tpu.memory_space<vmem>>, vector<128x128xbf16>
    %cst_159 = arith.constant dense<0.000000e+00> : vector<256x128xf32>
    %286 = tpu.matmul %284, %285, %cst_159 {dimension_numbers = #tpu.dot_dimension_numbers<[1], [0], [0], [1], [0, 0, 1, 1], [], []>} : vector<256x128xbf16>, vector<128x128xbf16>, vector<256x128xf32> -> vector<256x128xf32>
    %287 = arith.addf %282, %286 : vector<256x128xf32>
    %288 = vector.extract_strided_slice %276 {offsets = [0, 2, 0], sizes = [4, 64, 128], strides = [1, 1, 1]} : vector<4x66x128xbf16> to vector<4x64x128xbf16>
    %289 = vector.shape_cast %288 : vector<4x64x128xbf16> to vector<256x128xbf16>
    %c256_160 = arith.constant 256 : index
    %c0_161 = arith.constant 0 : index
    %290 = vector.load %arg22[%c256_160, %c0_161] : memref<384x128xbf16, #tpu.memory_space<vmem>>, vector<128x128xbf16>
    %cst_162 = arith.constant dense<0.000000e+00> : vector<256x128xf32>
    %291 = tpu.matmul %289, %290, %cst_162 {dimension_numbers = #tpu.dot_dimension_numbers<[1], [0], [0], [1], [0, 0, 1, 1], [], []>} : vector<256x128xbf16>, vector<128x128xbf16>, vector<256x128xf32> -> vector<256x128xf32>
    %292 = arith.addf %287, %291 : vector<256x128xf32>
    %c0_163 = arith.constant 0 : index
    %c0_164 = arith.constant 0 : index
    %293 = vector.load %arg23[%c0_163, %c0_164] : memref<1x128xf32, #tpu.memory_space<vmem>>, vector<1x128xf32>
    %294 = vector.broadcast %293 : vector<1x128xf32> to vector<256x128xf32>
    %295 = arith.addf %292, %294 : vector<256x128xf32>
    %296 = arith.addf %295, %272 : vector<256x128xf32>
    %cst_165 = arith.constant 0.000000e+00 : f32
    %297 = vector.broadcast %cst_165 : f32 to vector<256x128xf32>
    %298 = arith.maximumf %296, %297 : vector<256x128xf32>
    %299 = vector.shape_cast %298 : vector<256x128xf32> to vector<4x64x128xf32>
    %c0_166 = arith.constant 0 : index
    %c0_167 = arith.constant 0 : index
    %c0_168 = arith.constant 0 : index
    %300 = vector.load %arg26[%c0_166, %c0_167, %c0_168] : memref<4x64x128xf32, #tpu.memory_space<vmem>>, vector<4x64x128xf32>
    tpu.vector_store %arg26[%c0_166, %c0_167, %c0_168], %299 {strides = array<i32>} : memref<4x64x128xf32, #tpu.memory_space<vmem>>, vector<4x64x128xf32>,
    return
  }
  func.func @transform_0(%arg0: i32) -> (i32, i32, i32) {
    %c0_i32 = arith.constant 0 : i32
    %c0_i32_0 = arith.constant 0 : i32
    %c0_i32_1 = arith.constant 0 : i32
    return %arg0, %c0_i32, %c0_i32_0 : i32, i32, i32
  }
  func.func @transform_1(%arg0: i32) -> (i32, i32) {
    %c0_i32 = arith.constant 0 : i32
    %c0_i32_0 = arith.constant 0 : i32
    %c0_i32_1 = arith.constant 0 : i32
    return %c0_i32, %c0_i32_0 : i32, i32
  }
  func.func @transform_2(%arg0: i32) -> (i32, i32) {
    %c0_i32 = arith.constant 0 : i32
    %c0_i32_0 = arith.constant 0 : i32
    %c0_i32_1 = arith.constant 0 : i32
    return %c0_i32, %c0_i32_0 : i32, i32
  }
  func.func @transform_3(%arg0: i32) -> (i32, i32) {
    %c0_i32 = arith.constant 0 : i32
    %c0_i32_0 = arith.constant 0 : i32
    %c0_i32_1 = arith.constant 0 : i32
    return %c0_i32, %c0_i32_0 : i32, i32
  }
  func.func @transform_4(%arg0: i32) -> (i32, i32) {
    %c0_i32 = arith.constant 0 : i32
    %c0_i32_0 = arith.constant 0 : i32
    %c0_i32_1 = arith.constant 0 : i32
    return %c0_i32, %c0_i32_0 : i32, i32
  }
  func.func @transform_5(%arg0: i32) -> (i32, i32) {
    %c0_i32 = arith.constant 0 : i32
    %c0_i32_0 = arith.constant 0 : i32
    %c0_i32_1 = arith.constant 0 : i32
    return %c0_i32, %c0_i32_0 : i32, i32
  }
  func.func @transform_6(%arg0: i32) -> (i32, i32) {
    %c0_i32 = arith.constant 0 : i32
    %c0_i32_0 = arith.constant 0 : i32
    %c0_i32_1 = arith.constant 0 : i32
    return %c0_i32, %c0_i32_0 : i32, i32
  }
  func.func @transform_7(%arg0: i32) -> (i32, i32) {
    %c0_i32 = arith.constant 0 : i32
    %c0_i32_0 = arith.constant 0 : i32
    %c0_i32_1 = arith.constant 0 : i32
    return %c0_i32, %c0_i32_0 : i32, i32
  }
  func.func @transform_8(%arg0: i32) -> (i32, i32) {
    %c0_i32 = arith.constant 0 : i32
    %c0_i32_0 = arith.constant 0 : i32
    %c0_i32_1 = arith.constant 0 : i32
    return %c0_i32, %c0_i32_0 : i32, i32
  }
  func.func @transform_9(%arg0: i32) -> (i32, i32) {
    %c0_i32 = arith.constant 0 : i32
    %c0_i32_0 = arith.constant 0 : i32
    %c0_i32_1 = arith.constant 0 : i32
    return %c0_i32, %c0_i32_0 : i32, i32
  }
  func.func @transform_10(%arg0: i32) -> (i32, i32) {
    %c0_i32 = arith.constant 0 : i32
    %c0_i32_0 = arith.constant 0 : i32
    %c0_i32_1 = arith.constant 0 : i32
    return %c0_i32, %c0_i32_0 : i32, i32
  }
  func.func @transform_11(%arg0: i32) -> (i32, i32) {
    %c0_i32 = arith.constant 0 : i32
    %c0_i32_0 = arith.constant 0 : i32
    %c0_i32_1 = arith.constant 0 : i32
    return %c0_i32, %c0_i32_0 : i32, i32
  }
  func.func @transform_12(%arg0: i32) -> (i32, i32) {
    %c0_i32 = arith.constant 0 : i32
    %c0_i32_0 = arith.constant 0 : i32
    %c0_i32_1 = arith.constant 0 : i32
    return %c0_i32, %c0_i32_0 : i32, i32
  }
  func.func @transform_13(%arg0: i32) -> (i32, i32) {
    %c0_i32 = arith.constant 0 : i32
    %c0_i32_0 = arith.constant 0 : i32
    %c0_i32_1 = arith.constant 0 : i32
    return %c0_i32, %c0_i32_0 : i32, i32
  }
  func.func @transform_14(%arg0: i32) -> (i32, i32) {
    %c0_i32 = arith.constant 0 : i32
    %c0_i32_0 = arith.constant 0 : i32
    %c0_i32_1 = arith.constant 0 : i32
    return %c0_i32, %c0_i32_0 : i32, i32
  }
  func.func @transform_15(%arg0: i32) -> (i32, i32) {
    %c0_i32 = arith.constant 0 : i32
    %c0_i32_0 = arith.constant 0 : i32
    %c0_i32_1 = arith.constant 0 : i32
    return %c0_i32, %c0_i32_0 : i32, i32
  }
  func.func @transform_16(%arg0: i32) -> (i32, i32) {
    %c0_i32 = arith.constant 0 : i32
    %c0_i32_0 = arith.constant 0 : i32
    %c0_i32_1 = arith.constant 0 : i32
    return %c0_i32, %c0_i32_0 : i32, i32
  }
  func.func @transform_17(%arg0: i32) -> (i32, i32) {
    %c0_i32 = arith.constant 0 : i32
    %c0_i32_0 = arith.constant 0 : i32
    %c0_i32_1 = arith.constant 0 : i32
    return %c0_i32, %c0_i32_0 : i32, i32
  }
  func.func @transform_18(%arg0: i32) -> (i32, i32) {
    %c0_i32 = arith.constant 0 : i32
    %c0_i32_0 = arith.constant 0 : i32
    %c0_i32_1 = arith.constant 0 : i32
    return %c0_i32, %c0_i32_0 : i32, i32
  }
  func.func @transform_19(%arg0: i32) -> (i32, i32) {
    %c0_i32 = arith.constant 0 : i32
    %c0_i32_0 = arith.constant 0 : i32
    %c0_i32_1 = arith.constant 0 : i32
    return %c0_i32, %c0_i32_0 : i32, i32
  }
  func.func @transform_20(%arg0: i32) -> (i32, i32) {
    %c0_i32 = arith.constant 0 : i32
    %c0_i32_0 = arith.constant 0 : i32
    %c0_i32_1 = arith.constant 0 : i32
    return %c0_i32, %c0_i32_0 : i32, i32
  }
  func.func @transform_21(%arg0: i32) -> (i32, i32) {
    %c0_i32 = arith.constant 0 : i32
    %c0_i32_0 = arith.constant 0 : i32
    %c0_i32_1 = arith.constant 0 : i32
    return %c0_i32, %c0_i32_0 : i32, i32
  }
  func.func @transform_22(%arg0: i32) -> (i32, i32) {
    %c0_i32 = arith.constant 0 : i32
    %c0_i32_0 = arith.constant 0 : i32
    %c0_i32_1 = arith.constant 0 : i32
    return %c0_i32, %c0_i32_0 : i32, i32
  }
  func.func @transform_23(%arg0: i32) -> (i32, i32) {
    %c0_i32 = arith.constant 0 : i32
    %c0_i32_0 = arith.constant 0 : i32
    %c0_i32_1 = arith.constant 0 : i32
    return %c0_i32, %c0_i32_0 : i32, i32
  }
  func.func @transform_24(%arg0: i32) -> (i32, i32) {
    %c0_i32 = arith.constant 0 : i32
    %c0_i32_0 = arith.constant 0 : i32
    %c0_i32_1 = arith.constant 0 : i32
    return %c0_i32, %c0_i32_0 : i32, i32
  }
  func.func @transform_25(%arg0: i32) -> (i32, i32, i32) {
    %c0_i32 = arith.constant 0 : i32
    %c0_i32_0 = arith.constant 0 : i32
    %c0_i32_1 = arith.constant 0 : i32
    return %arg0, %c0_i32, %c0_i32_0 : i32, i32, i32
  }
}

</mosaic_0001>

<bundles_post_ra>
// kernel: resnet_body_forward_ncl.1
= control target key start
LH: loop header
LB: loop body
LE: loop exit
PB: predicated region body
PF: predicated region fallthrough
CT: control target
= control target key end

     0   :  { %s25605_s0 = inlined_call_operand.vmem [shape: bf16[8,64,28], index: 0, kind: input, shape index: {}]   ;;  %s25606_s1 = inlined_call_operand.vmem [shape: bf16[28,64], index: 1, kind: input, shape index: {}]   ;;  %s25607_s2 = inlined_call_operand.vmem [shape: f32[1,64], index: 2, kind: input, shape index: {}]   ;;  %s25608_s3 = inlined_call_operand.vmem [shape: bf16[320,64], index: 3, kind: input, shape index: {}]   ;;  %s25609_s4 = inlined_call_operand.vmem [shape: f32[1,64], index: 4, kind: input, shape index: {}]   ;;  %s25610_s5 = inlined_call_operand.vmem [shape: bf16[192,64], index: 5, kind: input, shape index: {}]   ;;  %s25611_s6 = inlined_call_operand.vmem [shape: f32[1,64], index: 6, kind: input, shape index: {}]   ;;  %s25612_s7 = inlined_call_operand.vmem [shape: bf16[28,64], index: 7, kind: input, shape index: {}]   ;;  %s25613_s8 = inlined_call_operand.vmem [shape: f32[1,64], index: 8, kind: input, shape index: {}]   ;;  %s25614_s9 = inlined_call_operand.vmem [shape: bf16[448,128], index: 9, kind: input, shape index: {}]   ;;  %s25615_s10 = inlined_call_operand.vmem [shape: f32[1,128], index: 10, kind: input, shape index: {}]   ;;  %s25616_s11 = inlined_call_operand.vmem [shape: bf16[640,128], index: 11, kind: input, shape index: {}]   ;;  %s25617_s12 = inlined_call_operand.vmem [shape: f32[1,128], index: 12, kind: input, shape index: {}]   ;;  %s25618_s13 = inlined_call_operand.vmem [shape: bf16[384,128], index: 13, kind: input, shape index: {}]   ;;  %s25619_s14 = inlined_call_operand.vmem [shape: f32[1,128], index: 14, kind: input, shape index: {}]   ;;  %s25620_s15 = inlined_call_operand.vmem [shape: bf16[64,128], index: 15, kind: input, shape index: {}]   ;;  %s25621_s16 = inlined_call_operand.vmem [shape: f32[1,128], index: 16, kind: input, shape index: {}]   ;;  %s25622_s17 = inlined_call_operand.vmem [shape: bf16[896,128], index: 17, kind: input, shape index: {}]   ;;  %s25623_s18 = inlined_call_operand.vmem [shape: f32[1,128], index: 18, kind: input, shape index: {}]   ;;  %s25624_s19 = inlined_call_operand.vmem [shape: bf16[640,128], index: 19, kind: input, shape index: {}]   ;;  %s25625_s20 = inlined_call_operand.vmem [shape: f32[1,128], index: 20, kind: input, shape index: {}]   ;;  %s25626_s21 = inlined_call_operand.vmem [shape: bf16[384,128], index: 21, kind: input, shape index: {}]   ;;  %s25627_s22 = inlined_call_operand.vmem [shape: f32[1,128], index: 22, kind: input, shape index: {}]   ;;  %s25628_s23 = inlined_call_operand.vmem [shape: f32[1,128], index: 23, kind: input, shape index: {}]   ;;  %s25629_s24 = inlined_call_operand.vmem [shape: f32[1,128], index: 24, kind: input, shape index: {}]   ;;  %s25630_s25 = inlined_call_operand.hbm [shape: f32[8,64,128], index: 25, kind: output, shape index: {}]  }
   0x1   :  { %25802 = sst [smem:[#allocation61_spill]] %s25605_s0 }
   0x2   :  { %25803 = sst [smem:[#allocation62_spill]] %s25606_s1 }
   0x3   :  { %25804 = sst [smem:[#allocation63_spill]] %s25607_s2 }
   0x4   :  { %25805 = sst [smem:[#allocation64_spill]] %s25608_s3 }
   0x5   :  { %25806 = sst [smem:[#allocation65_spill]] %s25609_s4 }
   0x6   :  { %25807 = sst [smem:[#allocation66_spill]] %s25610_s5 }
   0x7   :  { %25808 = sst [smem:[#allocation67_spill]] %s25611_s6 }
   0x8   :  { %25809 = sst [smem:[#allocation68_spill]] %s25612_s7 }
   0x9   :  { %25810 = sst [smem:[#allocation69_spill]] %s25613_s8 }
   0xa   :  { %25811 = sst [smem:[#allocation70_spill]] %s25614_s9 }
   0xb   :  { %25812 = sst [smem:[#allocation71_spill]] %s25615_s10 }
   0xc   :  { %25813 = sst [smem:[#allocation72_spill]] %s25616_s11 }
   0xd   :  { %30 = vsyncpa [#allocation3], 0 }
   0xe   :  { %32 = vsyncpa [#allocation3 + $0x1], 0  ;;  %s20586_s29 = smov 0   ;;  %s20588_s2 = smov 0  }
   0xf   :  { %s20590_s6 = smov 0   ;;  %s20592_s30 = smov 0  }
  0x10 LB: > { %25814 = sst [smem:[#allocation5_spill]] %s20447_s6  ;;  %s20607_s7 = sadd.s32 4294967295, %s20451_s30   ;;  %s20451_s30 = sphi %s20592_s30, %s26070_s30   ;;  %s20447_s6 = sphi %s20590_s6, %s26072_s6   ;;  %s20443_s2 = sphi %s20588_s2, %s26074_s2   ;;  %s20439_s29 = sphi %s20586_s29, %s26073_s29  }
  0x11   : > { %s15580_s3 = sadd.s32 4294967294, %s20451_s30   ;;  %s20611_s26 = sadd.s32 1, %s20451_s30  }
  0x12   : > { %25815 = sst [smem:[#allocation6_spill]] %s20611_s26  ;;  %s575_s1 = sadd.s32 1, %s20447_s6 }
  0x13   : > { %s572_s8 = ssub.s32 %s20451_s30, %s20611_s26  ;;  %p585_p0 = scmp.ne.s32.totalorder %s20447_s6, %s20443_s2 }
  0x14   : > { %p573_p1 = scmp.eq.s32.totalorder %s572_s8, 0  ;;  %p586_p2 = scmp.eq.s32.totalorder %s20607_s7, 1 }
  0x15   : > { %p591_p3 = scmp.ne.s32.totalorder %s20443_s2, %s20439_s29  ;;  %p592_p4 = scmp.eq.s32.totalorder %s15580_s3, 1 }
  0x16   : > { %s20622_s27 = scalar_select %p573_p1, %s20447_s6, %s575_s1  }
  0x17   : > { %p20624_p5 = por %p586_p2, %p585_p0  ;;  %p20628_p6 = por %p592_p4, %p591_p3 }
  0x18   : > { %25816 = sst [smem:[#allocation7_spill]] %s20622_s27  ;;  %p15583_p7 = scmp.ge.s32.totalorder %s20451_s30, 1 }
  0x19   : > { %s25818_s28 = scalar_select %p20628_p6, 1, 0 }
  0x1a   : > { %p692_p8 = scmp.lt.s32.totalorder %s20451_s30, 3 }
  0x1b   : > { %25819 = sst [smem:[#allocation8_spill]] %s25818_s28 }
  0x1c   : > { %p693_p9 = pnand %p15583_p7, %p692_p8 }
  0x1e   : > { %696 = sbr.rel (%p693_p9) target bundleno = 4206 (0x106e), region = 120 }
  0x25   : > { %s25820_s0 = sld [smem:[#allocation62_spill]]  ;;  %vm953_vm0 = vcmask 1045504   ;;  %s15585_s8 = sshll.u32 %s20607_s7, 2  ;;  %vm904_vm1 = vcmask 228352   ;;  %vm1182_vm2 = vcmask 1040384   ;;  %vm1406_vm4 = vcmask 523264  }
  0x26   : > { %p762_p10 = scmp.lt.s32.totalorder %s15585_s8, 7  ;;  %s25821_s26 = sld [smem:[#allocation64_spill]]  ;;  %vm1237_vm3 = vsmask.f32 7424  ;;  %vm2151_vm5 = vsmask.f32 6400  ;;  %vm22925_vm14 = vmneg %vm1182_vm2 }
  0x27   : > { %s25822_s3 = sld [smem:[#allocation61_spill]]  ;;  %s25823_s27 = sld [smem:[#allocation63_spill]]  ;;  %vm1841_vm6 = vcmask 1046528   ;;  %vm3092_vm7 = vsmask.f32 256  ;;  %vm4429_vm10 = vcmask 1041408  }
  0x28   : > { %s26076_s8 = smov (!%p762_p10, %s15585_s8), 7  ;;  %vm21342_vm8 = vmand %vm1182_vm2, %vm3092_vm7  ;;  %s25834_s28 = sld [smem:[#allocation70_spill]]  ;;  %vm4280_vm9 = vsmask.f32 1280  ;;  %vm6032_vm12 = vsmask.f32 5376 }
  0x29   : > { %s16179_s9 = sshll.u32 %s26076_s8, 5  ;;  %s25828_s8 = sld [smem:[#allocation68_spill]]  ;;  %vm21713_vm11 = vmand %vm4429_vm10, %vm4280_vm9  ;;  %vm6382_vm13 = vcmask 1044480  }
  0x2a   : > { %s25893_s11 = sld [smem:[#allocation72_spill]]  ;;  %s25898_s10 = sld [smem:[#allocation71_spill]] }
  0x2b   : > { %v20106_v0 = vld [vmem:[%s25820_s0] sm:$0xff]   ;;  %v20107_v1 = vld [vmem:[%s25820_s0 + $0x8] sm:$0x3f]   ;;  %s20453_s5 = smov [#allocation2]  }
  0x2c   : > { %17090 = vmatprep.subr.bf16.mxu1 %v20106_v0  ;;  %v955_v2 = vsel %vm953_vm0, %v20107_v1, 0  ;;  %v20124_v3 = vld [vmem:[%s25821_s26 + $0x20] sm:$0xff]   ;;  %v20125_v4 = vld [vmem:[%s25821_s26 + $0x28] sm:$0xff]   ;;  %v20126_v8 = vld [vmem:[%s25821_s26 + $0x30] sm:$0xff]  }
  0x2d   : > { %17091 = vmatpush3.bf16.msra.mxu1 %v20106_v0  ;;  %s20649_s1 = scalar_lea.vmem %s25822_s3, %s16179_s9  ;;  %v20127_v22 = vld [vmem:[%s25821_s26 + $0x38] sm:$0xff]   ;;  %v20696_v23 = vld [vmem:[%s25821_s26] sm:$0xff]   ;;  %s25836_s3 = sld [smem:[#allocation67_spill]] }
  0x2e   : > { %20062 = vmatprep.subr.msk.bf16.mxu1 %vm953_vm0, %v20107_v1  ;;  %v20108_v5 = vld [vmem:[%s20649_s1] sm:$0xff]   ;;  %v20109_v6 = vld [vmem:[%s20649_s1 + $0x8] sm:$0xff]   ;;  %v20110_v7 = vld [vmem:[%s20649_s1 + $0x10] sm:$0xff]  }
  0x2f   : > { %17094 = vmatprep.mubr.msk.bf16.mxu1 %vm904_vm1, %v20108_v5  ;;  %17330 = vmatprep.mubr.msk.bf16.mxu0 %vm904_vm1, %v20108_v5  ;;  %v20111_v9 = vld [vmem:[%s20649_s1 + $0x18] sm:$0xff]   ;;  %v20112_v10 = vld [vmem:[%s20649_s1 + $0x20] sm:$0xff]   ;;  %v20113_v11 = vld [vmem:[%s20649_s1 + $0x28] sm:$0xff]  }
  0x30   : > { %v20114_v12 = vld [vmem:[%s20649_s1 + $0x30] sm:$0xff]   ;;  %v20115_v13 = vld [vmem:[%s20649_s1 + $0x38] sm:$0xff]   ;;  %v20116_v14 = vld [vmem:[%s20649_s1 + $0x40] sm:$0xff]  }
  0x31   : > { %17093 = vmatpush3.bf16.msra.mxu1 %v955_v2  ;;  %v20117_v15 = vld [vmem:[%s20649_s1 + $0x48] sm:$0xff]   ;;  %v20118_v16 = vld [vmem:[%s20649_s1 + $0x50] sm:$0xff]   ;;  %v20119_v17 = vld [vmem:[%s20649_s1 + $0x58] sm:$0xff]  }
  0x32   : > { %17126 = vmatprep.subr.bf16.mxu1 %v20124_v3  ;;  %v20120_v18 = vld [vmem:[%s20649_s1 + $0x60] sm:$0xff]   ;;  %v20121_v19 = vld [vmem:[%s20649_s1 + $0x68] sm:$0xff]   ;;  %v20122_v20 = vld [vmem:[%s20649_s1 + $0x70] sm:$0xff]  }
  0x33   : > { %v20123_v21 = vld [vmem:[%s20649_s1 + $0x78] sm:$0xff]   ;;  %v20702_v24 = vld [vmem:[%s25823_s27] ss:$0 sm:$0xff]  ;;  %s25829_s27 = sld [smem:[#allocation66_spill]] }
  0x34   : > { %17095 = vmatmul.mubr.msk.bf16.vlgmr.msra.gmra.mrb[0].mxu1 %vm904_vm1, %v20109_v6 }
  0x35   : > { %17098 = vmatprep.mubr.msk.bf16.mxu1 %vm904_vm1, %v20110_v7  ;;  %17127 = vmatpush3.bf16.msra.mxu1 %v20124_v3 }
  0x36   : > { %17128 = vmatprep.subr.bf16.mxu1 %v20125_v4 }
  0x39   : > { %17129 = vmatpush3.bf16.msra.mxu1 %v20125_v4 }
  0x3a   : > { %17130 = vmatprep.subr.bf16.mxu1 %v20126_v8 }
  0x3c   : > { %17099 = vmatmul.mubr.msk.bf16.gmra.mrb[4].mxu1 %vm904_vm1, %v20111_v9 }
  0x3d   : > { %17102 = vmatprep.mubr.msk.bf16.mxu1 %vm904_vm1, %v20112_v10  ;;  %17131 = vmatpush3.bf16.msra.mxu1 %v20126_v8 }
  0x3e   : > { %17132 = vmatprep.subr.bf16.mxu1 %v20127_v22 }
  0x41   : > { %17133 = vmatpush3.bf16.msra.mxu1 %v20127_v22 }
  0x42   : > { %17166 = vmatprep.subr.bf16.mxu1 %v20696_v23 }
  0x44   : > { %17103 = vmatmul.mubr.msk.bf16.gmra.mrb[8].mxu1 %vm904_vm1, %v20113_v11 }
  0x45   : > { %17106 = vmatprep.mubr.msk.bf16.mxu1 %vm904_vm1, %v20114_v12 }
  0x4c   : > { %17107 = vmatmul.mubr.msk.bf16.gmra.mrb[12].mxu1 %vm904_vm1, %v20115_v13 }
  0x4d   : > { %17110 = vmatprep.mubr.msk.bf16.mxu1 %vm904_vm1, %v20116_v14 }
  0x54   : > { %17111 = vmatmul.mubr.msk.bf16.gmra.mrb[16].mxu1 %vm904_vm1, %v20117_v15 }
  0x55   : > { %17114 = vmatprep.mubr.msk.bf16.mxu1 %vm904_vm1, %v20118_v16 }
  0x5c   : > { %17115 = vmatmul.mubr.msk.bf16.gmra.mrb[20].mxu1 %vm904_vm1, %v20119_v17 }
  0x5d   : > { %17118 = vmatprep.mubr.msk.bf16.mxu1 %vm904_vm1, %v20120_v18 }
  0x64   : > { %17119 = vmatmul.mubr.msk.bf16.gmra.mrb[24].mxu1 %vm904_vm1, %v20121_v19 }
  0x65   : > { %17122 = vmatprep.mubr.msk.bf16.mxu1 %vm904_vm1, %v20122_v20 }
  0x6c   : > { %17123 = vmatmul.mubr.msk.bf16.gmra.mrb[28].mxu1 %vm904_vm1, %v20123_v21 }
 0x107   : > { %v17096_v25 = vpop.f32.mrb[0].mxu1 }
 0x108   : > { %v1000_v26 = vadd.f32 %v17096_v25, %v20702_v24  ;;  %v991_v27 = vpop.f32.mrb[1].mxu1 }
 0x109   : > { %v992_v28 = vadd.f32 %v20702_v24, %v991_v27  ;;  %v17097_v29 = vpop.f32.mrb[2].mxu1 }
 0x10a   : > { %v1003_v30 = vadd.f32 %v17097_v29, %v20702_v24  ;;  %v994_v31 = vpop.f32.mrb[3].mxu1  ;;  %v1120_v33 = vmax.f32 %v1000_v26, 0.0 }
 0x10b   : > { %v995_v32 = vadd.f32 %v20702_v24, %v994_v31  ;;  %v1118_v35 = vmax.f32 %v992_v28, 0.0  ;;  %v20129_v31 = vld [vmem:[%s25821_s26 + $0x8] sm:$0xff]  }
 0x10c   : > { %v1121_v34 = vmax.f32 %v1003_v30, 0.0 }
 0x10d   : > { %v1119_v36 = vmax.f32 %v995_v32, 0.0 }
 0x10e   : > { %v1151_v37 = vpack.c.bf16 %v1121_v34, %v1120_v33 }
 0x10f   : > { %v1150_v38 = vpack.c.bf16 %v1119_v36, %v1118_v35  ;;  %v17100_v39 = vpop.f32.mrb[4].mxu1 }
 0x110   : > { %v1184_v40 = vrot.slane %v1151_v37, 7  ;;  %v1016_v41 = vadd.f32 %v17100_v39, %v20702_v24  ;;  %v1007_v42 = vpop.f32.mrb[5].mxu1 }
 0x111   : > { %v1183_v43 = vrot.slane %v1150_v38, 7  ;;  %v1008_v44 = vadd.f32 %v20702_v24, %v1007_v42  ;;  %v17101_v45 = vpop.f32.mrb[6].mxu1 }
 0x112   : > { %v1019_v46 = vadd.f32 %v17101_v45, %v20702_v24  ;;  %v1010_v47 = vpop.f32.mrb[7].mxu1  ;;  %v1124_v50 = vmax.f32 %v1016_v41, 0.0 }
 0x113   : > { %v20712_v48 = vsel %vm1182_vm2, %v1183_v43, %v1184_v40  ;;  %v20715_v49 = vsel %vm1182_vm2, 0, %v1183_v43  ;;  %v1011_v51 = vadd.f32 %v20702_v24, %v1010_v47  ;;  %v1122_v56 = vmax.f32 %v1008_v44, 0.0 }
 0x114   : > { %v1240_v52 = vshll.u32 %v20715_v49, 16  ;;  %v1125_v53 = vmax.f32 %v1019_v46, 0.0  ;;  %v1238_v54 = vshrl.u32 %v20715_v49, 16  ;;  %v1245_v55 = vshll.u32 %v20712_v48, 16 }
 0x115   : > { %v1123_v57 = vmax.f32 %v1011_v51, 0.0  ;;  %v1249_v14 = vshrl.u32 %v20712_v48, 16  ;;  %v20130_v51 = vld [vmem:[%s25821_s26 + $0x10] sm:$0xff]  }
 0x116   : > { %v1153_v58 = vpack.c.bf16 %v1125_v53, %v1124_v50  ;;  %v1242_v59 = vrot.slane %v1240_v52, 1  ;;  %v20721_v60 = vrot.slane %v1238_v54, 1  ;;  %v20723_v63 = vrot.slane %v1240_v52, 2 }
 0x117   : > { %v1152_v61 = vpack.c.bf16 %v1123_v57, %v1122_v56  ;;  %v17104_v62 = vpop.f32.mrb[8].mxu1  ;;  %v1247_v4 = vrot.slane %v1245_v55, 1  ;;  %v2155_v45 = vrot.slane %v1249_v14, 1  ;;  %v2156_v52 = vrot.slane %v1245_v55, 2 }
 0x118   : > { %v1188_v0 = vrot.slane %v1153_v58, 7  ;;  %v1032_v1 = vadd.f32 %v17104_v62, %v20702_v24  ;;  %v1023_v2 = vpop.f32.mrb[9].mxu1  ;;  %v1243_v3 = vor.u32 %v1242_v59, %v1238_v54  ;;  %v2154_v7 = vor.u32 %v20723_v63, %v20721_v60 }
 0x119   : > { %v1186_v5 = vrot.slane %v1152_v61, 7  ;;  %v17105_v6 = vpop.f32.mrb[10].mxu1  ;;  %v1024_v8 = vadd.f32 %v20702_v24, %v1023_v2  ;;  %v1251_v19 = vor.u32 %v1249_v14, %v1247_v4 }
 0x11a   : > { %v1035_v9 = vadd.f32 %v17105_v6, %v20702_v24  ;;  %v1026_v10 = vpop.f32.mrb[11].mxu1  ;;  %v1248_v11 = vsel %vm1237_vm3, %v1243_v3, %v1247_v4  ;;  %v1128_v16 = vmax.f32 %v1032_v1, 0.0  ;;  %v20747_v27 = vsel %vm1182_vm2, %v1188_v0, 0  ;;  %v20131_v4 = vld [vmem:[%s25821_s26 + $0x18] sm:$0xff]  }
 0x11b   : > { %v20732_v12 = vsel %vm1182_vm2, %v1184_v40, %v1186_v5  ;;  %v20735_v13 = vsel %vm1182_vm2, %v1186_v5, %v1188_v0  ;;  %17134 = vmatprep.mubr.msk.bf16.mxu1 %vm1406_vm4, %v1248_v11  ;;  %v1027_v18 = vadd.f32 %v20702_v24, %v1026_v10  ;;  %v1126_v21 = vmax.f32 %v1024_v8, 0.0 }
 0x11c   : > { %v1253_v15 = vshll.u32 %v20732_v12, 16  ;;  %v1129_v17 = vmax.f32 %v1035_v9, 0.0  ;;  %v1261_v20 = vshll.u32 %v20735_v13, 16  ;;  %v1257_v29 = vshrl.u32 %v20732_v12, 16 }
 0x11d   : > { %v1127_v25 = vmax.f32 %v1027_v18, 0.0  ;;  %v1265_v40 = vshrl.u32 %v20735_v13, 16  ;;  %v1268_v41 = vshll.u32 %v20747_v27, 16  ;;  %v20790_v5 = vor.u32 %v2156_v52, %v2155_v45 }
 0x11e   : > { %v20742_v22 = vpack.c.bf16 %v1129_v17, %v1128_v16  ;;  %v1255_v26 = vrot.slane %v1253_v15, 1  ;;  %v1263_v30 = vrot.slane %v1261_v20, 1 }
 0x11f   : > { %v17108_v28 = vpop.f32.mrb[12].mxu1  ;;  %v1154_v33 = vpack.c.bf16 %v1127_v25, %v1126_v21  ;;  %v1270_v62 = vrot.slane %v1268_v41, 1 }
 0x120   : > { %v1191_v32 = vrot.slane %v20742_v22, 7  ;;  %v1048_v34 = vadd.f32 %v17108_v28, %v20702_v24  ;;  %v1039_v35 = vpop.f32.mrb[13].mxu1  ;;  %v1256_v36 = vsel %vm1237_vm3, %v1251_v19, %v1255_v26  ;;  %v1259_v39 = vor.u32 %v1257_v29, %v1255_v26  ;;  %v20817_v28 = vld [vmem:[%s25821_s26 + $0x40] sm:$0xff]  }
 0x121   : > { %v1040_v37 = vadd.f32 %v20702_v24, %v1039_v35  ;;  %v17109_v38 = vpop.f32.mrb[14].mxu1  ;;  %17135 = vmatmul.mubr.msk.bf16.vlgmr.msra.gmra.mrb[32].mxu1 %vm1406_vm4, %v1256_v36  ;;  %v1190_v42 = vrot.slane %v1154_v33, 7  ;;  %v1267_v50 = vor.u32 %v1265_v40, %v1263_v30  ;;  %v20806_v22 = vsel %vm2151_vm5, %v2154_v7, %v20790_v5 }
 0x122   : > { %v1051_v43 = vadd.f32 %v17109_v38, %v20702_v24  ;;  %17167 = vmatpush3.bf16.msra.mxu1 %v20696_v23  ;;  %v1042_v44 = vpop.f32.mrb[15].mxu1  ;;  %v1264_v47 = vsel %vm1237_vm3, %v1259_v39, %v1263_v30  ;;  %v1132_v54 = vmax.f32 %v1048_v34, 0.0 }
 0x123   : > { %v1043_v46 = vadd.f32 %v20702_v24, %v1042_v44  ;;  %17168 = vmatprep.subr.bf16.mxu1 %v20129_v31  ;;  %v20774_v53 = vsel %vm1182_vm2, %v1190_v42, %v1191_v32  ;;  %v20777_v23 = vsel %vm1182_vm2, 0, %v1190_v42  ;;  %17138 = vmatprep.mubr.msk.bf16.mxu1 %vm1406_vm4, %v1264_v47  ;;  %v1130_v58 = vmax.f32 %v1040_v37, 0.0 }
 0x124   : > { %v1133_v56 = vmax.f32 %v1051_v43, 0.0  ;;  %v1274_v57 = vshll.u32 %v20777_v23, 16  ;;  %v1279_v55 = vshll.u32 %v20774_v53, 16  ;;  %v1272_v2 = vshrl.u32 %v20777_v23, 16 }
 0x125   : > { %v1131_v59 = vmax.f32 %v1043_v46, 0.0  ;;  %v1271_v10 = vsel %vm1237_vm3, %v1267_v50, %v1270_v62  ;;  %v1283_v63 = vshrl.u32 %v20774_v53, 16 }
 0x126   : > { %v1157_v61 = vpack.c.bf16 %v1133_v56, %v1132_v54  ;;  %17169 = vmatpush3.bf16.msra.mxu1 %v20129_v31  ;;  %v1276_v3 = vrot.slane %v1274_v57, 1  ;;  %v1281_v21 = vrot.slane %v1279_v55, 1 }
 0x127   : > { %v1156_v0 = vpack.c.bf16 %v1131_v59, %v1130_v58  ;;  %v17112_v1 = vpop.f32.mrb[16].mxu1  ;;  %17170 = vmatprep.subr.bf16.mxu1 %v20130_v51  ;;  %v2159_v59 = vrot.slane %v1257_v29, 1 }
 0x128   : > { %v1195_v6 = vrot.slane %v1157_v61, 7  ;;  %v1064_v8 = vadd.f32 %v17112_v1, %v20702_v24  ;;  %v1055_v9 = vpop.f32.mrb[17].mxu1  ;;  %v1277_v16 = vor.u32 %v1276_v3, %v1272_v2  ;;  %v1285_v39 = vor.u32 %v1283_v63, %v1281_v21 }
 0x129   : > { %v1193_v11 = vrot.slane %v1156_v0, 7  ;;  %v17113_v14 = vpop.f32.mrb[18].mxu1  ;;  %17139 = vmatmul.mubr.msk.bf16.gmra.mrb[36].mxu1 %vm1406_vm4, %v1271_v10  ;;  %v1056_v17 = vadd.f32 %v20702_v24, %v1055_v9 }
 0x12a   : > { %v1067_v18 = vadd.f32 %v17113_v14, %v20702_v24  ;;  %v1058_v19 = vpop.f32.mrb[19].mxu1  ;;  %17171 = vmatpush3.bf16.msra.mxu1 %v20130_v51  ;;  %v1136_v30 = vmax.f32 %v1064_v8, 0.0  ;;  %v1282_v60 = vsel %vm1237_vm3, %v1277_v16, %v1281_v21  ;;  %v20826_v37 = vsel %vm1182_vm2, %v1195_v6, 0 }
 0x12b   : > { %v20809_v25 = vsel %vm1182_vm2, %v1191_v32, %v1193_v11  ;;  %v20812_v26 = vsel %vm1182_vm2, %v1193_v11, %v1195_v6  ;;  %17172 = vmatprep.subr.bf16.mxu1 %v20131_v4  ;;  %v1059_v33 = vadd.f32 %v20702_v24, %v1058_v19  ;;  %17142 = vmatprep.mubr.msk.bf16.mxu1 %vm1406_vm4, %v1282_v60  ;;  %v1134_v34 = vmax.f32 %v1056_v17, 0.0 }
 0x12c   : > { %v1137_v31 = vmax.f32 %v1067_v18, 0.0  ;;  %v1287_v7 = vshll.u32 %v20809_v25, 16  ;;  %v1295_v32 = vshll.u32 %v20812_v26, 16  ;;  %v1291_v43 = vshrl.u32 %v20809_v25, 16 }
 0x12d   : > { %v1135_v36 = vmax.f32 %v1059_v33, 0.0  ;;  %v1302_v58 = vshll.u32 %v20826_v37, 16  ;;  %v2160_v6 = vrot.slane %v1253_v15, 2 }
 0x12e   : > { %v1159_v35 = vpack.c.bf16 %v1137_v31, %v1136_v30  ;;  %17173 = vmatpush3.bf16.msra.mxu1 %v20131_v4  ;;  %v1289_v42 = vrot.slane %v1287_v7, 1  ;;  %v1297_v56 = vrot.slane %v1295_v32, 1  ;;  %v1299_v4 = vshrl.u32 %v20812_v26, 16 }
 0x12f   : > { %v17116_v38 = vpop.f32.mrb[20].mxu1  ;;  %17206 = vmatprep.subr.bf16.mxu1 %v20817_v28  ;;  %v1158_v45 = vpack.c.bf16 %v1135_v36, %v1134_v34  ;;  %v1304_v15 = vrot.slane %v1302_v58, 1  ;;  %v20867_v60 = vor.u32 %v2160_v6, %v2159_v59 }
 0x130   : > { %v1198_v44 = vrot.slane %v1159_v35, 7  ;;  %v1080_v46 = vadd.f32 %v17116_v38, %v20702_v24  ;;  %v1071_v47 = vpop.f32.mrb[21].mxu1  ;;  %v1290_v52 = vsel %vm1237_vm3, %v1285_v39, %v1289_v42  ;;  %v1293_v54 = vor.u32 %v1291_v43, %v1289_v42 }
 0x131   : > { %v1072_v50 = vadd.f32 %v20702_v24, %v1071_v47  ;;  %v17117_v51 = vpop.f32.mrb[22].mxu1  ;;  %v1197_v61 = vrot.slane %v1158_v45, 7  ;;  %17143 = vmatmul.mubr.msk.bf16.gmra.mrb[40].mxu1 %vm1406_vm4, %v1290_v52  ;;  %v1301_v17 = vor.u32 %v1299_v4, %v1297_v56  ;;  %v20881_v52 = vsel %vm2151_vm5, %v20790_v5, %v20867_v60 }
 0x132   : > { %v1083_v62 = vadd.f32 %v17117_v51, %v20702_v24  ;;  %v1074_v0 = vpop.f32.mrb[23].mxu1  ;;  %v1298_v3 = vsel %vm1237_vm3, %v1293_v54, %v1297_v56  ;;  %v1140_v9 = vmax.f32 %v1080_v46, 0.0 }
 0x133   : > { %v1075_v1 = vadd.f32 %v20702_v24, %v1074_v0  ;;  %v20852_v8 = vsel %vm1182_vm2, %v1197_v61, %v1198_v44  ;;  %v20855_v29 = vsel %vm1182_vm2, 0, %v1197_v61  ;;  %17146 = vmatprep.mubr.msk.bf16.mxu1 %vm1406_vm4, %v1298_v3  ;;  %v1138_v14 = vmax.f32 %v1072_v50, 0.0 }
 0x134   : > { %v1141_v10 = vmax.f32 %v1083_v62, 0.0  ;;  %v1308_v11 = vshll.u32 %v20855_v29, 16  ;;  %v1313_v19 = vshll.u32 %v20852_v8, 16  ;;  %v1306_v31 = vshrl.u32 %v20855_v29, 16 }
 0x135   : > { %v1139_v16 = vmax.f32 %v1075_v1, 0.0  ;;  %v1305_v42 = vsel %vm1237_vm3, %v1301_v17, %v1304_v15  ;;  %v1317_v59 = vshrl.u32 %v20852_v8, 16 }
 0x136   : > { %v1161_v18 = vpack.c.bf16 %v1141_v10, %v1140_v9  ;;  %v1310_v33 = vrot.slane %v1308_v11, 1  ;;  %v1315_v51 = vrot.slane %v1313_v19, 1 }
 0x137   : > { %v1160_v21 = vpack.c.bf16 %v1139_v16, %v1138_v14  ;;  %v17120_v30 = vpop.f32.mrb[24].mxu1 }
 0x138   : > { %v1202_v34 = vrot.slane %v1161_v18, 7  ;;  %v1096_v35 = vadd.f32 %v17120_v30, %v20702_v24  ;;  %v1087_v36 = vpop.f32.mrb[25].mxu1  ;;  %v1311_v45 = vor.u32 %v1310_v33, %v1306_v31  ;;  %v1319_v10 = vor.u32 %v1317_v59, %v1315_v51 }
 0x139   : > { %v1200_v38 = vrot.slane %v1160_v21, 7  ;;  %v17121_v39 = vpop.f32.mrb[26].mxu1  ;;  %v1088_v46 = vadd.f32 %v20702_v24, %v1087_v36  ;;  %17147 = vmatmul.mubr.msk.bf16.gmra.mrb[44].mxu1 %vm1406_vm4, %v1305_v42 }
 0x13a   : > { %v1099_v47 = vadd.f32 %v17121_v39, %v20702_v24  ;;  %v1090_v50 = vpop.f32.mrb[27].mxu1  ;;  %v1144_v61 = vmax.f32 %v1096_v35, 0.0  ;;  %v1316_v1 = vsel %vm1237_vm3, %v1311_v45, %v1315_v51  ;;  %v20898_v14 = vsel %vm1182_vm2, %v1202_v34, 0 }
 0x13b   : > { %v20884_v54 = vsel %vm1182_vm2, %v1198_v44, %v1200_v38  ;;  %v20887_v56 = vsel %vm1182_vm2, %v1200_v38, %v1202_v34  ;;  %v1091_v0 = vadd.f32 %v20702_v24, %v1090_v50  ;;  %17150 = vmatprep.mubr.msk.bf16.mxu1 %vm1406_vm4, %v1316_v1  ;;  %v1142_v6 = vmax.f32 %v1088_v46, 0.0 }
 0x13c   : > { %v1145_v62 = vmax.f32 %v1099_v47, 0.0  ;;  %v1321_v3 = vshll.u32 %v20884_v54, 16  ;;  %v1329_v5 = vshll.u32 %v20887_v56, 16  ;;  %v1325_v18 = vshrl.u32 %v20884_v54, 16 }
 0x13d   : > { %v1143_v9 = vmax.f32 %v1091_v0, 0.0  ;;  %v1333_v42 = vshrl.u32 %v20887_v56, 16  ;;  %v2167_v45 = vshrl.u32 %v20747_v27, 16  ;;  %v1336_v46 = vshll.u32 %v20898_v14, 16 }
 0x13e   : > { %v1163_v44 = vpack.c.bf16 %v1145_v62, %v1144_v61  ;;  %v1323_v17 = vrot.slane %v1321_v3, 1  ;;  %v1331_v15 = vrot.slane %v1329_v5, 1  ;;  %v2163_v1 = vrot.slane %v1265_v40, 1 }
 0x13f   : > { %v17124_v16 = vpop.f32.mrb[28].mxu1  ;;  %v1162_v30 = vpack.c.bf16 %v1143_v9, %v1142_v6  ;;  %v1338_v40 = vrot.slane %v1336_v46, 1 }
 0x140   : > { %v1205_v21 = vrot.slane %v1163_v44, 7  ;;  %v1112_v33 = vadd.f32 %v17124_v16, %v20702_v24  ;;  %v1103_v35 = vpop.f32.mrb[29].mxu1  ;;  %v1324_v34 = vsel %vm1237_vm3, %v1319_v10, %v1323_v17  ;;  %v1327_v39 = vor.u32 %v1325_v18, %v1323_v17 }
 0x141   : > { %v1104_v36 = vadd.f32 %v20702_v24, %v1103_v35  ;;  %v17125_v38 = vpop.f32.mrb[30].mxu1  ;;  %v1204_v47 = vrot.slane %v1162_v30, 7  ;;  %17151 = vmatmul.mubr.msk.bf16.gmra.mrb[48].mxu1 %vm1406_vm4, %v1324_v34  ;;  %v1335_v0 = vor.u32 %v1333_v42, %v1331_v15 }
 0x142   : > { %v1115_v50 = vadd.f32 %v17125_v38, %v20702_v24  ;;  %v1106_v51 = vpop.f32.mrb[31].mxu1  ;;  %v1332_v62 = vsel %vm1237_vm3, %v1327_v39, %v1331_v15  ;;  %v1148_v9 = vmax.f32 %v1112_v33, 0.0  ;;  %v2164_v33 = vrot.slane %v1261_v20, 2 }
 0x143   : > { %v1107_v61 = vadd.f32 %v20702_v24, %v1106_v51  ;;  %v20922_v6 = vsel %vm1182_vm2, %v1204_v47, %v1205_v21  ;;  %v20925_v44 = vsel %vm1182_vm2, 0, %v1204_v47  ;;  %17154 = vmatprep.mubr.msk.bf16.mxu1 %vm1406_vm4, %v1332_v62  ;;  %v1146_v16 = vmax.f32 %v1104_v36, 0.0 }
 0x144   : > { %v1149_v10 = vmax.f32 %v1115_v50, 0.0  ;;  %v25644_v24 = vshll.u32 %v20925_v44, 16  ;;  %v25643_v30 = vshll.u32 %v20922_v6, 16  ;;  %v1340_v38 = vshrl.u32 %v20925_v44, 16 }
 0x145   : > { %v1147_v17 = vmax.f32 %v1107_v61, 0.0  ;;  %v1339_v47 = vsel %vm1237_vm3, %v1335_v0, %v1338_v40  ;;  %v2169_v36 = vrot.slane %v2167_v45, 1  ;;  %v2170_v50 = vrot.slane %v1268_v41, 2 }
 0x146   : > { %v1165_v15 = vpack.c.bf16 %v1149_v10, %v1148_v9  ;;  %v1344_v34 = vrot.slane %v25644_v24, 1  ;;  %v1349_v62 = vrot.slane %v25643_v30, 1  ;;  %v2165_v9 = vor.u32 %v2164_v33, %v2163_v1 }
 0x147   : > { %v1164_v35 = vpack.c.bf16 %v1147_v17, %v1146_v16  ;;  %v1351_v20 = vshrl.u32 %v20922_v6, 16  ;;  %v2171_v0 = vor.u32 %v2170_v50, %v2169_v36  ;;  %v2173_v16 = vrot.slane %v1272_v2, 1 }
 0x148   : > { %v1209_v39 = vrot.slane %v1165_v15, 7  ;;  %v1345_v61 = vor.u32 %v1344_v34, %v1340_v38  ;;  %v2174_v1 = vrot.slane %v1274_v57, 2  ;;  %v2209_v36 = vshrl.u32 %v20898_v14, 16 }
 0x149   : > { %v1207_v51 = vrot.slane %v1164_v35, 7  ;;  %17155 = vmatmul.mubr.msk.bf16.gmra.mrb[52].mxu1 %vm1406_vm4, %v1339_v47  ;;  %v1353_v34 = vor.u32 %v1351_v20, %v1349_v62  ;;  %v20973_v47 = vsel %vm2151_vm5, %v20867_v60, %v2165_v9  ;;  %v2176_v30 = vrot.slane %v1283_v63, 1 }
 0x14a   : > { %v20945_v10 = vsel %vm1182_vm2, %v1209_v39, 0  ;;  %v1350_v15 = vsel %vm1237_vm3, %v1345_v61, %v1349_v62  ;;  %v2175_v61 = vor.u32 %v2174_v1, %v2173_v16  ;;  %v2177_v60 = vrot.slane %v1279_v55, 2 }
 0x14b   : > { %v20950_v45 = vsel %vm1182_vm2, %v1205_v21, %v1207_v51  ;;  %v20953_v41 = vsel %vm1182_vm2, %v1207_v51, %v1209_v39  ;;  %v1370_v17 = vshll.u32 %v20945_v10, 16  ;;  %v2188_v21 = vshrl.u32 %v20826_v37, 16  ;;  %17158 = vmatprep.mubr.msk.bf16.mxu1 %vm1406_vm4, %v1350_v15 }
 0x14c   : > { %v25641_v40 = vshll.u32 %v20950_v45, 16  ;;  %v25642_v35 = vshll.u32 %v20953_v41, 16  ;;  %v1359_v33 = vshrl.u32 %v20950_v45, 16  ;;  %v1367_v39 = vshrl.u32 %v20953_v41, 16 }
 0x14d   : > { %v2230_v50 = vshrl.u32 %v20945_v10, 16  ;;  %v20978_v51 = vsel %vm2151_vm5, %v2165_v9, %v2171_v0  ;;  %v2180_v24 = vrot.slane %v1291_v43, 1  ;;  %v2181_v9 = vrot.slane %v1287_v7, 2 }
 0x14e   : > { %v1357_v2 = vrot.slane %v25641_v40, 1  ;;  %v1365_v57 = vrot.slane %v25642_v35, 1  ;;  %v1372_v35 = vrot.slane %v1370_v17, 1  ;;  %v2184_v1 = vrot.slane %v1299_v4, 1 }
 0x14f   : > { %v2185_v63 = vrot.slane %v1295_v32, 2  ;;  %v2178_v55 = vor.u32 %v2177_v60, %v2176_v30  ;;  %v2190_v43 = vrot.slane %v2188_v21, 1  ;;  %v2191_v7 = vrot.slane %v1302_v58, 2 }
 0x150   : > { %v1358_v62 = vsel %vm1237_vm3, %v1353_v34, %v1357_v2  ;;  %v1361_v15 = vor.u32 %v1359_v33, %v1357_v2  ;;  %v1369_v40 = vor.u32 %v1367_v39, %v1365_v57  ;;  %v2182_v34 = vor.u32 %v2181_v9, %v2180_v24 }
 0x151   : > { %17159 = vmatmul.mubr.msk.bf16.gmra.mrb[56].mxu1 %vm1406_vm4, %v1358_v62  ;;  %v2186_v2 = vor.u32 %v2185_v63, %v2184_v1  ;;  %v2197_v4 = vrot.slane %v1317_v59, 1  ;;  %v21008_v32 = vsel %vm2151_vm5, %v2175_v61, %v2178_v55  ;;  %v2192_v24 = vor.u32 %v2191_v7, %v2190_v43 }
 0x152   : > { %v1366_v0 = vsel %vm1237_vm3, %v1361_v15, %v1365_v57  ;;  %v1373_v16 = vsel %vm1237_vm3, %v1369_v40, %v1372_v35  ;;  %v2194_v57 = vrot.slane %v1306_v31, 1  ;;  %v2195_v40 = vrot.slane %v1308_v11, 2 }
 0x153   : > { %17162 = vmatprep.mubr.msk.bf16.mxu1 %vm1406_vm4, %v1366_v0  ;;  %v21011_v30 = vsel %vm2151_vm5, %v2178_v55, %v2182_v34  ;;  %v2198_v58 = vrot.slane %v1313_v19, 2  ;;  %v21016_v35 = vsel %vm2151_vm5, %v2182_v34, %v2186_v2  ;;  %v2201_v11 = vrot.slane %v1325_v18, 1 }
 0x154   : > { %v2196_v31 = vor.u32 %v2195_v40, %v2194_v57  ;;  %v2202_v59 = vrot.slane %v1321_v3, 2  ;;  %v21023_v21 = vsel %vm2151_vm5, %v2186_v2, %v2192_v24  ;;  %v2205_v62 = vrot.slane %v1333_v42, 1 }
 0x155   : > { %v2199_v61 = vor.u32 %v2198_v58, %v2197_v4  ;;  %v2206_v19 = vrot.slane %v1329_v5, 2  ;;  %v2211_v60 = vrot.slane %v2209_v36, 1  ;;  %v2212_v9 = vrot.slane %v1336_v46, 2 }
 0x156   : > { %v2203_v15 = vor.u32 %v2202_v59, %v2201_v11  ;;  %v2215_v18 = vrot.slane %v1340_v38, 1  ;;  %v25824_v1 = vshll.u32 %v20925_v44, 16  ;;  %v2218_v55 = vrot.slane %v1351_v20, 1 }
 0x157   : > { %v21034_v3 = vsel %vm2151_vm5, %v2196_v31, %v2199_v61  ;;  %v2207_v0 = vor.u32 %v2206_v19, %v2205_v62  ;;  %v2213_v42 = vor.u32 %v2212_v9, %v2211_v60  ;;  %v25825_v36 = vshll.u32 %v20922_v6, 16  ;;  %v20135_v19 = vld [vmem:[%s25821_s26 + $0x58] sm:$0xff]  }
 0x158   : > { %v2216_v63 = vrot.slane %v25824_v1, 2  ;;  %v21040_v5 = vsel %vm2151_vm5, %v2199_v61, %v2203_v15  ;;  %v2222_v34 = vrot.slane %v1359_v33, 1  ;;  %v25826_v7 = vshll.u32 %v20950_v45, 16  ;;  %v20133_v61 = vld [vmem:[%s25821_s26 + $0x48] sm:$0xff]  }
 0x159   : > { %17163 = vmatmul.mubr.msk.bf16.gmra.mrb[60].mxu1 %vm1406_vm4, %v1373_v16  ;;  %v2219_v46 = vrot.slane %v25825_v36, 2  ;;  %v21047_v38 = vsel %vm2151_vm5, %v2203_v15, %v2207_v0  ;;  %v2226_v2 = vrot.slane %v1367_v39, 1  ;;  %v21052_v16 = vsel %vm2151_vm5, %v2207_v0, %v2213_v42  ;;  %v20137_v1 = vld [vmem:[%s25821_s26 + $0x68] sm:$0xff]   ;;  %v20138_v42 = vld [vmem:[%s25821_s26 + $0x70] sm:$0xff]  }
 0x15a   : > { %17174 = vmatprep.mubr.msk.bf16.mxu1 %vm1406_vm4, %v20715_v49  ;;  %v2217_v43 = vor.u32 %v2216_v63, %v2215_v18  ;;  %v2223_v20 = vrot.slane %v25826_v7, 2  ;;  %v25827_v40 = vshll.u32 %v20953_v41, 16  ;;  %v2232_v24 = vrot.slane %v2230_v50, 1 }
 0x15b   : > { %v2220_v57 = vor.u32 %v2219_v46, %v2218_v55  ;;  %v2233_v58 = vrot.slane %v1370_v17, 2  ;;  %v20134_v17 = vld [vmem:[%s25821_s26 + $0x50] sm:$0xff]   ;;  %v1842_v15 = vrot.slane %v20715_v49, 1  ;;  %v1843_v60 = vrot.slane %v20712_v48, 1 }
 0x15c   : > { %v2227_v4 = vrot.slane %v25827_v40, 2  ;;  %v2224_v33 = vor.u32 %v2223_v20, %v2222_v34  ;;  %v1845_v18 = vrot.slane %v20732_v12, 1  ;;  %v1847_v0 = vrot.slane %v20735_v13, 1 }
 0x15d   : > { %v21059_v31 = vsel %vm2151_vm5, %v2217_v43, %v2220_v57  ;;  %v2234_v39 = vor.u32 %v2233_v58, %v2232_v24  ;;  %v1844_v9 = vsel %vm1841_vm6, %v1842_v15, %v1843_v60  ;;  %v1849_v36 = vrot.slane %v20747_v27, 1  ;;  %v20139_v43 = vld [vmem:[%s25821_s26 + $0x78] sm:$0xff]  }
 0x15e   : > { %v2228_v11 = vor.u32 %v2227_v4, %v2226_v2  ;;  %v21062_v59 = vsel %vm2151_vm5, %v2220_v57, %v2224_v33  ;;  %v1846_v63 = vsel %vm1841_vm6, %v1843_v60, %v1845_v18  ;;  %v1848_v55 = vsel %vm1841_vm6, %v1845_v18, %v1847_v0  ;;  %v20140_v2 = vld [vmem:[%s25821_s26 + $0x80] sm:$0xff]  }
 0x15f   : > { %v1851_v46 = vrot.slane %v20777_v23, 1  ;;  %v1852_v34 = vrot.slane %v20774_v53, 1  ;;  %v1850_v7 = vsel %vm1841_vm6, %v1847_v0, %v1849_v36  ;;  %v1854_v57 = vrot.slane %v20809_v25, 1 }
 0x160   : > { %v21068_v62 = vsel %vm2151_vm5, %v2224_v33, %v2228_v11  ;;  %v21071_v50 = vsel %vm2151_vm5, %v2228_v11, %v2234_v39  ;;  %v1856_v40 = vrot.slane %v20812_v26, 1  ;;  %v1858_v33 = vrot.slane %v20826_v37, 1 }
 0x161   : > { %17175 = vmatmul.mubr.msk.bf16.vlgmr.msra.gmra.mrb[32].mxu1 %vm1406_vm4, %v20712_v48  ;;  %v1853_v20 = vsel %vm1841_vm6, %v1851_v46, %v1852_v34  ;;  %v1855_v4 = vsel %vm1841_vm6, %v1852_v34, %v1854_v57  ;;  %v1860_v58 = vrot.slane %v20855_v29, 1  ;;  %v1861_v11 = vrot.slane %v20852_v8, 1 }
 0x162   : > { %17207 = vmatpush3.bf16.msra.mxu1 %v20817_v28  ;;  %17178 = vmatprep.mubr.msk.bf16.mxu1 %vm1406_vm4, %v20732_v12  ;;  %v20136_v28 = vld [vmem:[%s25821_s26 + $0x60] sm:$0xff]   ;;  %v1857_v24 = vsel %vm1841_vm6, %v1854_v57, %v1856_v40  ;;  %v1859_v39 = vsel %vm1841_vm6, %v1856_v40, %v1858_v33  ;;  %v1867_v60 = vrot.slane %v20898_v14, 1  ;;  %v1870_v18 = vrot.slane %v20922_v6, 1  ;;  %v20141_v40 = vld [vmem:[%s25821_s26 + $0x88] sm:$0xff]   ;;  %v20380_v33 = vld [vmem:[%s20649_s1 + $0x38] sm:$0xff]  }
 0x163   : > { %17208 = vmatprep.subr.bf16.mxu1 %v20133_v61  ;;  %v1876_v46 = vrot.slane %v20945_v10, 1  ;;  %v20146_v57 = vld [vmem:[%s25829_s27 + $0x20] sm:$0xff]  }
 0x166   : > { %17209 = vmatpush3.bf16.msra.mxu1 %v20133_v61  ;;  %v1862_v61 = vsel %vm1841_vm6, %v1860_v58, %v1861_v11  ;;  %v2529_v58 = vrot.slane %v20852_v8, 2 }
 0x167   : > { %17210 = vmatprep.subr.bf16.mxu1 %v20134_v17 }
 0x169   : > { %17179 = vmatmul.mubr.msk.bf16.gmra.mrb[36].mxu1 %vm1406_vm4, %v20735_v13 }
 0x16a   : > { %17182 = vmatprep.mubr.msk.bf16.mxu1 %vm1406_vm4, %v20777_v23  ;;  %17211 = vmatpush3.bf16.msra.mxu1 %v20134_v17  ;;  %v1863_v17 = vrot.slane %v20884_v54, 1 }
 0x16b   : > { %17212 = vmatprep.subr.bf16.mxu1 %v20135_v19 }
 0x16e   : > { %17213 = vmatpush3.bf16.msra.mxu1 %v20135_v19  ;;  %v1865_v19 = vrot.slane %v20887_v56, 1 }
 0x16f   : > { %17246 = vmatprep.subr.bf16.mxu1 %v20136_v28 }
 0x170   : > { %v1866_v15 = vsel %vm1841_vm6, %v1863_v17, %v1865_v19  ;;  %v1868_v0 = vsel %vm1841_vm6, %v1865_v19, %v1867_v60  ;;  %v2540_v19 = vrot.slane %v20950_v45, 2  ;;  %v20383_v60 = vld [vmem:[%s20649_s1 + $0x50] sm:$0xff]  }
 0x171   : > { %17183 = vmatmul.mubr.msk.bf16.gmra.mrb[40].mxu1 %vm1406_vm4, %v20774_v53 }
 0x172   : > { %17186 = vmatprep.mubr.msk.bf16.mxu1 %vm1406_vm4, %v20809_v25 }
 0x179   : > { %17187 = vmatmul.mubr.msk.bf16.gmra.mrb[44].mxu1 %vm1406_vm4, %v20812_v26 }
 0x17a   : > { %17190 = vmatprep.mubr.msk.bf16.mxu1 %vm1406_vm4, %v20855_v29 }
 0x181   : > { %17191 = vmatmul.mubr.msk.bf16.gmra.mrb[48].mxu1 %vm1406_vm4, %v20852_v8  ;;  %v2535_v8 = vrot.slane %v20898_v14, 2  ;;  %v2542_v14 = vrot.slane %v20953_v41, 2 }
 0x182   : > { %17194 = vmatprep.mubr.msk.bf16.mxu1 %vm1406_vm4, %v20884_v54 }
 0x189   : > { %17195 = vmatmul.mubr.msk.bf16.gmra.mrb[52].mxu1 %vm1406_vm4, %v20887_v56 }
 0x18a   : > { %17198 = vmatprep.mubr.msk.bf16.mxu1 %vm1406_vm4, %v20925_v44 }
 0x191   : > { %17199 = vmatmul.mubr.msk.bf16.gmra.mrb[56].mxu1 %vm1406_vm4, %v20922_v6 }
 0x192   : > { %17202 = vmatprep.mubr.msk.bf16.mxu1 %vm1406_vm4, %v20950_v45 }
 0x199   : > { %17203 = vmatmul.mubr.msk.bf16.gmra.mrb[60].mxu1 %vm1406_vm4, %v20953_v41 }
 0x19a   : > { %17214 = vmatprep.mubr.msk.bf16.mxu1 %vm1406_vm4, %v1844_v9  ;;  %v1869_v9 = vrot.slane %v20925_v44, 1 }
 0x1a1   : > { %17215 = vmatmul.mubr.msk.bf16.vlgmr.msra.gmra.mrb[32].mxu1 %vm1406_vm4, %v1846_v63  ;;  %v1872_v63 = vrot.slane %v20950_v45, 1  ;;  %v20381_v45 = vld [vmem:[%s20649_s1 + $0x40] sm:$0xff]  }
 0x1a2   : > { %17247 = vmatpush3.bf16.msra.mxu1 %v20136_v28  ;;  %17218 = vmatprep.mubr.msk.bf16.mxu1 %vm1406_vm4, %v1848_v55  ;;  %v1864_v28 = vsel %vm1841_vm6, %v1861_v11, %v1863_v17  ;;  %v1874_v55 = vrot.slane %v20953_v41, 1  ;;  %v2538_v17 = vrot.slane %v20922_v6, 2  ;;  %v2543_v6 = vsel %vm953_vm0, %v2540_v19, %v2542_v14  ;;  %v20382_v41 = vld [vmem:[%s20649_s1 + $0x48] sm:$0xff]  }
 0x1a3   : > { %17248 = vmatprep.subr.bf16.mxu1 %v20137_v1 }
 0x1a4   : > { %v1875_v36 = vsel %vm1841_vm6, %v1872_v63, %v1874_v55  ;;  %v1877_v34 = vsel %vm1841_vm6, %v1874_v55, %v1876_v46  ;;  %v20148_v55 = vld [vmem:[%s25829_s27 + $0x30] sm:$0xff]  }
 0x1a6   : > { %17249 = vmatpush3.bf16.msra.mxu1 %v20137_v1  ;;  %v1871_v1 = vsel %vm1841_vm6, %v1869_v9, %v1870_v18  ;;  %v20384_v9 = vld [vmem:[%s20649_s1 + $0x58] sm:$0xff]  }
 0x1a7   : > { %17250 = vmatprep.subr.bf16.mxu1 %v20138_v42 }
 0x1a9   : > { %17219 = vmatmul.mubr.msk.bf16.gmra.mrb[36].mxu1 %vm1406_vm4, %v1850_v7  ;;  %v20145_v7 = vld [vmem:[%s25828_s8 + $0x8] sm:$0x3f]  }
 0x1aa   : > { %17222 = vmatprep.mubr.msk.bf16.mxu1 %vm1406_vm4, %v1853_v20  ;;  %17251 = vmatpush3.bf16.msra.mxu1 %v20138_v42  ;;  %v1873_v42 = vsel %vm1841_vm6, %v1870_v18, %v1872_v63  ;;  %v2913_v20 = vsel %vm953_vm0, %v20145_v7, 0  ;;  %v20385_v18 = vld [vmem:[%s20649_s1 + $0x60] sm:$0xff]   ;;  %v20147_v63 = vld [vmem:[%s25829_s27 + $0x28] sm:$0xff]  }
 0x1ab   : > { %17252 = vmatprep.subr.bf16.mxu1 %v20139_v43 }
 0x1ae   : > { %17253 = vmatpush3.bf16.msra.mxu1 %v20139_v43  ;;  %v20144_v43 = vld [vmem:[%s25828_s8] sm:$0xff]   ;;  %s25835_s8 = sld [smem:[#allocation69_spill]] }
 0x1af   : > { %17286 = vmatprep.subr.bf16.mxu1 %v20140_v2  ;;  %17326 = vmatprep.subr.bf16.mxu0 %v20144_v43 }
 0x1b0   : > { %17327 = vmatpush3.bf16.msra.mxu0 %v20144_v43 }
 0x1b1   : > { %17223 = vmatmul.mubr.msk.bf16.gmra.mrb[40].mxu1 %vm1406_vm4, %v1855_v4  ;;  %20063 = vmatprep.subr.msk.bf16.mxu0 %vm953_vm0, %v20145_v7  ;;  %v20374_v4 = vld [vmem:[%s20649_s1 + $0x8] sm:$0xff]  }
 0x1b2   : > { %17226 = vmatprep.mubr.msk.bf16.mxu1 %vm1406_vm4, %v1857_v24  ;;  %v20375_v24 = vld [vmem:[%s20649_s1 + $0x10] sm:$0xff]  }
 0x1b4   : > { %17329 = vmatpush3.bf16.msra.mxu0 %v2913_v20 }
 0x1b5   : > { %17362 = vmatprep.subr.bf16.mxu0 %v20146_v57 }
 0x1b7   : > { %17331 = vmatmul.mubr.msk.bf16.vlgmr.msra.gmra.mrb[0].mxu0 %vm904_vm1, %v20374_v4 }
 0x1b8   : > { %17363 = vmatpush3.bf16.msra.mxu0 %v20146_v57  ;;  %17334 = vmatprep.mubr.msk.bf16.mxu0 %vm904_vm1, %v20375_v24 }
 0x1b9   : > { %17227 = vmatmul.mubr.msk.bf16.gmra.mrb[44].mxu1 %vm1406_vm4, %v1859_v39  ;;  %v2533_v39 = vrot.slane %v20887_v56, 2  ;;  %17364 = vmatprep.subr.bf16.mxu0 %v20147_v63 }
 0x1ba   : > { %17230 = vmatprep.mubr.msk.bf16.mxu1 %vm1406_vm4, %v1862_v61 }
 0x1bc   : > { %17365 = vmatpush3.bf16.msra.mxu0 %v20147_v63 }
 0x1bd   : > { %17366 = vmatprep.subr.bf16.mxu0 %v20148_v55 }
 0x1c0   : > { %17367 = vmatpush3.bf16.msra.mxu0 %v20148_v55 }
 0x1c1   : > { %17231 = vmatmul.mubr.msk.bf16.gmra.mrb[48].mxu1 %vm1406_vm4, %v1864_v28  ;;  %v2544_v28 = vrot.slane %v20945_v10, 2  ;;  %v20386_v10 = vld [vmem:[%s20649_s1 + $0x68] sm:$0xff]  }
 0x1c2   : > { %17234 = vmatprep.mubr.msk.bf16.mxu1 %vm1406_vm4, %v1866_v15 }
 0x1c3   : > { %v2545_v15 = vsel %vm953_vm0, %v2542_v14, %v2544_v28 }
 0x1c9   : > { %17235 = vmatmul.mubr.msk.bf16.gmra.mrb[52].mxu1 %vm1406_vm4, %v1868_v0  ;;  %v20387_v0 = vld [vmem:[%s20649_s1 + $0x70] sm:$0xff]  }
 0x1ca   : > { %17238 = vmatprep.mubr.msk.bf16.mxu1 %vm1406_vm4, %v1871_v1  ;;  %v20388_v1 = vld [vmem:[%s20649_s1 + $0x78] sm:$0xff]  }
 0x1d1   : > { %17239 = vmatmul.mubr.msk.bf16.gmra.mrb[56].mxu1 %vm1406_vm4, %v1873_v42  ;;  %v20149_v42 = vld [vmem:[%s25829_s27 + $0x38] sm:$0xff]  }
 0x1d2   : > { %17242 = vmatprep.mubr.msk.bf16.mxu1 %vm1406_vm4, %v1875_v36  ;;  %17368 = vmatprep.subr.bf16.mxu0 %v20149_v42  ;;  %v21324_v36 = vld [vmem:[%s25829_s27] sm:$0xff]  }
 0x1d3   : > { %17369 = vmatpush3.bf16.msra.mxu0 %v20149_v42 }
 0x1d4   : > { %17402 = vmatprep.subr.bf16.mxu0 %v21324_v36 }
 0x1d9   : > { %17243 = vmatmul.mubr.msk.bf16.gmra.mrb[60].mxu1 %vm1406_vm4, %v1877_v34 }
 0x1da   : > { %17254 = vmatprep.mubr.msk.bf16.mxu1 %vm1406_vm4, %v20806_v22  ;;  %v20142_v22 = vld [vmem:[%s25821_s26 + $0x90] sm:$0xff]  }
 0x1e1   : > { %17255 = vmatmul.mubr.msk.bf16.vlgmr.msra.gmra.mrb[32].mxu1 %vm1406_vm4, %v20881_v52  ;;  %v20143_v52 = vld [vmem:[%s25821_s26 + $0x98] sm:$0xff]   ;;  %s25830_s26 = sld [smem:[#allocation65_spill]] }
 0x1e2   : > { %17287 = vmatpush3.bf16.msra.mxu1 %v20140_v2  ;;  %17258 = vmatprep.mubr.msk.bf16.mxu1 %vm1406_vm4, %v20973_v47  ;;  %v20376_v47 = vld [vmem:[%s20649_s1 + $0x18] sm:$0xff]   ;;  %v20377_v2 = vld [vmem:[%s20649_s1 + $0x20] sm:$0xff]  }
 0x1e3   : > { %17288 = vmatprep.subr.bf16.mxu1 %v20141_v40  ;;  %17335 = vmatmul.mubr.msk.bf16.gmra.mrb[4].mxu0 %vm904_vm1, %v20376_v47 }
 0x1e4   : > { %17338 = vmatprep.mubr.msk.bf16.mxu0 %vm904_vm1, %v20377_v2 }
 0x1e6   : > { %17289 = vmatpush3.bf16.msra.mxu1 %v20141_v40 }
 0x1e7   : > { %17290 = vmatprep.subr.bf16.mxu1 %v20142_v22  ;;  %v21330_v46 = vld [vmem:[%s25830_s26] ss:$0 sm:$0xff]  ;;  %s16181_s26 = sshll.u32 %s20607_s7, 12 }
 0x1e8   : > { %s25555_s6 = scalar_lea.hbm %s25630_s25, %s16181_s26  ;;  %s20393_s26 = sshll.u32 %s20453_s5, 4  ;;  %s20394_s26 = int_to_ptr.vmem [resolvable:$false] %s20393_s26 }
 0x1e9   : > { %17259 = vmatmul.mubr.msk.bf16.gmra.mrb[36].mxu1 %vm1406_vm4, %v20978_v51  ;;  %v20378_v51 = vld [vmem:[%s20649_s1 + $0x28] sm:$0xff]  }
 0x1ea   : > { %17262 = vmatprep.mubr.msk.bf16.mxu1 %vm1406_vm4, %v21008_v32  ;;  %17291 = vmatpush3.bf16.msra.mxu1 %v20142_v22  ;;  %v20379_v32 = vld [vmem:[%s20649_s1 + $0x30] sm:$0xff]  }
 0x1eb   : > { %17292 = vmatprep.subr.bf16.mxu1 %v20143_v52  ;;  %17339 = vmatmul.mubr.msk.bf16.gmra.mrb[8].mxu0 %vm904_vm1, %v20378_v51 }
 0x1ec   : > { %17342 = vmatprep.mubr.msk.bf16.mxu0 %vm904_vm1, %v20379_v32 }
 0x1ee   : > { %17293 = vmatpush3.bf16.msra.mxu1 %v20143_v52 }
 0x1ef   : > { %18906 = vmatprep.subr.bf16.mxu1 %v20144_v43 }
 0x1f1   : > { %17263 = vmatmul.mubr.msk.bf16.gmra.mrb[40].mxu1 %vm1406_vm4, %v21011_v30  ;;  %v2510_v30 = vrot.slane %v20715_v49, 2  ;;  %v2519_v49 = vrot.slane %v20777_v23, 2  ;;  %v2528_v23 = vrot.slane %v20855_v29, 2  ;;  %v2537_v29 = vrot.slane %v20925_v44, 2 }
 0x1f2   : > { %17266 = vmatprep.mubr.msk.bf16.mxu1 %vm1406_vm4, %v21016_v35  ;;  %v2511_v35 = vrot.slane %v20712_v48, 2  ;;  %v2517_v48 = vrot.slane %v20747_v27, 2  ;;  %v2541_v44 = vsel %vm953_vm0, %v2538_v17, %v2540_v19 }
 0x1f3   : > { %17343 = vmatmul.mubr.msk.bf16.gmra.mrb[12].mxu0 %vm904_vm1, %v20380_v33  ;;  %v2539_v56 = vsel %vm953_vm0, %v2537_v29, %v2538_v17 }
 0x1f9   : > { %17267 = vmatmul.mubr.msk.bf16.gmra.mrb[44].mxu1 %vm1406_vm4, %v21023_v21  ;;  %v2512_v21 = vsel %vm953_vm0, %v2510_v30, %v2511_v35 }
 0x1fa   : > { %17270 = vmatprep.mubr.msk.bf16.mxu1 %vm1406_vm4, %v21034_v3  ;;  %v2513_v3 = vrot.slane %v20732_v12, 2 }
 0x201   : > { %17271 = vmatmul.mubr.msk.bf16.gmra.mrb[48].mxu1 %vm1406_vm4, %v21040_v5  ;;  %v2515_v5 = vrot.slane %v20735_v13, 2 }
 0x202   : > { %17274 = vmatprep.mubr.msk.bf16.mxu1 %vm1406_vm4, %v21047_v38  ;;  %v2514_v38 = vsel %vm953_vm0, %v2511_v35, %v2513_v3 }
 0x203   : > { %v2518_v12 = vsel %vm953_vm0, %v2515_v5, %v2517_v48 }
 0x209   : > { %17275 = vmatmul.mubr.msk.bf16.gmra.mrb[52].mxu1 %vm1406_vm4, %v21052_v16  ;;  %v2516_v16 = vsel %vm953_vm0, %v2513_v3, %v2515_v5 }
 0x20a   : > { %17278 = vmatprep.mubr.msk.bf16.mxu1 %vm1406_vm4, %v21059_v31  ;;  %v2520_v31 = vrot.slane %v20774_v53, 2  ;;  %v2526_v53 = vrot.slane %v20826_v37, 2 }
 0x20c   : > { %v2521_v13 = vsel %vm953_vm0, %v2519_v49, %v2520_v31 }
 0x211   : > { %17279 = vmatmul.mubr.msk.bf16.gmra.mrb[56].mxu1 %vm1406_vm4, %v21062_v59  ;;  %v2522_v59 = vrot.slane %v20809_v25, 2  ;;  %v2530_v25 = vsel %vm953_vm0, %v2528_v23, %v2529_v58 }
 0x212   : > { %17282 = vmatprep.mubr.msk.bf16.mxu1 %vm1406_vm4, %v21068_v62  ;;  %v2524_v62 = vrot.slane %v20812_v26, 2  ;;  %v2531_v26 = vrot.slane %v20884_v54, 2  ;;  %v2536_v54 = vsel %vm953_vm0, %v2533_v39, %v2535_v8 }
 0x214   : > { %v2525_v27 = vsel %vm953_vm0, %v2522_v59, %v2524_v62  ;;  %v2527_v11 = vsel %vm953_vm0, %v2524_v62, %v2526_v53  ;;  %v2532_v61 = vsel %vm953_vm0, %v2529_v58, %v2531_v26  ;;  %v2534_v37 = vsel %vm953_vm0, %v2531_v26, %v2533_v39 }
 0x219   : > { %17283 = vmatmul.mubr.msk.bf16.gmra.mrb[60].mxu1 %vm1406_vm4, %v21071_v50  ;;  %v2523_v50 = vsel %vm953_vm0, %v2520_v31, %v2522_v59 }
 0x21a   : > { %17294 = vmatprep.mubr.msk.bf16.mxu1 %vm1406_vm4, %v2512_v21 }
 0x221   : > { %17295 = vmatmul.mubr.msk.bf16.vlgmr.msra.gmra.mrb[32].mxu1 %vm1406_vm4, %v2514_v38 }
 0x222   : > { %17298 = vmatprep.mubr.msk.bf16.mxu1 %vm1406_vm4, %v2516_v16  ;;  %18908 = vmatpush3.bf16.msra.mxu1 %v20144_v43 }
 0x223   : > { %20064 = vmatprep.subr.msk.bf16.mxu1 %vm953_vm0, %v20145_v7 }
 0x226   : > { %18909 = vmatpush3.bf16.msra.mxu1 %v2913_v20 }
 0x229   : > { %17299 = vmatmul.mubr.msk.bf16.gmra.mrb[36].mxu1 %vm1406_vm4, %v2518_v12 }
 0x22a   : > { %17302 = vmatprep.mubr.msk.bf16.mxu1 %vm1406_vm4, %v2521_v13 }
 0x231   : > { %17303 = vmatmul.mubr.msk.bf16.gmra.mrb[40].mxu1 %vm1406_vm4, %v2523_v50  ;;  %v25831_v50 = vmov 0 }
 0x232   : > { %17306 = vmatprep.mubr.msk.bf16.mxu1 %vm1406_vm4, %v2525_v27  ;;  %v25832_v50 = vsel %vm21342_vm8, 4294967295, %v25831_v50 }
 0x233   : > { %25833 = vst [vmem:[#allocation9_spill] sm:$0xff] %v25832_v50 }
 0x239   : > { %17307 = vmatmul.mubr.msk.bf16.gmra.mrb[44].mxu1 %vm1406_vm4, %v2527_v11 }
 0x23a   : > { %17310 = vmatprep.mubr.msk.bf16.mxu1 %vm1406_vm4, %v2530_v25 }
 0x241   : > { %17311 = vmatmul.mubr.msk.bf16.gmra.mrb[48].mxu1 %vm1406_vm4, %v2532_v61 }
 0x242   : > { %17314 = vmatprep.mubr.msk.bf16.mxu1 %vm1406_vm4, %v2534_v37 }
 0x249   : > { %17315 = vmatmul.mubr.msk.bf16.gmra.mrb[52].mxu1 %vm1406_vm4, %v2536_v54 }
 0x24a   : > { %17318 = vmatprep.mubr.msk.bf16.mxu1 %vm1406_vm4, %v2539_v56 }
 0x251   : > { %17319 = vmatmul.mubr.msk.bf16.gmra.mrb[56].mxu1 %vm1406_vm4, %v2541_v44 }
 0x252   : > { %17322 = vmatprep.mubr.msk.bf16.mxu1 %vm1406_vm4, %v2543_v6 }
 0x259   : > { %17323 = vmatmul.mubr.msk.bf16.gmra.mrb[60].mxu1 %vm1406_vm4, %v2545_v15 }
 0x25a   : > { %17346 = vmatprep.mubr.msk.bf16.mxu1 %vm904_vm1, %v20381_v45 }
 0x261   : > { %17347 = vmatmul.mubr.msk.bf16.vlgmr.msra.gmra.mrb[64].mxu1 %vm904_vm1, %v20382_v41 }
 0x262   : > { %17350 = vmatprep.mubr.msk.bf16.mxu1 %vm904_vm1, %v20383_v60 }
 0x269   : > { %17351 = vmatmul.mubr.msk.bf16.gmra.mrb[68].mxu1 %vm904_vm1, %v20384_v9 }
 0x26a   : > { %17354 = vmatprep.mubr.msk.bf16.mxu1 %vm904_vm1, %v20385_v18 }
 0x271   : > { %17355 = vmatmul.mubr.msk.bf16.gmra.mrb[72].mxu1 %vm904_vm1, %v20386_v10 }
 0x272   : > { %17358 = vmatprep.mubr.msk.bf16.mxu1 %vm904_vm1, %v20387_v0 }
 0x279   : > { %17359 = vmatmul.mubr.msk.bf16.gmra.mrb[76].mxu1 %vm904_vm1, %v20388_v1 }
 0x2f4   : > { %v17296_v34 = vpop.f32.mrb[32].mxu1 }
 0x2f5   : > { %v2828_v43 = vadd.f32 %v17296_v34, %v21330_v46  ;;  %v2660_v7 = vpop.f32.mrb[33].mxu1 }
 0x2f6   : > { %v2826_v20 = vadd.f32 %v21330_v46, %v2660_v7  ;;  %v17297_v57 = vpop.f32.mrb[34].mxu1 }
 0x2f7   : > { %v2829_v40 = vadd.f32 %v17297_v57, %v21330_v46  ;;  %v2663_v22 = vpop.f32.mrb[35].mxu1  ;;  %v2860_v24 = vmax.f32 %v2828_v43, 0.0 }
 0x2f8   : > { %v2827_v4 = vadd.f32 %v21330_v46, %v2663_v22  ;;  %v2858_v47 = vmax.f32 %v2826_v20, 0.0 }
 0x2f9   : > { %v2861_v52 = vmax.f32 %v2829_v40, 0.0 }
 0x2fa   : > { %v2859_v2 = vmax.f32 %v2827_v4, 0.0 }
 0x2fb   : > { %v3077_v51 = vpack.c.bf16 %v2861_v52, %v2860_v24 }
 0x2fc   : > { %v3076_v32 = vpack.c.bf16 %v2859_v2, %v2858_v47  ;;  %v17300_v33 = vpop.f32.mrb[36].mxu1 }
 0x2fd   : > { %v3101_v30 = vshrl.u32 %v3077_v51, 16  ;;  %v2832_v35 = vadd.f32 %v17300_v33, %v21330_v46  ;;  %v2676_v21 = vpop.f32.mrb[37].mxu1  ;;  %v3104_v48 = vshll.u32 %v3077_v51, 16 }
 0x2fe   : > { %v3094_v3 = vshrl.u32 %v3076_v32, 16  ;;  %v2830_v5 = vadd.f32 %v21330_v46, %v2676_v21  ;;  %v17301_v38 = vpop.f32.mrb[38].mxu1  ;;  %v3097_v13 = vshll.u32 %v3076_v32, 16 }
 0x2ff   : > { %v3103_v16 = vrot.slane %v3101_v30, 7  ;;  %v2833_v49 = vadd.f32 %v17301_v38, %v21330_v46  ;;  %v2679_v31 = vpop.f32.mrb[39].mxu1  ;;  %v2864_v27 = vmax.f32 %v2832_v35, 0.0 }
 0x300   : > { %v3096_v12 = vrot.slane %v3094_v3, 7  ;;  %v2831_v59 = vadd.f32 %v21330_v46, %v2679_v31  ;;  %v2862_v58 = vmax.f32 %v2830_v5, 0.0 }
 0x301   : > { %v3106_v62 = vor.u32 %v3104_v48, %v3103_v16  ;;  %v2865_v53 = vmax.f32 %v2833_v49, 0.0 }
 0x302   : > { %v3099_v23 = vor.u32 %v3097_v13, %v3096_v12  ;;  %v2863_v11 = vmax.f32 %v2831_v59, 0.0 }
 0x303   : > { %v21347_v25 = vsel %vm3092_vm7, %v3096_v12, %v3106_v62  ;;  %v3079_v26 = vpack.c.bf16 %v2865_v53, %v2864_v27 }
 0x304   : > { %v21351_v39 = vsel %vm21342_vm8, 0, %v3099_v23  ;;  %v3078_v61 = vpack.c.bf16 %v2863_v11, %v2862_v58  ;;  %v17304_v37 = vpop.f32.mrb[40].mxu1  ;;  %v3250_v8 = vshll.u32 %v21347_v25, 16  ;;  %v3254_v56 = vshrl.u32 %v21347_v25, 16  ;;  %v20151_v58 = vld [vmem:[%s25829_s27 + $0x8] sm:$0xff]  }
 0x305   : > { %v3117_v29 = vshrl.u32 %v3079_v26, 16  ;;  %v2836_v17 = vadd.f32 %v17304_v37, %v21330_v46  ;;  %v2692_v54 = vpop.f32.mrb[41].mxu1  ;;  %v3120_v19 = vshll.u32 %v3079_v26, 16  ;;  %v3245_v28 = vshll.u32 %v21351_v39, 16 }
 0x306   : > { %v3109_v14 = vshrl.u32 %v3078_v61, 16  ;;  %v2834_v44 = vadd.f32 %v21330_v46, %v2692_v54  ;;  %v17305_v6 = vpop.f32.mrb[42].mxu1  ;;  %v3243_v60 = vshrl.u32 %v21351_v39, 16  ;;  %v3252_v9 = vrot.slane %v3250_v8, 1 }
 0x307   : > { %v3119_v15 = vrot.slane %v3117_v29, 7  ;;  %v2837_v45 = vadd.f32 %v17305_v6, %v21330_v46  ;;  %v2695_v41 = vpop.f32.mrb[43].mxu1  ;;  %v3112_v10 = vshll.u32 %v3078_v61, 16  ;;  %v3247_v1 = vrot.slane %v3245_v28, 1 }
 0x308   : > { %v3111_v18 = vrot.slane %v3109_v14, 7  ;;  %v2835_v0 = vadd.f32 %v21330_v46, %v2695_v41  ;;  %v2868_v55 = vmax.f32 %v2836_v17, 0.0  ;;  %v2866_v42 = vmax.f32 %v2834_v44, 0.0  ;;  %v20152_v41 = vld [vmem:[%s25829_s27 + $0x10] sm:$0xff]  }
 0x309   : > { %v3122_v63 = vor.u32 %v3120_v19, %v3119_v15  ;;  %v2869_v34 = vmax.f32 %v2837_v45, 0.0  ;;  %v21363_v43 = vsel %vm21342_vm8, %v3119_v15, 0  ;;  %v3248_v57 = vor.u32 %v3247_v1, %v3243_v60 }
 0x30a   : > { %v3114_v7 = vor.u32 %v3112_v10, %v3111_v18  ;;  %v2867_v20 = vmax.f32 %v2835_v0, 0.0  ;;  %v3256_v4 = vor.u32 %v3254_v56, %v3252_v9  ;;  %v3274_v21 = vshll.u32 %v21363_v43, 16 }
 0x30b   : > { %v21366_v40 = vsel %vm3092_vm7, %v3111_v18, %v3122_v63  ;;  %v3081_v22 = vpack.c.bf16 %v2869_v34, %v2868_v55  ;;  %v3253_v2 = vsel %vm1237_vm3, %v3248_v57, %v3252_v9 }
 0x30c   : > { %v21369_v24 = vsel %vm3092_vm7, %v3103_v16, %v3114_v7  ;;  %v3080_v52 = vpack.c.bf16 %v2867_v20, %v2866_v42  ;;  %v17308_v47 = vpop.f32.mrb[44].mxu1  ;;  %v3266_v51 = vshll.u32 %v21366_v40, 16  ;;  %17370 = vmatprep.mubr.msk.bf16.mxu0 %vm1406_vm4, %v3253_v2  ;;  %v3270_v54 = vshrl.u32 %v21366_v40, 16 }
 0x30d   : > { %v3132_v32 = vshrl.u32 %v3081_v22, 16  ;;  %v2840_v33 = vadd.f32 %v17308_v47, %v21330_v46  ;;  %v2708_v30 = vpop.f32.mrb[45].mxu1  ;;  %v3258_v35 = vshll.u32 %v21369_v24, 16  ;;  %v3135_v3 = vshll.u32 %v3081_v22, 16 }
 0x30e   : > { %v3125_v5 = vshrl.u32 %v3080_v52, 16  ;;  %v3128_v38 = vshll.u32 %v3080_v52, 16  ;;  %v2838_v16 = vadd.f32 %v21330_v46, %v2708_v30  ;;  %v17309_v48 = vpop.f32.mrb[46].mxu1  ;;  %v3262_v59 = vshrl.u32 %v21369_v24, 16 }
 0x30f   : > { %v21378_v49 = vrot.slane %v3132_v32, 7  ;;  %v2841_v31 = vadd.f32 %v17309_v48, %v21330_v46  ;;  %v2711_v12 = vpop.f32.mrb[47].mxu1  ;;  %v3260_v13 = vrot.slane %v3258_v35, 1  ;;  %v2872_v27 = vmax.f32 %v2840_v33, 0.0 }
 0x310   : > { %v3127_v62 = vrot.slane %v3125_v5, 7  ;;  %v2839_v53 = vadd.f32 %v21330_v46, %v2711_v12  ;;  %v3268_v23 = vrot.slane %v3266_v51, 1  ;;  %v2870_v29 = vmax.f32 %v2838_v16, 0.0  ;;  %v20153_v51 = vld [vmem:[%s25829_s27 + $0x18] sm:$0xff]  }
 0x311   : > { %v3137_v11 = vor.u32 %v3135_v3, %v21378_v49  ;;  %v2873_v26 = vmax.f32 %v2841_v31, 0.0  ;;  %v3261_v61 = vsel %vm1237_vm3, %v3256_v4, %v3260_v13  ;;  %v3264_v37 = vor.u32 %v3262_v59, %v3260_v13 }
 0x312   : > { %v3130_v8 = vor.u32 %v3128_v38, %v3127_v62  ;;  %v2871_v17 = vmax.f32 %v2839_v53, 0.0  ;;  %17371 = vmatmul.mubr.msk.bf16.vlgmr.msra.gmra.mrb[0].mxu0 %vm1406_vm4, %v3261_v61  ;;  %v3272_v15 = vor.u32 %v3270_v54, %v3268_v23  ;;  %v3276_v10 = vrot.slane %v3274_v21, 1 }
 0x313   : > { %v21391_v56 = vsel %vm3092_vm7, %v3127_v62, %v3137_v11  ;;  %v3083_v19 = vpack.c.bf16 %v2873_v26, %v2872_v27  ;;  %17403 = vmatpush3.bf16.msra.mxu0 %v21324_v36  ;;  %v3269_v14 = vsel %vm1237_vm3, %v3264_v37, %v3268_v23  ;;  %v21432_v23 = vld [vmem:[%s25829_s27 + $0x40] sm:$0xff]  }
 0x314   : > { %v21397_v44 = vsel %vm21342_vm8, 0, %v3130_v8  ;;  %v3082_v6 = vpack.c.bf16 %v2871_v17, %v2870_v29  ;;  %v17312_v28 = vpop.f32.mrb[48].mxu1  ;;  %17374 = vmatprep.mubr.msk.bf16.mxu0 %vm1406_vm4, %v3269_v14  ;;  %v3286_v45 = vshll.u32 %v21391_v56, 16  ;;  %17404 = vmatprep.subr.bf16.mxu0 %v20151_v58  ;;  %v3277_v57 = vsel %vm1237_vm3, %v3272_v15, %v3276_v10 }
 0x315   : > { %v3148_v60 = vshrl.u32 %v3083_v19, 16  ;;  %v3151_v36 = vshll.u32 %v3083_v19, 16  ;;  %v2844_v9 = vadd.f32 %v17312_v28, %v21330_v46  ;;  %v2724_v18 = vpop.f32.mrb[49].mxu1  ;;  %v3279_v42 = vshrl.u32 %v21397_v44, 16 }
 0x316   : > { %v3140_v0 = vshrl.u32 %v3082_v6, 16  ;;  %v3143_v1 = vshll.u32 %v3082_v6, 16  ;;  %v2842_v63 = vadd.f32 %v21330_v46, %v2724_v18  ;;  %v17313_v55 = vpop.f32.mrb[50].mxu1  ;;  %v3281_v22 = vshll.u32 %v21397_v44, 16 }
 0x317   : > { %v3150_v34 = vrot.slane %v3148_v60, 7  ;;  %v2845_v7 = vadd.f32 %v17313_v55, %v21330_v46  ;;  %v2727_v20 = vpop.f32.mrb[51].mxu1  ;;  %17405 = vmatpush3.bf16.msra.mxu0 %v20151_v58  ;;  %v2876_v52 = vmax.f32 %v2844_v9, 0.0  ;;  %v3288_v2 = vrot.slane %v3286_v45, 1 }
 0x318   : > { %v3142_v4 = vrot.slane %v3140_v0, 7  ;;  %v2843_v47 = vadd.f32 %v21330_v46, %v2727_v20  ;;  %17406 = vmatprep.subr.bf16.mxu0 %v20152_v41  ;;  %v3283_v35 = vrot.slane %v3281_v22, 1  ;;  %v2874_v3 = vmax.f32 %v2842_v63, 0.0 }
 0x319   : > { %v3153_v32 = vor.u32 %v3151_v36, %v3150_v34  ;;  %v21416_v33 = vsel %vm21342_vm8, %v3150_v34, 0  ;;  %v2877_v30 = vmax.f32 %v2845_v7, 0.0  ;;  %v3290_v38 = vshrl.u32 %v21391_v56, 16 }
 0x31a   : > { %v3145_v21 = vor.u32 %v3143_v1, %v3142_v4  ;;  %v2875_v5 = vmax.f32 %v2843_v47, 0.0  ;;  %17375 = vmatmul.mubr.msk.bf16.gmra.mrb[4].mxu0 %vm1406_vm4, %v3277_v57  ;;  %v3284_v31 = vor.u32 %v3283_v35, %v3279_v42  ;;  %v3310_v12 = vshll.u32 %v21416_v33, 16 }
 0x31b   : > { %v21421_v16 = vsel %vm3092_vm7, %v3142_v4, %v3153_v32  ;;  %v3085_v48 = vpack.c.bf16 %v2877_v30, %v2876_v52  ;;  %17407 = vmatpush3.bf16.msra.mxu0 %v20152_v41  ;;  %v3292_v27 = vor.u32 %v3290_v38, %v3288_v2 }
 0x31c   : > { %v21426_v13 = vsel %vm3092_vm7, %v21378_v49, %v3145_v21  ;;  %v3084_v59 = vpack.c.bf16 %v2875_v5, %v2874_v3  ;;  %v17316_v62 = vpop.f32.mrb[52].mxu1  ;;  %v3302_v53 = vshll.u32 %v21421_v16, 16  ;;  %17408 = vmatprep.subr.bf16.mxu0 %v20153_v51  ;;  %v3289_v61 = vsel %vm1237_vm3, %v3284_v31, %v3288_v2 }
 0x31d   : > { %v3163_v58 = vshrl.u32 %v3085_v48, 16  ;;  %v3166_v11 = vshll.u32 %v3085_v48, 16  ;;  %v2848_v26 = vadd.f32 %v17316_v62, %v21330_v46  ;;  %v2740_v37 = vpop.f32.mrb[53].mxu1  ;;  %17378 = vmatprep.mubr.msk.bf16.mxu0 %vm1406_vm4, %v3289_v61  ;;  %v3294_v54 = vshll.u32 %v21426_v13, 16 }
 0x31e   : > { %v3156_v49 = vshrl.u32 %v3084_v59, 16  ;;  %v3159_v8 = vshll.u32 %v3084_v59, 16  ;;  %v2846_v29 = vadd.f32 %v21330_v46, %v2740_v37  ;;  %v17317_v17 = vpop.f32.mrb[54].mxu1  ;;  %v3298_v15 = vshrl.u32 %v21426_v13, 16 }
 0x31f   : > { %v3165_v19 = vrot.slane %v3163_v58, 7  ;;  %v2880_v14 = vmax.f32 %v2848_v26, 0.0  ;;  %v2849_v6 = vadd.f32 %v17317_v17, %v21330_v46  ;;  %v2743_v28 = vpop.f32.mrb[55].mxu1  ;;  %17409 = vmatpush3.bf16.msra.mxu0 %v20153_v51  ;;  %v3296_v36 = vrot.slane %v3294_v54, 1 }
 0x320   : > { %v3158_v45 = vrot.slane %v3156_v49, 7  ;;  %v2878_v41 = vmax.f32 %v2846_v29, 0.0  ;;  %v2847_v60 = vadd.f32 %v21330_v46, %v2743_v28  ;;  %17442 = vmatprep.subr.bf16.mxu0 %v21432_v23  ;;  %v3304_v10 = vrot.slane %v3302_v53, 1 }
 0x321   : > { %v3168_v9 = vor.u32 %v3166_v11, %v3165_v19  ;;  %v2881_v18 = vmax.f32 %v2849_v6, 0.0  ;;  %v3306_v0 = vshrl.u32 %v21421_v16, 16  ;;  %v3297_v55 = vsel %vm1237_vm3, %v3292_v27, %v3296_v36 }
 0x322   : > { %v3161_v1 = vor.u32 %v3159_v8, %v3158_v45  ;;  %v2879_v63 = vmax.f32 %v2847_v60, 0.0  ;;  %v3300_v42 = vor.u32 %v3298_v15, %v3296_v36  ;;  %17379 = vmatmul.mubr.msk.bf16.gmra.mrb[8].mxu0 %vm1406_vm4, %v3297_v55  ;;  %v3312_v57 = vrot.slane %v3310_v12, 1 }
 0x323   : > { %v21446_v34 = vsel %vm3092_vm7, %v3158_v45, %v3168_v9  ;;  %v3087_v7 = vpack.c.bf16 %v2881_v18, %v2880_v14  ;;  %v3308_v20 = vor.u32 %v3306_v0, %v3304_v10 }
 0x324   : > { %v21451_v22 = vsel %vm21342_vm8, 0, %v3161_v1  ;;  %v3086_v4 = vpack.c.bf16 %v2879_v63, %v2878_v41  ;;  %v17320_v52 = vpop.f32.mrb[56].mxu1  ;;  %v3305_v47 = vsel %vm1237_vm3, %v3300_v42, %v3304_v10  ;;  %v3322_v2 = vshll.u32 %v21446_v34, 16 }
 0x325   : > { %v3179_v51 = vshrl.u32 %v3087_v7, 16  ;;  %v2852_v32 = vadd.f32 %v17320_v52, %v21330_v46  ;;  %17382 = vmatprep.mubr.msk.bf16.mxu0 %vm1406_vm4, %v3305_v47  ;;  %v2756_v30 = vpop.f32.mrb[57].mxu1  ;;  %v3182_v35 = vshll.u32 %v3087_v7, 16  ;;  %v3313_v38 = vsel %vm1237_vm3, %v3308_v20, %v3312_v57 }
 0x326   : > { %v3171_v21 = vshrl.u32 %v3086_v4, 16  ;;  %v2850_v3 = vadd.f32 %v21330_v46, %v2756_v30  ;;  %v17321_v5 = vpop.f32.mrb[58].mxu1  ;;  %v3174_v31 = vshll.u32 %v3086_v4, 16  ;;  %v3317_v62 = vshll.u32 %v21451_v22, 16 }
 0x327   : > { %v3181_v48 = vrot.slane %v3179_v51, 7  ;;  %v2853_v12 = vadd.f32 %v17321_v5, %v21330_v46  ;;  %v2759_v59 = vpop.f32.mrb[59].mxu1  ;;  %v3315_v58 = vshrl.u32 %v21451_v22, 16  ;;  %v3324_v11 = vrot.slane %v3322_v2, 1 }
 0x328   : > { %v3173_v27 = vrot.slane %v3171_v21, 7  ;;  %v2851_v53 = vadd.f32 %v21330_v46, %v2759_v59  ;;  %v2884_v61 = vmax.f32 %v2852_v32, 0.0  ;;  %v3319_v49 = vrot.slane %v3317_v62, 1 }
 0x329   : > { %v3184_v26 = vor.u32 %v3182_v35, %v3181_v48  ;;  %v2885_v37 = vmax.f32 %v2853_v12, 0.0  ;;  %v2882_v29 = vmax.f32 %v2850_v3, 0.0  ;;  %v3326_v54 = vshrl.u32 %v21446_v34, 16 }
 0x32a   : > { %v3176_v8 = vor.u32 %v3174_v31, %v3173_v27  ;;  %v2883_v17 = vmax.f32 %v2851_v53, 0.0  ;;  %17383 = vmatmul.mubr.msk.bf16.gmra.mrb[12].mxu0 %vm1406_vm4, %v3313_v38  ;;  %v3320_v28 = vor.u32 %v3319_v49, %v3315_v58  ;;  %v21470_v15 = vsel %vm21342_vm8, %v3181_v48, 0 }
 0x32b   : > { %v21465_v14 = vsel %vm3092_vm7, %v3173_v27, %v3184_v26  ;;  %v3089_v6 = vpack.c.bf16 %v2885_v37, %v2884_v61  ;;  %v3328_v36 = vor.u32 %v3326_v54, %v3324_v11 }
 0x32c   : > { %v21473_v45 = vsel %vm3092_vm7, %v3165_v19, %v3176_v8  ;;  %v3088_v41 = vpack.c.bf16 %v2883_v17, %v2882_v29  ;;  %v17324_v60 = vpop.f32.mrb[60].mxu1  ;;  %v3325_v10 = vsel %vm1237_vm3, %v3320_v28, %v3324_v11  ;;  %v3338_v1 = vshll.u32 %v21465_v14, 16 }
 0x32d   : > { %v3194_v9 = vshrl.u32 %v3089_v6, 16  ;;  %v2856_v18 = vadd.f32 %v17324_v60, %v21330_v46  ;;  %v2772_v0 = vpop.f32.mrb[61].mxu1  ;;  %v3197_v63 = vshll.u32 %v3089_v6, 16  ;;  %17386 = vmatprep.mubr.msk.bf16.mxu0 %vm1406_vm4, %v3325_v10  ;;  %v3330_v19 = vshll.u32 %v21473_v45, 16 }
 0x32e   : > { %v3187_v55 = vshrl.u32 %v3088_v41, 16  ;;  %v2854_v42 = vadd.f32 %v21330_v46, %v2772_v0  ;;  %v17325_v7 = vpop.f32.mrb[62].mxu1  ;;  %v3190_v57 = vshll.u32 %v3088_v41, 16  ;;  %v3334_v30 = vshrl.u32 %v21473_v45, 16 }
 0x32f   : > { %v3196_v20 = vrot.slane %v3194_v9, 7  ;;  %v2888_v4 = vmax.f32 %v2856_v18, 0.0  ;;  %v2857_v52 = vadd.f32 %v17325_v7, %v21330_v46  ;;  %v2775_v47 = vpop.f32.mrb[63].mxu1  ;;  %v3332_v32 = vrot.slane %v3330_v19, 1 }
 0x330   : > { %v3189_v2 = vrot.slane %v3187_v55, 7  ;;  %v2855_v51 = vadd.f32 %v21330_v46, %v2775_v47  ;;  %v2886_v21 = vmax.f32 %v2854_v42, 0.0  ;;  %v3340_v5 = vrot.slane %v3338_v1, 1 }
 0x331   : > { %v3199_v35 = vor.u32 %v3197_v63, %v3196_v20  ;;  %v2889_v3 = vmax.f32 %v2857_v52, 0.0  ;;  %v3333_v31 = vsel %vm1237_vm3, %v3328_v36, %v3332_v32  ;;  %v3336_v12 = vor.u32 %v3334_v30, %v3332_v32 }
 0x332   : > { %v3192_v38 = vor.u32 %v3190_v57, %v3189_v2  ;;  %v2887_v48 = vmax.f32 %v2855_v51, 0.0  ;;  %17387 = vmatmul.mubr.msk.bf16.gmra.mrb[16].mxu0 %vm1406_vm4, %v3333_v31  ;;  %v3346_v46 = vshll.u32 %v21470_v15, 16  ;;  %v3342_v11 = vshrl.u32 %v21465_v14, 16  ;;  %v20157_v31 = vld [vmem:[%s25829_s27 + $0x58] sm:$0xff]  }
 0x333   : > { %v21486_v59 = vsel %vm3092_vm7, %v3189_v2, %v3199_v35  ;;  %v3091_v62 = vpack.c.bf16 %v2889_v3, %v2888_v4  ;;  %v3341_v58 = vsel %vm1237_vm3, %v3336_v12, %v3340_v5  ;;  %v3852_v12 = vrot.slane %v21351_v39, 1 }
 0x334   : > { %v21492_v27 = vsel %vm21342_vm8, 0, %v3192_v38  ;;  %v3090_v53 = vpack.c.bf16 %v2887_v48, %v2886_v21  ;;  %17390 = vmatprep.mubr.msk.bf16.mxu0 %vm1406_vm4, %v3341_v58  ;;  %v3344_v37 = vor.u32 %v3342_v11, %v3340_v5  ;;  %v3358_v8 = vshll.u32 %v21486_v59, 16  ;;  %v20155_v38 = vld [vmem:[%s25829_s27 + $0x48] sm:$0xff]   ;;  %v20156_v48 = vld [vmem:[%s25829_s27 + $0x50] sm:$0xff]  }
 0x335   : > { %v3210_v26 = vshrl.u32 %v3091_v62, 16  ;;  %v3353_v49 = vshll.u32 %v21492_v27, 16  ;;  %v3213_v17 = vshll.u32 %v3091_v62, 16  ;;  %v3348_v54 = vrot.slane %v3346_v46, 1  ;;  %v20159_v11 = vld [vmem:[%s25834_s28 + $0x28] sm:$0xff]  }
 0x336   : > { %v3202_v61 = vshrl.u32 %v3090_v53, 16  ;;  %v3205_v28 = vshll.u32 %v3090_v53, 16  ;;  %v3351_v41 = vshrl.u32 %v21492_v27, 16  ;;  %v3360_v0 = vrot.slane %v3358_v8, 1 }
 0x337   : > { %v3212_v29 = vrot.slane %v3210_v26, 7  ;;  %v3355_v60 = vrot.slane %v3353_v49, 1  ;;  %v3349_v18 = vsel %vm1237_vm3, %v3344_v37, %v3348_v54  ;;  %v3362_v42 = vshrl.u32 %v21486_v59, 16 }
 0x338   : > { %v3204_v6 = vrot.slane %v3202_v61, 7  ;;  %v3853_v62 = vrot.slane %v21347_v25, 1  ;;  %v3855_v53 = vrot.slane %v21369_v24, 1  ;;  %v3857_v58 = vrot.slane %v21366_v40, 1 }
 0x339   : > { %v3215_v36 = vor.u32 %v3213_v17, %v3212_v29  ;;  %v3356_v10 = vor.u32 %v3355_v60, %v3351_v41  ;;  %v3364_v57 = vor.u32 %v3362_v42, %v3360_v0  ;;  %v21516_v47 = vsel %vm21342_vm8, %v3212_v29, 0 }
 0x33a   : > { %v3207_v9 = vor.u32 %v3205_v28, %v3204_v6  ;;  %17391 = vmatmul.mubr.msk.bf16.gmra.mrb[20].mxu0 %vm1406_vm4, %v3349_v18  ;;  %v3382_v35 = vshll.u32 %v21516_v47, 16  ;;  %v3854_v46 = vsel %vm1841_vm6, %v3852_v12, %v3853_v62  ;;  %v3856_v26 = vsel %vm1841_vm6, %v3853_v62, %v3855_v53 }
 0x33b   : > { %v21502_v1 = vsel %vm3092_vm7, %v3204_v6, %v3215_v36  ;;  %v3361_v55 = vsel %vm1237_vm3, %v3356_v10, %v3360_v0  ;;  %v3859_v61 = vrot.slane %v21363_v43, 1  ;;  %v3864_v8 = vrot.slane %v21426_v13, 1  ;;  %v20161_v10 = vld [vmem:[%s25834_s28 + $0x38] sm:$0xff]   ;;  %v17348_v0 = vpop.f32.mrb[64].mxu1 }
 0x33c   : > { %v21506_v63 = vsel %vm3092_vm7, %v3196_v20, %v3207_v9  ;;  %17394 = vmatprep.mubr.msk.bf16.mxu0 %vm1406_vm4, %v3361_v55  ;;  %v3374_v19 = vshll.u32 %v21502_v1, 16  ;;  %v3378_v30 = vshrl.u32 %v21502_v1, 16  ;;  %v3384_v3 = vrot.slane %v3382_v35, 1 }
 0x33d   : > { %v3366_v7 = vshll.u32 %v21506_v63, 16  ;;  %v3370_v52 = vshrl.u32 %v21506_v63, 16  ;;  %v3860_v37 = vsel %vm1841_vm6, %v3857_v58, %v3859_v61  ;;  %v3866_v29 = vrot.slane %v21421_v16, 1 }
 0x33e   : > { %v3376_v51 = vrot.slane %v3374_v19, 1  ;;  %v3871_v17 = vrot.slane %v21446_v34, 1  ;;  %v3868_v54 = vrot.slane %v21416_v33, 1  ;;  %v3875_v28 = vrot.slane %v21465_v14, 1 }
 0x33f   : > { %v3368_v4 = vrot.slane %v3366_v7, 1  ;;  %v3867_v43 = vsel %vm1841_vm6, %v3864_v8, %v3866_v29  ;;  %v3879_v33 = vrot.slane %v21492_v27, 1  ;;  %v3877_v60 = vrot.slane %v21470_v15, 1 }
 0x340   : > { %v3380_v21 = vor.u32 %v3378_v30, %v3376_v51  ;;  %v3869_v6 = vsel %vm1841_vm6, %v3866_v29, %v3868_v54  ;;  %v3884_v9 = vrot.slane %v21502_v1, 1  ;;  %v3886_v15 = vrot.slane %v21516_v47, 1 }
 0x341   : > { %v3369_v20 = vsel %vm1237_vm3, %v3364_v57, %v3368_v4  ;;  %v3372_v2 = vor.u32 %v3370_v52, %v3368_v4  ;;  %v3878_v36 = vsel %vm1841_vm6, %v3875_v28, %v3877_v60 }
 0x342   : > { %17395 = vmatmul.mubr.msk.bf16.gmra.mrb[24].mxu0 %vm1406_vm4, %v3369_v20  ;;  %v3385_v5 = vsel %vm1237_vm3, %v3380_v21, %v3384_v3  ;;  %v21647_v21 = vld [vmem:[%s25835_s8] ss:$0 sm:$0xff]  ;;  %s758_s8 = sand.u32 1, %s20443_s2  }
 0x343   : > { %v3377_v32 = vsel %vm1237_vm3, %v3372_v2, %v3376_v51  ;;  %s15584_s1 = sshll.u32 %s758_s8, 8  ;;  %s25564_s7 = scalar_lea.sflag [#allocation3], %s758_s8 }
 0x344   : > { %17398 = vmatprep.mubr.msk.bf16.mxu0 %vm1406_vm4, %v3377_v32  ;;  %s25388_s0 = scalar_lea.vmem [#allocation2], %s15584_s1 }
 0x345   : > { %s15518_s9 = sshll.u32 %s25388_s0, 4  ;;  %s25557_s9 = int_to_ptr.vmem [resolvable:$true] %s15518_s9 }
 0x346   : > { %s20389_s1 = scalar_lea.vmem %s25557_s9, 4096  ;;  %p20396_p0 = scmp.lt.s32.totalorder %s25557_s9, %s20394_s26 }
 0x347   : > { %p20390_p11 = scmp.ne.s32.totalorder %s25557_s9, %s20389_s1 }
 0x349   : > { %p20391_p12 = pnand %p20390_p11, %p20624_p5 }
 0x34a   : > { %17399 = vmatmul.mubr.msk.bf16.gmra.mrb[28].mxu0 %vm1406_vm4, %v3385_v5  ;;  %v21652_v5 = vld [vmem:[%s25836_s3] ss:$0 sm:$0xff]  ;;  %s20395_s3 = scalar_lea.vmem %s20394_s26, 8192 }
 0x34b   : > { %17410 = vmatprep.mubr.msk.bf16.mxu0 %vm1406_vm4, %v21351_v39  ;;  %v20160_v39 = vld [vmem:[%s25834_s28 + $0x30] sm:$0xff]   ;;  %p20392_p13 = pneg %p20391_p12  ;;  %p20397_p1 = scmp.lt.s32.totalorder %s20395_s3, %s20389_s1 }
 0x34d   : > { %p20398_p2 = por %p20397_p1, %p20396_p0 }
 0x34f   : > { %p20399_p3 = pnand %p20398_p2, %p20392_p13 }
 0x352   : > { %17411 = vmatmul.mubr.msk.bf16.vlgmr.msra.gmra.mrb[0].mxu0 %vm1406_vm4, %v21347_v25  ;;  %v3858_v25 = vsel %vm1841_vm6, %v3855_v53, %v3857_v58 }
 0x353   : > { %17443 = vmatpush3.bf16.msra.mxu0 %v21432_v23  ;;  %17414 = vmatprep.mubr.msk.bf16.mxu0 %vm1406_vm4, %v21369_v24  ;;  %v20158_v23 = vld [vmem:[%s25834_s28 + $0x20] sm:$0xff]   ;;  %v3862_v24 = vrot.slane %v21391_v56, 1 }
 0x354   : > { %17444 = vmatprep.subr.bf16.mxu0 %v20155_v38 }
 0x357   : > { %17445 = vmatpush3.bf16.msra.mxu0 %v20155_v38 }
 0x358   : > { %17446 = vmatprep.subr.bf16.mxu0 %v20156_v48 }
 0x35a   : > { %17415 = vmatmul.mubr.msk.bf16.gmra.mrb[4].mxu0 %vm1406_vm4, %v21366_v40  ;;  %v3861_v40 = vrot.slane %v21397_v44, 1 }
 0x35b   : > { %17418 = vmatprep.mubr.msk.bf16.mxu0 %vm1406_vm4, %v21397_v44  ;;  %17447 = vmatpush3.bf16.msra.mxu0 %v20156_v48  ;;  %v3865_v44 = vsel %vm1841_vm6, %v3862_v24, %v3864_v8 }
 0x35c   : > { %17448 = vmatprep.subr.bf16.mxu0 %v20157_v31  ;;  %v3863_v49 = vsel %vm1841_vm6, %v3861_v40, %v3862_v24 }
 0x35f   : > { %17449 = vmatpush3.bf16.msra.mxu0 %v20157_v31 }
 0x360   : > { %17482 = vmatprep.subr.bf16.mxu0 %v20158_v23 }
 0x362   : > { %17419 = vmatmul.mubr.msk.bf16.gmra.mrb[8].mxu0 %vm1406_vm4, %v21391_v56  ;;  %v3870_v56 = vrot.slane %v21451_v22, 1 }
 0x363   : > { %17422 = vmatprep.mubr.msk.bf16.mxu0 %vm1406_vm4, %v21426_v13  ;;  %v3873_v13 = vrot.slane %v21473_v45, 1 }
 0x365   : > { %v3874_v41 = vsel %vm1841_vm6, %v3871_v17, %v3873_v13 }
 0x36a   : > { %17423 = vmatmul.mubr.msk.bf16.gmra.mrb[12].mxu0 %vm1406_vm4, %v21421_v16  ;;  %v3872_v16 = vsel %vm1841_vm6, %v3870_v56, %v3871_v17 }
 0x36b   : > { %17426 = vmatprep.mubr.msk.bf16.mxu0 %vm1406_vm4, %v21451_v22  ;;  %v3880_v22 = vrot.slane %v21486_v59, 1 }
 0x372   : > { %17427 = vmatmul.mubr.msk.bf16.gmra.mrb[16].mxu0 %vm1406_vm4, %v21446_v34  ;;  %v3876_v34 = vsel %vm1841_vm6, %v3873_v13, %v3875_v28 }
 0x373   : > { %17430 = vmatprep.mubr.msk.bf16.mxu0 %vm1406_vm4, %v21473_v45  ;;  %v3882_v45 = vrot.slane %v21506_v63, 1 }
 0x375   : > { %v3883_v18 = vsel %vm1841_vm6, %v3880_v22, %v3882_v45 }
 0x37a   : > { %17431 = vmatmul.mubr.msk.bf16.gmra.mrb[20].mxu0 %vm1406_vm4, %v21465_v14  ;;  %v3881_v14 = vsel %vm1841_vm6, %v3879_v33, %v3880_v22 }
 0x37b   : > { %17434 = vmatprep.mubr.msk.bf16.mxu0 %vm1406_vm4, %v21492_v27  ;;  %v3887_v27 = vsel %vm1841_vm6, %v3884_v9, %v3886_v15 }
 0x382   : > { %17435 = vmatmul.mubr.msk.bf16.gmra.mrb[24].mxu0 %vm1406_vm4, %v21486_v59  ;;  %v3885_v59 = vsel %vm1841_vm6, %v3882_v45, %v3884_v9 }
 0x383   : > { %17438 = vmatprep.mubr.msk.bf16.mxu0 %vm1406_vm4, %v21506_v63  ;;  %v21635_v63 = vld [vmem:[%s25834_s28] sm:$0xff]  }
 0x38a   : > { %17439 = vmatmul.mubr.msk.bf16.gmra.mrb[28].mxu0 %vm1406_vm4, %v21502_v1  ;;  %v3013_v1 = vpop.f32.mrb[65].mxu1 }
 0x38b   : > { %17450 = vmatprep.mubr.msk.bf16.mxu0 %vm1406_vm4, %v3854_v46  ;;  %v17349_v55 = vpop.f32.mrb[66].mxu1  ;;  %v21666_v24 = vadd.f32 %v21647_v21, %v3013_v1 }
 0x38c   : > { %v3016_v42 = vpop.f32.mrb[67].mxu1  ;;  %v21669_v61 = vadd.f32 %v17349_v55, %v21647_v21 }
 0x38d   : > { %v17352_v7 = vpop.f32.mrb[68].mxu1  ;;  %v21672_v29 = vadd.f32 %v21647_v21, %v3016_v42 }
 0x38e   : > { %v3029_v19 = vpop.f32.mrb[69].mxu1 }
 0x38f   : > { %v17353_v57 = vpop.f32.mrb[70].mxu1  ;;  %v21681_v54 = vadd.f32 %v21647_v21, %v3029_v19  ;;  %v25839_v19 = vmov 0 }
 0x390   : > { %v3032_v4 = vpop.f32.mrb[71].mxu1  ;;  %v25840_v19 = vsel %vm21713_vm11, 4294967295, %v25839_v19 }
 0x391   : > { %v17356_v52 = vpop.f32.mrb[72].mxu1  ;;  %25841 = vst [vmem:[#allocation12_spill] sm:$0xff] %v25840_v19 }
 0x392   : > { %17451 = vmatmul.mubr.msk.bf16.vlgmr.msra.gmra.mrb[0].mxu0 %vm1406_vm4, %v3856_v26  ;;  %v3045_v47 = vpop.f32.mrb[73].mxu1 }
 0x393   : > { %17454 = vmatprep.mubr.msk.bf16.mxu0 %vm1406_vm4, %v3858_v25  ;;  %17483 = vmatpush3.bf16.msra.mxu0 %v20158_v23  ;;  %v17357_v20 = vpop.f32.mrb[74].mxu1  ;;  %v21663_v25 = vadd.f32 %v17348_v0, %v21647_v21  ;;  %v21705_v0 = vadd.f32 %v21647_v21, %v3045_v47 }
 0x394   : > { %17484 = vmatprep.subr.bf16.mxu0 %v20159_v11  ;;  %v3048_v2 = vpop.f32.mrb[75].mxu1 }
 0x395   : > { %v17360_v51 = vpop.f32.mrb[76].mxu1 }
 0x396   : > { %v21638_v32 = vpop.f32.mrb[77].mxu1  ;;  %v21721_v47 = vadd.f32 %v17360_v51, %v21647_v21 }
 0x397   : > { %17485 = vmatpush3.bf16.msra.mxu0 %v20159_v11  ;;  %v21640_v30 = vpop.f32.mrb[78].mxu1 }
 0x398   : > { %17486 = vmatprep.subr.bf16.mxu0 %v20160_v39  ;;  %v21642_v35 = vpop.f32.mrb[79].mxu1 }
 0x39a   : > { %17455 = vmatmul.mubr.msk.bf16.gmra.mrb[4].mxu0 %vm1406_vm4, %v3860_v37 }
 0x39b   : > { %17458 = vmatprep.mubr.msk.bf16.mxu0 %vm1406_vm4, %v3863_v49  ;;  %17487 = vmatpush3.bf16.msra.mxu0 %v20160_v39 }
 0x39c   : > { %17488 = vmatprep.subr.bf16.mxu0 %v20161_v10 }
 0x39f   : > { %17489 = vmatpush3.bf16.msra.mxu0 %v20161_v10 }
 0x3a0   : > { %17522 = vmatprep.subr.bf16.mxu0 %v21635_v63 }
 0x3a2   : > { %17459 = vmatmul.mubr.msk.bf16.gmra.mrb[8].mxu0 %vm1406_vm4, %v3865_v44  ;;  %v21675_v44 = vadd.f32 %v17352_v7, %v21647_v21  ;;  %v21709_v7 = vadd.f32 %v17357_v20, %v21647_v21  ;;  %v21725_v20 = vadd.f32 %v21647_v21, %v21638_v32 }
 0x3a3   : > { %17462 = vmatprep.mubr.msk.bf16.mxu0 %vm1406_vm4, %v3867_v43 }
 0x3aa   : > { %17463 = vmatmul.mubr.msk.bf16.gmra.mrb[12].mxu0 %vm1406_vm4, %v3869_v6  ;;  %v21684_v6 = vadd.f32 %v17353_v57, %v21647_v21 }
 0x3ab   : > { %17466 = vmatprep.mubr.msk.bf16.mxu0 %vm1406_vm4, %v3872_v16 }
 0x3b2   : > { %17467 = vmatmul.mubr.msk.bf16.gmra.mrb[16].mxu0 %vm1406_vm4, %v3874_v41  ;;  %v21690_v41 = vadd.f32 %v21647_v21, %v3032_v4 }
 0x3b3   : > { %17470 = vmatprep.mubr.msk.bf16.mxu0 %vm1406_vm4, %v3876_v34  ;;  %v21693_v34 = vadd.f32 %v17356_v52, %v21647_v21  ;;  %v21718_v52 = vadd.f32 %v21647_v21, %v3048_v2  ;;  %v21732_v2 = vadd.f32 %v21640_v30, %v21647_v21 }
 0x3ba   : > { %17471 = vmatmul.mubr.msk.bf16.gmra.mrb[20].mxu0 %vm1406_vm4, %v3878_v36 }
 0x3bb   : > { %17474 = vmatprep.mubr.msk.bf16.mxu0 %vm1406_vm4, %v3881_v14 }
 0x3c2   : > { %17475 = vmatmul.mubr.msk.bf16.gmra.mrb[24].mxu0 %vm1406_vm4, %v3883_v18 }
 0x3c3   : > { %17478 = vmatprep.mubr.msk.bf16.mxu0 %vm1406_vm4, %v3885_v59 }
 0x3ca   : > { %17479 = vmatmul.mubr.msk.bf16.gmra.mrb[28].mxu0 %vm1406_vm4, %v3887_v27 }
 0x465   : > { %v17452_v3 = vpop.f32.mrb[0].mxu0 }
 0x466   : > { %v18910_v38 = vadd.f32 %v17452_v3, %v21647_v21  ;;  %v4002_v48 = vpop.f32.mrb[1].mxu0 }
 0x467   : > { %v18912_v31 = vadd.f32 %v21647_v21, %v4002_v48  ;;  %v17453_v23 = vpop.f32.mrb[2].mxu0 }
 0x468   : > { %v18911_v12 = vadd.f32 %v18910_v38, %v21652_v5  ;;  %v18914_v62 = vadd.f32 %v17453_v23, %v21647_v21  ;;  %v4005_v46 = vpop.f32.mrb[3].mxu0 }
 0x469   : > { %v18913_v53 = vadd.f32 %v18912_v31, %v21652_v5  ;;  %v18916_v58 = vadd.f32 %v21647_v21, %v4005_v46 }
 0x46a   : > { %v18915_v11 = vadd.f32 %v18914_v62, %v21652_v5  ;;  %v4234_v39 = vmax.f32 %v18911_v12, 0.0 }
 0x46b   : > { %v18917_v26 = vadd.f32 %v18916_v58, %v21652_v5  ;;  %v4232_v37 = vmax.f32 %v18913_v53, 0.0 }
 0x46c   : > { %v4235_v40 = vmax.f32 %v18915_v11, 0.0  ;;  %v21743_v11 = vadd.f32 %v21647_v21, %v21642_v35 }
 0x46d   : > { %v4233_v49 = vmax.f32 %v18917_v26, 0.0  ;;  %v17456_v8 = vpop.f32.mrb[4].mxu0 }
 0x46e   : > { %v21677_v43 = vpack.c.bf16 %v4235_v40, %v4234_v39  ;;  %v18918_v56 = vadd.f32 %v17456_v8, %v21647_v21  ;;  %v4018_v17 = vpop.f32.mrb[5].mxu0 }
 0x46f   : > { %v21686_v16 = vpack.c.bf16 %v4233_v49, %v4232_v37  ;;  %v18920_v13 = vadd.f32 %v21647_v21, %v4018_v17  ;;  %v17457_v28 = vpop.f32.mrb[6].mxu0 }
 0x470   : > { %25837 = vst [vmem:[#allocation10_spill] sm:$0xff] %v21677_v43  ;;  %v4290_v33 = vshrl.u32 %v21677_v43, 16  ;;  %v4293_v22 = vshll.u32 %v21677_v43, 16  ;;  %v18919_v60 = vadd.f32 %v18918_v56, %v21652_v5  ;;  %v18922_v36 = vadd.f32 %v17457_v28, %v21647_v21  ;;  %v4021_v14 = vpop.f32.mrb[7].mxu0 }
 0x471   : > { %25838 = vst [vmem:[#allocation11_spill] sm:$0xff] %v21686_v16  ;;  %v4282_v45 = vshrl.u32 %v21686_v16, 16  ;;  %v4285_v9 = vshll.u32 %v21686_v16, 16  ;;  %v18921_v18 = vadd.f32 %v18920_v13, %v21652_v5  ;;  %v18924_v59 = vadd.f32 %v21647_v21, %v4021_v14 }
 0x472   : > { %v4292_v15 = vrot.slane %v4290_v33, 6  ;;  %v4295_v27 = vrot.slane %v4293_v22, 7  ;;  %v18923_v10 = vadd.f32 %v18922_v36, %v21652_v5  ;;  %v4238_v57 = vmax.f32 %v18919_v60, 0.0 }
 0x473   : > { %v4284_v1 = vrot.slane %v4282_v45, 6  ;;  %v4287_v55 = vrot.slane %v4285_v9, 7  ;;  %v18925_v42 = vadd.f32 %v18924_v59, %v21652_v5  ;;  %v4236_v38 = vmax.f32 %v18921_v18, 0.0 }
 0x474   : > { %v4239_v4 = vmax.f32 %v18923_v10, 0.0  ;;  %v4296_v23 = vor.u32 %v4295_v27, %v4292_v15 }
 0x475   : > { %v4288_v3 = vor.u32 %v4287_v55, %v4284_v1  ;;  %v4237_v48 = vmax.f32 %v18925_v42, 0.0  ;;  %v17460_v31 = vpop.f32.mrb[8].mxu0 }
 0x476   : > { %v21727_v12 = vpack.c.bf16 %v4239_v4, %v4238_v57  ;;  %v18926_v62 = vadd.f32 %v17460_v31, %v21647_v21  ;;  %v4034_v46 = vpop.f32.mrb[9].mxu0 }
 0x477   : > { %v21736_v51 = vsel %vm21713_vm11, 0, %v4288_v3  ;;  %v21738_v53 = vpack.c.bf16 %v4237_v48, %v4236_v38  ;;  %v18928_v58 = vadd.f32 %v21647_v21, %v4034_v46  ;;  %v17461_v32 = vpop.f32.mrb[10].mxu0  ;;  %v21754_v35 = vsel %vm4280_vm9, %v4288_v3, %v4296_v23 }
 0x478   : > { %25842 = vst [vmem:[#allocation13_spill] sm:$0xff] %v21727_v12  ;;  %v4308_v26 = vshrl.u32 %v21727_v12, 16  ;;  %v4311_v39 = vshll.u32 %v21727_v12, 16  ;;  %v18927_v30 = vadd.f32 %v18926_v62, %v21652_v5  ;;  %v18930_v40 = vadd.f32 %v17461_v32, %v21647_v21  ;;  %v4037_v37 = vpop.f32.mrb[11].mxu0 }
 0x479   : > { %25843 = vst [vmem:[#allocation14_spill] sm:$0xff] %v21738_v53  ;;  %v4299_v49 = vshrl.u32 %v21738_v53, 16  ;;  %v4302_v8 = vshll.u32 %v21738_v53, 16  ;;  %v18929_v56 = vadd.f32 %v18928_v58, %v21652_v5  ;;  %v18932_v17 = vadd.f32 %v21647_v21, %v4037_v37 }
 0x47a   : > { %v4310_v13 = vrot.slane %v4308_v26, 6  ;;  %v4313_v28 = vrot.slane %v4311_v39, 7  ;;  %v18931_v33 = vadd.f32 %v18930_v40, %v21652_v5  ;;  %v4242_v36 = vmax.f32 %v18927_v30, 0.0 }
 0x47b   : > { %v4301_v22 = vrot.slane %v4299_v49, 6  ;;  %v4304_v60 = vrot.slane %v4302_v8, 7  ;;  %v18933_v14 = vadd.f32 %v18932_v17, %v21652_v5  ;;  %v4240_v9 = vmax.f32 %v18929_v56, 0.0 }
 0x47c   : > { %v4314_v45 = vor.u32 %v4313_v28, %v4310_v13  ;;  %v4243_v18 = vmax.f32 %v18931_v33, 0.0  ;;  %v21759_v59 = vshll.u32 %v21736_v51, 16  ;;  %v21762_v1 = vshrl.u32 %v21736_v51, 16 }
 0x47d   : > { %v4305_v15 = vor.u32 %v4304_v60, %v4301_v22  ;;  %v4241_v27 = vmax.f32 %v18933_v14, 0.0  ;;  %v17464_v10 = vpop.f32.mrb[12].mxu0  ;;  %v21765_v55 = vshll.u32 %v21754_v35, 16  ;;  %v21772_v38 = vshrl.u32 %v21754_v35, 16 }
 0x47e   : > { %v21767_v42 = vpack.c.bf16 %v4243_v18, %v4242_v36  ;;  %v18934_v57 = vadd.f32 %v17464_v10, %v21647_v21  ;;  %v4050_v4 = vpop.f32.mrb[13].mxu0  ;;  %v4452_v3 = vrot.slane %v21759_v59, 1  ;;  %v21776_v48 = vsel %vm21713_vm11, %v4314_v45, 0 }
 0x47f   : > { %25844 = vst [vmem:[#allocation15_spill] sm:$0xff] %v21765_v55  ;;  %v21779_v31 = vsel %vm4280_vm9, %v4296_v23, %v4305_v15  ;;  %v21781_v62 = vpack.c.bf16 %v4241_v27, %v4240_v9  ;;  %v18936_v46 = vadd.f32 %v21647_v21, %v4050_v4  ;;  %v17465_v58 = vpop.f32.mrb[14].mxu0  ;;  %v21793_v56 = vsel %vm4280_vm9, %v4305_v15, %v4314_v45 }
 0x480   : > { %25845 = vst [vmem:[#allocation16_spill] sm:$0xff] %v21767_v42  ;;  %v4325_v32 = vshrl.u32 %v21767_v42, 16  ;;  %v4328_v26 = vshll.u32 %v21767_v42, 16  ;;  %v18935_v39 = vadd.f32 %v18934_v57, %v21652_v5  ;;  %v18938_v30 = vadd.f32 %v17465_v58, %v21647_v21  ;;  %v4053_v40 = vpop.f32.mrb[15].mxu0 }
 0x481   : > { %25846 = vst [vmem:[#allocation17_spill] sm:$0xff] %v21781_v62  ;;  %v4317_v37 = vshrl.u32 %v21781_v62, 16  ;;  %v4320_v49 = vshll.u32 %v21781_v62, 16  ;;  %v18937_v23 = vadd.f32 %v18936_v46, %v21652_v5  ;;  %v4453_v8 = vor.u32 %v4452_v3, %v21762_v1 }
 0x482   : > { %v4327_v17 = vrot.slane %v4325_v32, 6  ;;  %v4330_v13 = vrot.slane %v4328_v26, 7  ;;  %v18939_v28 = vadd.f32 %v18938_v30, %v21652_v5  ;;  %v4246_v60 = vmax.f32 %v18935_v39, 0.0 }
 0x483   : > { %v4319_v33 = vrot.slane %v4317_v37, 6  ;;  %v4322_v22 = vrot.slane %v4320_v49, 7  ;;  %v4457_v36 = vrot.slane %v21765_v55, 1  ;;  %v18940_v18 = vadd.f32 %v21647_v21, %v4053_v40 }
 0x484   : > { %v21797_v14 = vor.u32 %v4330_v13, %v4327_v17  ;;  %v4247_v9 = vmax.f32 %v18939_v28, 0.0  ;;  %v21801_v27 = vshll.u32 %v21779_v31, 16  ;;  %v4244_v45 = vmax.f32 %v18937_v23, 0.0  ;;  %v20163_v13 = vld [vmem:[%s25834_s28 + $0x8] sm:$0xff]  }
 0x485   : > { %v4323_v10 = vor.u32 %v4322_v22, %v4319_v33  ;;  %v4458_v15 = vsel %vm1237_vm3, %v4453_v8, %v4457_v36  ;;  %v4461_v57 = vor.u32 %v21772_v38, %v4457_v36  ;;  %v17468_v4 = vpop.f32.mrb[16].mxu0  ;;  %v18941_v46 = vadd.f32 %v18940_v18, %v21652_v5 }
 0x486   : > { %25847 = vst [vmem:[#allocation18_spill] sm:$0xff] %v21801_v27  ;;  %v21805_v3 = vpack.c.bf16 %v4247_v9, %v4246_v60  ;;  %17490 = vmatprep.mubr.msk.bf16.mxu0 %vm1406_vm4, %v4458_v15  ;;  %v18943_v58 = vadd.f32 %v17468_v4, %v21663_v25  ;;  %v4465_v21 = vrot.slane %v21801_v27, 1  ;;  %v4066_v32 = vpop.f32.mrb[17].mxu0  ;;  %v21817_v40 = vshrl.u32 %v21779_v31, 16 }
 0x487   : > { %v21813_v26 = vsel %vm4280_vm9, %v4323_v10, %v21797_v14  ;;  %v18946_v39 = vadd.f32 %v4066_v32, %v21666_v24  ;;  %v17469_v30 = vpop.f32.mrb[18].mxu0  ;;  %v21820_v37 = vshll.u32 %v21793_v56, 16  ;;  %v4245_v23 = vmax.f32 %v18941_v46, 0.0 }
 0x488   : > { %25848 = vst [vmem:[#allocation19_spill] sm:$0xff] %v21805_v3  ;;  %25849 = vst [vmem:[#allocation20_spill] sm:$0xff] %v21817_v40  ;;  %v4343_v49 = vshrl.u32 %v21805_v3, 16  ;;  %v4346_v25 = vshll.u32 %v21805_v3, 16  ;;  %v18944_v8 = vadd.f32 %v18943_v58, %v21652_v5  ;;  %v4069_v17 = vpop.f32.mrb[19].mxu0  ;;  %v4466_v24 = vsel %vm1237_vm3, %v4461_v57, %v4465_v21 }
 0x489   : > { %25850 = vst [vmem:[#allocation21_spill] sm:$0xff] %v21820_v37  ;;  %v18947_v28 = vadd.f32 %v18946_v39, %v21652_v5  ;;  %v18949_v33 = vadd.f32 %v17469_v30, %v21669_v61  ;;  %v4469_v22 = vor.u32 %v21817_v40, %v4465_v21  ;;  %v21834_v60 = vsel %vm21713_vm11, 0, %v4323_v10  ;;  %17491 = vmatmul.mubr.msk.bf16.vlgmr.msra.gmra.mrb[32].mxu0 %vm1406_vm4, %v4466_v24 }
 0x48a   : > { %v4345_v36 = vrot.slane %v4343_v49, 6  ;;  %v4348_v9 = vrot.slane %v4346_v25, 7  ;;  %v21836_v18 = vpack.c.bf16 %v4245_v23, %v4244_v45  ;;  %v4250_v15 = vmax.f32 %v18944_v8, 0.0  ;;  %17523 = vmatpush3.bf16.msra.mxu0 %v21635_v63  ;;  %v20164_v45 = vld [vmem:[%s25834_s28 + $0x10] sm:$0xff]  }
 0x48b   : > { %v18950_v57 = vadd.f32 %v18949_v33, %v21652_v5  ;;  %v4473_v4 = vrot.slane %v21820_v37, 1  ;;  %v18952_v61 = vadd.f32 %v4069_v17, %v21672_v29  ;;  %v4248_v58 = vmax.f32 %v18947_v28, 0.0  ;;  %17524 = vmatprep.subr.bf16.mxu0 %v20163_v13 }
 0x48c   : > { %25851 = vst [vmem:[#allocation22_spill] sm:$0xff] %v21836_v18  ;;  %v4334_v46 = vshrl.u32 %v21836_v18, 16  ;;  %v4337_v10 = vshll.u32 %v21836_v18, 16  ;;  %v21846_v21 = vshrl.u32 %v21793_v56, 16  ;;  %v21854_v29 = vshll.u32 %v21776_v48, 16 }
 0x48d   : > { %v4251_v63 = vmax.f32 %v18950_v57, 0.0  ;;  %v4474_v32 = vsel %vm1237_vm3, %v4469_v22, %v4473_v4  ;;  %v18953_v39 = vadd.f32 %v18952_v61, %v21652_v5  ;;  %v17472_v30 = vpop.f32.mrb[20].mxu0  ;;  %v4349_v49 = vor.u32 %v4348_v9, %v4345_v36 }
 0x48e   : > { %25852 = vst [vmem:[#allocation23_spill] sm:$0xff] %v21846_v21  ;;  %25853 = vst [vmem:[#allocation24_spill] sm:$0xff] %v21854_v29  ;;  %v4336_v25 = vrot.slane %v4334_v46, 6  ;;  %v4339_v23 = vrot.slane %v4337_v10, 7  ;;  %17494 = vmatprep.mubr.msk.bf16.mxu0 %vm1406_vm4, %v4474_v32  ;;  %v18955_v8 = vadd.f32 %v17472_v30, %v21675_v44  ;;  %v4082_v17 = vpop.f32.mrb[21].mxu0  ;;  %v4477_v33 = vor.u32 %v21846_v21, %v4473_v4  ;;  %v20165_v44 = vld [vmem:[%s25834_s28 + $0x18] sm:$0xff]  }
 0x48f   : > { %v21858_v24 = vpack.c.bf16 %v4251_v63, %v4250_v15  ;;  %v4249_v28 = vmax.f32 %v18953_v39, 0.0  ;;  %v4481_v22 = vrot.slane %v21854_v29, 1  ;;  %v17473_v57 = vpop.f32.mrb[22].mxu0  ;;  %17525 = vmatpush3.bf16.msra.mxu0 %v20163_v13  ;;  %v18958_v36 = vadd.f32 %v4082_v17, %v21681_v54 }
 0x490   : > { %v4340_v61 = vor.u32 %v4339_v23, %v4336_v25  ;;  %v18956_v50 = vadd.f32 %v18955_v8, %v21652_v5  ;;  %v18961_v9 = vadd.f32 %v17473_v57, %v21684_v6  ;;  %v4085_v46 = vpop.f32.mrb[23].mxu0  ;;  %17526 = vmatprep.subr.bf16.mxu0 %v20164_v45  ;;  %v21875_v63 = vsel %vm21713_vm11, %v4349_v49, 0 }
 0x491   : > { %25854 = vst [vmem:[#allocation25_spill] sm:$0xff] %v21858_v24  ;;  %v4360_v15 = vshrl.u32 %v21858_v24, 16  ;;  %v4363_v4 = vshll.u32 %v21858_v24, 16  ;;  %v21870_v10 = vpack.c.bf16 %v4249_v28, %v4248_v58  ;;  %v4482_v13 = vsel %vm1237_vm3, %v4477_v33, %v4481_v22 }
 0x492   : > { %v21879_v54 = vsel %vm4280_vm9, %v21797_v14, %v4340_v61  ;;  %v21882_v6 = vsel %vm4280_vm9, %v4340_v61, %v4349_v49  ;;  %v4254_v32 = vmax.f32 %v18956_v50, 0.0  ;;  %17495 = vmatmul.mubr.msk.bf16.gmra.mrb[36].mxu0 %vm1406_vm4, %v4482_v13  ;;  %v18959_v23 = vadd.f32 %v18958_v36, %v21652_v5  ;;  %v21898_v50 = vld [vmem:[%s25834_s28 + $0x40] sm:$0xff]  }
 0x493   : > { %25855 = vst [vmem:[#allocation26_spill] sm:$0xff] %v21870_v10  ;;  %v4362_v39 = vrot.slane %v4360_v15, 6  ;;  %v4365_v30 = vrot.slane %v4363_v4, 7  ;;  %v4352_v58 = vshrl.u32 %v21870_v10, 16  ;;  %v4355_v25 = vshll.u32 %v21870_v10, 16  ;;  %17527 = vmatpush3.bf16.msra.mxu0 %v20164_v45 }
 0x494   : > { %v18962_v8 = vadd.f32 %v18961_v9, %v21652_v5  ;;  %v21890_v14 = vshrl.u32 %v21834_v60, 16  ;;  %v21893_v49 = vshll.u32 %v21834_v60, 16  ;;  %17528 = vmatprep.subr.bf16.mxu0 %v20165_v44  ;;  %v21903_v33 = vshll.u32 %v21813_v26, 16 }
 0x495   : > { %v21900_v17 = vor.u32 %v4365_v30, %v4362_v39  ;;  %v4354_v28 = vrot.slane %v4352_v58, 6  ;;  %v4357_v45 = vrot.slane %v4355_v25, 7  ;;  %v17476_v22 = vpop.f32.mrb[24].mxu0  ;;  %v18964_v36 = vadd.f32 %v4085_v46, %v21690_v41 }
 0x496   : > { %25856 = vst [vmem:[#allocation27_spill] sm:$0xff] %v21890_v14  ;;  %25857 = vst [vmem:[#allocation28_spill] sm:$0xff] %v21893_v49  ;;  %v4255_v57 = vmax.f32 %v18962_v8, 0.0  ;;  %v4488_v61 = vrot.slane %v21893_v49, 1  ;;  %v18967_v9 = vadd.f32 %v17476_v22, %v21693_v34  ;;  %v4098_v15 = vpop.f32.mrb[25].mxu0  ;;  %v4493_v13 = vrot.slane %v21903_v33, 1 }
 0x497   : > { %25858 = vst [vmem:[#allocation29_spill] sm:$0xff] %v21903_v33  ;;  %v4358_v4 = vor.u32 %v4357_v45, %v4354_v28  ;;  %v21910_v39 = vshrl.u32 %v21813_v26, 16  ;;  %v21913_v30 = vshll.u32 %v21879_v54, 16  ;;  %v17477_v58 = vpop.f32.mrb[26].mxu0  ;;  %17529 = vmatpush3.bf16.msra.mxu0 %v20165_v44  ;;  %v4252_v25 = vmax.f32 %v18959_v23, 0.0 }
 0x498   : > { %v21915_v8 = vpack.c.bf16 %v4255_v57, %v4254_v32  ;;  %v4489_v24 = vor.u32 %v4488_v61, %v21890_v14  ;;  %v18965_v41 = vadd.f32 %v18964_v36, %v21652_v5  ;;  %v4101_v34 = vpop.f32.mrb[27].mxu0  ;;  %17562 = vmatprep.subr.bf16.mxu0 %v21898_v50  ;;  %v18968_v28 = vadd.f32 %v18967_v9, %v21652_v5 }
 0x499   : > { %25859 = vst [vmem:[#allocation30_spill] sm:$0xff] %v21910_v39  ;;  %25860 = vst [vmem:[#allocation31_spill] sm:$0xff] %v21913_v30  ;;  %v21922_v46 = vsel %vm4280_vm9, %v4358_v4, %v21900_v17  ;;  %v4497_v45 = vor.u32 %v21910_v39, %v4493_v13  ;;  %v4501_v44 = vrot.slane %v21913_v30, 1  ;;  %v21932_v61 = vsel %vm21713_vm11, 0, %v4358_v4 }
 0x49a   : > { %25861 = vst [vmem:[#allocation32_spill] sm:$0xff] %v21915_v8  ;;  %v4378_v32 = vshrl.u32 %v21915_v8, 16  ;;  %v4381_v23 = vshll.u32 %v21915_v8, 16  ;;  %v4494_v22 = vsel %vm1237_vm3, %v4489_v24, %v4493_v13  ;;  %v4253_v57 = vmax.f32 %v18965_v41, 0.0 }
 0x49b   : > { %17498 = vmatprep.mubr.msk.bf16.mxu0 %vm1406_vm4, %v4494_v22  ;;  %v4502_v36 = vsel %vm1237_vm3, %v4497_v45, %v4501_v44  ;;  %v18970_v9 = vadd.f32 %v4098_v15, %v21705_v0  ;;  %v18973_v10 = vadd.f32 %v17477_v58, %v21709_v7  ;;  %v21942_v24 = vshrl.u32 %v21879_v54, 16 }
 0x49c   : > { %v4380_v3 = vrot.slane %v4378_v32, 6  ;;  %v4383_v18 = vrot.slane %v4381_v23, 7  ;;  %v21938_v42 = vpack.c.bf16 %v4253_v57, %v4252_v25  ;;  %17499 = vmatmul.mubr.msk.bf16.gmra.mrb[40].mxu0 %vm1406_vm4, %v4502_v36  ;;  %v21947_v41 = vshll.u32 %v21882_v6, 16 }
 0x49d   : > { %25863 = vst [vmem:[#allocation34_spill] sm:$0xff] %v21942_v24  ;;  %v18971_v4 = vadd.f32 %v18970_v9, %v21652_v5  ;;  %v18974_v13 = vadd.f32 %v18973_v10, %v21652_v5  ;;  %v18976_v0 = vadd.f32 %v4101_v34, %v21718_v52  ;;  %v17480_v15 = vpop.f32.mrb[28].mxu0  ;;  %v4258_v25 = vmax.f32 %v18968_v28, 0.0 }
 0x49e   : > { %25862 = vst [vmem:[#allocation33_spill] sm:$0xff] %v21938_v42  ;;  %25864 = vst [vmem:[#allocation35_spill] sm:$0xff] %v21947_v41  ;;  %v4369_v7 = vshrl.u32 %v21938_v42, 16  ;;  %v4372_v58 = vshll.u32 %v21938_v42, 16  ;;  %v4505_v45 = vor.u32 %v21942_v24, %v4501_v44  ;;  %v4114_v32 = vpop.f32.mrb[29].mxu0  ;;  %v4384_v23 = vor.u32 %v4383_v18, %v4380_v3 }
 0x49f   : > { %v4259_v22 = vmax.f32 %v18974_v13, 0.0  ;;  %v4509_v57 = vrot.slane %v21947_v41, 1  ;;  %v18977_v10 = vadd.f32 %v18976_v0, %v21652_v5  ;;  %v17481_v36 = vpop.f32.mrb[30].mxu0  ;;  %v4256_v62 = vmax.f32 %v18971_v4, 0.0 }
 0x4a0   : > { %v4371_v9 = vrot.slane %v4369_v7, 6  ;;  %v4374_v8 = vrot.slane %v4372_v58, 7  ;;  %v18979_v52 = vadd.f32 %v17480_v15, %v21721_v47  ;;  %v4117_v34 = vpop.f32.mrb[31].mxu0  ;;  %v21960_v44 = vshrl.u32 %v21882_v6, 16 }
 0x4a1   : > { %v21956_v12 = vpack.c.bf16 %v4259_v22, %v4258_v25  ;;  %v4510_v28 = vsel %vm1237_vm3, %v4505_v45, %v4509_v57  ;;  %v4257_v42 = vmax.f32 %v18977_v10, 0.0  ;;  %v21965_v13 = vshll.u32 %v21875_v63, 16 }
 0x4a2   : > { %25866 = vst [vmem:[#allocation37_spill] sm:$0xff] %v21960_v44  ;;  %v4375_v3 = vor.u32 %v4374_v8, %v4371_v9  ;;  %17502 = vmatprep.mubr.msk.bf16.mxu0 %vm1406_vm4, %v4510_v28  ;;  %v18980_v18 = vadd.f32 %v18979_v52, %v21652_v5  ;;  %v18982_v4 = vadd.f32 %v4114_v32, %v21725_v20  ;;  %v21975_v8 = vsel %vm21713_vm11, %v4384_v23, 0 }
 0x4a3   : > { %25865 = vst [vmem:[#allocation36_spill] sm:$0xff] %v21956_v12  ;;  %25867 = vst [vmem:[#allocation38_spill] sm:$0xff] %v21965_v13  ;;  %v4395_v47 = vshrl.u32 %v21956_v12, 16  ;;  %v4398_v0 = vshll.u32 %v21956_v12, 16  ;;  %v21970_v15 = vpack.c.bf16 %v4257_v42, %v4256_v62  ;;  %v4513_v7 = vor.u32 %v21960_v44, %v4509_v57 }
 0x4a4   : > { %v21979_v58 = vsel %vm4280_vm9, %v21900_v17, %v4375_v3  ;;  %v21982_v25 = vsel %vm4280_vm9, %v4375_v3, %v4384_v23  ;;  %v4517_v20 = vrot.slane %v21965_v13, 1  ;;  %v4262_v22 = vmax.f32 %v18980_v18, 0.0 }
 0x4a5   : > { %25868 = vst [vmem:[#allocation39_spill] sm:$0xff] %v21970_v15  ;;  %v4397_v45 = vrot.slane %v4395_v47, 6  ;;  %v4400_v32 = vrot.slane %v4398_v0, 7  ;;  %v4387_v42 = vshrl.u32 %v21970_v15, 16  ;;  %v4390_v62 = vshll.u32 %v21970_v15, 16 }
 0x4a6   : > { %v4518_v57 = vsel %vm1237_vm3, %v4513_v7, %v4517_v20  ;;  %v18983_v10 = vadd.f32 %v18982_v4, %v21652_v5  ;;  %v18985_v9 = vadd.f32 %v17481_v36, %v21732_v2  ;;  %v21992_v23 = vshrl.u32 %v21932_v61, 16 }
 0x4a7   : > { %v4389_v17 = vrot.slane %v4387_v42, 6  ;;  %v4392_v52 = vrot.slane %v4390_v62, 7  ;;  %17503 = vmatmul.mubr.msk.bf16.gmra.mrb[44].mxu0 %vm1406_vm4, %v4518_v57  ;;  %v21995_v28 = vshll.u32 %v21932_v61, 16  ;;  %v4401_v3 = vor.u32 %v4400_v32, %v4397_v45 }
 0x4a8   : > { %v18986_v47 = vadd.f32 %v18985_v9, %v21652_v5  ;;  %v21999_v18 = vshll.u32 %v21922_v46, 16  ;;  %v18988_v4 = vadd.f32 %v4117_v34, %v21743_v11  ;;  %v4260_v2 = vmax.f32 %v18983_v10, 0.0 }
 0x4a9   : > { %v4393_v0 = vor.u32 %v4392_v52, %v4389_v17  ;;  %v4524_v36 = vrot.slane %v21995_v28, 1  ;;  %v22004_v7 = vshll.u32 %v21979_v58, 16  ;;  %v22009_v45 = vshrl.u32 %v21922_v46, 16 }
 0x4aa   : > { %v4263_v20 = vmax.f32 %v18986_v47, 0.0  ;;  %v4529_v42 = vrot.slane %v21999_v18, 1  ;;  %v18989_v62 = vadd.f32 %v18988_v4, %v21652_v5  ;;  %v22018_v57 = vshrl.u32 %v21979_v58, 16 }
 0x4ab   : > { %v22013_v32 = vsel %vm21713_vm11, 0, %v4393_v0  ;;  %v4525_v11 = vor.u32 %v4524_v36, %v21992_v23  ;;  %v4537_v34 = vrot.slane %v22004_v7, 1  ;;  %v22024_v5 = vshll.u32 %v21982_v25, 16 }
 0x4ac   : > { %v22020_v10 = vpack.c.bf16 %v4263_v20, %v4262_v22  ;;  %v4261_v9 = vmax.f32 %v18989_v62, 0.0  ;;  %v4533_v17 = vor.u32 %v22009_v45, %v4529_v42  ;;  %v22027_v52 = vsel %vm4280_vm9, %v4393_v0, %v4401_v3 }
 0x4ad   : > { %v4530_v47 = vsel %vm1237_vm3, %v4525_v11, %v4529_v42  ;;  %v4541_v4 = vor.u32 %v22018_v57, %v4537_v34  ;;  %v4545_v62 = vrot.slane %v22024_v5, 1  ;;  %v22040_v0 = vshrl.u32 %v21982_v25, 16 }
 0x4ae   : > { %25869 = vst [vmem:[#allocation40_spill] sm:$0xff] %v22020_v10  ;;  %v4413_v36 = vshrl.u32 %v22020_v10, 16  ;;  %v4416_v12 = vshll.u32 %v22020_v10, 16  ;;  %17506 = vmatprep.mubr.msk.bf16.mxu0 %vm1406_vm4, %v4530_v47  ;;  %v22034_v22 = vpack.c.bf16 %v4261_v9, %v4260_v2  ;;  %v4538_v20 = vsel %vm1237_vm3, %v4533_v17, %v4537_v34 }
 0x4af   : > { %17507 = vmatmul.mubr.msk.bf16.gmra.mrb[48].mxu0 %vm1406_vm4, %v4538_v20  ;;  %v22043_v42 = vshll.u32 %v21975_v8, 16  ;;  %v22046_v11 = vshll.u32 %v22013_v32, 16  ;;  %v4546_v34 = vsel %vm1237_vm3, %v4541_v4, %v4545_v62  ;;  %v22052_v17 = vshrl.u32 %v22013_v32, 16 }
 0x4b0   : > { %25870 = vst [vmem:[#allocation41_spill] sm:$0xff] %v22034_v22  ;;  %v4415_v10 = vrot.slane %v4413_v36, 6  ;;  %v4418_v15 = vrot.slane %v4416_v12, 7  ;;  %v4404_v2 = vshrl.u32 %v22034_v22, 16  ;;  %v4407_v9 = vshll.u32 %v22034_v22, 16  ;;  %17510 = vmatprep.mubr.msk.bf16.mxu0 %vm1406_vm4, %v4546_v34 }
 0x4b1   : > { %v4560_v47 = vrot.slane %v22046_v11, 1  ;;  %v22056_v20 = vshll.u32 %v22027_v52, 16  ;;  %v4549_v12 = vor.u32 %v22040_v0, %v4545_v62  ;;  %v4553_v13 = vrot.slane %v22043_v42, 1 }
 0x4b2   : > { %v4419_v53 = vor.u32 %v4418_v15, %v4415_v10  ;;  %v4406_v43 = vrot.slane %v4404_v2, 6  ;;  %v4409_v16 = vrot.slane %v4407_v9, 7  ;;  %v5416_v19 = vrot.slane %v22004_v7, 2 }
 0x4b3   : > { %v4561_v36 = vor.u32 %v4560_v47, %v22052_v17  ;;  %v4565_v22 = vrot.slane %v22056_v20, 1  ;;  %v4554_v10 = vsel %vm1237_vm3, %v4549_v12, %v4553_v13  ;;  %v5420_v30 = vrot.slane %v22024_v5, 2 }
 0x4b4   : > { %v4410_v4 = vor.u32 %v4409_v16, %v4406_v43  ;;  %v22080_v43 = vshrl.u32 %v22027_v52, 16  ;;  %v22092_v12 = vsel %vm21713_vm11, %v4419_v53, 0  ;;  %v5423_v24 = vshrl.u32 %v21975_v8, 16 }
 0x4b5   : > { %v4566_v41 = vsel %vm1237_vm3, %v4561_v36, %v4565_v22  ;;  %v5426_v39 = vrot.slane %v22043_v42, 2  ;;  %v5429_v49 = vrot.slane %v22052_v17, 1  ;;  %v5444_v21 = vshrl.u32 %v22092_v12, 16 }
 0x4b6   : > { %v22065_v44 = vsel %vm4280_vm9, %v4401_v3, %v4410_v4  ;;  %v22068_v15 = vsel %vm4280_vm9, %v4410_v4, %v4419_v53  ;;  %v4569_v13 = vor.u32 %v22080_v43, %v4565_v22  ;;  %v22101_v22 = vshll.u32 %v22092_v12, 16 }
 0x4b7   : > { %17511 = vmatmul.mubr.msk.bf16.gmra.mrb[52].mxu0 %vm1406_vm4, %v4554_v10  ;;  %v22073_v62 = vshll.u32 %v22065_v44, 16  ;;  %v22076_v2 = vshll.u32 %v22068_v15, 16  ;;  %v22084_v3 = vshrl.u32 %v22065_v44, 16  ;;  %v22098_v36 = vshrl.u32 %v22068_v15, 16 }
 0x4b8   : > { %17514 = vmatprep.mubr.msk.bf16.mxu0 %vm1406_vm4, %v4566_v41  ;;  %v4589_v10 = vrot.slane %v22101_v22, 1  ;;  %v5408_v53 = vrot.slane %v21992_v23, 1  ;;  %v5425_v14 = vrot.slane %v5423_v24, 1  ;;  %v5447_v55 = vrot.slane %v22101_v22, 2 }
 0x4b9   : > { %v4573_v16 = vrot.slane %v22073_v62, 1  ;;  %v4581_v34 = vrot.slane %v22076_v2, 1  ;;  %v5436_v29 = vrot.slane %v22084_v3, 1  ;;  %v5441_v37 = vrot.slane %v22076_v2, 2 }
 0x4bb   : > { %v4577_v9 = vor.u32 %v22084_v3, %v4573_v16  ;;  %v4574_v47 = vsel %vm1237_vm3, %v4569_v13, %v4573_v16  ;;  %v4585_v4 = vor.u32 %v22098_v36, %v4581_v34  ;;  %v5409_v13 = vrot.slane %v21995_v28, 2 }
 0x4bd   : > { %v4582_v41 = vsel %vm1237_vm3, %v4577_v9, %v4581_v34  ;;  %v4590_v16 = vsel %vm1237_vm3, %v4585_v4, %v4589_v10  ;;  %v5411_v9 = vrot.slane %v22009_v45, 1  ;;  %v5410_v34 = vor.u32 %v5409_v13, %v5408_v53  ;;  %v20167_v4 = vld [vmem:[%s25834_s28 + $0x48] sm:$0xff]  }
 0x4bf   : > { %17515 = vmatmul.mubr.msk.bf16.gmra.mrb[56].mxu0 %vm1406_vm4, %v4574_v47  ;;  %v5412_v47 = vrot.slane %v21999_v18, 2 }
 0x4c0   : > { %17518 = vmatprep.mubr.msk.bf16.mxu0 %vm1406_vm4, %v4582_v41  ;;  %v5415_v41 = vrot.slane %v22018_v57, 1 }
 0x4c1   : > { %v5413_v10 = vor.u32 %v5412_v47, %v5411_v9  ;;  %v5430_v9 = vrot.slane %v22046_v11, 2  ;;  %v5432_v47 = vrot.slane %v22080_v43, 1 }
 0x4c2   : > { %v5417_v33 = vor.u32 %v5416_v19, %v5415_v41  ;;  %v5433_v41 = vrot.slane %v22056_v20, 2 }
 0x4c3   : > { %v22126_v53 = vsel %vm2151_vm5, %v5410_v34, %v5413_v10 }
 0x4c4   : > { %25871 = vst [vmem:[#allocation42_spill] sm:$0xff] %v22126_v53  ;;  %v22133_v19 = vsel %vm2151_vm5, %v5413_v10, %v5417_v33  ;;  %v5437_v53 = vrot.slane %v22073_v62, 2  ;;  %v5434_v10 = vor.u32 %v5433_v41, %v5432_v47  ;;  %v6078_v47 = vrot.slane %v22018_v57, 2 }
 0x4c5   : > { %25872 = vst [vmem:[#allocation43_spill] sm:$0xff] %v22133_v19  ;;  %v5440_v19 = vrot.slane %v22098_v36, 1  ;;  %v6079_v41 = vrot.slane %v22004_v7, 3  ;;  %v6091_v57 = vrot.slane %v22046_v11, 3  ;;  %v6101_v11 = vrot.slane %v22098_v36, 2 }
 0x4c6   : > { %v5438_v40 = vor.u32 %v5437_v53, %v5436_v29  ;;  %v6074_v53 = vrot.slane %v22009_v45, 2 }
 0x4c7   : > { %17519 = vmatmul.mubr.msk.bf16.gmra.mrb[60].mxu0 %vm1406_vm4, %v4590_v16  ;;  %v5419_v16 = vrot.slane %v22040_v0, 1 }
 0x4c8   : > { %17530 = vmatprep.mubr.msk.bf16.mxu0 %vm1406_vm4, %v21736_v51 }
 0x4c9   : > { %v5421_v13 = vor.u32 %v5420_v30, %v5419_v16  ;;  %v20168_v30 = vld [vmem:[%s25834_s28 + $0x50] sm:$0xff]   ;;  %v5431_v16 = vor.u32 %v5430_v9, %v5429_v49  ;;  %v5446_v49 = vrot.slane %v5444_v21, 1  ;;  %v22159_v9 = vsel %vm2151_vm5, %v5434_v10, %v5438_v40 }
 0x4cb   : > { %v22142_v34 = vsel %vm2151_vm5, %v5417_v33, %v5421_v13  ;;  %v22153_v33 = vsel %vm2151_vm5, %v5431_v16, %v5434_v10  ;;  %v5448_v29 = vor.u32 %v5447_v55, %v5446_v49  ;;  %v6071_v55 = vrot.slane %v21992_v23, 2 }
 0x4cc   : > { %v6082_v23 = vrot.slane %v22040_v0, 2  ;;  %v6080_v16 = vor.u32 %v6079_v41, %v6078_v47  ;;  %v6083_v10 = vrot.slane %v22024_v5, 3  ;;  %v6093_v0 = vrot.slane %v22080_v43, 2 }
 0x4ce   : > { %v6084_v49 = vor.u32 %v6083_v10, %v6082_v23  ;;  %v5062_v23 = vrot.slane %v21793_v56, 1 }
 0x4cf   : > { %17531 = vmatmul.mubr.msk.bf16.vlgmr.msra.gmra.mrb[32].mxu0 %vm1406_vm4, %v21754_v35 }
 0x4d0   : > { %17563 = vmatpush3.bf16.msra.mxu0 %v21898_v50  ;;  %17534 = vmatprep.mubr.msk.bf16.mxu0 %vm1406_vm4, %v21779_v31  ;;  %v5427_v50 = vor.u32 %v5426_v39, %v5425_v14  ;;  %v5442_v14 = vor.u32 %v5441_v37, %v5440_v19  ;;  %v20169_v39 = vld [vmem:[%s25834_s28 + $0x58] sm:$0xff]   ;;  %v6075_v19 = vrot.slane %v21999_v18, 3  ;;  %v6087_v18 = vrot.slane %v22043_v42, 3 }
 0x4d1   : > { %17564 = vmatprep.subr.bf16.mxu0 %v20167_v4  ;;  %v22207_v42 = vsel %vm6032_vm12, %v6080_v16, %v6084_v49 }
 0x4d2   : > { %v22149_v27 = vsel %vm2151_vm5, %v5421_v13, %v5427_v50  ;;  %v22162_v13 = vsel %vm2151_vm5, %v5438_v40, %v5442_v14  ;;  %v22169_v37 = vsel %vm2151_vm5, %v5442_v14, %v5448_v29  ;;  %v6072_v40 = vrot.slane %v21995_v28, 3 }
 0x4d3   : > { %v6076_v50 = vor.u32 %v6075_v19, %v6074_v53  ;;  %v6086_v28 = vrot.slane %v5423_v24, 2  ;;  %v6090_v14 = vrot.slane %v22052_v17, 2  ;;  %v6097_v24 = vrot.slane %v22084_v3, 2 }
 0x4d4   : > { %17565 = vmatpush3.bf16.msra.mxu0 %v20167_v4  ;;  %v22174_v4 = vld [vmem:[%s25834_s28 + $0x60] sm:$0xff]   ;;  %v6105_v53 = vrot.slane %v5444_v21, 2  ;;  %v6106_v3 = vrot.slane %v22101_v22, 3  ;;  %v5057_v21 = vrot.slane %v21736_v51, 1  ;;  %v5058_v22 = vrot.slane %v21754_v35, 1 }
 0x4d5   : > { %17566 = vmatprep.subr.bf16.mxu0 %v20168_v30  ;;  %v22200_v7 = vsel %vm6032_vm12, %v6076_v50, %v6080_v16  ;;  %v6088_v29 = vor.u32 %v6087_v18, %v6086_v28  ;;  %v6092_v5 = vor.u32 %v6091_v57, %v6090_v14  ;;  %v20171_v16 = vld [vmem:[%s25834_s28 + $0x68] sm:$0xff]   ;;  %v20172_v18 = vld [vmem:[%s25834_s28 + $0x70] sm:$0xff]   ;;  %v5064_v14 = vrot.slane %v21776_v48, 1 }
 0x4d6   : > { %v5066_v57 = vrot.slane %v21834_v60, 1 }
 0x4d7   : > { %17535 = vmatmul.mubr.msk.bf16.gmra.mrb[36].mxu0 %vm1406_vm4, %v21793_v56  ;;  %v22214_v43 = vsel %vm6032_vm12, %v6084_v49, %v6088_v29  ;;  %v5067_v49 = vrot.slane %v21813_v26, 1  ;;  %v20174_v29 = vld [vmem:[%s25834_s28 + $0x80] sm:$0xff]  }
 0x4d8   : > { %17538 = vmatprep.mubr.msk.bf16.mxu0 %vm1406_vm4, %v21834_v60  ;;  %17567 = vmatpush3.bf16.msra.mxu0 %v20168_v30  ;;  %v6073_v30 = vor.u32 %v6072_v40, %v6071_v55  ;;  %v6098_v55 = vrot.slane %v22073_v62, 3  ;;  %v6102_v40 = vrot.slane %v22076_v2, 3  ;;  %v6107_v2 = vor.u32 %v6106_v3, %v6105_v53 }
 0x4d9   : > { %17568 = vmatprep.subr.bf16.mxu0 %v20169_v39 }
 0x4da   : > { %v22194_v45 = vsel %vm6032_vm12, %v6073_v30, %v6076_v50  ;;  %v6103_v19 = vor.u32 %v6102_v40, %v6101_v11  ;;  %v5059_v30 = vsel %vm1841_vm6, %v5057_v21, %v5058_v22  ;;  %v5060_v50 = vrot.slane %v21779_v31, 1 }
 0x4db   : > { %v5073_v11 = vrot.slane %v21875_v63, 1  ;;  %v5075_v40 = vrot.slane %v21932_v61, 1 }
 0x4dc   : > { %17569 = vmatpush3.bf16.msra.mxu0 %v20169_v39  ;;  %v6094_v39 = vrot.slane %v22056_v20, 3  ;;  %v6099_v20 = vor.u32 %v6098_v55, %v6097_v24  ;;  %v22229_v41 = vsel %vm6032_vm12, %v6103_v19, %v6107_v2  ;;  %v5061_v10 = vsel %vm1841_vm6, %v5058_v22, %v5060_v50 }
 0x4dd   : > { %17602 = vmatprep.subr.bf16.mxu0 %v22174_v4  ;;  %25875 = vst [vmem:[#allocation46_spill] sm:$0xff] %v22229_v41  ;;  %v5063_v28 = vsel %vm1841_vm6, %v5060_v50, %v5062_v23  ;;  %v5071_v24 = vrot.slane %v21882_v6, 1  ;;  %v5080_v2 = vrot.slane %v21982_v25, 1  ;;  %v5084_v50 = vrot.slane %v22013_v32, 1  ;;  %v25887_v41 = vld [vmem:[#allocation31_spill] sm:$0xff] }
 0x4de   : > { %v6095_v17 = vor.u32 %v6094_v39, %v6093_v0  ;;  %v22226_v47 = vsel %vm6032_vm12, %v6099_v20, %v6103_v19  ;;  %v20173_v0 = vld [vmem:[%s25834_s28 + $0x78] sm:$0xff]   ;;  %v5068_v39 = vsel %vm1841_vm6, %v5066_v57, %v5067_v49  ;;  %v5078_v19 = vrot.slane %v21979_v58, 1 }
 0x4df   : > { %17539 = vmatmul.mubr.msk.bf16.gmra.mrb[40].mxu0 %vm1406_vm4, %v21813_v26  ;;  %25874 = vst [vmem:[#allocation45_spill] sm:$0xff] %v22226_v47  ;;  %v5074_v53 = vsel %vm1841_vm6, %v5071_v24, %v5073_v11  ;;  %v5366_v57 = vrot.slane %v21762_v1, 1 }
 0x4e0   : > { %17542 = vmatprep.mubr.msk.bf16.mxu0 %vm1406_vm4, %v21879_v54  ;;  %v22220_v62 = vsel %vm6032_vm12, %v6092_v5, %v6095_v17  ;;  %v22223_v36 = vsel %vm6032_vm12, %v6095_v17, %v6099_v20  ;;  %v5069_v5 = vrot.slane %v21879_v54, 1  ;;  %v5076_v20 = vrot.slane %v21922_v46, 1 }
 0x4e1   : > { %25873 = vst [vmem:[#allocation44_spill] sm:$0xff] %v22223_v36  ;;  %v5081_v22 = vsel %vm1841_vm6, %v5078_v19, %v5080_v2  ;;  %v25888_v36 = vld [vmem:[#allocation37_spill] sm:$0xff] }
 0x4e2   : > { %v5070_v55 = vsel %vm1841_vm6, %v5067_v49, %v5069_v5  ;;  %v5072_v17 = vsel %vm1841_vm6, %v5069_v5, %v5071_v24  ;;  %v5077_v3 = vsel %vm1841_vm6, %v5075_v40, %v5076_v20  ;;  %v5079_v21 = vsel %vm1841_vm6, %v5076_v20, %v5078_v19  ;;  %v25877_v40 = vld [vmem:[#allocation20_spill] sm:$0xff] }
 0x4e3   : > { %v5091_v24 = vrot.slane %v22092_v12, 1  ;;  %v5373_v20 = vrot.slane %v25877_v40, 1 }
 0x4e7   : > { %17543 = vmatmul.mubr.msk.bf16.gmra.mrb[44].mxu0 %vm1406_vm4, %v21882_v6 }
 0x4e8   : > { %17546 = vmatprep.mubr.msk.bf16.mxu0 %vm1406_vm4, %v21932_v61 }
 0x4ef   : > { %17547 = vmatmul.mubr.msk.bf16.gmra.mrb[48].mxu0 %vm1406_vm4, %v21922_v46 }
 0x4f0   : > { %17550 = vmatprep.mubr.msk.bf16.mxu0 %vm1406_vm4, %v21979_v58 }
 0x4f7   : > { %17551 = vmatmul.mubr.msk.bf16.gmra.mrb[52].mxu0 %vm1406_vm4, %v21982_v25 }
 0x4f8   : > { %17554 = vmatprep.mubr.msk.bf16.mxu0 %vm1406_vm4, %v22013_v32 }
 0x4ff   : > { %17555 = vmatmul.mubr.msk.bf16.gmra.mrb[56].mxu0 %vm1406_vm4, %v22027_v52 }
 0x500   : > { %17558 = vmatprep.mubr.msk.bf16.mxu0 %vm1406_vm4, %v22065_v44 }
 0x507   : > { %17559 = vmatmul.mubr.msk.bf16.gmra.mrb[60].mxu0 %vm1406_vm4, %v22068_v15 }
 0x508   : > { %17570 = vmatprep.mubr.msk.bf16.mxu0 %vm1406_vm4, %v5059_v30  ;;  %v5082_v30 = vrot.slane %v21975_v8, 1 }
 0x50f   : > { %17571 = vmatmul.mubr.msk.bf16.vlgmr.msra.gmra.mrb[32].mxu0 %vm1406_vm4, %v5061_v10 }
 0x510   : > { %17603 = vmatpush3.bf16.msra.mxu0 %v22174_v4  ;;  %17574 = vmatprep.mubr.msk.bf16.mxu0 %vm1406_vm4, %v5063_v28  ;;  %v5065_v4 = vsel %vm1841_vm6, %v5062_v23, %v5064_v14  ;;  %v5085_v23 = vrot.slane %v22027_v52, 1  ;;  %v5087_v28 = vrot.slane %v22065_v44, 1 }
 0x511   : > { %17604 = vmatprep.subr.bf16.mxu0 %v20171_v16 }
 0x512   : > { %v5086_v10 = vsel %vm1841_vm6, %v5084_v50, %v5085_v23  ;;  %v5088_v14 = vsel %vm1841_vm6, %v5085_v23, %v5087_v28  ;;  %v25697_v23 = vshrl.u32 %v21776_v48, 16 }
 0x514   : > { %17605 = vmatpush3.bf16.msra.mxu0 %v20171_v16  ;;  %v5083_v16 = vsel %vm1841_vm6, %v5080_v2, %v5082_v30  ;;  %v25879_v2 = vld [vmem:[#allocation23_spill] sm:$0xff] }
 0x515   : > { %17606 = vmatprep.subr.bf16.mxu0 %v20172_v18 }
 0x517   : > { %17575 = vmatmul.mubr.msk.bf16.gmra.mrb[36].mxu0 %vm1406_vm4, %v5065_v4  ;;  %v5369_v4 = vrot.slane %v21772_v38, 1 }
 0x518   : > { %17578 = vmatprep.mubr.msk.bf16.mxu0 %vm1406_vm4, %v5068_v39  ;;  %17607 = vmatpush3.bf16.msra.mxu0 %v20172_v18  ;;  %v5089_v18 = vrot.slane %v22068_v15, 1  ;;  %v25876_v39 = vld [vmem:[#allocation15_spill] sm:$0xff] }
 0x519   : > { %17608 = vmatprep.subr.bf16.mxu0 %v20173_v0  ;;  %v5370_v5 = vrot.slane %v25876_v39, 2 }
 0x51a   : > { %v5090_v49 = vsel %vm1841_vm6, %v5087_v28, %v5089_v18  ;;  %v5092_v11 = vsel %vm1841_vm6, %v5089_v18, %v5091_v24  ;;  %v5383_v18 = vrot.slane %v25697_v23, 1  ;;  %v25886_v23 = vld [vmem:[#allocation34_spill] sm:$0xff] }
 0x51c   : > { %17609 = vmatpush3.bf16.msra.mxu0 %v20173_v0  ;;  %v5367_v0 = vrot.slane %v21759_v59, 2 }
 0x51d   : > { %17642 = vmatprep.subr.bf16.mxu0 %v20174_v29 }
 0x51f   : > { %17579 = vmatmul.mubr.msk.bf16.gmra.mrb[40].mxu0 %vm1406_vm4, %v5070_v55  ;;  %v5368_v55 = vor.u32 %v5367_v0, %v5366_v57 }
 0x520   : > { %17582 = vmatprep.mubr.msk.bf16.mxu0 %vm1406_vm4, %v5072_v17  ;;  %v5371_v17 = vor.u32 %v5370_v5, %v5369_v4  ;;  %v25883_v5 = vld [vmem:[#allocation28_spill] sm:$0xff] }
 0x521   : > { %v5388_v24 = vrot.slane %v25883_v5, 2 }
 0x522   : > { %v5372_v19 = vsel %vm2151_vm5, %v5368_v55, %v5371_v17  ;;  %v25884_v55 = vld [vmem:[#allocation30_spill] sm:$0xff] }
 0x527   : > { %17583 = vmatmul.mubr.msk.bf16.gmra.mrb[44].mxu0 %vm1406_vm4, %v5074_v53  ;;  %v25878_v53 = vld [vmem:[#allocation18_spill] sm:$0xff] }
 0x528   : > { %17586 = vmatprep.mubr.msk.bf16.mxu0 %vm1406_vm4, %v5077_v3  ;;  %v5374_v3 = vrot.slane %v25878_v53, 2 }
 0x52a   : > { %v5375_v50 = vor.u32 %v5374_v3, %v5373_v20  ;;  %v25885_v20 = vld [vmem:[#allocation29_spill] sm:$0xff] }
 0x52b   : > { %v5391_v3 = vrot.slane %v25885_v20, 2 }
 0x52c   : > { %v5376_v28 = vsel %vm2151_vm5, %v5371_v17, %v5375_v50  ;;  %v20176_v17 = vld [vmem:[%s25834_s28 + $0x90] sm:$0xff]  }
 0x52f   : > { %17587 = vmatmul.mubr.msk.bf16.gmra.mrb[48].mxu0 %vm1406_vm4, %v5079_v21  ;;  %v5377_v21 = vrot.slane %v25879_v2, 1 }
 0x530   : > { %17590 = vmatprep.mubr.msk.bf16.mxu0 %vm1406_vm4, %v5081_v22  ;;  %v25880_v22 = vld [vmem:[#allocation21_spill] sm:$0xff] }
 0x531   : > { %v5378_v30 = vrot.slane %v25880_v22, 2 }
 0x537   : > { %17591 = vmatmul.mubr.msk.bf16.gmra.mrb[52].mxu0 %vm1406_vm4, %v5083_v16  ;;  %v5379_v16 = vor.u32 %v5378_v30, %v5377_v21 }
 0x538   : > { %17594 = vmatprep.mubr.msk.bf16.mxu0 %vm1406_vm4, %v5086_v10  ;;  %v20175_v10 = vld [vmem:[%s25834_s28 + $0x88] sm:$0xff]  }
 0x539   : > { %v5380_v4 = vsel %vm2151_vm5, %v5375_v50, %v5379_v16  ;;  %v20177_v50 = vld [vmem:[%s25834_s28 + $0x98] sm:$0xff]  }
 0x53f   : > { %17595 = vmatmul.mubr.msk.bf16.gmra.mrb[56].mxu0 %vm1406_vm4, %v5088_v14  ;;  %v25881_v14 = vld [vmem:[#allocation24_spill] sm:$0xff] }
 0x540   : > { %17598 = vmatprep.mubr.msk.bf16.mxu0 %vm1406_vm4, %v5090_v49  ;;  %v5384_v57 = vrot.slane %v25881_v14, 2  ;;  %v25882_v49 = vld [vmem:[#allocation27_spill] sm:$0xff] }
 0x541   : > { %v5387_v0 = vrot.slane %v25882_v49, 1 }
 0x543   : > { %v5389_v21 = vor.u32 %v5388_v24, %v5387_v0  ;;  %v5402_v24 = vshrl.u32 %v21875_v63, 16 }
 0x547   : > { %17599 = vmatmul.mubr.msk.bf16.gmra.mrb[60].mxu0 %vm1406_vm4, %v5092_v11  ;;  %v5390_v11 = vrot.slane %v25884_v55, 1 }
 0x548   : > { %17610 = vmatprep.mubr.msk.bf16.mxu0 %vm1406_vm4, %v5372_v19  ;;  %v5385_v19 = vor.u32 %v5384_v57, %v5383_v18  ;;  %v5398_v18 = vrot.slane %v25888_v36, 1  ;;  %v25889_v57 = vld [vmem:[#allocation35_spill] sm:$0xff] }
 0x549   : > { %v5392_v30 = vor.u32 %v5391_v3, %v5390_v11  ;;  %v5399_v0 = vrot.slane %v25889_v57, 2 }
 0x54b   : > { %v5393_v47 = vsel %vm2151_vm5, %v5389_v21, %v5392_v30  ;;  %v5400_v11 = vor.u32 %v5399_v0, %v5398_v18  ;;  %v25890_v21 = vld [vmem:[#allocation38_spill] sm:$0xff]  ;;  %v5724_v18 = vrot.slane %v21754_v35, 2 }
 0x54f   : > { %17611 = vmatmul.mubr.msk.bf16.vlgmr.msra.gmra.mrb[32].mxu0 %vm1406_vm4, %v5376_v28  ;;  %v5386_v28 = vsel %vm2151_vm5, %v5379_v16, %v5385_v19  ;;  %v20178_v16 = vld [vmem:[%s25834_s28 + $0xa0] sm:$0xff]   ;;  %v5404_v19 = vrot.slane %v5402_v24, 1 }
 0x550   : > { %17643 = vmatpush3.bf16.msra.mxu0 %v20174_v29  ;;  %17614 = vmatprep.mubr.msk.bf16.mxu0 %vm1406_vm4, %v5380_v4  ;;  %v5394_v29 = vrot.slane %v25886_v23, 1  ;;  %v5395_v4 = vrot.slane %v25887_v41, 2 }
 0x551   : > { %17644 = vmatprep.subr.bf16.mxu0 %v20175_v10 }
 0x554   : > { %17645 = vmatpush3.bf16.msra.mxu0 %v20175_v10  ;;  %v5396_v10 = vor.u32 %v5395_v4, %v5394_v29  ;;  %v5723_v4 = vrot.slane %v21736_v51, 2 }
 0x555   : > { %17646 = vmatprep.subr.bf16.mxu0 %v20176_v17 }
 0x556   : > { %v5397_v3 = vsel %vm2151_vm5, %v5392_v30, %v5396_v10  ;;  %v25892_v30 = vld [vmem:[#allocation43_spill] sm:$0xff] }
 0x557   : > { %17615 = vmatmul.mubr.msk.bf16.gmra.mrb[36].mxu0 %vm1406_vm4, %v5386_v28  ;;  %v5405_v28 = vrot.slane %v25890_v21, 2 }
 0x558   : > { %17618 = vmatprep.mubr.msk.bf16.mxu0 %vm1406_vm4, %v5393_v47  ;;  %17647 = vmatpush3.bf16.msra.mxu0 %v20176_v17  ;;  %v5401_v47 = vsel %vm2151_vm5, %v5396_v10, %v5400_v11  ;;  %v5730_v10 = vrot.slane %v21776_v48, 2 }
 0x559   : > { %17648 = vmatprep.subr.bf16.mxu0 %v20177_v50  ;;  %v5406_v17 = vor.u32 %v5405_v28, %v5404_v19  ;;  %v20181_v19 = vld [vmem:[%s25834_s28 + $0xb8] sm:$0xff]  }
 0x55b   : > { %v5407_v29 = vsel %vm2151_vm5, %v5400_v11, %v5406_v17  ;;  %v5732_v11 = vrot.slane %v21834_v60, 2  ;;  %v5735_v17 = vrot.slane %v21879_v54, 2 }
 0x55c   : > { %17649 = vmatpush3.bf16.msra.mxu0 %v20177_v50  ;;  %v25891_v50 = vld [vmem:[#allocation42_spill] sm:$0xff] }
 0x55d   : > { %17682 = vmatprep.subr.bf16.mxu0 %v20178_v16 }
 0x55f   : > { %17619 = vmatmul.mubr.msk.bf16.gmra.mrb[40].mxu0 %vm1406_vm4, %v5397_v3  ;;  %v5733_v3 = vrot.slane %v21813_v26, 2 }
 0x560   : > { %17622 = vmatprep.mubr.msk.bf16.mxu0 %vm1406_vm4, %v5401_v47  ;;  %v22403_v47 = vld [vmem:[%s25834_s28 + $0xc0] sm:$0xff]  }
 0x561   : > { %v5734_v28 = vsel %vm953_vm0, %v5732_v11, %v5733_v3  ;;  %v5750_v11 = vrot.slane %v22013_v32, 2 }
 0x567   : > { %17623 = vmatmul.mubr.msk.bf16.gmra.mrb[44].mxu0 %vm1406_vm4, %v5407_v29  ;;  %v5737_v29 = vrot.slane %v21882_v6, 2 }
 0x568   : > { %17626 = vmatprep.mubr.msk.bf16.mxu0 %vm1406_vm4, %v25891_v50  ;;  %v5736_v50 = vsel %vm953_vm0, %v5733_v3, %v5735_v17  ;;  %v5751_v3 = vrot.slane %v22027_v52, 2 }
 0x56f   : > { %17627 = vmatmul.mubr.msk.bf16.gmra.mrb[48].mxu0 %vm1406_vm4, %v25892_v30  ;;  %v5738_v30 = vsel %vm953_vm0, %v5735_v17, %v5737_v29  ;;  %v5755_v17 = vrot.slane %v22068_v15, 2 }
 0x570   : > { %17630 = vmatprep.mubr.msk.bf16.mxu0 %vm1406_vm4, %v22142_v34  ;;  %v5725_v34 = vsel %vm953_vm0, %v5723_v4, %v5724_v18  ;;  %v5739_v4 = vrot.slane %v21875_v63, 2 }
 0x577   : > { %17631 = vmatmul.mubr.msk.bf16.gmra.mrb[52].mxu0 %vm1406_vm4, %v22149_v27  ;;  %v5726_v27 = vrot.slane %v21779_v31, 2 }
 0x578   : > { %17634 = vmatprep.mubr.msk.bf16.mxu0 %vm1406_vm4, %v22153_v33  ;;  %v5728_v33 = vrot.slane %v21793_v56, 2 }
 0x57a   : > { %v5729_v0 = vsel %vm953_vm0, %v5726_v27, %v5728_v33 }
 0x57f   : > { %17635 = vmatmul.mubr.msk.bf16.gmra.mrb[56].mxu0 %vm1406_vm4, %v22159_v9  ;;  %v20179_v9 = vld [vmem:[%s25834_s28 + $0xa8] sm:$0xff]  }
 0x580   : > { %17638 = vmatprep.mubr.msk.bf16.mxu0 %vm1406_vm4, %v22162_v13  ;;  %v5727_v13 = vsel %vm953_vm0, %v5724_v18, %v5726_v27  ;;  %v5741_v18 = vrot.slane %v21932_v61, 2  ;;  %v5740_v27 = vsel %vm953_vm0, %v5737_v29, %v5739_v4  ;;  %v6034_v4 = vrot.slane %v21759_v59, 3 }
 0x587   : > { %17639 = vmatmul.mubr.msk.bf16.gmra.mrb[60].mxu0 %vm1406_vm4, %v22169_v37  ;;  %v20180_v37 = vld [vmem:[%s25834_s28 + $0xb0] sm:$0xff]  }
 0x588   : > { %17650 = vmatprep.mubr.msk.bf16.mxu0 %vm1406_vm4, %v5725_v34  ;;  %v5742_v34 = vrot.slane %v21922_v46, 2 }
 0x58f   : > { %17651 = vmatmul.mubr.msk.bf16.vlgmr.msra.gmra.mrb[32].mxu0 %vm1406_vm4, %v5727_v13  ;;  %v5746_v13 = vrot.slane %v21982_v25, 2 }
 0x590   : > { %17683 = vmatpush3.bf16.msra.mxu0 %v20178_v16  ;;  %17654 = vmatprep.mubr.msk.bf16.mxu0 %vm1406_vm4, %v5729_v0  ;;  %v5731_v16 = vsel %vm953_vm0, %v5728_v33, %v5730_v10  ;;  %v5743_v33 = vsel %vm953_vm0, %v5741_v18, %v5742_v34  ;;  %v5748_v10 = vrot.slane %v21975_v8, 2  ;;  %v6036_v18 = vrot.slane %v21772_v38, 2 }
 0x591   : > { %17684 = vmatprep.subr.bf16.mxu0 %v20179_v9  ;;  %v6044_v38 = vrot.slane %v25879_v2, 2  ;;  %v20183_v2 = vld [vmem:[%s25834_s28 + $0xc8] sm:$0xff]  }
 0x594   : > { %17685 = vmatpush3.bf16.msra.mxu0 %v20179_v9  ;;  %v5744_v9 = vrot.slane %v21979_v58, 2 }
 0x595   : > { %17686 = vmatprep.subr.bf16.mxu0 %v20180_v37 }
 0x596   : > { %v5745_v0 = vsel %vm953_vm0, %v5742_v34, %v5744_v9  ;;  %v6037_v34 = vrot.slane %v25876_v39, 3  ;;  %v6045_v39 = vrot.slane %v25880_v22, 3 }
 0x597   : > { %17655 = vmatmul.mubr.msk.bf16.gmra.mrb[36].mxu0 %vm1406_vm4, %v5731_v16  ;;  %v5752_v16 = vsel %vm953_vm0, %v5750_v11, %v5751_v3  ;;  %v25894_v11 = vshrl.u32 %v21776_v48, 16 }
 0x598   : > { %17658 = vmatprep.mubr.msk.bf16.mxu0 %vm1406_vm4, %v5734_v28  ;;  %17687 = vmatpush3.bf16.msra.mxu0 %v20180_v37  ;;  %v5747_v37 = vsel %vm953_vm0, %v5744_v9, %v5746_v13  ;;  %v5753_v28 = vrot.slane %v22065_v44, 2  ;;  %v6038_v9 = vor.u32 %v6037_v34, %v6036_v18  ;;  %v6063_v34 = vrot.slane %v25888_v36, 2 }
 0x599   : > { %17688 = vmatprep.subr.bf16.mxu0 %v20181_v19 }
 0x59a   : > { %v5754_v29 = vsel %vm953_vm0, %v5751_v3, %v5753_v28  ;;  %v6048_v3 = vrot.slane %v25894_v11, 2 }
 0x59c   : > { %17689 = vmatpush3.bf16.msra.mxu0 %v20181_v19  ;;  %v5749_v19 = vsel %vm953_vm0, %v5746_v13, %v5748_v10  ;;  %v20187_v10 = vld [vmem:[%s25893_s11 + $0x48] sm:$0xff]  }
 0x59d   : > { %17722 = vmatprep.subr.bf16.mxu0 %v22403_v47 }
 0x59f   : > { %17659 = vmatmul.mubr.msk.bf16.gmra.mrb[40].mxu0 %vm1406_vm4, %v5736_v50  ;;  %v6033_v50 = vrot.slane %v21762_v1, 2  ;;  %v6040_v1 = vrot.slane %v25877_v40, 2 }
 0x5a0   : > { %17662 = vmatprep.mubr.msk.bf16.mxu0 %vm1406_vm4, %v5738_v30  ;;  %v5756_v30 = vsel %vm953_vm0, %v5753_v28, %v5755_v17 }
 0x5a7   : > { %17663 = vmatmul.mubr.msk.bf16.gmra.mrb[44].mxu0 %vm1406_vm4, %v5740_v27  ;;  %v5757_v27 = vrot.slane %v22092_v12, 2 }
 0x5a8   : > { %17666 = vmatprep.mubr.msk.bf16.mxu0 %vm1406_vm4, %v5743_v33  ;;  %v6035_v33 = vor.u32 %v6034_v4, %v6033_v50  ;;  %v6056_v50 = vrot.slane %v25885_v20, 3  ;;  %v6059_v20 = vrot.slane %v25886_v23, 2  ;;  %v6068_v23 = vrot.slane %v25890_v21, 3  ;;  %v25896_v21 = vld [vmem:[#allocation45_spill] sm:$0xff] }
 0x5a9   : > { %v5758_v13 = vsel %vm953_vm0, %v5755_v17, %v5757_v27  ;;  %v6053_v17 = vrot.slane %v25883_v5, 3  ;;  %v20185_v5 = vld [vmem:[%s25834_s28 + $0xd8] sm:$0xff]   ;;  %v6064_v27 = vrot.slane %v25889_v57, 3 }
 0x5aa   : > { %v6039_v59 = vsel %vm6032_vm12, %v6035_v33, %v6038_v9 }
 0x5af   : > { %17667 = vmatmul.mubr.msk.bf16.gmra.mrb[48].mxu0 %vm1406_vm4, %v5745_v0  ;;  %v6041_v0 = vrot.slane %v25878_v53, 3  ;;  %v6046_v53 = vor.u32 %v6045_v39, %v6044_v38  ;;  %v6392_v38 = vrot.slane %v21834_v60, 3  ;;  %v6393_v39 = vrot.slane %v21813_v26, 3 }
 0x5b0   : > { %17670 = vmatprep.mubr.msk.bf16.mxu0 %vm1406_vm4, %v5747_v37  ;;  %v20186_v37 = vld [vmem:[%s25893_s11 + $0x40] sm:$0xff]   ;;  %v6399_v26 = vrot.slane %v21875_v63, 3  ;;  %v6401_v60 = vrot.slane %v21932_v61, 3  ;;  %v6410_v61 = vrot.slane %v22013_v32, 3  ;;  %v6417_v32 = vrot.slane %v22092_v12, 3  ;;  %v20191_v12 = vld [vmem:[%s25893_s11 + $0x68] sm:$0xff]  }
 0x5b1   : > { %17762 = vmatprep.subr.bf16.mxu1 %v20186_v37  ;;  %v6042_v40 = vor.u32 %v6041_v0, %v6040_v1  ;;  %v6384_v0 = vrot.slane %v21754_v35, 3  ;;  %v6390_v35 = vrot.slane %v21776_v48, 3 }
 0x5b2   : > { %17763 = vmatpush3.bf16.msra.mxu1 %v20186_v37 }
 0x5b3   : > { %17764 = vmatprep.subr.bf16.mxu1 %v20187_v10  ;;  %v6043_v22 = vsel %vm6032_vm12, %v6038_v9, %v6042_v40  ;;  %v6047_v28 = vsel %vm6032_vm12, %v6042_v40, %v6046_v53  ;;  %v6065_v9 = vor.u32 %v6064_v27, %v6063_v34 }
 0x5b6   : > { %17765 = vmatpush3.bf16.msra.mxu1 %v20187_v10  ;;  %v6397_v10 = vrot.slane %v21882_v6, 3  ;;  %v6404_v6 = vrot.slane %v21979_v58, 3 }
 0x5b7   : > { %17671 = vmatmul.mubr.msk.bf16.gmra.mrb[52].mxu0 %vm1406_vm4, %v5749_v19  ;;  %v6049_v19 = vrot.slane %v25881_v14, 3  ;;  %v20184_v14 = vld [vmem:[%s25834_s28 + $0xd0] sm:$0xff]  }
 0x5b8   : > { %17674 = vmatprep.mubr.msk.bf16.mxu0 %vm1406_vm4, %v5752_v16  ;;  %v6052_v16 = vrot.slane %v25882_v49, 2 }
 0x5b9   : > { %v6050_v49 = vor.u32 %v6049_v19, %v6048_v3  ;;  %v6411_v3 = vrot.slane %v22027_v52, 3 }
 0x5bb   : > { %v6412_v58 = vsel %vm6382_vm13, %v6410_v61, %v6411_v3 }
 0x5bf   : > { %17675 = vmatmul.mubr.msk.bf16.gmra.mrb[56].mxu0 %vm1406_vm4, %v5754_v29  ;;  %v6055_v29 = vrot.slane %v25884_v55, 2  ;;  %v6051_v55 = vsel %vm6032_vm12, %v6046_v53, %v6050_v49  ;;  %v6402_v53 = vrot.slane %v21922_v46, 3  ;;  %v6408_v46 = vrot.slane %v21975_v8, 3  ;;  %v22590_v49 = vld [vmem:[%s25898_s10] ss:$0 sm:$0xff] }
 0x5c0   : > { %17678 = vmatprep.mubr.msk.bf16.mxu0 %vm1406_vm4, %v5756_v30  ;;  %v6054_v30 = vor.u32 %v6053_v17, %v6052_v16  ;;  %v6415_v16 = vrot.slane %v22068_v15, 3  ;;  %v20189_v15 = vld [vmem:[%s25893_s11 + $0x58] sm:$0xff]   ;;  %v20190_v17 = vld [vmem:[%s25893_s11 + $0x60] sm:$0xff]  }
 0x5c1   : > { %v6057_v4 = vor.u32 %v6056_v50, %v6055_v29  ;;  %v6405_v11 = vsel %vm6382_vm13, %v6402_v53, %v6404_v6  ;;  %v20192_v29 = vld [vmem:[%s25893_s11 + $0x70] sm:$0xff]   ;;  %v20193_v50 = vld [vmem:[%s25893_s11 + $0x78] sm:$0xff]  }
 0x5c2   : > { %v6418_v52 = vsel %vm6382_vm13, %v6415_v16, %v6417_v32 }
 0x5c3   : > { %v6058_v18 = vsel %vm6032_vm12, %v6054_v30, %v6057_v4 }
 0x5c7   : > { %17679 = vmatmul.mubr.msk.bf16.gmra.mrb[60].mxu0 %vm1406_vm4, %v5758_v13 }
 0x5c8   : > { %17690 = vmatprep.mubr.msk.bf16.mxu0 %vm1406_vm4, %v6039_v59 }
 0x5cf   : > { %17691 = vmatmul.mubr.msk.bf16.vlgmr.msra.gmra.mrb[32].mxu0 %vm1406_vm4, %v6043_v22  ;;  %v6406_v22 = vrot.slane %v21982_v25, 3  ;;  %v6413_v25 = vrot.slane %v22065_v44, 3  ;;  %v20188_v44 = vld [vmem:[%s25893_s11 + $0x50] sm:$0xff]  }
 0x5d0   : > { %17723 = vmatpush3.bf16.msra.mxu0 %v22403_v47  ;;  %17694 = vmatprep.mubr.msk.bf16.mxu0 %vm1406_vm4, %v6047_v28  ;;  %v6060_v47 = vrot.slane %v25887_v41, 3  ;;  %v6067_v41 = vrot.slane %v5402_v24, 2  ;;  %v25895_v24 = vld [vmem:[#allocation44_spill] sm:$0xff] }
 0x5d1   : > { %17724 = vmatprep.subr.bf16.mxu0 %v20183_v2  ;;  %v6407_v63 = vsel %vm6382_vm13, %v6404_v6, %v6406_v22  ;;  %v6409_v19 = vsel %vm6382_vm13, %v6406_v22, %v6408_v46  ;;  %v6414_v28 = vsel %vm6382_vm13, %v6411_v3, %v6413_v25  ;;  %v6416_v8 = vsel %vm6382_vm13, %v6413_v25, %v6415_v16 }
 0x5d2   : > { %v6061_v33 = vor.u32 %v6060_v47, %v6059_v20  ;;  %v6069_v57 = vor.u32 %v6068_v23, %v6067_v41  ;;  %17766 = vmatprep.subr.bf16.mxu1 %v20188_v44 }
 0x5d3   : > { %17767 = vmatpush3.bf16.msra.mxu1 %v20188_v44 }
 0x5d4   : > { %17725 = vmatpush3.bf16.msra.mxu0 %v20183_v2  ;;  %v6062_v13 = vsel %vm6032_vm12, %v6057_v4, %v6061_v33  ;;  %v6066_v36 = vsel %vm6032_vm12, %v6061_v33, %v6065_v9  ;;  %v6070_v1 = vsel %vm6032_vm12, %v6065_v9, %v6069_v57  ;;  %v6400_v2 = vsel %vm6382_vm13, %v6397_v10, %v6399_v26 }
 0x5d5   : > { %17726 = vmatprep.subr.bf16.mxu0 %v20184_v14  ;;  %17768 = vmatprep.subr.bf16.mxu1 %v20189_v15 }
 0x5d7   : > { %17695 = vmatmul.mubr.msk.bf16.gmra.mrb[36].mxu0 %vm1406_vm4, %v6051_v55  ;;  %17769 = vmatpush3.bf16.msra.mxu1 %v20189_v15 }
 0x5d8   : > { %17698 = vmatprep.mubr.msk.bf16.mxu0 %vm1406_vm4, %v6058_v18  ;;  %17727 = vmatpush3.bf16.msra.mxu0 %v20184_v14  ;;  %v22584_v14 = vld [vmem:[%s25893_s11] sm:$0xff]  }
 0x5d9   : > { %17728 = vmatprep.subr.bf16.mxu0 %v20185_v5  ;;  %17770 = vmatprep.subr.bf16.mxu1 %v20190_v17 }
 0x5db   : > { %17771 = vmatpush3.bf16.msra.mxu1 %v20190_v17 }
 0x5dc   : > { %17729 = vmatpush3.bf16.msra.mxu0 %v20185_v5  ;;  %17772 = vmatprep.subr.bf16.mxu1 %v20191_v12 }
 0x5df   : > { %17699 = vmatmul.mubr.msk.bf16.gmra.mrb[40].mxu0 %vm1406_vm4, %v6062_v13  ;;  %17773 = vmatpush3.bf16.msra.mxu1 %v20191_v12 }
 0x5e0   : > { %17702 = vmatprep.mubr.msk.bf16.mxu0 %vm1406_vm4, %v6066_v36  ;;  %17774 = vmatprep.subr.bf16.mxu1 %v20192_v29 }
 0x5e3   : > { %17775 = vmatpush3.bf16.msra.mxu1 %v20192_v29 }
 0x5e4   : > { %17776 = vmatprep.subr.bf16.mxu1 %v20193_v50 }
 0x5e7   : > { %17703 = vmatmul.mubr.msk.bf16.gmra.mrb[44].mxu0 %vm1406_vm4, %v6070_v1  ;;  %17777 = vmatpush3.bf16.msra.mxu1 %v20193_v50 }
 0x5e8   : > { %17706 = vmatprep.mubr.msk.bf16.mxu0 %vm1406_vm4, %v22194_v45  ;;  %v6383_v45 = vrot.slane %v21736_v51, 3  ;;  %17810 = vmatprep.subr.bf16.mxu1 %v22584_v14 }
 0x5ef   : > { %17707 = vmatmul.mubr.msk.bf16.gmra.mrb[48].mxu0 %vm1406_vm4, %v22200_v7  ;;  %v25897_v7 = vld [vmem:[#allocation46_spill] sm:$0xff] }
 0x5f0   : > { %17710 = vmatprep.mubr.msk.bf16.mxu0 %vm1406_vm4, %v22207_v42  ;;  %v6385_v42 = vsel %vm6382_vm13, %v6383_v45, %v6384_v0 }
 0x5f7   : > { %17711 = vmatmul.mubr.msk.bf16.gmra.mrb[52].mxu0 %vm1406_vm4, %v22214_v43  ;;  %v6386_v43 = vrot.slane %v21779_v31, 3  ;;  %v6394_v31 = vsel %vm6382_vm13, %v6392_v38, %v6393_v39 }
 0x5f8   : > { %17714 = vmatprep.mubr.msk.bf16.mxu0 %vm1406_vm4, %v22220_v62  ;;  %v6388_v62 = vrot.slane %v21793_v56, 3  ;;  %v6395_v56 = vrot.slane %v21879_v54, 3  ;;  %v6403_v54 = vsel %vm6382_vm13, %v6401_v60, %v6402_v53 }
 0x5f9   : > { %v6387_v59 = vsel %vm6382_vm13, %v6384_v0, %v6386_v43 }
 0x5fa   : > { %v6389_v51 = vsel %vm6382_vm13, %v6386_v43, %v6388_v62  ;;  %v6391_v37 = vsel %vm6382_vm13, %v6388_v62, %v6390_v35  ;;  %v6396_v40 = vsel %vm6382_vm13, %v6393_v39, %v6395_v56  ;;  %v6398_v48 = vsel %vm6382_vm13, %v6395_v56, %v6397_v10 }
 0x5ff   : > { %17715 = vmatmul.mubr.msk.bf16.gmra.mrb[56].mxu0 %vm1406_vm4, %v25895_v24 }
 0x600   : > { %17718 = vmatprep.mubr.msk.bf16.mxu0 %vm1406_vm4, %v25896_v21 }
 0x607   : > { %17719 = vmatmul.mubr.msk.bf16.gmra.mrb[60].mxu0 %vm1406_vm4, %v25897_v7 }
 0x608   : > { %17730 = vmatprep.mubr.msk.bf16.mxu0 %vm1406_vm4, %v6385_v42 }
 0x60f   : > { %17731 = vmatmul.mubr.msk.bf16.vlgmr.msra.gmra.mrb[32].mxu0 %vm1406_vm4, %v6387_v59 }
 0x610   : > { %17734 = vmatprep.mubr.msk.bf16.mxu0 %vm1406_vm4, %v6389_v51 }
 0x617   : > { %17735 = vmatmul.mubr.msk.bf16.gmra.mrb[36].mxu0 %vm1406_vm4, %v6391_v37 }
 0x618   : > { %17738 = vmatprep.mubr.msk.bf16.mxu0 %vm1406_vm4, %v6394_v31 }
 0x61f   : > { %17739 = vmatmul.mubr.msk.bf16.gmra.mrb[40].mxu0 %vm1406_vm4, %v6396_v40 }
 0x620   : > { %17742 = vmatprep.mubr.msk.bf16.mxu0 %vm1406_vm4, %v6398_v48 }
 0x627   : > { %17743 = vmatmul.mubr.msk.bf16.gmra.mrb[44].mxu0 %vm1406_vm4, %v6400_v2 }
 0x628   : > { %17746 = vmatprep.mubr.msk.bf16.mxu0 %vm1406_vm4, %v6403_v54 }
 0x62f   : > { %17747 = vmatmul.mubr.msk.bf16.gmra.mrb[48].mxu0 %vm1406_vm4, %v6405_v11 }
 0x630   : > { %17750 = vmatprep.mubr.msk.bf16.mxu0 %vm1406_vm4, %v6407_v63 }
 0x637   : > { %17751 = vmatmul.mubr.msk.bf16.gmra.mrb[52].mxu0 %vm1406_vm4, %v6409_v19 }
 0x638   : > { %17754 = vmatprep.mubr.msk.bf16.mxu0 %vm1406_vm4, %v6412_v58 }
 0x63f   : > { %17755 = vmatmul.mubr.msk.bf16.gmra.mrb[56].mxu0 %vm1406_vm4, %v6414_v28 }
 0x640   : > { %17758 = vmatprep.mubr.msk.bf16.mxu0 %vm1406_vm4, %v6416_v8 }
 0x647   : > { %17759 = vmatmul.mubr.msk.bf16.gmra.mrb[60].mxu0 %vm1406_vm4, %v6418_v52 }
 0x6e2   : > { %v17732_v30 = vpop.f32.mrb[32].mxu0 }
 0x6e3   : > { %v6701_v4 = vadd.f32 %v17732_v30, %v22590_v49  ;;  %v6533_v5 = vpop.f32.mrb[33].mxu0 }
 0x6e4   : > { %v6699_v55 = vadd.f32 %v22590_v49, %v6533_v5  ;;  %v17733_v20 = vpop.f32.mrb[34].mxu0 }
 0x6e5   : > { %v6702_v47 = vadd.f32 %v17733_v20, %v22590_v49  ;;  %v6536_v18 = vpop.f32.mrb[35].mxu0  ;;  %v6733_v27 = vmax.f32 %v6701_v4, 0.0 }
 0x6e6   : > { %v6700_v34 = vadd.f32 %v22590_v49, %v6536_v18  ;;  %v6731_v9 = vmax.f32 %v6699_v55, 0.0 }
 0x6e7   : > { %v6734_v33 = vmax.f32 %v6702_v47, 0.0 }
 0x6e8   : > { %v6732_v13 = vmax.f32 %v6700_v34, 0.0  ;;  %v20195_v34 = vld [vmem:[%s25893_s11 + $0x8] sm:$0xff]  }
 0x6e9   : > { %v6764_v41 = vpack.c.bf16 %v6734_v33, %v6733_v27 }
 0x6ea   : > { %v6763_v23 = vpack.c.bf16 %v6732_v13, %v6731_v9  ;;  %v17736_v36 = vpop.f32.mrb[36].mxu0 }
 0x6eb   : > { %v6796_v57 = vrot.slane %v6764_v41, 7  ;;  %v6705_v1 = vadd.f32 %v17736_v36, %v22590_v49  ;;  %v6549_v24 = vpop.f32.mrb[37].mxu0 }
 0x6ec   : > { %v22597_v21 = vrot.slane %v6763_v23, 7  ;;  %v6703_v45 = vadd.f32 %v22590_v49, %v6549_v24  ;;  %v17737_v0 = vpop.f32.mrb[38].mxu0 }
 0x6ed   : > { %v6706_v7 = vadd.f32 %v17737_v0, %v22590_v49  ;;  %v6552_v42 = vpop.f32.mrb[39].mxu0  ;;  %v6737_v59 = vmax.f32 %v6705_v1, 0.0 }
 0x6ee   : > { %v22603_v43 = vsel %vm1182_vm2, %v22597_v21, %v6796_v57  ;;  %v22607_v62 = vsel %vm1182_vm2, 0, %v22597_v21  ;;  %v6704_v51 = vadd.f32 %v22590_v49, %v6552_v42  ;;  %v6735_v31 = vmax.f32 %v6703_v45, 0.0 }
 0x6ef   : > { %v6738_v35 = vmax.f32 %v6706_v7, 0.0  ;;  %v6871_v38 = vshrl.u32 %v22607_v62, 16  ;;  %v6873_v39 = vshll.u32 %v22607_v62, 16  ;;  %v6878_v37 = vshll.u32 %v22603_v43, 16 }
 0x6f0   : > { %v6736_v56 = vmax.f32 %v6704_v51, 0.0  ;;  %v6882_v32 = vshrl.u32 %v22603_v43, 16 }
 0x6f1   : > { %v6766_v10 = vpack.c.bf16 %v6738_v35, %v6737_v59  ;;  %v6875_v40 = vrot.slane %v6873_v39, 1  ;;  %v22613_v48 = vrot.slane %v6871_v38, 1  ;;  %v22615_v53 = vrot.slane %v6873_v39, 2  ;;  %v20196_v39 = vld [vmem:[%s25893_s11 + $0x10] sm:$0xff]  }
 0x6f2   : > { %v6765_v26 = vpack.c.bf16 %v6736_v56, %v6735_v31  ;;  %v17740_v60 = vpop.f32.mrb[40].mxu0  ;;  %v6880_v11 = vrot.slane %v6878_v37, 1  ;;  %v7777_v42 = vrot.slane %v6882_v32, 1  ;;  %v7778_v59 = vrot.slane %v6878_v37, 2 }
 0x6f3   : > { %v6800_v2 = vrot.slane %v6766_v10, 7  ;;  %v6709_v54 = vadd.f32 %v17740_v60, %v22590_v49  ;;  %v6565_v6 = vpop.f32.mrb[41].mxu0  ;;  %v6876_v22 = vor.u32 %v6875_v40, %v6871_v38  ;;  %v7776_v3 = vor.u32 %v22615_v53, %v22613_v48  ;;  %v20198_v53 = vld [vmem:[%s25893_s11 + $0x20] sm:$0xff]  }
 0x6f4   : > { %v6798_v63 = vrot.slane %v6765_v26, 7  ;;  %v6707_v46 = vadd.f32 %v22590_v49, %v6565_v6  ;;  %v17741_v61 = vpop.f32.mrb[42].mxu0  ;;  %v6884_v50 = vor.u32 %v6882_v32, %v6880_v11 }
 0x6f5   : > { %v6710_v19 = vadd.f32 %v17741_v61, %v22590_v49  ;;  %v6568_v58 = vpop.f32.mrb[43].mxu0  ;;  %v6881_v25 = vsel %vm1237_vm3, %v6876_v22, %v6880_v11  ;;  %v6741_v52 = vmax.f32 %v6709_v54, 0.0  ;;  %v22634_v30 = vsel %vm1182_vm2, %v6800_v2, 0 }
 0x6f6   : > { %v22624_v16 = vsel %vm1182_vm2, %v6796_v57, %v6798_v63  ;;  %v22627_v28 = vsel %vm1182_vm2, %v6798_v63, %v6800_v2  ;;  %v6708_v8 = vadd.f32 %v22590_v49, %v6568_v58  ;;  %17778 = vmatprep.mubr.bf16.mxu1 %v6881_v25  ;;  %v6739_v12 = vmax.f32 %v6707_v46, 0.0  ;;  %v20197_v46 = vld [vmem:[%s25893_s11 + $0x18] sm:$0xff]  }
 0x6f7   : > { %v6742_v44 = vmax.f32 %v6710_v19, 0.0  ;;  %v6886_v15 = vshll.u32 %v22624_v16, 16  ;;  %v6894_v17 = vshll.u32 %v22627_v28, 16  ;;  %v6890_v55 = vshrl.u32 %v22624_v16, 16 }
 0x6f8   : > { %v6740_v29 = vmax.f32 %v6708_v8, 0.0  ;;  %v6898_v1 = vshrl.u32 %v22627_v28, 16  ;;  %v6901_v24 = vshll.u32 %v22634_v30, 16  ;;  %v22684_v61 = vor.u32 %v7778_v59, %v7777_v42 }
 0x6f9   : > { %v22636_v4 = vpack.c.bf16 %v6742_v44, %v6741_v52  ;;  %v6888_v5 = vrot.slane %v6886_v15, 1  ;;  %v6896_v18 = vrot.slane %v6894_v17, 1 }
 0x6fa   : > { %v6767_v20 = vpack.c.bf16 %v6740_v29, %v6739_v12  ;;  %v17744_v47 = vpop.f32.mrb[44].mxu0  ;;  %v6903_v26 = vrot.slane %v6901_v24, 1  ;;  %v22697_v29 = vsel %vm2151_vm5, %v7776_v3, %v22684_v61 }
 0x6fb   : > { %v6803_v27 = vrot.slane %v22636_v4, 7  ;;  %v6713_v33 = vadd.f32 %v17744_v47, %v22590_v49  ;;  %v6581_v9 = vpop.f32.mrb[45].mxu0  ;;  %v6889_v13 = vsel %vm1237_vm3, %v6884_v50, %v6888_v5  ;;  %v6892_v41 = vor.u32 %v6890_v55, %v6888_v5 }
 0x6fc   : > { %v22651_v23 = vrot.slane %v6767_v20, 7  ;;  %v6711_v36 = vadd.f32 %v22590_v49, %v6581_v9  ;;  %v17745_v57 = vpop.f32.mrb[46].mxu0  ;;  %17779 = vmatmul.mubr.bf16.vlgmr.msra.gmra.mrb[80].mxu1 %v6889_v13 }
 0x6fd   : > { %v6714_v45 = vadd.f32 %v17745_v57, %v22590_v49  ;;  %17811 = vmatpush3.bf16.msra.mxu1 %v22584_v14  ;;  %v6584_v0 = vpop.f32.mrb[47].mxu0  ;;  %v6897_v7 = vsel %vm1237_vm3, %v6892_v41, %v6896_v18  ;;  %v6900_v14 = vor.u32 %v6898_v1, %v6896_v18  ;;  %v6745_v37 = vmax.f32 %v6713_v33, 0.0 }
 0x6fe   : > { %v22661_v51 = vsel %vm1182_vm2, %v22651_v23, %v6803_v27  ;;  %v22665_v35 = vsel %vm1182_vm2, 0, %v22651_v23  ;;  %v6712_v38 = vadd.f32 %v22590_v49, %v6584_v0  ;;  %17782 = vmatprep.mubr.bf16.mxu1 %v6897_v7  ;;  %17812 = vmatprep.subr.bf16.mxu1 %v20195_v34  ;;  %v6743_v10 = vmax.f32 %v6711_v36, 0.0 }
 0x6ff   : > { %v6746_v31 = vmax.f32 %v6714_v45, 0.0  ;;  %v6907_v56 = vshll.u32 %v22665_v35, 16  ;;  %v6912_v60 = vshll.u32 %v22661_v51, 16  ;;  %v6905_v54 = vshrl.u32 %v22665_v35, 16 }
 0x700   : > { %v6744_v40 = vmax.f32 %v6712_v38, 0.0  ;;  %v6904_v63 = vsel %vm1237_vm3, %v6900_v14, %v6903_v26  ;;  %v6916_v48 = vshrl.u32 %v22661_v51, 16  ;;  %v20199_v38 = vld [vmem:[%s25893_s11 + $0x28] sm:$0xff]  }
 0x701   : > { %v6770_v2 = vpack.c.bf16 %v6746_v31, %v6745_v37  ;;  %17813 = vmatpush3.bf16.msra.mxu1 %v20195_v34  ;;  %v6909_v6 = vrot.slane %v6907_v56, 1  ;;  %v6914_v32 = vrot.slane %v6912_v60, 1 }
 0x702   : > { %v6769_v22 = vpack.c.bf16 %v6744_v40, %v6743_v10  ;;  %v17748_v11 = vpop.f32.mrb[48].mxu0  ;;  %17814 = vmatprep.subr.bf16.mxu1 %v20196_v39 }
 0x703   : > { %v6807_v19 = vrot.slane %v6770_v2, 7  ;;  %v6717_v58 = vadd.f32 %v17748_v11, %v22590_v49  ;;  %v6597_v25 = vpop.f32.mrb[49].mxu0  ;;  %v6910_v8 = vor.u32 %v6909_v6, %v6905_v54  ;;  %v6918_v41 = vor.u32 %v6916_v48, %v6914_v32 }
 0x704   : > { %v6805_v52 = vrot.slane %v6769_v22, 7  ;;  %v6715_v44 = vadd.f32 %v22590_v49, %v6597_v25  ;;  %v17749_v12 = vpop.f32.mrb[50].mxu0  ;;  %17783 = vmatmul.mubr.bf16.gmra.mrb[84].mxu1 %v6904_v63  ;;  %v7781_v11 = vrot.slane %v6890_v55, 1 }
 0x705   : > { %v6718_v50 = vadd.f32 %v17749_v12, %v22590_v49  ;;  %v6600_v4 = vpop.f32.mrb[51].mxu0  ;;  %v6915_v5 = vsel %vm1237_vm3, %v6910_v8, %v6914_v32  ;;  %17815 = vmatpush3.bf16.msra.mxu1 %v20196_v39  ;;  %v6749_v3 = vmax.f32 %v6717_v58, 0.0  ;;  %v22717_v36 = vsel %vm1182_vm2, %v6807_v19, 0 }
 0x706   : > { %v22702_v20 = vsel %vm1182_vm2, %v6803_v27, %v6805_v52  ;;  %v22705_v47 = vsel %vm1182_vm2, %v6805_v52, %v6807_v19  ;;  %v6716_v18 = vadd.f32 %v22590_v49, %v6600_v4  ;;  %17786 = vmatprep.mubr.bf16.mxu1 %v6915_v5  ;;  %17816 = vmatprep.subr.bf16.mxu1 %v20197_v46  ;;  %v6747_v9 = vmax.f32 %v6715_v44, 0.0  ;;  %v20200_v52 = vld [vmem:[%s25893_s11 + $0x30] sm:$0xff]  }
 0x707   : > { %v6750_v34 = vmax.f32 %v6718_v50, 0.0  ;;  %v6920_v33 = vshll.u32 %v22702_v20, 16  ;;  %v6928_v27 = vshll.u32 %v22705_v47, 16  ;;  %v6924_v0 = vshrl.u32 %v22702_v20, 16 }
 0x708   : > { %v6748_v13 = vmax.f32 %v6716_v18, 0.0  ;;  %v6932_v6 = vshrl.u32 %v22705_v47, 16  ;;  %v6935_v22 = vshll.u32 %v22717_v36, 16  ;;  %v7782_v58 = vrot.slane %v6886_v15, 2 }
 0x709   : > { %v22719_v57 = vpack.c.bf16 %v6750_v34, %v6749_v3  ;;  %v6922_v45 = vrot.slane %v6920_v33, 1  ;;  %17817 = vmatpush3.bf16.msra.mxu1 %v20197_v46  ;;  %v6930_v59 = vrot.slane %v6928_v27, 1 }
 0x70a   : > { %v6771_v7 = vpack.c.bf16 %v6748_v13, %v6747_v9  ;;  %v17752_v42 = vpop.f32.mrb[52].mxu0  ;;  %17818 = vmatprep.subr.bf16.mxu1 %v20198_v53  ;;  %v6937_v5 = vrot.slane %v6935_v22, 1  ;;  %v22766_v9 = vor.u32 %v7782_v58, %v7781_v11 }
 0x70b   : > { %v6810_v14 = vrot.slane %v22719_v57, 7  ;;  %v6721_v39 = vadd.f32 %v17752_v42, %v22590_v49  ;;  %v6613_v37 = vpop.f32.mrb[53].mxu0  ;;  %v6923_v31 = vsel %vm1237_vm3, %v6918_v41, %v6922_v45  ;;  %v6926_v10 = vor.u32 %v6924_v0, %v6922_v45  ;;  %v20201_v45 = vld [vmem:[%s25893_s11 + $0x38] sm:$0xff]  }
 0x70c   : > { %v22734_v40 = vrot.slane %v6771_v7, 7  ;;  %v6719_v26 = vadd.f32 %v22590_v49, %v6613_v37  ;;  %v17753_v2 = vpop.f32.mrb[54].mxu0  ;;  %17787 = vmatmul.mubr.bf16.gmra.mrb[88].mxu1 %v6923_v31  ;;  %v6934_v55 = vor.u32 %v6932_v6, %v6930_v59 }
 0x70d   : > { %v6722_v63 = vadd.f32 %v17753_v2, %v22590_v49  ;;  %v6616_v46 = vpop.f32.mrb[55].mxu0  ;;  %v6931_v19 = vsel %vm1237_vm3, %v6926_v10, %v6930_v59  ;;  %17819 = vmatpush3.bf16.msra.mxu1 %v20198_v53  ;;  %v6753_v15 = vmax.f32 %v6721_v39, 0.0 }
 0x70e   : > { %v22747_v25 = vsel %vm1182_vm2, %v22734_v40, %v6810_v14  ;;  %v22751_v8 = vsel %vm1182_vm2, 0, %v22734_v40  ;;  %v6720_v32 = vadd.f32 %v22590_v49, %v6616_v46  ;;  %17790 = vmatprep.mubr.bf16.mxu1 %v6931_v19  ;;  %17820 = vmatprep.subr.bf16.mxu1 %v20199_v38  ;;  %v6751_v50 = vmax.f32 %v6719_v26, 0.0 }
 0x70f   : > { %v6754_v44 = vmax.f32 %v6722_v63, 0.0  ;;  %v6941_v12 = vshll.u32 %v22751_v8, 16  ;;  %v6946_v18 = vshll.u32 %v22747_v25, 16  ;;  %v6939_v3 = vshrl.u32 %v22751_v8, 16 }
 0x710   : > { %v6752_v4 = vmax.f32 %v6720_v32, 0.0  ;;  %v6938_v57 = vsel %vm1237_vm3, %v6934_v55, %v6937_v5  ;;  %v22781_v26 = vsel %vm2151_vm5, %v22684_v61, %v22766_v9  ;;  %v6950_v32 = vshrl.u32 %v22747_v25, 16  ;;  %v22796_v61 = vld [vmem:[%s25893_s11 + $0x80] sm:$0xff]  }
 0x711   : > { %v6774_v53 = vpack.c.bf16 %v6754_v44, %v6753_v15  ;;  %v6943_v34 = vrot.slane %v6941_v12, 1  ;;  %17821 = vmatpush3.bf16.msra.mxu1 %v20199_v38  ;;  %v6948_v38 = vrot.slane %v6946_v18, 1 }
 0x712   : > { %v6773_v13 = vpack.c.bf16 %v6752_v4, %v6751_v50  ;;  %v17756_v41 = vpop.f32.mrb[56].mxu0  ;;  %17822 = vmatprep.subr.bf16.mxu1 %v20200_v52 }
 0x713   : > { %v6814_v7 = vrot.slane %v6774_v53, 7  ;;  %v6725_v42 = vadd.f32 %v17756_v41, %v22590_v49  ;;  %v6629_v59 = vpop.f32.mrb[57].mxu0  ;;  %v6944_v39 = vor.u32 %v6943_v34, %v6939_v3  ;;  %v6952_v4 = vor.u32 %v6950_v32, %v6948_v38 }
 0x714   : > { %v6812_v37 = vrot.slane %v6773_v13, 7  ;;  %v6723_v31 = vadd.f32 %v22590_v49, %v6629_v59  ;;  %v17757_v10 = vpop.f32.mrb[58].mxu0  ;;  %17791 = vmatmul.mubr.bf16.gmra.mrb[92].mxu1 %v6938_v57 }
 0x715   : > { %v6726_v2 = vadd.f32 %v17757_v10, %v22590_v49  ;;  %v6632_v11 = vpop.f32.mrb[59].mxu0  ;;  %v6949_v63 = vsel %vm1237_vm3, %v6944_v39, %v6948_v38  ;;  %17823 = vmatpush3.bf16.msra.mxu1 %v20200_v52  ;;  %v6757_v55 = vmax.f32 %v6725_v42, 0.0  ;;  %v22803_v5 = vsel %vm1182_vm2, %v6814_v7, 0 }
 0x716   : > { %v22786_v46 = vsel %vm1182_vm2, %v6810_v14, %v6812_v37  ;;  %v22789_v19 = vsel %vm1182_vm2, %v6812_v37, %v6814_v7  ;;  %v6724_v58 = vadd.f32 %v22590_v49, %v6632_v11  ;;  %17794 = vmatprep.mubr.bf16.mxu1 %v6949_v63  ;;  %17824 = vmatprep.subr.bf16.mxu1 %v20201_v45  ;;  %v6755_v44 = vmax.f32 %v6723_v31, 0.0 }
 0x717   : > { %v6758_v15 = vmax.f32 %v6726_v2, 0.0  ;;  %v6954_v52 = vshll.u32 %v22786_v46, 16  ;;  %v25698_v14 = vshll.u32 %v22789_v19, 16  ;;  %v6958_v13 = vshrl.u32 %v22786_v46, 16 }
 0x718   : > { %v6756_v50 = vmax.f32 %v6724_v58, 0.0  ;;  %v25703_v2 = vshrl.u32 %v22789_v19, 16  ;;  %v25702_v11 = vshll.u32 %v22803_v5, 16 }
 0x719   : > { %v6776_v53 = vpack.c.bf16 %v6758_v15, %v6757_v55  ;;  %v6956_v34 = vrot.slane %v6954_v52, 1  ;;  %17825 = vmatpush3.bf16.msra.mxu1 %v20201_v45  ;;  %v6964_v42 = vrot.slane %v25698_v14, 1  ;;  %v7785_v15 = vrot.slane %v6898_v1, 1 }
 0x71a   : > { %v6775_v41 = vpack.c.bf16 %v6756_v50, %v6755_v44  ;;  %v17760_v57 = vpop.f32.mrb[60].mxu0  ;;  %17858 = vmatprep.subr.bf16.mxu1 %v22796_v61  ;;  %v7786_v44 = vrot.slane %v6894_v17, 2 }
 0x71b   : > { %v6817_v59 = vrot.slane %v6776_v53, 7  ;;  %v6729_v39 = vadd.f32 %v17760_v57, %v22590_v49  ;;  %v6645_v38 = vpop.f32.mrb[61].mxu0  ;;  %v6957_v7 = vsel %vm1237_vm3, %v6952_v4, %v6956_v34  ;;  %v6960_v37 = vor.u32 %v6958_v13, %v6956_v34 }
 0x71c   : > { %v22815_v31 = vrot.slane %v6775_v41, 7  ;;  %v6727_v45 = vadd.f32 %v22590_v49, %v6645_v38  ;;  %v17761_v10 = vpop.f32.mrb[62].mxu0  ;;  %17795 = vmatmul.mubr.bf16.gmra.mrb[96].mxu1 %v6957_v7  ;;  %v6968_v34 = vor.u32 %v25703_v2, %v6964_v42  ;;  %v6971_v7 = vrot.slane %v25702_v11, 1 }
 0x71d   : > { %v6730_v63 = vadd.f32 %v17761_v10, %v22590_v49  ;;  %v6648_v58 = vpop.f32.mrb[63].mxu0  ;;  %v6965_v55 = vsel %vm1237_vm3, %v6960_v37, %v6964_v42  ;;  %v6761_v41 = vmax.f32 %v6729_v39, 0.0  ;;  %v7789_v39 = vshrl.u32 %v22634_v30, 16 }
 0x71e   : > { %v22828_v50 = vsel %vm1182_vm2, %v22815_v31, %v6817_v59  ;;  %v22832_v4 = vsel %vm1182_vm2, 0, %v22815_v31  ;;  %v6728_v53 = vadd.f32 %v22590_v49, %v6648_v58  ;;  %17798 = vmatprep.mubr.bf16.mxu1 %v6965_v55  ;;  %v6759_v38 = vmax.f32 %v6727_v45, 0.0 }
 0x71f   : > { %v6762_v57 = vmax.f32 %v6730_v63, 0.0  ;;  %v25699_v1 = vshll.u32 %v22832_v4, 16  ;;  %v25700_v37 = vshll.u32 %v22828_v50, 16  ;;  %v25701_v14 = vshrl.u32 %v22832_v4, 16 }
 0x720   : > { %v6760_v17 = vmax.f32 %v6728_v53, 0.0  ;;  %v7787_v58 = vor.u32 %v7786_v44, %v7785_v15  ;;  %v6972_v42 = vsel %vm1237_vm3, %v6968_v34, %v6971_v7  ;;  %v7792_v15 = vrot.slane %v6901_v24, 2 }
 0x721   : > { %v6778_v10 = vpack.c.bf16 %v6762_v57, %v6761_v41  ;;  %v6977_v49 = vrot.slane %v25699_v1, 1  ;;  %v6982_v53 = vrot.slane %v25700_v37, 1  ;;  %v7791_v1 = vrot.slane %v7789_v39, 1 }
 0x722   : > { %v6777_v55 = vpack.c.bf16 %v6760_v17, %v6759_v38  ;;  %v22852_v41 = vsel %vm2151_vm5, %v22766_v9, %v7787_v58  ;;  %v7795_v38 = vrot.slane %v6905_v54, 1  ;;  %v7796_v17 = vrot.slane %v6907_v56, 2 }
 0x723   : > { %v6821_v63 = vrot.slane %v6778_v10, 7  ;;  %v6978_v45 = vor.u32 %v6977_v49, %v25701_v14  ;;  %v6984_v24 = vshrl.u32 %v22828_v50, 16  ;;  %v7798_v54 = vrot.slane %v6916_v48, 1 }
 0x724   : > { %v6819_v57 = vrot.slane %v6777_v55, 7  ;;  %17799 = vmatmul.mubr.bf16.gmra.mrb[100].mxu1 %v6972_v42  ;;  %v7793_v39 = vor.u32 %v7792_v15, %v7791_v1  ;;  %v7802_v1 = vrot.slane %v6924_v0, 1  ;;  %v7803_v15 = vrot.slane %v6920_v33, 2 }
 0x725   : > { %v22857_v44 = vsel %vm1182_vm2, %v6821_v63, 0  ;;  %v6983_v34 = vsel %vm1237_vm3, %v6978_v45, %v6982_v53  ;;  %v6986_v42 = vor.u32 %v6984_v24, %v6982_v53  ;;  %v7813_v33 = vrot.slane %v6935_v22, 2 }
 0x726   : > { %v22865_v9 = vsel %vm1182_vm2, %v6817_v59, %v6819_v57  ;;  %v22868_v7 = vsel %vm1182_vm2, %v6819_v57, %v6821_v63  ;;  %17802 = vmatprep.mubr.bf16.mxu1 %v6983_v34  ;;  %v7003_v10 = vshll.u32 %v22857_v44, 16  ;;  %v7797_v57 = vor.u32 %v7796_v17, %v7795_v38 }
 0x727   : > { %v6988_v49 = vshll.u32 %v22865_v9, 16  ;;  %v6996_v55 = vshll.u32 %v22868_v7, 16  ;;  %v6992_v56 = vshrl.u32 %v22865_v9, 16  ;;  %v7000_v59 = vshrl.u32 %v22868_v7, 16 }
 0x728   : > { %v7799_v34 = vrot.slane %v6912_v60, 2  ;;  %v7005_v37 = vrot.slane %v7003_v10, 1  ;;  %v22885_v14 = vsel %vm2151_vm5, %v7787_v58, %v7793_v39  ;;  %v7806_v60 = vrot.slane %v6932_v6, 1 }
 0x729   : > { %v6990_v63 = vrot.slane %v6988_v49, 1  ;;  %v6998_v45 = vrot.slane %v6996_v55, 1  ;;  %v7807_v38 = vrot.slane %v6928_v27, 2  ;;  %v7804_v0 = vor.u32 %v7803_v15, %v7802_v1 }
 0x72a   : > { %v7800_v2 = vor.u32 %v7799_v34, %v7798_v54  ;;  %v7810_v54 = vshrl.u32 %v22717_v36, 16  ;;  %v7816_v6 = vrot.slane %v6939_v3, 1  ;;  %v7817_v27 = vrot.slane %v6941_v12, 2 }
 0x72b   : > { %v6991_v48 = vsel %vm1237_vm3, %v6986_v42, %v6990_v63  ;;  %v6994_v53 = vor.u32 %v6992_v56, %v6990_v63  ;;  %v7002_v11 = vor.u32 %v7000_v59, %v6998_v45  ;;  %v7808_v39 = vor.u32 %v7807_v38, %v7806_v60 }
 0x72c   : > { %17803 = vmatmul.mubr.bf16.gmra.mrb[104].mxu1 %v6991_v48  ;;  %v22899_v42 = vsel %vm2151_vm5, %v7797_v57, %v7800_v2  ;;  %v7812_v63 = vrot.slane %v7810_v54, 1  ;;  %v7823_v22 = vrot.slane %v6958_v13, 1  ;;  %v7824_v3 = vrot.slane %v6954_v52, 2 }
 0x72d   : > { %v6999_v58 = vsel %vm1237_vm3, %v6994_v53, %v6998_v45  ;;  %v7006_v17 = vsel %vm1237_vm3, %v7002_v11, %v7005_v37  ;;  %v7819_v11 = vrot.slane %v6950_v32, 1  ;;  %v7820_v37 = vrot.slane %v6946_v18, 2 }
 0x72e   : > { %17806 = vmatprep.mubr.bf16.mxu1 %v6999_v58  ;;  %v22913_v45 = vsel %vm2151_vm5, %v7800_v2, %v7804_v0  ;;  %v22916_v57 = vsel %vm2151_vm5, %v7804_v0, %v7808_v39  ;;  %v7814_v34 = vor.u32 %v7813_v33, %v7812_v63  ;;  %v7818_v12 = vor.u32 %v7817_v27, %v7816_v6 }
 0x72f   : > { %v7821_v48 = vor.u32 %v7820_v37, %v7819_v11  ;;  %v25899_v32 = vshrl.u32 %v22789_v19, 16  ;;  %v25900_v18 = vmov 0  ;;  %v7825_v2 = vor.u32 %v7824_v3, %v7823_v22 }
 0x730   : > { %v25901_v18 = vsel %vm22925_vm14, 4294967295, %v25900_v18  ;;  %v25903_v1 = vshll.u32 %v22789_v19, 16  ;;  %v7831_v13 = vshrl.u32 %v22803_v5, 16  ;;  %v25904_v60 = vshll.u32 %v22803_v5, 16 }
 0x731   : > { %v7827_v53 = vrot.slane %v25899_v32, 1  ;;  %25902 = vst [vmem:[#allocation15_spill] sm:$0xff] %v25901_v18  ;;  %v22935_v38 = vsel %vm2151_vm5, %v7808_v39, %v7814_v34  ;;  %v22938_v58 = vsel %vm2151_vm5, %v7818_v12, %v7821_v48  ;;  %v25905_v54 = vshrl.u32 %v22832_v4, 16 }
 0x732   : > { %v7828_v15 = vrot.slane %v25903_v1, 2  ;;  %v7834_v52 = vrot.slane %v25904_v60, 2  ;;  %v25906_v33 = vshll.u32 %v22832_v4, 16  ;;  %v22945_v63 = vsel %vm2151_vm5, %v7821_v48, %v7825_v2 }
 0x733   : > { %v7837_v0 = vrot.slane %v25905_v54, 1  ;;  %v7833_v11 = vrot.slane %v7831_v13, 1  ;;  %v7840_v37 = vrot.slane %v6984_v24, 1  ;;  %v25907_v22 = vshll.u32 %v22828_v50, 16  ;;  %v20204_v54 = vld [vmem:[%s25893_s11 + $0x90] sm:$0xff]  }
 0x734   : > { %v7838_v6 = vrot.slane %v25906_v33, 2  ;;  %17807 = vmatmul.mubr.bf16.gmra.mrb[108].mxu1 %v7006_v17  ;;  %v7829_v27 = vor.u32 %v7828_v15, %v7827_v53  ;;  %v7844_v34 = vrot.slane %v6992_v56, 1  ;;  %v7845_v12 = vrot.slane %v6988_v49, 2  ;;  %v20207_v33 = vld [vmem:[%s25893_s11 + $0xa8] sm:$0xff]  }
 0x735   : > { %17826 = vmatprep.mubr.msk.bf16.mxu1 %vm22925_vm14, %v22597_v21  ;;  %v7841_v3 = vrot.slane %v25907_v22, 2  ;;  %v7835_v17 = vor.u32 %v7834_v52, %v7833_v11  ;;  %v7848_v1 = vrot.slane %v7000_v59, 1  ;;  %v7849_v48 = vrot.slane %v6996_v55, 2  ;;  %v20203_v55 = vld [vmem:[%s25893_s11 + $0x88] sm:$0xff]  }
 0x736   : > { %v7839_v39 = vor.u32 %v7838_v6, %v7837_v0  ;;  %v22953_v32 = vsel %vm2151_vm5, %v7825_v2, %v7829_v27  ;;  %v7846_v24 = vor.u32 %v7845_v12, %v7844_v34  ;;  %v7852_v15 = vshrl.u32 %v22857_v44, 16  ;;  %v20205_v0 = vld [vmem:[%s25893_s11 + $0x98] sm:$0xff]   ;;  %v20212_v12 = vld [vmem:[%s25893_s11 + $0xd0] sm:$0xff]  }
 0x737   : > { %v7842_v53 = vor.u32 %v7841_v3, %v7840_v37  ;;  %v7855_v21 = vrot.slane %v7003_v10, 2  ;;  %v22961_v13 = vsel %vm2151_vm5, %v7829_v27, %v7835_v17  ;;  %v7850_v56 = vor.u32 %v7849_v48, %v7848_v1  ;;  %v20209_v6 = vld [vmem:[%s25893_s11 + $0xb8] sm:$0xff]   ;;  %v20210_v27 = vld [vmem:[%s25893_s11 + $0xc0] sm:$0xff]  }
 0x738   : > { %v7854_v59 = vrot.slane %v7852_v15, 1  ;;  %v7466_v11 = vrot.slane %v22603_v43, 1  ;;  %v7470_v22 = vrot.slane %v22627_v28, 1  ;;  %v7472_v17 = vrot.slane %v22634_v30, 1 }
 0x739   : > { %v22964_v49 = vsel %vm2151_vm5, %v7839_v39, %v7842_v53  ;;  %v22967_v2 = vsel %vm2151_vm5, %v7842_v53, %v7846_v24  ;;  %v22973_v60 = vsel %vm2151_vm5, %v7846_v24, %v7850_v56  ;;  %v7468_v39 = vrot.slane %v22624_v16, 1  ;;  %v20213_v53 = vld [vmem:[%s25893_s11 + $0xd8] sm:$0xff]  }
 0x73a   : > { %v7856_v52 = vor.u32 %v7855_v21, %v7854_v59  ;;  %v7474_v1 = vrot.slane %v22665_v35, 1  ;;  %v7475_v48 = vrot.slane %v22661_v51, 1  ;;  %v7473_v24 = vsel %vm1841_vm6, %v7470_v22, %v7472_v17  ;;  %v20214_v21 = vld [vmem:[%s25893_s11 + $0xe0] sm:$0xff]  }
 0x73b   : > { %v7469_v3 = vsel %vm1841_vm6, %v7466_v11, %v7468_v39  ;;  %v7471_v34 = vsel %vm1841_vm6, %v7468_v39, %v7470_v22  ;;  %v7479_v59 = vrot.slane %v22705_v47, 1  ;;  %v7488_v39 = vrot.slane %v22789_v19, 1 }
 0x73c   : > { %17827 = vmatmul.mubr.bf16.vlgmr.msra.gmra.mrb[80].mxu1 %v22603_v43  ;;  %v22979_v10 = vsel %vm2151_vm5, %v7850_v56, %v7856_v52  ;;  %v7476_v15 = vsel %vm1841_vm6, %v7474_v1, %v7475_v48  ;;  %v7477_v56 = vrot.slane %v22702_v20, 1 }
 0x73d   : > { %17859 = vmatpush3.bf16.msra.mxu1 %v22796_v61  ;;  %17830 = vmatprep.mubr.bf16.mxu1 %v22624_v16  ;;  %v20206_v61 = vld [vmem:[%s25893_s11 + $0xa0] sm:$0xff]  }
 0x73e   : > { %17860 = vmatprep.subr.bf16.mxu1 %v20203_v55  ;;  %v7478_v52 = vsel %vm1841_vm6, %v7475_v48, %v7477_v56  ;;  %v7495_v48 = vrot.slane %v22865_v9, 1 }
 0x741   : > { %17861 = vmatpush3.bf16.msra.mxu1 %v20203_v55  ;;  %v20215_v55 = vld [vmem:[%s25893_s11 + $0xe8] sm:$0xff]  }
 0x742   : > { %17862 = vmatprep.subr.bf16.mxu1 %v20204_v54 }
 0x744   : > { %17831 = vmatmul.mubr.bf16.gmra.mrb[84].mxu1 %v22627_v28 }
 0x745   : > { %17834 = vmatprep.mubr.msk.bf16.mxu1 %vm22925_vm14, %v22651_v23  ;;  %17863 = vmatpush3.bf16.msra.mxu1 %v20204_v54  ;;  %v20208_v23 = vld [vmem:[%s25893_s11 + $0xb0] sm:$0xff]   ;;  %v7480_v54 = vsel %vm1841_vm6, %v7477_v56, %v7479_v59 }
 0x746   : > { %17864 = vmatprep.subr.bf16.mxu1 %v20205_v0 }
 0x749   : > { %17865 = vmatpush3.bf16.msra.mxu1 %v20205_v0  ;;  %v20216_v0 = vld [vmem:[%s25893_s11 + $0xf0] sm:$0xff]  }
 0x74a   : > { %17866 = vmatprep.subr.bf16.mxu1 %v20206_v61 }
 0x74c   : > { %17835 = vmatmul.mubr.bf16.gmra.mrb[88].mxu1 %v22661_v51 }
 0x74d   : > { %17838 = vmatprep.mubr.bf16.mxu1 %v22702_v20  ;;  %17867 = vmatpush3.bf16.msra.mxu1 %v20206_v61  ;;  %v7481_v61 = vrot.slane %v22717_v36, 1 }
 0x74e   : > { %17868 = vmatprep.subr.bf16.mxu1 %v20207_v33 }
 0x751   : > { %17869 = vmatpush3.bf16.msra.mxu1 %v20207_v33  ;;  %v7483_v33 = vrot.slane %v22751_v8, 1 }
 0x752   : > { %17870 = vmatprep.subr.bf16.mxu1 %v20208_v23 }
 0x754   : > { %17839 = vmatmul.mubr.bf16.gmra.mrb[92].mxu1 %v22705_v47 }
 0x755   : > { %17842 = vmatprep.mubr.msk.bf16.mxu1 %vm22925_vm14, %v22734_v40  ;;  %17871 = vmatpush3.bf16.msra.mxu1 %v20208_v23  ;;  %v7465_v40 = vrot.slane %v22607_v62, 1  ;;  %v7484_v23 = vrot.slane %v22747_v25, 1 }
 0x756   : > { %17872 = vmatprep.subr.bf16.mxu1 %v20209_v6 }
 0x757   : > { %v7467_v37 = vsel %vm1841_vm6, %v7465_v40, %v7466_v11  ;;  %v7485_v40 = vsel %vm1841_vm6, %v7483_v33, %v7484_v23  ;;  %v20218_v11 = vld [vmem:[%s25893_s11 + $0x100] sm:$0xff]   ;;  %v8149_v33 = vrot.slane %v22751_v8, 2  ;;  %v8159_v8 = vrot.slane %v22828_v50, 2 }
 0x759   : > { %17873 = vmatpush3.bf16.msra.mxu1 %v20209_v6  ;;  %v20217_v6 = vld [vmem:[%s25893_s11 + $0xf8] sm:$0xff]  }
 0x75a   : > { %17906 = vmatprep.subr.bf16.mxu1 %v20210_v27 }
 0x75c   : > { %17843 = vmatmul.mubr.bf16.gmra.mrb[96].mxu1 %v22747_v25 }
 0x75d   : > { %17846 = vmatprep.mubr.bf16.mxu1 %v22786_v46 }
 0x764   : > { %17847 = vmatmul.mubr.bf16.gmra.mrb[100].mxu1 %v22789_v19 }
 0x765   : > { %17850 = vmatprep.mubr.msk.bf16.mxu1 %vm22925_vm14, %v22815_v31  ;;  %v20211_v31 = vld [vmem:[%s25893_s11 + $0xc8] sm:$0xff]  }
 0x76c   : > { %17851 = vmatmul.mubr.bf16.gmra.mrb[104].mxu1 %v22828_v50 }
 0x76d   : > { %17854 = vmatprep.mubr.bf16.mxu1 %v22865_v9 }
 0x774   : > { %17855 = vmatmul.mubr.bf16.gmra.mrb[108].mxu1 %v22868_v7 }
 0x775   : > { %17874 = vmatprep.mubr.bf16.mxu1 %v7467_v37  ;;  %v7486_v37 = vrot.slane %v22786_v46, 1 }
 0x777   : > { %v7487_v22 = vsel %vm1841_vm6, %v7484_v23, %v7486_v37  ;;  %v8150_v23 = vrot.slane %v22747_v25, 2  ;;  %v8158_v25 = vrot.slane %v22832_v4, 2 }
 0x77c   : > { %17875 = vmatmul.mubr.bf16.vlgmr.msra.gmra.mrb[80].mxu1 %v7469_v3  ;;  %v7490_v3 = vrot.slane %v22803_v5, 1 }
 0x77d   : > { %17907 = vmatpush3.bf16.msra.mxu1 %v20210_v27  ;;  %17878 = vmatprep.mubr.bf16.mxu1 %v7471_v34  ;;  %v7482_v27 = vsel %vm1841_vm6, %v7479_v59, %v7481_v61  ;;  %v7492_v34 = vrot.slane %v22832_v4, 1  ;;  %v20219_v59 = vld [vmem:[%s25893_s11 + $0x108] sm:$0xff]   ;;  %v8147_v61 = vrot.slane %v22717_v36, 2  ;;  %v8156_v36 = vrot.slane %v22803_v5, 2  ;;  %v25908_v4 = vld [vmem:[#allocation11_spill] sm:$0xff] }
 0x77e   : > { %17908 = vmatprep.subr.bf16.mxu1 %v20211_v31  ;;  %v7491_v17 = vsel %vm1841_vm6, %v7488_v39, %v7490_v3  ;;  %v8165_v5 = vrot.slane %v22857_v44, 2  ;;  %v25909_v3 = vld [vmem:[#allocation10_spill] sm:$0xff] }
 0x781   : > { %17909 = vmatpush3.bf16.msra.mxu1 %v20211_v31  ;;  %v7489_v31 = vsel %vm1841_vm6, %v7486_v37, %v7488_v39  ;;  %v8160_v39 = vsel %vm953_vm0, %v8158_v25, %v8159_v8 }
 0x782   : > { %17910 = vmatprep.subr.bf16.mxu1 %v20212_v12 }
 0x784   : > { %17879 = vmatmul.mubr.bf16.gmra.mrb[84].mxu1 %v7473_v24 }
 0x785   : > { %17882 = vmatprep.mubr.bf16.mxu1 %v7476_v15  ;;  %17911 = vmatpush3.bf16.msra.mxu1 %v20212_v12  ;;  %v7493_v12 = vrot.slane %v22828_v50, 1 }
 0x786   : > { %17912 = vmatprep.subr.bf16.mxu1 %v20213_v53 }
 0x787   : > { %v7494_v1 = vsel %vm1841_vm6, %v7492_v34, %v7493_v12  ;;  %v7496_v24 = vsel %vm1841_vm6, %v7493_v12, %v7495_v48  ;;  %v20233_v34 = vld [vmem:[%s25618_s13 + $0x58] sm:$0xff]   ;;  %v25911_v12 = vld [vmem:[#allocation13_spill] sm:$0xff] }
 0x789   : > { %17913 = vmatpush3.bf16.msra.mxu1 %v20213_v53  ;;  %v7497_v53 = vrot.slane %v22868_v7, 1 }
 0x78a   : > { %17914 = vmatprep.subr.bf16.mxu1 %v20214_v21 }
 0x78b   : > { %v7498_v15 = vsel %vm1841_vm6, %v7495_v48, %v7497_v53  ;;  %v25913_v48 = vld [vmem:[#allocation16_spill] sm:$0xff] }
 0x78c   : > { %17883 = vmatmul.mubr.bf16.gmra.mrb[88].mxu1 %v7478_v52 }
 0x78d   : > { %17886 = vmatprep.mubr.bf16.mxu1 %v7480_v54  ;;  %17915 = vmatpush3.bf16.msra.mxu1 %v20214_v21  ;;  %v7499_v21 = vrot.slane %v22857_v44, 1  ;;  %v20232_v44 = vld [vmem:[%s25618_s13 + $0x50] sm:$0xff]  }
 0x78e   : > { %17916 = vmatprep.subr.bf16.mxu1 %v20215_v55 }
 0x78f   : > { %v7500_v56 = vsel %vm1841_vm6, %v7497_v53, %v7499_v21  ;;  %v25914_v53 = vld [vmem:[#allocation22_spill] sm:$0xff]  ;;  %v25917_v21 = vld [vmem:[#allocation25_spill] sm:$0xff] }
 0x791   : > { %17917 = vmatpush3.bf16.msra.mxu1 %v20215_v55  ;;  %v20220_v55 = vld [vmem:[%s25893_s11 + $0x110] sm:$0xff]  }
 0x792   : > { %17918 = vmatprep.subr.bf16.mxu1 %v20216_v0 }
 0x794   : > { %17887 = vmatmul.mubr.bf16.gmra.mrb[92].mxu1 %v7482_v27  ;;  %v8154_v27 = vrot.slane %v22789_v19, 2  ;;  %v8163_v19 = vrot.slane %v22868_v7, 2  ;;  %v25910_v7 = vld [vmem:[#allocation14_spill] sm:$0xff] }
 0x795   : > { %17890 = vmatprep.mubr.bf16.mxu1 %v7485_v40  ;;  %17919 = vmatpush3.bf16.msra.mxu1 %v20216_v0 }
 0x796   : > { %17920 = vmatprep.subr.bf16.mxu1 %v20217_v6  ;;  %v8157_v37 = vsel %vm953_vm0, %v8154_v27, %v8156_v36  ;;  %v8166_v50 = vsel %vm953_vm0, %v8163_v19, %v8165_v5 }
 0x799   : > { %17921 = vmatpush3.bf16.msra.mxu1 %v20217_v6 }
 0x79a   : > { %17954 = vmatprep.subr.bf16.mxu1 %v20218_v11 }
 0x79c   : > { %17891 = vmatmul.mubr.bf16.gmra.mrb[96].mxu1 %v7487_v22 }
 0x79d   : > { %17894 = vmatprep.mubr.bf16.mxu1 %v7489_v31 }
 0x7a4   : > { %17895 = vmatmul.mubr.bf16.gmra.mrb[100].mxu1 %v7491_v17  ;;  %v25912_v17 = vld [vmem:[#allocation17_spill] sm:$0xff] }
 0x7a5   : > { %17898 = vmatprep.mubr.bf16.mxu1 %v7494_v1  ;;  %v20234_v1 = vld [vmem:[%s25618_s13 + $0x60] sm:$0xff]  }
 0x7ac   : > { %17899 = vmatmul.mubr.bf16.gmra.mrb[104].mxu1 %v7496_v24  ;;  %v25915_v24 = vld [vmem:[#allocation19_spill] sm:$0xff] }
 0x7ad   : > { %17902 = vmatprep.mubr.bf16.mxu1 %v7498_v15  ;;  %v25916_v15 = vld [vmem:[#allocation26_spill] sm:$0xff] }
 0x7b4   : > { %17903 = vmatmul.mubr.bf16.gmra.mrb[108].mxu1 %v7500_v56  ;;  %v25918_v56 = vld [vmem:[#allocation33_spill] sm:$0xff] }
 0x7b5   : > { %17922 = vmatprep.mubr.bf16.mxu1 %v22697_v29  ;;  %v20221_v29 = vld [vmem:[%s25893_s11 + $0x118] sm:$0xff]  }
 0x7bc   : > { %17923 = vmatmul.mubr.bf16.vlgmr.msra.gmra.mrb[80].mxu1 %v22781_v26  ;;  %v20222_v26 = vld [vmem:[%s25893_s11 + $0x120] sm:$0xff]  }
 0x7bd   : > { %17955 = vmatpush3.bf16.msra.mxu1 %v20218_v11  ;;  %17926 = vmatprep.mubr.bf16.mxu1 %v22852_v41  ;;  %v20223_v41 = vld [vmem:[%s25893_s11 + $0x128] sm:$0xff]  }
 0x7be   : > { %17956 = vmatprep.subr.bf16.mxu1 %v20219_v59 }
 0x7c1   : > { %17957 = vmatpush3.bf16.msra.mxu1 %v20219_v59  ;;  %v20235_v59 = vld [vmem:[%s25618_s13 + $0x68] sm:$0xff]  }
 0x7c2   : > { %17958 = vmatprep.subr.bf16.mxu1 %v20220_v55 }
 0x7c4   : > { %17927 = vmatmul.mubr.bf16.gmra.mrb[84].mxu1 %v22885_v14  ;;  %v20224_v14 = vld [vmem:[%s25893_s11 + $0x130] sm:$0xff]  }
 0x7c5   : > { %17930 = vmatprep.mubr.bf16.mxu1 %v22899_v42  ;;  %17959 = vmatpush3.bf16.msra.mxu1 %v20220_v55  ;;  %v20225_v42 = vld [vmem:[%s25893_s11 + $0x138] sm:$0xff]  }
 0x7c6   : > { %17960 = vmatprep.subr.bf16.mxu1 %v20221_v29  ;;  %v25919_v55 = vld [vmem:[#allocation32_spill] sm:$0xff] }
 0x7c9   : > { %17961 = vmatpush3.bf16.msra.mxu1 %v20221_v29  ;;  %v25920_v29 = vld [vmem:[#allocation39_spill] sm:$0xff] }
 0x7ca   : > { %17962 = vmatprep.subr.bf16.mxu1 %v20222_v26 }
 0x7cc   : > { %17931 = vmatmul.mubr.bf16.gmra.mrb[88].mxu1 %v22913_v45  ;;  %v20226_v45 = vld [vmem:[%s25620_s15] sm:$0xff]  }
 0x7cd   : > { %17934 = vmatprep.mubr.bf16.mxu1 %v22916_v57  ;;  %17963 = vmatpush3.bf16.msra.mxu1 %v20222_v26  ;;  %v8131_v57 = vrot.slane %v22607_v62, 2  ;;  %v20236_v26 = vld [vmem:[%s25618_s13 + $0x70] sm:$0xff]  }
 0x7ce   : > { %17964 = vmatprep.subr.bf16.mxu1 %v20223_v41 }
 0x7d1   : > { %17965 = vmatpush3.bf16.msra.mxu1 %v20223_v41  ;;  %v25921_v41 = vld [vmem:[#allocation36_spill] sm:$0xff] }
 0x7d2   : > { %17966 = vmatprep.subr.bf16.mxu1 %v20224_v14 }
 0x7d4   : > { %17935 = vmatmul.mubr.bf16.gmra.mrb[92].mxu1 %v22935_v38  ;;  %v8132_v38 = vrot.slane %v22603_v43, 2  ;;  %v20228_v43 = vld [vmem:[%s25620_s15 + $0x10] sm:$0xff]  }
 0x7d5   : > { %17938 = vmatprep.mubr.bf16.mxu1 %v22938_v58  ;;  %17967 = vmatpush3.bf16.msra.mxu1 %v20224_v14  ;;  %v25922_v14 = vld [vmem:[#allocation41_spill] sm:$0xff] }
 0x7d6   : > { %17968 = vmatprep.subr.bf16.mxu1 %v20225_v42  ;;  %v8133_v58 = vsel %vm953_vm0, %v8131_v57, %v8132_v38  ;;  %v23225_v57 = vld [vmem:[%s25618_s13] sm:$0xff]  }
 0x7d9   : > { %17969 = vmatpush3.bf16.msra.mxu1 %v20225_v42  ;;  %v20237_v42 = vld [vmem:[%s25618_s13 + $0x78] sm:$0xff]  }
 0x7da   : > { %18002 = vmatprep.subr.bf16.mxu1 %v20226_v45 }
 0x7dc   : > { %17939 = vmatmul.mubr.bf16.gmra.mrb[96].mxu1 %v22945_v63  ;;  %v8134_v63 = vrot.slane %v22624_v16, 2  ;;  %v8138_v16 = vrot.slane %v22634_v30, 2  ;;  %v20230_v30 = vld [vmem:[%s25618_s13 + $0x40] sm:$0xff]  }
 0x7dd   : > { %17942 = vmatprep.mubr.bf16.mxu1 %v22953_v32  ;;  %v8136_v32 = vrot.slane %v22627_v28, 2  ;;  %v8140_v28 = vrot.slane %v22665_v35, 2  ;;  %v8145_v35 = vrot.slane %v22705_v47, 2  ;;  %v8152_v47 = vrot.slane %v22786_v46, 2 }
 0x7de   : > { %v8161_v46 = vrot.slane %v22865_v9, 2  ;;  %v20231_v9 = vld [vmem:[%s25618_s13 + $0x48] sm:$0xff]  }
 0x7df   : > { %v8137_v62 = vsel %vm953_vm0, %v8134_v63, %v8136_v32  ;;  %v8148_v6 = vsel %vm953_vm0, %v8145_v35, %v8147_v61  ;;  %v8153_v40 = vsel %vm953_vm0, %v8150_v23, %v8152_v47  ;;  %v8155_v11 = vsel %vm953_vm0, %v8152_v47, %v8154_v27 }
 0x7e0   : > { %v8162_v22 = vsel %vm953_vm0, %v8159_v8, %v8161_v46  ;;  %v8164_v31 = vsel %vm953_vm0, %v8161_v46, %v8163_v19 }
 0x7e4   : > { %17943 = vmatmul.mubr.bf16.gmra.mrb[100].mxu1 %v22961_v13  ;;  %v20227_v13 = vld [vmem:[%s25620_s15 + $0x8] sm:$0xff]  }
 0x7e5   : > { %17946 = vmatprep.mubr.bf16.mxu1 %v22964_v49  ;;  %v8135_v49 = vsel %vm953_vm0, %v8132_v38, %v8134_v63  ;;  %v23231_v38 = vld [vmem:[%s25617_s12] ss:$0 sm:$0xff] }
 0x7ec   : > { %17947 = vmatmul.mubr.bf16.gmra.mrb[104].mxu1 %v22967_v2  ;;  %v8141_v2 = vrot.slane %v22661_v51, 2  ;;  %v8143_v51 = vrot.slane %v22702_v20, 2  ;;  %v8151_v20 = vsel %vm953_vm0, %v8149_v33, %v8150_v23 }
 0x7ed   : > { %17950 = vmatprep.mubr.bf16.mxu1 %v22973_v60  ;;  %v20229_v60 = vld [vmem:[%s25620_s15 + $0x18] sm:$0xff]  }
 0x7ee   : > { %v8142_v52 = vsel %vm953_vm0, %v8140_v28, %v8141_v2  ;;  %v8144_v54 = vsel %vm953_vm0, %v8141_v2, %v8143_v51  ;;  %v8146_v0 = vsel %vm953_vm0, %v8143_v51, %v8145_v35 }
 0x7f4   : > { %17951 = vmatmul.mubr.bf16.gmra.mrb[108].mxu1 %v22979_v10  ;;  %v8139_v10 = vsel %vm953_vm0, %v8136_v32, %v8138_v16 }
 0x7f5   : > { %17970 = vmatprep.mubr.bf16.mxu1 %v8133_v58 }
 0x7fc   : > { %17971 = vmatmul.mubr.bf16.vlgmr.msra.gmra.mrb[80].mxu1 %v8135_v49 }
 0x7fd   : > { %17974 = vmatprep.mubr.bf16.mxu1 %v8137_v62  ;;  %18003 = vmatpush3.bf16.msra.mxu1 %v20226_v45  ;;  %v25923_v45 = vld [vmem:[#allocation40_spill] sm:$0xff] }
 0x7fe   : > { %18004 = vmatprep.subr.bf16.mxu1 %v20227_v13 }
 0x801   : > { %18005 = vmatpush3.bf16.msra.mxu1 %v20227_v13 }
 0x802   : > { %18006 = vmatprep.subr.bf16.mxu1 %v20228_v43 }
 0x804   : > { %17975 = vmatmul.mubr.bf16.gmra.mrb[84].mxu1 %v8139_v10 }
 0x805   : > { %17978 = vmatprep.mubr.bf16.mxu1 %v8142_v52  ;;  %18007 = vmatpush3.bf16.msra.mxu1 %v20228_v43 }
 0x806   : > { %18008 = vmatprep.subr.bf16.mxu1 %v20229_v60 }
 0x809   : > { %18009 = vmatpush3.bf16.msra.mxu1 %v20229_v60 }
 0x80a   : > { %18042 = vmatprep.subr.bf16.mxu1 %v20230_v30 }
 0x80c   : > { %17979 = vmatmul.mubr.bf16.gmra.mrb[88].mxu1 %v8144_v54 }
 0x80d   : > { %17982 = vmatprep.mubr.bf16.mxu1 %v8146_v0 }
 0x814   : > { %17983 = vmatmul.mubr.bf16.gmra.mrb[92].mxu1 %v8148_v6 }
 0x815   : > { %17986 = vmatprep.mubr.bf16.mxu1 %v8151_v20 }
 0x81c   : > { %17987 = vmatmul.mubr.bf16.gmra.mrb[96].mxu1 %v8153_v40 }
 0x81d   : > { %17990 = vmatprep.mubr.bf16.mxu1 %v8155_v11 }
 0x824   : > { %17991 = vmatmul.mubr.bf16.gmra.mrb[100].mxu1 %v8157_v37 }
 0x825   : > { %17994 = vmatprep.mubr.bf16.mxu1 %v8160_v39 }
 0x82c   : > { %17995 = vmatmul.mubr.bf16.gmra.mrb[104].mxu1 %v8162_v22 }
 0x82d   : > { %17998 = vmatprep.mubr.bf16.mxu1 %v8164_v31 }
 0x834   : > { %17999 = vmatmul.mubr.bf16.gmra.mrb[108].mxu1 %v8166_v50 }
 0x835   : > { %18010 = vmatprep.mubr.msk.bf16.mxu1 %vm1406_vm4, %v25908_v4 }
 0x83c   : > { %18011 = vmatmul.mubr.msk.bf16.vlgmr.msra.gmra.mrb[112].mxu1 %vm1406_vm4, %v25909_v3 }
 0x83d   : > { %18014 = vmatprep.mubr.msk.bf16.mxu1 %vm1406_vm4, %v25910_v7  ;;  %18043 = vmatpush3.bf16.msra.mxu1 %v20230_v30 }
 0x83e   : > { %18044 = vmatprep.subr.bf16.mxu1 %v20231_v9 }
 0x841   : > { %18045 = vmatpush3.bf16.msra.mxu1 %v20231_v9 }
 0x842   : > { %18046 = vmatprep.subr.bf16.mxu1 %v20232_v44 }
 0x844   : > { %18015 = vmatmul.mubr.msk.bf16.gmra.mrb[116].mxu1 %vm1406_vm4, %v25911_v12 }
 0x845   : > { %18018 = vmatprep.mubr.msk.bf16.mxu1 %vm1406_vm4, %v25912_v17  ;;  %18047 = vmatpush3.bf16.msra.mxu1 %v20232_v44 }
 0x846   : > { %18048 = vmatprep.subr.bf16.mxu1 %v20233_v34 }
 0x849   : > { %18049 = vmatpush3.bf16.msra.mxu1 %v20233_v34 }
 0x84a   : > { %18050 = vmatprep.subr.bf16.mxu1 %v20234_v1 }
 0x84c   : > { %18019 = vmatmul.mubr.msk.bf16.gmra.mrb[120].mxu1 %vm1406_vm4, %v25913_v48 }
 0x84d   : > { %18022 = vmatprep.mubr.msk.bf16.mxu1 %vm1406_vm4, %v25914_v53  ;;  %18051 = vmatpush3.bf16.msra.mxu1 %v20234_v1 }
 0x84e   : > { %18052 = vmatprep.subr.bf16.mxu1 %v20235_v59 }
 0x851   : > { %18053 = vmatpush3.bf16.msra.mxu1 %v20235_v59 }
 0x852   : > { %18054 = vmatprep.subr.bf16.mxu1 %v20236_v26 }
 0x854   : > { %18023 = vmatmul.mubr.msk.bf16.gmra.mrb[124].mxu1 %vm1406_vm4, %v25915_v24 }
 0x855   : > { %18026 = vmatprep.mubr.msk.bf16.mxu1 %vm1406_vm4, %v25916_v15  ;;  %18055 = vmatpush3.bf16.msra.mxu1 %v20236_v26 }
 0x856   : > { %18056 = vmatprep.subr.bf16.mxu1 %v20237_v42 }
 0x859   : > { %18057 = vmatpush3.bf16.msra.mxu1 %v20237_v42 }
 0x85a   : > { %18090 = vmatprep.subr.bf16.mxu1 %v23225_v57 }
 0x85c   : > { %18027 = vmatmul.mubr.msk.bf16.gmra.mrb[128].mxu1 %vm1406_vm4, %v25917_v21 }
 0x85d   : > { %18030 = vmatprep.mubr.msk.bf16.mxu1 %vm1406_vm4, %v25918_v56 }
 0x864   : > { %18031 = vmatmul.mubr.msk.bf16.gmra.mrb[132].mxu1 %vm1406_vm4, %v25919_v55 }
 0x865   : > { %18034 = vmatprep.mubr.msk.bf16.mxu1 %vm1406_vm4, %v25920_v29 }
 0x86c   : > { %18035 = vmatmul.mubr.msk.bf16.gmra.mrb[136].mxu1 %vm1406_vm4, %v25921_v41 }
 0x86d   : > { %18038 = vmatprep.mubr.msk.bf16.mxu1 %vm1406_vm4, %v25922_v14 }
 0x874   : > { %18039 = vmatmul.mubr.msk.bf16.gmra.mrb[140].mxu1 %vm1406_vm4, %v25923_v45 }
 0x8cf   : > { %v17972_v58 = vpop.f32.mrb[80].mxu1 }
 0x8d0   : > { %v8449_v63 = vadd.f32 %v17972_v58, %v23231_v38  ;;  %v8281_v32 = vpop.f32.mrb[81].mxu1 }
 0x8d1   : > { %v8447_v13 = vadd.f32 %v23231_v38, %v8281_v32  ;;  %v17973_v49 = vpop.f32.mrb[82].mxu1 }
 0x8d2   : > { %v8450_v62 = vadd.f32 %v17973_v49, %v23231_v38  ;;  %v8284_v43 = vpop.f32.mrb[83].mxu1  ;;  %v8481_v28 = vmax.f32 %v8449_v63, 0.0 }
 0x8d3   : > { %v8448_v16 = vadd.f32 %v23231_v38, %v8284_v43  ;;  %v8479_v60 = vmax.f32 %v8447_v13, 0.0 }
 0x8d4   : > { %v8482_v2 = vmax.f32 %v8450_v62, 0.0 }
 0x8d5   : > { %v8480_v10 = vmax.f32 %v8448_v16, 0.0 }
 0x8d6   : > { %v8744_v52 = vpack.c.bf16 %v8482_v2, %v8481_v28 }
 0x8d7   : > { %v8743_v30 = vpack.c.bf16 %v8480_v10, %v8479_v60  ;;  %v17976_v51 = vpop.f32.mrb[84].mxu1 }
 0x8d8   : > { %v8767_v35 = vshrl.u32 %v8744_v52, 16  ;;  %v8453_v54 = vadd.f32 %v17976_v51, %v23231_v38  ;;  %v8297_v0 = vpop.f32.mrb[85].mxu1  ;;  %v8770_v20 = vshll.u32 %v8744_v52, 16 }
 0x8d9   : > { %v8760_v61 = vshrl.u32 %v8743_v30, 16  ;;  %v8451_v33 = vadd.f32 %v23231_v38, %v8297_v0  ;;  %v17977_v23 = vpop.f32.mrb[86].mxu1  ;;  %v8763_v11 = vshll.u32 %v8743_v30, 16 }
 0x8da   : > { %v8769_v6 = vrot.slane %v8767_v35, 7  ;;  %v8454_v47 = vadd.f32 %v17977_v23, %v23231_v38  ;;  %v8300_v27 = vpop.f32.mrb[87].mxu1  ;;  %v8485_v8 = vmax.f32 %v8453_v54, 0.0 }
 0x8db   : > { %v8762_v40 = vrot.slane %v8760_v61, 7  ;;  %v8452_v36 = vadd.f32 %v23231_v38, %v8300_v27  ;;  %v8483_v46 = vmax.f32 %v8451_v33, 0.0 }
 0x8dc   : > { %v8772_v25 = vor.u32 %v8770_v20, %v8769_v6  ;;  %v8486_v37 = vmax.f32 %v8454_v47, 0.0 }
 0x8dd   : > { %v8765_v39 = vor.u32 %v8763_v11, %v8762_v40  ;;  %v8484_v19 = vmax.f32 %v8452_v36, 0.0 }
 0x8de   : > { %v23242_v22 = vsel %vm3092_vm7, %v8762_v40, %v8772_v25  ;;  %v8746_v31 = vpack.c.bf16 %v8486_v37, %v8485_v8 }
 0x8df   : > { %v23246_v50 = vsel %vm21342_vm8, 0, %v8765_v39  ;;  %v8745_v4 = vpack.c.bf16 %v8484_v19, %v8483_v46  ;;  %v17980_v9 = vpop.f32.mrb[88].mxu1  ;;  %v8935_v3 = vshll.u32 %v23242_v22, 16  ;;  %v8939_v12 = vshrl.u32 %v23242_v22, 16  ;;  %v20239_v19 = vld [vmem:[%s25618_s13 + $0x8] sm:$0xff]  }
 0x8e0   : > { %v8783_v7 = vshrl.u32 %v8746_v31, 16  ;;  %v8457_v44 = vadd.f32 %v17980_v9, %v23231_v38  ;;  %v8313_v34 = vpop.f32.mrb[89].mxu1  ;;  %v8786_v17 = vshll.u32 %v8746_v31, 16  ;;  %v8930_v24 = vshll.u32 %v23246_v50, 16 }
 0x8e1   : > { %v8775_v1 = vshrl.u32 %v8745_v4, 16  ;;  %v8455_v48 = vadd.f32 %v23231_v38, %v8313_v34  ;;  %v17981_v53 = vpop.f32.mrb[90].mxu1  ;;  %v8928_v59 = vshrl.u32 %v23246_v50, 16  ;;  %v8937_v55 = vrot.slane %v8935_v3, 1 }
 0x8e2   : > { %v8785_v15 = vrot.slane %v8783_v7, 7  ;;  %v8458_v21 = vadd.f32 %v17981_v53, %v23231_v38  ;;  %v8316_v56 = vpop.f32.mrb[91].mxu1  ;;  %v8778_v26 = vshll.u32 %v8745_v4, 16  ;;  %v8932_v14 = vrot.slane %v8930_v24, 1 }
 0x8e3   : > { %v8777_v29 = vrot.slane %v8775_v1, 7  ;;  %v8456_v41 = vadd.f32 %v23231_v38, %v8316_v56  ;;  %v8489_v45 = vmax.f32 %v8457_v44, 0.0  ;;  %v8487_v58 = vmax.f32 %v8455_v48, 0.0 }
 0x8e4   : > { %v8788_v42 = vor.u32 %v8786_v17, %v8785_v15  ;;  %v8490_v63 = vmax.f32 %v8458_v21, 0.0  ;;  %v23258_v32 = vsel %vm21342_vm8, %v8785_v15, 0  ;;  %v8933_v62 = vor.u32 %v8932_v14, %v8928_v59  ;;  %v20240_v59 = vld [vmem:[%s25618_s13 + $0x10] sm:$0xff]  }
 0x8e5   : > { %v8780_v13 = vor.u32 %v8778_v26, %v8777_v29  ;;  %v8488_v49 = vmax.f32 %v8456_v41, 0.0  ;;  %v8941_v28 = vor.u32 %v8939_v12, %v8937_v55  ;;  %v8959_v61 = vshll.u32 %v23258_v32, 16 }
 0x8e6   : > { %v23261_v43 = vsel %vm3092_vm7, %v8777_v29, %v8788_v42  ;;  %v8748_v16 = vpack.c.bf16 %v8490_v63, %v8489_v45  ;;  %v8938_v52 = vsel %vm1237_vm3, %v8933_v62, %v8937_v55 }
 0x8e7   : > { %v23264_v2 = vsel %vm3092_vm7, %v8769_v6, %v8780_v13  ;;  %v8747_v60 = vpack.c.bf16 %v8488_v49, %v8487_v58  ;;  %v17984_v10 = vpop.f32.mrb[92].mxu1  ;;  %v8951_v30 = vshll.u32 %v23261_v43, 16  ;;  %18058 = vmatprep.mubr.bf16.mxu1 %v8938_v52  ;;  %v8955_v12 = vshrl.u32 %v23261_v43, 16 }
 0x8e8   : > { %v8798_v51 = vshrl.u32 %v8748_v16, 16  ;;  %v8461_v35 = vadd.f32 %v17984_v10, %v23231_v38  ;;  %v8329_v54 = vpop.f32.mrb[93].mxu1  ;;  %v8943_v0 = vshll.u32 %v23264_v2, 16  ;;  %v8801_v33 = vshll.u32 %v8748_v16, 16 }
 0x8e9   : > { %v8791_v23 = vshrl.u32 %v8747_v60, 16  ;;  %v8794_v20 = vshll.u32 %v8747_v60, 16  ;;  %v8459_v6 = vadd.f32 %v23231_v38, %v8329_v54  ;;  %v17985_v47 = vpop.f32.mrb[94].mxu1  ;;  %v8947_v25 = vshrl.u32 %v23264_v2, 16 }
 0x8ea   : > { %v23272_v27 = vrot.slane %v8798_v51, 7  ;;  %v8462_v40 = vadd.f32 %v17985_v47, %v23231_v38  ;;  %v8332_v11 = vpop.f32.mrb[95].mxu1  ;;  %v8945_v36 = vrot.slane %v8943_v0, 1  ;;  %v8493_v37 = vmax.f32 %v8461_v35, 0.0  ;;  %v20241_v51 = vld [vmem:[%s25618_s13 + $0x18] sm:$0xff]  }
 0x8eb   : > { %v8793_v8 = vrot.slane %v8791_v23, 7  ;;  %v8460_v39 = vadd.f32 %v23231_v38, %v8332_v11  ;;  %v8953_v46 = vrot.slane %v8951_v30, 1  ;;  %v8491_v44 = vmax.f32 %v8459_v6, 0.0 }
 0x8ec   : > { %v8803_v31 = vor.u32 %v8801_v33, %v23272_v27  ;;  %v8494_v4 = vmax.f32 %v8462_v40, 0.0  ;;  %v8946_v9 = vsel %vm1237_vm3, %v8941_v28, %v8945_v36  ;;  %v8949_v3 = vor.u32 %v8947_v25, %v8945_v36 }
 0x8ed   : > { %v8796_v7 = vor.u32 %v8794_v20, %v8793_v8  ;;  %v8492_v34 = vmax.f32 %v8460_v39, 0.0  ;;  %18059 = vmatmul.mubr.bf16.vlgmr.msra.gmra.mrb[112].mxu1 %v8946_v9  ;;  %v8957_v21 = vor.u32 %v8955_v12, %v8953_v46  ;;  %v8961_v41 = vrot.slane %v8959_v61, 1 }
 0x8ee   : > { %v23284_v17 = vsel %vm3092_vm7, %v8793_v8, %v8803_v31  ;;  %v8750_v1 = vpack.c.bf16 %v8494_v4, %v8493_v37  ;;  %18091 = vmatpush3.bf16.msra.mxu1 %v23225_v57  ;;  %v8954_v48 = vsel %vm1237_vm3, %v8949_v3, %v8953_v46 }
 0x8ef   : > { %v23290_v53 = vsel %vm21342_vm8, 0, %v8796_v7  ;;  %v8749_v24 = vpack.c.bf16 %v8492_v34, %v8491_v44  ;;  %v17988_v15 = vpop.f32.mrb[96].mxu1  ;;  %18062 = vmatprep.mubr.bf16.mxu1 %v8954_v48  ;;  %18092 = vmatprep.subr.bf16.mxu1 %v20239_v19  ;;  %v8971_v56 = vshll.u32 %v23284_v17, 16  ;;  %v8962_v16 = vsel %vm1237_vm3, %v8957_v21, %v8961_v41 }
 0x8f0   : > { %v8814_v55 = vshrl.u32 %v8750_v1, 16  ;;  %v8817_v29 = vshll.u32 %v8750_v1, 16  ;;  %v8465_v57 = vadd.f32 %v17988_v15, %v23231_v38  ;;  %v8345_v26 = vpop.f32.mrb[97].mxu1  ;;  %v8964_v63 = vshrl.u32 %v23290_v53, 16 }
 0x8f1   : > { %v8806_v14 = vshrl.u32 %v8749_v24, 16  ;;  %v8809_v42 = vshll.u32 %v8749_v24, 16  ;;  %v8463_v45 = vadd.f32 %v23231_v38, %v8345_v26  ;;  %v17989_v58 = vpop.f32.mrb[98].mxu1  ;;  %v8966_v28 = vshll.u32 %v23290_v53, 16 }
 0x8f2   : > { %v8816_v13 = vrot.slane %v8814_v55, 7  ;;  %v8466_v49 = vadd.f32 %v17989_v58, %v23231_v38  ;;  %v8348_v62 = vpop.f32.mrb[99].mxu1  ;;  %18093 = vmatpush3.bf16.msra.mxu1 %v20239_v19  ;;  %v8497_v10 = vmax.f32 %v8465_v57, 0.0  ;;  %v8973_v30 = vrot.slane %v8971_v56, 1  ;;  %v20242_v19 = vld [vmem:[%s25618_s13 + $0x20] sm:$0xff]  }
 0x8f3   : > { %v8808_v60 = vrot.slane %v8806_v14, 7  ;;  %v8464_v52 = vadd.f32 %v23231_v38, %v8348_v62  ;;  %18094 = vmatprep.subr.bf16.mxu1 %v20240_v59  ;;  %v8968_v61 = vrot.slane %v8966_v28, 1  ;;  %v8495_v23 = vmax.f32 %v8463_v45, 0.0  ;;  %v20243_v45 = vld [vmem:[%s25618_s13 + $0x28] sm:$0xff]  }
 0x8f4   : > { %v8819_v35 = vor.u32 %v8817_v29, %v8816_v13  ;;  %v23308_v54 = vsel %vm21342_vm8, %v8816_v13, 0  ;;  %v8498_v0 = vmax.f32 %v8466_v49, 0.0  ;;  %v8975_v6 = vshrl.u32 %v23284_v17, 16 }
 0x8f5   : > { %v8811_v33 = vor.u32 %v8809_v42, %v8808_v60  ;;  %v8496_v20 = vmax.f32 %v8464_v52, 0.0  ;;  %18063 = vmatmul.mubr.bf16.gmra.mrb[116].mxu1 %v8962_v16  ;;  %v8969_v11 = vor.u32 %v8968_v61, %v8964_v63  ;;  %v8995_v36 = vshll.u32 %v23308_v54, 16 }
 0x8f6   : > { %v23312_v47 = vsel %vm3092_vm7, %v8808_v60, %v8819_v35  ;;  %v8752_v40 = vpack.c.bf16 %v8498_v0, %v8497_v10  ;;  %18095 = vmatpush3.bf16.msra.mxu1 %v20240_v59  ;;  %v8977_v39 = vor.u32 %v8975_v6, %v8973_v30 }
 0x8f7   : > { %v8751_v25 = vpack.c.bf16 %v8496_v20, %v8495_v23  ;;  %v17992_v8 = vpop.f32.mrb[100].mxu1  ;;  %v23317_v37 = vsel %vm3092_vm7, %v23272_v27, %v8811_v33  ;;  %v8987_v46 = vshll.u32 %v23312_v47, 16  ;;  %18096 = vmatprep.subr.bf16.mxu1 %v20241_v51  ;;  %v8974_v3 = vsel %vm1237_vm3, %v8969_v11, %v8973_v30  ;;  %v20244_v23 = vld [vmem:[%s25618_s13 + $0x30] sm:$0xff]  }
 0x8f8   : > { %v8829_v31 = vshrl.u32 %v8752_v40, 16  ;;  %v8832_v4 = vshll.u32 %v8752_v40, 16  ;;  %v8469_v9 = vadd.f32 %v17992_v8, %v23231_v38  ;;  %v8361_v7 = vpop.f32.mrb[101].mxu1  ;;  %18066 = vmatprep.mubr.bf16.mxu1 %v8974_v3  ;;  %v8979_v1 = vshll.u32 %v23317_v37, 16 }
 0x8f9   : > { %v8822_v44 = vshrl.u32 %v8751_v25, 16  ;;  %v8825_v34 = vshll.u32 %v8751_v25, 16  ;;  %v8467_v27 = vadd.f32 %v23231_v38, %v8361_v7  ;;  %v17993_v12 = vpop.f32.mrb[102].mxu1  ;;  %v8983_v56 = vshrl.u32 %v23317_v37, 16 }
 0x8fa   : > { %v23327_v48 = vrot.slane %v8829_v31, 7  ;;  %v8501_v24 = vmax.f32 %v8469_v9, 0.0  ;;  %v8470_v15 = vadd.f32 %v17993_v12, %v23231_v38  ;;  %v8364_v21 = vpop.f32.mrb[103].mxu1  ;;  %18097 = vmatpush3.bf16.msra.mxu1 %v20241_v51  ;;  %v8981_v57 = vrot.slane %v8979_v1, 1  ;;  %v20245_v12 = vld [vmem:[%s25618_s13 + $0x38] sm:$0xff]  }
 0x8fb   : > { %v8824_v59 = vrot.slane %v8822_v44, 7  ;;  %v8499_v55 = vmax.f32 %v8467_v27, 0.0  ;;  %v8468_v29 = vadd.f32 %v23231_v38, %v8364_v21  ;;  %18098 = vmatprep.subr.bf16.mxu1 %v20242_v19  ;;  %v8989_v14 = vrot.slane %v8987_v46, 1 }
 0x8fc   : > { %v8834_v26 = vor.u32 %v8832_v4, %v23327_v48  ;;  %v8502_v41 = vmax.f32 %v8470_v15, 0.0  ;;  %v8991_v42 = vshrl.u32 %v23312_v47, 16  ;;  %v8982_v13 = vsel %vm1237_vm3, %v8977_v39, %v8981_v57 }
 0x8fd   : > { %v8827_v58 = vor.u32 %v8825_v34, %v8824_v59  ;;  %v8500_v63 = vmax.f32 %v8468_v29, 0.0  ;;  %v8985_v49 = vor.u32 %v8983_v56, %v8981_v57  ;;  %18067 = vmatmul.mubr.bf16.gmra.mrb[120].mxu1 %v8982_v13  ;;  %v8997_v60 = vrot.slane %v8995_v36, 1 }
 0x8fe   : > { %v23339_v62 = vsel %vm3092_vm7, %v8824_v59, %v8834_v26  ;;  %v8754_v16 = vpack.c.bf16 %v8502_v41, %v8501_v24  ;;  %v8993_v28 = vor.u32 %v8991_v42, %v8989_v14  ;;  %18099 = vmatpush3.bf16.msra.mxu1 %v20242_v19 }
 0x8ff   : > { %v23343_v10 = vsel %vm21342_vm8, 0, %v8827_v58  ;;  %v8753_v52 = vpack.c.bf16 %v8500_v63, %v8499_v55  ;;  %v17996_v30 = vpop.f32.mrb[104].mxu1  ;;  %v8990_v51 = vsel %vm1237_vm3, %v8985_v49, %v8989_v14  ;;  %v9007_v35 = vshll.u32 %v23339_v62, 16  ;;  %18100 = vmatprep.subr.bf16.mxu1 %v20243_v45  ;;  %v23378_v49 = vld [vmem:[%s25618_s13 + $0x80] sm:$0xff]  }
 0x900   : > { %v8845_v0 = vshrl.u32 %v8754_v16, 16  ;;  %v8473_v61 = vadd.f32 %v17996_v30, %v23231_v38  ;;  %18070 = vmatprep.mubr.bf16.mxu1 %v8990_v51  ;;  %v8377_v33 = vpop.f32.mrb[105].mxu1  ;;  %v8848_v20 = vshll.u32 %v8754_v16, 16  ;;  %v8998_v36 = vsel %vm1237_vm3, %v8993_v28, %v8997_v60 }
 0x901   : > { %v8837_v6 = vshrl.u32 %v8753_v52, 16  ;;  %v8471_v40 = vadd.f32 %v23231_v38, %v8377_v33  ;;  %v17997_v11 = vpop.f32.mrb[106].mxu1  ;;  %v8840_v8 = vshll.u32 %v8753_v52, 16  ;;  %v9002_v19 = vshll.u32 %v23343_v10, 16 }
 0x902   : > { %v8847_v25 = vrot.slane %v8845_v0, 7  ;;  %v8474_v39 = vadd.f32 %v17997_v11, %v23231_v38  ;;  %v8380_v46 = vpop.f32.mrb[107].mxu1  ;;  %v9000_v9 = vshrl.u32 %v23343_v10, 16  ;;  %v9009_v3 = vrot.slane %v9007_v35, 1  ;;  %18101 = vmatpush3.bf16.msra.mxu1 %v20243_v45 }
 0x903   : > { %v8839_v31 = vrot.slane %v8837_v6, 7  ;;  %v8472_v4 = vadd.f32 %v23231_v38, %v8380_v46  ;;  %v8505_v44 = vmax.f32 %v8473_v61, 0.0  ;;  %v9004_v27 = vrot.slane %v9002_v19, 1  ;;  %18102 = vmatprep.subr.bf16.mxu1 %v20244_v23 }
 0x904   : > { %v8850_v7 = vor.u32 %v8848_v20, %v8847_v25  ;;  %v8506_v34 = vmax.f32 %v8474_v39, 0.0  ;;  %v8503_v24 = vmax.f32 %v8471_v40, 0.0  ;;  %v9011_v21 = vshrl.u32 %v23339_v62, 16 }
 0x905   : > { %v8842_v1 = vor.u32 %v8840_v8, %v8839_v31  ;;  %v8504_v15 = vmax.f32 %v8472_v4, 0.0  ;;  %18071 = vmatmul.mubr.bf16.gmra.mrb[124].mxu1 %v8998_v36  ;;  %v9005_v55 = vor.u32 %v9004_v27, %v9000_v9  ;;  %v23366_v29 = vsel %vm21342_vm8, %v8847_v25, 0 }
 0x906   : > { %v23362_v56 = vsel %vm3092_vm7, %v8839_v31, %v8850_v7  ;;  %v8756_v59 = vpack.c.bf16 %v8506_v34, %v8505_v44  ;;  %v9013_v14 = vor.u32 %v9011_v21, %v9009_v3  ;;  %18103 = vmatpush3.bf16.msra.mxu1 %v20244_v23 }
 0x907   : > { %v8755_v57 = vpack.c.bf16 %v8504_v15, %v8503_v24  ;;  %v18000_v26 = vpop.f32.mrb[108].mxu1  ;;  %v23370_v41 = vsel %vm3092_vm7, %v23327_v48, %v8842_v1  ;;  %v9010_v58 = vsel %vm1237_vm3, %v9005_v55, %v9009_v3  ;;  %v9023_v13 = vshll.u32 %v23362_v56, 16  ;;  %18104 = vmatprep.subr.bf16.mxu1 %v20245_v12 }
 0x908   : > { %v8860_v42 = vshrl.u32 %v8756_v59, 16  ;;  %v8477_v45 = vadd.f32 %v18000_v26, %v23231_v38  ;;  %v8393_v63 = vpop.f32.mrb[109].mxu1  ;;  %v8863_v16 = vshll.u32 %v8756_v59, 16  ;;  %18074 = vmatprep.mubr.bf16.mxu1 %v9010_v58  ;;  %v9015_v52 = vshll.u32 %v23370_v41, 16 }
 0x909   : > { %v8853_v28 = vshrl.u32 %v8755_v57, 16  ;;  %v8475_v48 = vadd.f32 %v23231_v38, %v8393_v63  ;;  %v18001_v60 = vpop.f32.mrb[110].mxu1  ;;  %v8856_v51 = vshll.u32 %v8755_v57, 16  ;;  %v9019_v6 = vshrl.u32 %v23370_v41, 16 }
 0x90a   : > { %v8862_v30 = vrot.slane %v8860_v42, 7  ;;  %v8509_v35 = vmax.f32 %v8477_v45, 0.0  ;;  %v8478_v0 = vadd.f32 %v18001_v60, %v23231_v38  ;;  %v8396_v61 = vpop.f32.mrb[111].mxu1  ;;  %v9017_v20 = vrot.slane %v9015_v52, 1  ;;  %18105 = vmatpush3.bf16.msra.mxu1 %v20245_v12 }
 0x90b   : > { %v8855_v33 = vrot.slane %v8853_v28, 7  ;;  %v8476_v23 = vadd.f32 %v23231_v38, %v8396_v61  ;;  %v8507_v11 = vmax.f32 %v8475_v48, 0.0  ;;  %v9025_v25 = vrot.slane %v9023_v13, 1  ;;  %18138 = vmatprep.subr.bf16.mxu1 %v23378_v49 }
 0x90c   : > { %v8865_v40 = vor.u32 %v8863_v16, %v8862_v30  ;;  %v8510_v36 = vmax.f32 %v8478_v0, 0.0  ;;  %v9018_v46 = vsel %vm1237_vm3, %v9013_v14, %v9017_v20  ;;  %v9021_v19 = vor.u32 %v9019_v6, %v9017_v20 }
 0x90d   : > { %v8858_v8 = vor.u32 %v8856_v51, %v8855_v33  ;;  %v8508_v39 = vmax.f32 %v8476_v23, 0.0  ;;  %18075 = vmatmul.mubr.bf16.gmra.mrb[128].mxu1 %v9018_v46  ;;  %v9031_v38 = vshll.u32 %v23366_v29, 16  ;;  %v9027_v44 = vshrl.u32 %v23362_v56, 16  ;;  %v20255_v46 = vld [vmem:[%s25622_s17 + $0x48] sm:$0xff]  }
 0x90e   : > { %v23388_v31 = vsel %vm3092_vm7, %v8855_v33, %v8865_v40  ;;  %v8758_v4 = vpack.c.bf16 %v8510_v36, %v8509_v35  ;;  %v9026_v7 = vsel %vm1237_vm3, %v9021_v19, %v9025_v25  ;;  %v20256_v19 = vld [vmem:[%s25622_s17 + $0x50] sm:$0xff]  }
 0x90f   : > { %v23393_v9 = vsel %vm21342_vm8, 0, %v8858_v8  ;;  %v8757_v3 = vpack.c.bf16 %v8508_v39, %v8507_v11  ;;  %18078 = vmatprep.mubr.bf16.mxu1 %v9026_v7  ;;  %v9029_v12 = vor.u32 %v9027_v44, %v9025_v25  ;;  %v9043_v24 = vshll.u32 %v23388_v31, 16  ;;  %v20254_v39 = vld [vmem:[%s25622_s17 + $0x40] sm:$0xff]   ;;  %v20249_v44 = vld [vmem:[%s25618_s13 + $0x98] sm:$0xff]  }
 0x910   : > { %v8876_v34 = vshrl.u32 %v8758_v4, 16  ;;  %v9038_v1 = vshll.u32 %v23393_v9, 16  ;;  %v8879_v21 = vshll.u32 %v8758_v4, 16  ;;  %v9033_v59 = vrot.slane %v9031_v38, 1  ;;  %18186 = vmatprep.subr.bf16.mxu0 %v20254_v39  ;;  %v20247_v4 = vld [vmem:[%s25618_s13 + $0x88] sm:$0xff]   ;;  %v20257_v38 = vld [vmem:[%s25622_s17 + $0x58] sm:$0xff]  }
 0x911   : > { %v8868_v27 = vshrl.u32 %v8757_v3, 16  ;;  %v8871_v57 = vshll.u32 %v8757_v3, 16  ;;  %v9036_v26 = vshrl.u32 %v23393_v9, 16  ;;  %v9045_v13 = vrot.slane %v9043_v24, 1  ;;  %18187 = vmatpush3.bf16.msra.mxu0 %v20254_v39  ;;  %v20248_v3 = vld [vmem:[%s25618_s13 + $0x90] sm:$0xff]   ;;  %v20258_v7 = vld [vmem:[%s25622_s17 + $0x60] sm:$0xff]  }
 0x912   : > { %v8878_v15 = vrot.slane %v8876_v34, 7  ;;  %v9040_v14 = vrot.slane %v9038_v1, 1  ;;  %v9034_v58 = vsel %vm1237_vm3, %v9029_v12, %v9033_v59  ;;  %v9047_v60 = vshrl.u32 %v23388_v31, 16  ;;  %18188 = vmatprep.subr.bf16.mxu0 %v20255_v46  ;;  %v20251_v34 = vld [vmem:[%s25618_s13 + $0xa8] sm:$0xff]   ;;  %v20253_v12 = vld [vmem:[%s25618_s13 + $0xb8] sm:$0xff]  }
 0x913   : > { %v8870_v55 = vrot.slane %v8868_v27, 7  ;;  %v20252_v27 = vld [vmem:[%s25618_s13 + $0xb0] sm:$0xff]   ;;  %v9529_v1 = vrot.slane %v23246_v50, 1  ;;  %v9530_v24 = vrot.slane %v23242_v22, 1  ;;  %v9534_v59 = vrot.slane %v23261_v43, 1 }
 0x914   : > { %v8881_v42 = vor.u32 %v8879_v21, %v8878_v15  ;;  %v9041_v63 = vor.u32 %v9040_v14, %v9036_v26  ;;  %v9049_v35 = vor.u32 %v9047_v60, %v9045_v13  ;;  %v23414_v33 = vsel %vm21342_vm8, %v8878_v15, 0 }
 0x915   : > { %v8873_v45 = vor.u32 %v8871_v57, %v8870_v55  ;;  %18079 = vmatmul.mubr.bf16.gmra.mrb[132].mxu1 %v9034_v58  ;;  %v9067_v11 = vshll.u32 %v23414_v33, 16  ;;  %18189 = vmatpush3.bf16.msra.mxu0 %v20255_v46  ;;  %v9531_v15 = vsel %vm1841_vm6, %v9529_v1, %v9530_v24  ;;  %v9532_v21 = vrot.slane %v23264_v2, 1 }
 0x916   : > { %v23402_v16 = vsel %vm3092_vm7, %v8870_v55, %v8881_v42  ;;  %v9046_v28 = vsel %vm1237_vm3, %v9041_v63, %v9045_v13  ;;  %18190 = vmatprep.subr.bf16.mxu0 %v20256_v19  ;;  %v9538_v26 = vrot.slane %v23290_v53, 1 }
 0x917   : > { %v23406_v48 = vsel %vm3092_vm7, %v8862_v30, %v8873_v45  ;;  %18082 = vmatprep.mubr.bf16.mxu1 %v9046_v28  ;;  %v9059_v51 = vshll.u32 %v23402_v16, 16  ;;  %v9063_v40 = vshrl.u32 %v23402_v16, 16  ;;  %v9069_v25 = vrot.slane %v9067_v11, 1 }
 0x918   : > { %v9051_v52 = vshll.u32 %v23406_v48, 16  ;;  %v9055_v61 = vshrl.u32 %v23406_v48, 16  ;;  %v9533_v55 = vsel %vm1841_vm6, %v9530_v24, %v9532_v21  ;;  %v9535_v57 = vsel %vm1841_vm6, %v9532_v21, %v9534_v59 }
 0x919   : > { %v9061_v30 = vrot.slane %v9059_v51, 1  ;;  %18191 = vmatpush3.bf16.msra.mxu0 %v20256_v19 }
 0x91a   : > { %v9053_v0 = vrot.slane %v9051_v52, 1  ;;  %18192 = vmatprep.subr.bf16.mxu0 %v20257_v38 }
 0x91b   : > { %v9065_v36 = vor.u32 %v9063_v40, %v9061_v30 }
 0x91c   : > { %v9054_v23 = vsel %vm1237_vm3, %v9049_v35, %v9053_v0  ;;  %v9057_v20 = vor.u32 %v9055_v61, %v9053_v0  ;;  %v23522_v61 = vld [vmem:[%s25622_s17] sm:$0xff]  }
 0x91d   : > { %18083 = vmatmul.mubr.bf16.gmra.mrb[136].mxu1 %v9054_v23  ;;  %v9070_v8 = vsel %vm1237_vm3, %v9065_v36, %v9069_v25  ;;  %18193 = vmatpush3.bf16.msra.mxu0 %v20257_v38 }
 0x91e   : > { %v9062_v6 = vsel %vm1237_vm3, %v9057_v20, %v9061_v30  ;;  %18194 = vmatprep.subr.bf16.mxu0 %v20258_v7  ;;  %v23533_v20 = vld [vmem:[%s25619_s14] ss:$0 sm:$0xff] }
 0x91f   : > { %18086 = vmatprep.mubr.bf16.mxu1 %v9062_v6 }
 0x921   : > { %18195 = vmatpush3.bf16.msra.mxu0 %v20258_v7 }
 0x925   : > { %18087 = vmatmul.mubr.bf16.gmra.mrb[140].mxu1 %v9070_v8 }
 0x926   : > { %18106 = vmatprep.mubr.bf16.mxu1 %v23246_v50  ;;  %v9539_v50 = vrot.slane %v23284_v17, 1 }
 0x928   : > { %v9540_v42 = vsel %vm1841_vm6, %v9538_v26, %v9539_v50 }
 0x92d   : > { %18107 = vmatmul.mubr.bf16.vlgmr.msra.gmra.mrb[112].mxu1 %v23242_v22  ;;  %v9536_v22 = vrot.slane %v23258_v32, 1  ;;  %v9548_v32 = vrot.slane %v23339_v62, 1 }
 0x92e   : > { %18139 = vmatpush3.bf16.msra.mxu1 %v23378_v49  ;;  %18110 = vmatprep.mubr.bf16.mxu1 %v23264_v2  ;;  %v20250_v49 = vld [vmem:[%s25618_s13 + $0xa0] sm:$0xff]   ;;  %v9543_v2 = vrot.slane %v23312_v47, 1 }
 0x92f   : > { %18140 = vmatprep.subr.bf16.mxu1 %v20247_v4  ;;  %v9537_v14 = vsel %vm1841_vm6, %v9534_v59, %v9536_v22 }
 0x932   : > { %18141 = vmatpush3.bf16.msra.mxu1 %v20247_v4 }
 0x933   : > { %18142 = vmatprep.subr.bf16.mxu1 %v20248_v3 }
 0x935   : > { %18111 = vmatmul.mubr.bf16.gmra.mrb[116].mxu1 %v23261_v43  ;;  %v9541_v43 = vrot.slane %v23317_v37, 1 }
 0x936   : > { %18114 = vmatprep.mubr.bf16.mxu1 %v23290_v53  ;;  %18143 = vmatpush3.bf16.msra.mxu1 %v20248_v3  ;;  %v9545_v53 = vrot.slane %v23308_v54, 1  ;;  %v9557_v54 = vrot.slane %v23388_v31, 1 }
 0x937   : > { %18144 = vmatprep.subr.bf16.mxu1 %v20249_v44  ;;  %v9542_v45 = vsel %vm1841_vm6, %v9539_v50, %v9541_v43  ;;  %v9544_v58 = vsel %vm1841_vm6, %v9541_v43, %v9543_v2 }
 0x938   : > { %v9546_v63 = vsel %vm1841_vm6, %v9543_v2, %v9545_v53 }
 0x93a   : > { %18145 = vmatpush3.bf16.msra.mxu1 %v20249_v44 }
 0x93b   : > { %18146 = vmatprep.subr.bf16.mxu1 %v20250_v49 }
 0x93d   : > { %18115 = vmatmul.mubr.bf16.gmra.mrb[120].mxu1 %v23284_v17  ;;  %v9547_v17 = vrot.slane %v23343_v10, 1 }
 0x93e   : > { %18118 = vmatprep.mubr.bf16.mxu1 %v23317_v37  ;;  %18147 = vmatpush3.bf16.msra.mxu1 %v20250_v49  ;;  %v9552_v37 = vrot.slane %v23362_v56, 1 }
 0x93f   : > { %18148 = vmatprep.subr.bf16.mxu1 %v20251_v34  ;;  %v9549_v13 = vsel %vm1841_vm6, %v9547_v17, %v9548_v32 }
 0x942   : > { %18149 = vmatpush3.bf16.msra.mxu1 %v20251_v34 }
 0x943   : > { %18150 = vmatprep.subr.bf16.mxu1 %v20252_v27 }
 0x945   : > { %18119 = vmatmul.mubr.bf16.gmra.mrb[124].mxu1 %v23312_v47  ;;  %v9550_v47 = vrot.slane %v23370_v41, 1 }
 0x946   : > { %18122 = vmatprep.mubr.bf16.mxu1 %v23343_v10  ;;  %18151 = vmatpush3.bf16.msra.mxu1 %v20252_v27  ;;  %v9554_v10 = vrot.slane %v23366_v29, 1 }
 0x947   : > { %18152 = vmatprep.subr.bf16.mxu1 %v20253_v12  ;;  %v9551_v28 = vsel %vm1841_vm6, %v9548_v32, %v9550_v47  ;;  %v9553_v60 = vsel %vm1841_vm6, %v9550_v47, %v9552_v37 }
 0x948   : > { %v9555_v52 = vsel %vm1841_vm6, %v9552_v37, %v9554_v10 }
 0x94a   : > { %18153 = vmatpush3.bf16.msra.mxu1 %v20253_v12 }
 0x94d   : > { %18123 = vmatmul.mubr.bf16.gmra.mrb[128].mxu1 %v23339_v62  ;;  %v9556_v62 = vrot.slane %v23393_v9, 1 }
 0x94e   : > { %18126 = vmatprep.mubr.bf16.mxu1 %v23370_v41  ;;  %v9561_v41 = vrot.slane %v23402_v16, 1 }
 0x94f   : > { %v9558_v51 = vsel %vm1841_vm6, %v9556_v62, %v9557_v54 }
 0x955   : > { %18127 = vmatmul.mubr.bf16.gmra.mrb[132].mxu1 %v23362_v56  ;;  %v9559_v56 = vrot.slane %v23406_v48, 1 }
 0x956   : > { %18130 = vmatprep.mubr.bf16.mxu1 %v23393_v9  ;;  %v20259_v9 = vld [vmem:[%s25622_s17 + $0x68] sm:$0xff]  }
 0x957   : > { %v9560_v35 = vsel %vm1841_vm6, %v9557_v54, %v9559_v56  ;;  %v9562_v0 = vsel %vm1841_vm6, %v9559_v56, %v9561_v41  ;;  %18196 = vmatprep.subr.bf16.mxu0 %v20259_v9 }
 0x958   : > { %18197 = vmatpush3.bf16.msra.mxu0 %v20259_v9 }
 0x95d   : > { %18131 = vmatmul.mubr.bf16.gmra.mrb[136].mxu1 %v23388_v31  ;;  %v9563_v31 = vrot.slane %v23414_v33, 1  ;;  %v23528_v33 = vld [vmem:[%s25621_s16] ss:$0 sm:$0xff] }
 0x95e   : > { %18134 = vmatprep.mubr.bf16.mxu1 %v23406_v48  ;;  %v20261_v48 = vld [vmem:[%s25622_s17 + $0x78] sm:$0xff]  }
 0x95f   : > { %v9564_v29 = vsel %vm1841_vm6, %v9561_v41, %v9563_v31 }
 0x965   : > { %18135 = vmatmul.mubr.bf16.gmra.mrb[140].mxu1 %v23402_v16  ;;  %v20260_v16 = vld [vmem:[%s25622_s17 + $0x70] sm:$0xff]  }
 0x966   : > { %18154 = vmatprep.mubr.bf16.mxu1 %v9531_v15  ;;  %18198 = vmatprep.subr.bf16.mxu0 %v20260_v16 }
 0x967   : > { %18199 = vmatpush3.bf16.msra.mxu0 %v20260_v16 }
 0x968   : > { %18200 = vmatprep.subr.bf16.mxu0 %v20261_v48 }
 0x96b   : > { %18201 = vmatpush3.bf16.msra.mxu0 %v20261_v48 }
 0x96c   : > { %18234 = vmatprep.subr.bf16.mxu0 %v23522_v61 }
 0x96d   : > { %18155 = vmatmul.mubr.bf16.vlgmr.msra.gmra.mrb[112].mxu1 %v9533_v55 }
 0x96e   : > { %18158 = vmatprep.mubr.bf16.mxu1 %v9535_v57 }
 0x975   : > { %18159 = vmatmul.mubr.bf16.gmra.mrb[116].mxu1 %v9537_v14 }
 0x976   : > { %18162 = vmatprep.mubr.bf16.mxu1 %v9540_v42 }
 0x97d   : > { %18163 = vmatmul.mubr.bf16.gmra.mrb[120].mxu1 %v9542_v45 }
 0x97e   : > { %18166 = vmatprep.mubr.bf16.mxu1 %v9544_v58 }
 0x985   : > { %18167 = vmatmul.mubr.bf16.gmra.mrb[124].mxu1 %v9546_v63 }
 0x986   : > { %18170 = vmatprep.mubr.bf16.mxu1 %v9549_v13 }
 0x98d   : > { %18171 = vmatmul.mubr.bf16.gmra.mrb[128].mxu1 %v9551_v28 }
 0x98e   : > { %18174 = vmatprep.mubr.bf16.mxu1 %v9553_v60 }
 0x995   : > { %18175 = vmatmul.mubr.bf16.gmra.mrb[132].mxu1 %v9555_v52 }
 0x996   : > { %18178 = vmatprep.mubr.bf16.mxu1 %v9558_v51 }
 0x99d   : > { %18179 = vmatmul.mubr.bf16.gmra.mrb[136].mxu1 %v9560_v35 }
 0x99e   : > { %18182 = vmatprep.mubr.bf16.mxu1 %v9562_v0 }
 0x9a5   : > { %18183 = vmatmul.mubr.bf16.gmra.mrb[140].mxu1 %v9564_v29 }
 0xa40   : > { %v18156_v23 = vpop.f32.mrb[112].mxu1 }
 0xa41   : > { %v18990_v30 = vadd.f32 %v18156_v23, %v23528_v33  ;;  %v9679_v6 = vpop.f32.mrb[113].mxu1 }
 0xa42   : > { %v18992_v40 = vadd.f32 %v23528_v33, %v9679_v6  ;;  %v18157_v11 = vpop.f32.mrb[114].mxu1 }
 0xa43   : > { %v23538_v36 = vadd.f32 %v18990_v30, %v23533_v20  ;;  %v18994_v25 = vadd.f32 %v18157_v11, %v23528_v33  ;;  %v9682_v8 = vpop.f32.mrb[115].mxu1 }
 0xa44   : > { %v23542_v39 = vadd.f32 %v18992_v40, %v23533_v20  ;;  %v18996_v46 = vadd.f32 %v23528_v33, %v9682_v8 }
 0xa45   : > { %25925 = vst [vmem:[#allocation20_spill] sm:$0xff] %v23538_v36  ;;  %v23546_v19 = vadd.f32 %v18994_v25, %v23533_v20  ;;  %v25721_v38 = vmax.f32 %v23538_v36, 0.0 }
 0xa46   : > { %25926 = vst [vmem:[#allocation18_spill] sm:$0xff] %v23542_v39  ;;  %v23549_v4 = vadd.f32 %v18996_v46, %v23533_v20  ;;  %v25720_v7 = vmax.f32 %v23542_v39, 0.0 }
 0xa47   : > { %25927 = vst [vmem:[#allocation23_spill] sm:$0xff] %v23546_v19  ;;  %v25719_v3 = vmax.f32 %v23546_v19, 0.0 }
 0xa48   : > { %25928 = vst [vmem:[#allocation21_spill] sm:$0xff] %v23549_v4  ;;  %v25718_v44 = vmax.f32 %v23549_v4, 0.0  ;;  %v18160_v49 = vpop.f32.mrb[116].mxu1 }
 0xa49   : > { %v9942_v34 = vpack.c.bf16 %v25719_v3, %v25721_v38  ;;  %v18998_v27 = vadd.f32 %v18160_v49, %v23528_v33  ;;  %v9695_v12 = vpop.f32.mrb[117].mxu1 }
 0xa4a   : > { %v9941_v1 = vpack.c.bf16 %v25718_v44, %v25720_v7  ;;  %v19000_v24 = vadd.f32 %v23528_v33, %v9695_v12  ;;  %v18161_v15 = vpop.f32.mrb[118].mxu1 }
 0xa4b   : > { %v9966_v21 = vshrl.u32 %v9942_v34, 16  ;;  %v9969_v59 = vshll.u32 %v9942_v34, 16  ;;  %v23566_v55 = vadd.f32 %v18998_v27, %v23533_v20  ;;  %v19002_v57 = vadd.f32 %v18161_v15, %v23528_v33  ;;  %v9698_v26 = vpop.f32.mrb[119].mxu1 }
 0xa4c   : > { %v9958_v50 = vshrl.u32 %v9941_v1, 16  ;;  %v9961_v22 = vshll.u32 %v9941_v1, 16  ;;  %v23570_v14 = vadd.f32 %v19000_v24, %v23533_v20  ;;  %v19004_v42 = vadd.f32 %v23528_v33, %v9698_v26 }
 0xa4d   : > { %25929 = vst [vmem:[#allocation24_spill] sm:$0xff] %v23566_v55  ;;  %v9968_v43 = vrot.slane %v9966_v21, 6  ;;  %v9971_v2 = vrot.slane %v9969_v59, 7  ;;  %v23574_v45 = vadd.f32 %v19002_v57, %v23533_v20  ;;  %v25715_v63 = vmax.f32 %v23566_v55, 0.0 }
 0xa4e   : > { %25930 = vst [vmem:[#allocation27_spill] sm:$0xff] %v23570_v14  ;;  %v9960_v58 = vrot.slane %v9958_v50, 6  ;;  %v9963_v17 = vrot.slane %v9961_v22, 7  ;;  %v23577_v32 = vadd.f32 %v19004_v42, %v23533_v20  ;;  %v25714_v37 = vmax.f32 %v23570_v14, 0.0 }
 0xa4f   : > { %25931 = vst [vmem:[#allocation28_spill] sm:$0xff] %v23574_v45  ;;  %v9972_v53 = vor.u32 %v9971_v2, %v9968_v43  ;;  %v25713_v13 = vmax.f32 %v23574_v45, 0.0 }
 0xa50   : > { %25932 = vst [vmem:[#allocation30_spill] sm:$0xff] %v23577_v32  ;;  %v9964_v47 = vor.u32 %v9963_v17, %v9960_v58  ;;  %v25712_v28 = vmax.f32 %v23577_v32, 0.0  ;;  %v18164_v60 = vpop.f32.mrb[120].mxu1 }
 0xa51   : > { %v9944_v62 = vpack.c.bf16 %v25713_v13, %v25715_v63  ;;  %v19006_v54 = vadd.f32 %v18164_v60, %v23528_v33  ;;  %v9711_v10 = vpop.f32.mrb[121].mxu1 }
 0xa52   : > { %v23589_v52 = vsel %vm4280_vm9, %v9964_v47, %v9972_v53  ;;  %v9943_v51 = vpack.c.bf16 %v25712_v28, %v25714_v37  ;;  %v18165_v56 = vpop.f32.mrb[122].mxu1  ;;  %v19008_v31 = vadd.f32 %v23528_v33, %v9711_v10  ;;  %v23603_v6 = vsel %vm21713_vm11, 0, %v9964_v47 }
 0xa53   : > { %v9984_v41 = vshrl.u32 %v9944_v62, 16  ;;  %v9987_v35 = vshll.u32 %v9944_v62, 16  ;;  %v23596_v0 = vadd.f32 %v19006_v54, %v23533_v20  ;;  %v9714_v29 = vpop.f32.mrb[123].mxu1  ;;  %v19010_v48 = vadd.f32 %v18165_v56, %v23528_v33 }
 0xa54   : > { %v9975_v9 = vshrl.u32 %v9943_v51, 16  ;;  %v9978_v16 = vshll.u32 %v9943_v51, 16  ;;  %v19012_v23 = vadd.f32 %v23528_v33, %v9714_v29  ;;  %v23606_v25 = vadd.f32 %v19008_v31, %v23533_v20 }
 0xa55   : > { %25933 = vst [vmem:[#allocation29_spill] sm:$0xff] %v23596_v0  ;;  %v9986_v40 = vrot.slane %v9984_v41, 6  ;;  %v9989_v11 = vrot.slane %v9987_v35, 7  ;;  %v23609_v49 = vadd.f32 %v19010_v48, %v23533_v20  ;;  %v25711_v12 = vmax.f32 %v23596_v0, 0.0 }
 0xa56   : > { %25935 = vst [vmem:[#allocation34_spill] sm:$0xff] %v23606_v25  ;;  %v9977_v8 = vrot.slane %v9975_v9, 6  ;;  %v9980_v46 = vrot.slane %v9978_v16, 7  ;;  %v23612_v34 = vadd.f32 %v19012_v23, %v23533_v20  ;;  %v23620_v59 = vshll.u32 %v23603_v6, 16 }
 0xa57   : > { %25936 = vst [vmem:[#allocation31_spill] sm:$0xff] %v23609_v49  ;;  %v23614_v27 = vor.u32 %v9989_v11, %v9986_v40  ;;  %v25709_v24 = vmax.f32 %v23609_v49, 0.0  ;;  %v25710_v57 = vmax.f32 %v23606_v25, 0.0  ;;  %v23646_v47 = vshll.u32 %v23589_v52, 16 }
 0xa58   : > { %25937 = vst [vmem:[#allocation37_spill] sm:$0xff] %v23612_v34  ;;  %v9981_v1 = vor.u32 %v9980_v46, %v9977_v8  ;;  %v25708_v15 = vmax.f32 %v23612_v34, 0.0  ;;  %v18168_v21 = vpop.f32.mrb[124].mxu1  ;;  %v10146_v51 = vrot.slane %v23620_v59, 1 }
 0xa59   : > { %v19014_v26 = vadd.f32 %v18168_v21, %v23528_v33  ;;  %v9727_v50 = vpop.f32.mrb[125].mxu1  ;;  %v9946_v43 = vpack.c.bf16 %v25709_v24, %v25711_v12  ;;  %v10151_v46 = vrot.slane %v23646_v47, 1 }
 0xa5a   : > { %v23625_v22 = vsel %vm4280_vm9, %v9972_v53, %v9981_v1  ;;  %v23629_v42 = vsel %vm4280_vm9, %v9981_v1, %v23614_v27  ;;  %v18169_v2 = vpop.f32.mrb[126].mxu1  ;;  %v9945_v58 = vpack.c.bf16 %v25708_v15, %v25710_v57  ;;  %v23643_v53 = vshrl.u32 %v23603_v6, 16 }
 0xa5b   : > { %v23640_v17 = vadd.f32 %v19014_v26, %v23533_v20  ;;  %v9730_v60 = vpop.f32.mrb[127].mxu1  ;;  %v10001_v62 = vshrl.u32 %v9946_v43, 16  ;;  %v10004_v54 = vshll.u32 %v9946_v43, 16  ;;  %v19018_v10 = vadd.f32 %v18169_v2, %v23528_v33 }
 0xa5c   : > { %v9993_v56 = vshrl.u32 %v9945_v58, 16  ;;  %v9996_v41 = vshll.u32 %v9945_v58, 16  ;;  %v19016_v35 = vadd.f32 %v23528_v33, %v9727_v50  ;;  %v10147_v16 = vor.u32 %v10146_v51, %v23643_v53 }
 0xa5d   : > { %25938 = vst [vmem:[#allocation35_spill] sm:$0xff] %v23640_v17  ;;  %v10003_v31 = vrot.slane %v10001_v62, 6  ;;  %v10006_v29 = vrot.slane %v10004_v54, 7  ;;  %v23652_v9 = vadd.f32 %v19018_v10, %v23533_v20  ;;  %v25705_v11 = vmax.f32 %v23640_v17, 0.0 }
 0xa5e   : > { %v9995_v48 = vrot.slane %v9993_v56, 6  ;;  %v9998_v23 = vrot.slane %v9996_v41, 7  ;;  %v23661_v26 = vadd.f32 %v19016_v35, %v23533_v20  ;;  %v19020_v50 = vadd.f32 %v23528_v33, %v9730_v60 }
 0xa5f   : > { %25939 = vst [vmem:[#allocation38_spill] sm:$0xff] %v23652_v9  ;;  %v23655_v40 = vor.u32 %v10006_v29, %v10003_v31  ;;  %v25704_v8 = vmax.f32 %v23652_v9, 0.0  ;;  %v10152_v62 = vsel %vm1237_vm3, %v10147_v16, %v10151_v46  ;;  %v23675_v51 = vshrl.u32 %v23589_v52, 16 }
 0xa60   : > { %v18172_v1 = vpop.f32.mrb[128].mxu1  ;;  %v9999_v21 = vor.u32 %v9998_v23, %v9995_v48  ;;  %25940 = vst [vmem:[#allocation42_spill] sm:$0xff] %v23661_v26  ;;  %18202 = vmatprep.mubr.bf16.mxu0 %v10152_v62  ;;  %v23678_v60 = vadd.f32 %v19020_v50, %v23533_v20  ;;  %v23684_v29 = vshll.u32 %v23625_v22, 16  ;;  %v25707_v16 = vmax.f32 %v23661_v26, 0.0 }
 0xa61   : > { %v19022_v43 = vadd.f32 %v18172_v1, %v23528_v33  ;;  %v9743_v2 = vpop.f32.mrb[129].mxu1  ;;  %v9948_v58 = vpack.c.bf16 %v25704_v8, %v25705_v11  ;;  %v10155_v1 = vor.u32 %v23675_v51, %v10151_v46  ;;  %v23705_v46 = vsel %vm21713_vm11, %v23614_v27, 0 }
 0xa62   : > { %v18173_v54 = vpop.f32.mrb[130].mxu1  ;;  %v23672_v10 = vsel %vm4280_vm9, %v9999_v21, %v23655_v40  ;;  %25941 = vst [vmem:[#allocation43_spill] sm:$0xff] %v23678_v60  ;;  %v25706_v48 = vmax.f32 %v23678_v60, 0.0  ;;  %v10159_v50 = vrot.slane %v23684_v29, 1  ;;  %v19024_v62 = vadd.f32 %v23528_v33, %v9743_v2 }
 0xa63   : > { %v9746_v56 = vpop.f32.mrb[131].mxu1  ;;  %v10019_v41 = vshrl.u32 %v9948_v58, 16  ;;  %v10022_v35 = vshll.u32 %v9948_v58, 16  ;;  %v23681_v31 = vadd.f32 %v19022_v43, %v23533_v20  ;;  %v19026_v23 = vadd.f32 %v18173_v54, %v23528_v33  ;;  %v20263_v54 = vld [vmem:[%s25622_s17 + $0x8] sm:$0xff]  }
 0xa64   : > { %v9947_v43 = vpack.c.bf16 %v25706_v48, %v25707_v16  ;;  %v23714_v24 = vshll.u32 %v23629_v42, 16  ;;  %v23718_v27 = vsel %vm21713_vm11, 0, %v9999_v21 }
 0xa65   : > { %25942 = vst [vmem:[#allocation44_spill] sm:$0xff] %v23681_v31  ;;  %v10021_v8 = vrot.slane %v10019_v41, 6  ;;  %v10024_v58 = vrot.slane %v10022_v35, 7  ;;  %v23697_v11 = vadd.f32 %v19026_v23, %v23533_v20  ;;  %v25717_v2 = vmax.f32 %v23681_v31, 0.0 }
 0xa66   : > { %v10160_v41 = vsel %vm1237_vm3, %v10155_v1, %v10159_v50  ;;  %v23710_v35 = vshrl.u32 %v23625_v22, 16  ;;  %v10010_v16 = vshrl.u32 %v9947_v43, 16  ;;  %v10013_v23 = vshll.u32 %v9947_v43, 16  ;;  %25944 = vst [vmem:[#allocation46_spill] sm:$0xff] %v23714_v24 }
 0xa67   : > { %25943 = vst [vmem:[#allocation45_spill] sm:$0xff] %v23697_v11  ;;  %18203 = vmatmul.mubr.bf16.vlgmr.msra.gmra.mrb[64].mxu0 %v10160_v41  ;;  %v25716_v15 = vmax.f32 %v23697_v11, 0.0  ;;  %v23722_v1 = vadd.f32 %v19024_v62, %v23533_v20  ;;  %v19028_v43 = vadd.f32 %v23528_v33, %v9746_v56  ;;  %v23726_v28 = vor.u32 %v10024_v58, %v10021_v8 }
 0xa68   : > { %v18176_v48 = vpop.f32.mrb[132].mxu1  ;;  %18235 = vmatpush3.bf16.msra.mxu0 %v23522_v61  ;;  %v10163_v12 = vor.u32 %v23710_v35, %v10159_v50  ;;  %v10012_v13 = vrot.slane %v10010_v16, 6  ;;  %v10015_v37 = vrot.slane %v10013_v23, 7  ;;  %v20264_v61 = vld [vmem:[%s25622_s17 + $0x10] sm:$0xff]   ;;  %v10167_v50 = vrot.slane %v23714_v24, 1 }
 0xa69   : > { %v9759_v57 = vpop.f32.mrb[133].mxu1  ;;  %25945 = vst [vmem:[#allocation11_spill] sm:$0xff] %v23722_v1  ;;  %v9950_v21 = vpack.c.bf16 %v25716_v15, %v25717_v2  ;;  %18236 = vmatprep.subr.bf16.mxu0 %v20263_v54  ;;  %v23737_v56 = vadd.f32 %v19028_v43, %v23533_v20  ;;  %v19030_v8 = vadd.f32 %v18176_v48, %v23528_v33  ;;  %v23741_v16 = vshrl.u32 %v23629_v42, 16 }
 0xa6a   : > { %v18177_v41 = vpop.f32.mrb[134].mxu1  ;;  %v10016_v62 = vor.u32 %v10015_v37, %v10012_v13  ;;  %v23744_v15 = vshll.u32 %v23705_v46, 16  ;;  %v25726_v2 = vmax.f32 %v23722_v1, 0.0  ;;  %v10168_v44 = vsel %vm1237_vm3, %v10163_v12, %v10167_v50  ;;  %v20265_v12 = vld [vmem:[%s25622_s17 + $0x18] sm:$0xff]  }
 0xa6b   : > { %v9762_v63 = vpop.f32.mrb[135].mxu1  ;;  %25946 = vst [vmem:[#allocation10_spill] sm:$0xff] %v23737_v56  ;;  %25947 = vst [vmem:[#allocation14_spill] sm:$0xff] %v23741_v16  ;;  %v10036_v58 = vshrl.u32 %v9950_v21, 16  ;;  %v10039_v23 = vshll.u32 %v9950_v21, 16  ;;  %v25725_v3 = vmax.f32 %v23737_v56, 0.0  ;;  %v10171_v43 = vor.u32 %v23741_v16, %v10167_v50  ;;  %18206 = vmatprep.mubr.bf16.mxu0 %v10168_v44 }
 0xa6c   : > { %25948 = vst [vmem:[#allocation13_spill] sm:$0xff] %v23744_v15  ;;  %18237 = vmatpush3.bf16.msra.mxu0 %v20263_v54  ;;  %v23752_v48 = vsel %vm4280_vm9, %v23655_v40, %v10016_v62  ;;  %v23756_v13 = vsel %vm4280_vm9, %v10016_v62, %v23726_v28  ;;  %v10175_v40 = vrot.slane %v23744_v15, 1  ;;  %v23769_v62 = vadd.f32 %v19030_v8, %v23533_v20 }
 0xa6d   : > { %v10038_v37 = vrot.slane %v10036_v58, 6  ;;  %v10041_v21 = vrot.slane %v10039_v23, 7  ;;  %18238 = vmatprep.subr.bf16.mxu0 %v20264_v61  ;;  %v9949_v54 = vpack.c.bf16 %v25725_v3, %v25726_v2  ;;  %v19032_v44 = vadd.f32 %v23528_v33, %v9759_v57 }
 0xa6e   : > { %25949 = vst [vmem:[#allocation17_spill] sm:$0xff] %v23769_v62  ;;  %v19034_v58 = vadd.f32 %v18177_v41, %v23528_v33  ;;  %v10176_v1 = vsel %vm1237_vm3, %v10171_v43, %v10175_v40  ;;  %v23775_v56 = vshll.u32 %v23718_v27, 16  ;;  %v23784_v57 = vshll.u32 %v23672_v10, 16  ;;  %v20266_v43 = vld [vmem:[%s25622_s17 + $0x20] sm:$0xff]  }
 0xa6f   : > { %v23766_v7 = vor.u32 %v10041_v21, %v10038_v37  ;;  %v10028_v38 = vshrl.u32 %v9949_v54, 16  ;;  %v10031_v11 = vshll.u32 %v9949_v54, 16  ;;  %18207 = vmatmul.mubr.bf16.gmra.mrb[68].mxu0 %v10176_v1  ;;  %v23778_v37 = vadd.f32 %v19032_v44, %v23533_v20 }
 0xa70   : > { %v18180_v50 = vpop.f32.mrb[136].mxu1  ;;  %25950 = vst [vmem:[#allocation16_spill] sm:$0xff] %v23775_v56  ;;  %18239 = vmatpush3.bf16.msra.mxu0 %v20264_v61  ;;  %v23781_v8 = vadd.f32 %v19034_v58, %v23533_v20  ;;  %25953 = vst [vmem:[#allocation26_spill] sm:$0xff] %v23784_v57  ;;  %v19036_v41 = vadd.f32 %v23528_v33, %v9762_v63  ;;  %v23791_v1 = vshrl.u32 %v23718_v27, 16  ;;  %v10182_v40 = vrot.slane %v23775_v56, 1 }
 0xa71   : > { %v9775_v23 = vpop.f32.mrb[137].mxu1  ;;  %25951 = vst [vmem:[#allocation22_spill] sm:$0xff] %v23778_v37  ;;  %18240 = vmatprep.subr.bf16.mxu0 %v20265_v12  ;;  %v10030_v61 = vrot.slane %v10028_v38, 6  ;;  %v10033_v54 = vrot.slane %v10031_v11, 7  ;;  %v25732_v44 = vmax.f32 %v23769_v62, 0.0  ;;  %v10187_v60 = vrot.slane %v23784_v57, 1 }
 0xa72   : > { %v18181_v3 = vpop.f32.mrb[138].mxu1  ;;  %25952 = vst [vmem:[#allocation19_spill] sm:$0xff] %v23781_v8  ;;  %25954 = vst [vmem:[#allocation25_spill] sm:$0xff] %v23791_v1  ;;  %v25731_v58 = vmax.f32 %v23781_v8, 0.0  ;;  %v23797_v2 = vadd.f32 %v19036_v41, %v23533_v20  ;;  %v10183_v31 = vor.u32 %v10182_v40, %v23791_v1  ;;  %v19038_v38 = vadd.f32 %v18180_v50, %v23528_v33  ;;  %v20267_v41 = vld [vmem:[%s25622_s17 + $0x28] sm:$0xff]  }
 0xa73   : > { %v9778_v21 = vpop.f32.mrb[139].mxu1  ;;  %v23799_v63 = vor.u32 %v10033_v54, %v10030_v61  ;;  %v25741_v11 = vmax.f32 %v23778_v37, 0.0  ;;  %v23827_v62 = vshrl.u32 %v23672_v10, 16  ;;  %v23830_v17 = vshll.u32 %v23752_v48, 16 }
 0xa74   : > { %25955 = vst [vmem:[#allocation33_spill] sm:$0xff] %v23797_v2  ;;  %18241 = vmatpush3.bf16.msra.mxu0 %v20265_v12  ;;  %v9952_v9 = vpack.c.bf16 %v25731_v58, %v25732_v44  ;;  %v25740_v26 = vmax.f32 %v23797_v2, 0.0  ;;  %v10188_v12 = vsel %vm1237_vm3, %v10183_v31, %v10187_v60  ;;  %v23824_v8 = vadd.f32 %v19038_v38, %v23533_v20  ;;  %v20268_v38 = vld [vmem:[%s25622_s17 + $0x30] sm:$0xff]  }
 0xa75   : > { %18242 = vmatprep.subr.bf16.mxu0 %v20266_v43  ;;  %v23816_v61 = vsel %vm4280_vm9, %v23799_v63, %v23766_v7  ;;  %18210 = vmatprep.mubr.bf16.mxu0 %v10188_v12  ;;  %25957 = vst [vmem:[#allocation39_spill] sm:$0xff] %v23827_v62  ;;  %25958 = vst [vmem:[#allocation36_spill] sm:$0xff] %v23830_v17  ;;  %v19040_v31 = vadd.f32 %v23528_v33, %v9775_v23  ;;  %v23842_v23 = vshrl.u32 %v23752_v48, 16 }
 0xa76   : > { %v10054_v54 = vshrl.u32 %v9952_v9, 16  ;;  %v10057_v40 = vshll.u32 %v9952_v9, 16  ;;  %v9951_v58 = vpack.c.bf16 %v25740_v26, %v25741_v11  ;;  %25956 = vst [vmem:[#allocation32_spill] sm:$0xff] %v23824_v8  ;;  %v10191_v26 = vor.u32 %v23827_v62, %v10187_v60 }
 0xa77   : > { %v10195_v11 = vrot.slane %v23830_v17, 1  ;;  %v19042_v25 = vadd.f32 %v18181_v3, %v23528_v33  ;;  %25959 = vst [vmem:[#allocation41_spill] sm:$0xff] %v23842_v23  ;;  %v23851_v32 = vadd.f32 %v19040_v31, %v23533_v20  ;;  %v25749_v31 = vmax.f32 %v23824_v8, 0.0 }
 0xa78   : > { %v18184_v50 = vpop.f32.mrb[140].mxu1  ;;  %18243 = vmatpush3.bf16.msra.mxu0 %v20266_v43  ;;  %v10056_v9 = vrot.slane %v10054_v54, 6  ;;  %v10059_v12 = vrot.slane %v10057_v40, 7  ;;  %v10045_v37 = vshrl.u32 %v9951_v58, 16  ;;  %v10048_v49 = vshll.u32 %v9951_v58, 16 }
 0xa79   : > { %v9791_v44 = vpop.f32.mrb[141].mxu1  ;;  %18244 = vmatprep.subr.bf16.mxu0 %v20267_v41  ;;  %v23847_v40 = vshll.u32 %v23756_v13, 16  ;;  %v10196_v0 = vsel %vm1237_vm3, %v10191_v26, %v10195_v11  ;;  %25961 = vst [vmem:[#allocation12_spill] sm:$0xff] %v23851_v32  ;;  %v23854_v60 = vadd.f32 %v19042_v25, %v23533_v20  ;;  %v10199_v3 = vor.u32 %v23842_v23, %v10195_v11 }
 0xa7a   : > { %v18185_v34 = vpop.f32.mrb[142].mxu1  ;;  %v23844_v43 = vor.u32 %v10059_v12, %v10056_v9  ;;  %v10047_v54 = vrot.slane %v10045_v37, 6  ;;  %v10050_v58 = vrot.slane %v10048_v49, 7  ;;  %v23860_v9 = vsel %vm21713_vm11, %v23726_v28, 0  ;;  %18211 = vmatmul.mubr.bf16.gmra.mrb[72].mxu0 %v10196_v0  ;;  %v20269_v28 = vld [vmem:[%s25622_s17 + $0x38] sm:$0xff]  }
 0xa7b   : > { %v23833_v2 = vpop.f32.mrb[143].mxu1  ;;  %25960 = vst [vmem:[#allocation40_spill] sm:$0xff] %v23847_v40  ;;  %25962 = vst [vmem:[#allocation47_spill] sm:$0xff] %v23854_v60  ;;  %v10203_v37 = vrot.slane %v23847_v40, 1  ;;  %v19044_v26 = vadd.f32 %v23528_v33, %v9778_v21  ;;  %v25748_v25 = vmax.f32 %v23854_v60, 0.0  ;;  %v19046_v12 = vadd.f32 %v18184_v50, %v23528_v33 }
 0xa7c   : > { %18245 = vmatpush3.bf16.msra.mxu0 %v20267_v41  ;;  %v10051_v49 = vor.u32 %v10050_v58, %v10047_v54  ;;  %v23868_v11 = vshrl.u32 %v23756_v13, 16  ;;  %v19048_v8 = vadd.f32 %v23528_v33, %v9791_v44 }
 0xa7d   : > { %18246 = vmatprep.subr.bf16.mxu0 %v20268_v38  ;;  %v10204_v41 = vsel %vm1237_vm3, %v10199_v3, %v10203_v37  ;;  %v23883_v54 = vadd.f32 %v19044_v26, %v23533_v20  ;;  %v9954_v58 = vpack.c.bf16 %v25748_v25, %v25749_v31  ;;  %v23896_v3 = vshll.u32 %v23860_v9, 16 }
 0xa7e   : > { %25963 = vst [vmem:[#allocation48_spill] sm:$0xff] %v23868_v11  ;;  %v23875_v0 = vsel %vm4280_vm9, %v23766_v7, %v10051_v49  ;;  %v23879_v21 = vsel %vm4280_vm9, %v10051_v49, %v23844_v43  ;;  %18214 = vmatprep.mubr.bf16.mxu0 %v10204_v41  ;;  %v23891_v7 = vadd.f32 %v19046_v12, %v23533_v20  ;;  %v23903_v12 = vld [vmem:[%s25622_s17 + $0x80] sm:$0xff]   ;;  %v25967_v41 = vmax.f32 %v23851_v32, 0.0 }
 0xa7f   : > { %25964 = vst [vmem:[#allocation49_spill] sm:$0xff] %v23883_v54  ;;  %v25753_v45 = vmax.f32 %v23883_v54, 0.0  ;;  %v10207_v49 = vor.u32 %v23868_v11, %v10203_v37  ;;  %25966 = vst [vmem:[#allocation51_spill] sm:$0xff] %v23896_v3  ;;  %v19050_v26 = vadd.f32 %v18185_v34, %v23528_v33  ;;  %v10071_v50 = vshrl.u32 %v9954_v58, 16 }
 0xa80   : > { %25965 = vst [vmem:[#allocation50_spill] sm:$0xff] %v23891_v7  ;;  %18247 = vmatpush3.bf16.msra.mxu0 %v20268_v38  ;;  %v10074_v14 = vshll.u32 %v9954_v58, 16  ;;  %v23908_v37 = vsel %vm21713_vm11, 0, %v23799_v63  ;;  %v10211_v38 = vrot.slane %v23896_v3, 1  ;;  %v25755_v55 = vmax.f32 %v23891_v7, 0.0 }
 0xa81   : > { %18248 = vmatprep.subr.bf16.mxu0 %v20269_v28  ;;  %v9953_v34 = vpack.c.bf16 %v25753_v45, %v25967_v41  ;;  %v10073_v58 = vrot.slane %v10071_v50, 6  ;;  %v23916_v25 = vadd.f32 %v19050_v26, %v23533_v20  ;;  %v23921_v63 = vadd.f32 %v19048_v8, %v23533_v20 }
 0xa82   : > { %v10076_v44 = vrot.slane %v10074_v14, 7  ;;  %v10212_v4 = vsel %vm1237_vm3, %v10207_v49, %v10211_v38  ;;  %v23925_v45 = vshll.u32 %v23908_v37, 16  ;;  %v23928_v14 = vshll.u32 %v23816_v61, 16 }
 0xa83   : > { %25968 = vst [vmem:[#allocation52_spill] sm:$0xff] %v23916_v25  ;;  %v10063_v31 = vshrl.u32 %v9953_v34, 16  ;;  %v10066_v60 = vshll.u32 %v9953_v34, 16  ;;  %18215 = vmatmul.mubr.bf16.gmra.mrb[76].mxu0 %v10212_v4  ;;  %25969 = vst [vmem:[#allocation53_spill] sm:$0xff] %v23921_v63  ;;  %v25754_v41 = vmax.f32 %v23916_v25, 0.0  ;;  %v23938_v8 = vshrl.u32 %v23908_v37, 16 }
 0xa84   : > { %18249 = vmatpush3.bf16.msra.mxu0 %v20269_v28  ;;  %v10077_v50 = vor.u32 %v10076_v44, %v10073_v58  ;;  %v19052_v28 = vadd.f32 %v23528_v33, %v23833_v2  ;;  %v10218_v49 = vrot.slane %v23925_v45, 1  ;;  %v10223_v38 = vrot.slane %v23928_v14, 1 }
 0xa85   : > { %18282 = vmatprep.subr.bf16.mxu0 %v23903_v12  ;;  %v10065_v26 = vrot.slane %v10063_v31, 6  ;;  %v10068_v34 = vrot.slane %v10066_v60, 7  ;;  %v9956_v4 = vpack.c.bf16 %v25754_v41, %v25755_v55  ;;  %v23945_v31 = vsel %vm21713_vm11, %v23844_v43, 0 }
 0xa86   : > { %v23948_v33 = vadd.f32 %v19052_v28, %v23533_v20  ;;  %v23951_v2 = vshll.u32 %v23875_v0, 16  ;;  %v10219_v41 = vor.u32 %v10218_v49, %v23938_v8  ;;  %v23955_v55 = vshrl.u32 %v23816_v61, 16 }
 0xa87   : > { %v10069_v60 = vor.u32 %v10068_v34, %v10065_v26  ;;  %v10089_v58 = vshrl.u32 %v9956_v4, 16  ;;  %v10092_v44 = vshll.u32 %v9956_v4, 16  ;;  %v25764_v43 = vmax.f32 %v23921_v63, 0.0 }
 0xa88   : > { %25970 = vst [vmem:[#allocation54_spill] sm:$0xff] %v23948_v33  ;;  %v25763_v26 = vmax.f32 %v23948_v33, 0.0  ;;  %v23963_v20 = vshrl.u32 %v23875_v0, 16  ;;  %v10224_v28 = vsel %vm1237_vm3, %v10219_v41, %v10223_v38  ;;  %v10227_v4 = vor.u32 %v23955_v55, %v10223_v38 }
 0xa89   : > { %v23958_v25 = vsel %vm4280_vm9, %v10069_v60, %v10077_v50  ;;  %v23967_v34 = vsel %vm21713_vm11, 0, %v10069_v60  ;;  %v10231_v49 = vrot.slane %v23951_v2, 1  ;;  %v10091_v7 = vrot.slane %v10089_v58, 6  ;;  %18218 = vmatprep.mubr.bf16.mxu0 %v10224_v28 }
 0xa8a   : > { %v10094_v54 = vrot.slane %v10092_v44, 7  ;;  %v9955_v32 = vpack.c.bf16 %v25763_v26, %v25764_v43  ;;  %v23977_v19 = vshll.u32 %v23879_v21, 16  ;;  %v23983_v58 = vshrl.u32 %v23879_v21, 16 }
 0xa8b   : > { %v10232_v60 = vsel %vm1237_vm3, %v10227_v4, %v10231_v49  ;;  %v10235_v39 = vor.u32 %v23963_v20, %v10231_v49  ;;  %v23986_v44 = vshll.u32 %v23945_v31, 16  ;;  %v23989_v28 = vshll.u32 %v23967_v34, 16 }
 0xa8c   : > { %v10080_v41 = vshrl.u32 %v9955_v32, 16  ;;  %v10083_v36 = vshll.u32 %v9955_v32, 16  ;;  %18219 = vmatmul.mubr.bf16.gmra.mrb[80].mxu0 %v10232_v60  ;;  %v10239_v38 = vrot.slane %v23977_v19, 1  ;;  %v23992_v26 = vshll.u32 %v23958_v25, 16 }
 0xa8d   : > { %v10095_v4 = vor.u32 %v10094_v54, %v10091_v7  ;;  %v23997_v33 = vshrl.u32 %v23967_v34, 16  ;;  %v10254_v63 = vrot.slane %v23989_v28, 1  ;;  %v10247_v18 = vrot.slane %v23986_v44, 1 }
 0xa8e   : > { %v10082_v43 = vrot.slane %v10080_v41, 6  ;;  %v10085_v49 = vrot.slane %v10083_v36, 7  ;;  %v10240_v32 = vsel %vm1237_vm3, %v10235_v39, %v10239_v38  ;;  %v10243_v60 = vor.u32 %v23983_v58, %v10239_v38 }
 0xa8f   : > { %18222 = vmatprep.mubr.bf16.mxu0 %v10240_v32  ;;  %v10255_v3 = vor.u32 %v10254_v63, %v23997_v33  ;;  %v10259_v40 = vrot.slane %v23992_v26, 1  ;;  %v24018_v63 = vshrl.u32 %v23958_v25, 16  ;;  %v24030_v32 = vsel %vm21713_vm11, %v10095_v4, 0 }
 0xa90   : > { %v10086_v5 = vor.u32 %v10085_v49, %v10082_v43  ;;  %v10248_v39 = vsel %vm1237_vm3, %v10243_v60, %v10247_v18  ;;  %v11094_v30 = vrot.slane %v23938_v8, 1  ;;  %v11105_v23 = vrot.slane %v23983_v58, 1 }
 0xa91   : > { %v10260_v7 = vsel %vm1237_vm3, %v10255_v3, %v10259_v40  ;;  %v10263_v18 = vor.u32 %v24018_v63, %v10259_v40  ;;  %v25788_v57 = vshrl.u32 %v23945_v31, 16  ;;  %v11112_v62 = vrot.slane %v23986_v44, 2 }
 0xa92   : > { %v24004_v54 = vsel %vm4280_vm9, %v10077_v50, %v10086_v5  ;;  %v24007_v36 = vsel %vm4280_vm9, %v10086_v5, %v10095_v4  ;;  %v11095_v4 = vrot.slane %v23925_v45, 2  ;;  %v11119_v1 = vrot.slane %v23992_v26, 2 }
 0xa93   : > { %v24012_v41 = vshll.u32 %v24004_v54, 16  ;;  %v24015_v43 = vshll.u32 %v24007_v36, 16  ;;  %v24022_v5 = vshrl.u32 %v24004_v54, 16 }
 0xa94   : > { %18223 = vmatmul.mubr.bf16.gmra.mrb[84].mxu0 %v10248_v39  ;;  %v24034_v39 = vshrl.u32 %v24007_v36, 16 }
 0xa95   : > { %18226 = vmatprep.mubr.bf16.mxu0 %v10260_v7  ;;  %v10267_v50 = vrot.slane %v24012_v41, 1  ;;  %v10275_v38 = vrot.slane %v24015_v43, 1  ;;  %v24037_v7 = vshll.u32 %v24030_v32, 16 }
 0xa96   : > { %v11126_v15 = vrot.slane %v24034_v39, 1 }
 0xa97   : > { %v10271_v3 = vor.u32 %v24022_v5, %v10267_v50  ;;  %v10268_v49 = vsel %vm1237_vm3, %v10263_v18, %v10267_v50  ;;  %v10279_v40 = vor.u32 %v24034_v39, %v10275_v38  ;;  %v10283_v11 = vrot.slane %v24037_v7, 1 }
 0xa98   : > { %v11097_v18 = vrot.slane %v23955_v55, 1 }
 0xa99   : > { %v10276_v60 = vsel %vm1237_vm3, %v10271_v3, %v10275_v38  ;;  %v10284_v50 = vsel %vm1237_vm3, %v10279_v40, %v10283_v11  ;;  %v11098_v3 = vrot.slane %v23928_v14, 2  ;;  %v11102_v38 = vrot.slane %v23951_v2, 2  ;;  %v20271_v40 = vld [vmem:[%s25622_s17 + $0x88] sm:$0xff]  }
 0xa9a   : > { %v11106_v11 = vrot.slane %v23977_v19, 2 }
 0xa9b   : > { %v11099_v17 = vor.u32 %v11098_v3, %v11097_v18  ;;  %v11116_v18 = vrot.slane %v23989_v28, 2 }
 0xa9c   : > { %18227 = vmatmul.mubr.bf16.gmra.mrb[88].mxu0 %v10268_v49  ;;  %v11096_v49 = vor.u32 %v11095_v4, %v11094_v30  ;;  %v11115_v30 = vrot.slane %v23997_v33, 1  ;;  %v11107_v56 = vor.u32 %v11106_v11, %v11105_v23  ;;  %v11122_v11 = vrot.slane %v24022_v5, 1 }
 0xa9d   : > { %18230 = vmatprep.mubr.bf16.mxu0 %v10276_v60  ;;  %v11101_v60 = vrot.slane %v23963_v20, 1 }
 0xa9e   : > { %v24058_v4 = vsel %vm2151_vm5, %v11096_v49, %v11099_v17  ;;  %v11117_v49 = vor.u32 %v11116_v18, %v11115_v30  ;;  %v11133_v30 = vrot.slane %v24037_v7, 2 }
 0xa9f   : > { %25971 = vst [vmem:[#allocation55_spill] sm:$0xff] %v24058_v4 }
 0xaa4   : > { %18231 = vmatmul.mubr.bf16.gmra.mrb[92].mxu0 %v10284_v50  ;;  %v11103_v50 = vor.u32 %v11102_v38, %v11101_v60  ;;  %v11111_v60 = vrot.slane %v25788_v57, 1  ;;  %v11118_v38 = vrot.slane %v24018_v63, 1  ;;  %v20272_v57 = vld [vmem:[%s25622_s17 + $0x90] sm:$0xff]  }
 0xaa5   : > { %18250 = vmatprep.mubr.bf16.mxu0 %v23603_v6 }
 0xaa6   : > { %v24063_v3 = vsel %vm2151_vm5, %v11099_v17, %v11103_v50  ;;  %v24072_v23 = vsel %vm2151_vm5, %v11103_v50, %v11107_v56  ;;  %v11123_v17 = vrot.slane %v24012_v41, 2  ;;  %v11120_v4 = vor.u32 %v11119_v1, %v11118_v38 }
 0xaa7   : > { %25972 = vst [vmem:[#allocation56_spill] sm:$0xff] %v24063_v3  ;;  %25973 = vst [vmem:[#allocation57_spill] sm:$0xff] %v24072_v23  ;;  %v11113_v3 = vor.u32 %v11112_v62, %v11111_v60  ;;  %v11130_v50 = vshrl.u32 %v24030_v32, 16  ;;  %v20273_v60 = vld [vmem:[%s25622_s17 + $0x98] sm:$0xff]  }
 0xaa8   : > { %v11124_v24 = vor.u32 %v11123_v17, %v11122_v11  ;;  %v24087_v23 = vsel %vm2151_vm5, %v11117_v49, %v11120_v4  ;;  %v11759_v49 = vrot.slane %v23955_v55, 2  ;;  %v11760_v11 = vrot.slane %v23928_v14, 3 }
 0xaa9   : > { %v24084_v18 = vsel %vm2151_vm5, %v11107_v56, %v11113_v3  ;;  %v11132_v1 = vrot.slane %v11130_v50, 1  ;;  %v11757_v3 = vrot.slane %v23925_v45, 3  ;;  %v11763_v17 = vrot.slane %v23963_v20, 2  ;;  %v20278_v45 = vld [vmem:[%s25622_s17 + $0xc0] sm:$0xff]  }
 0xaaa   : > { %v24090_v62 = vsel %vm2151_vm5, %v11120_v4, %v11124_v24  ;;  %v11756_v4 = vrot.slane %v23938_v8, 2  ;;  %v11761_v55 = vor.u32 %v11760_v11, %v11759_v49  ;;  %v11768_v8 = vrot.slane %v23977_v19, 3 }
 0xaab   : > { %v11134_v56 = vor.u32 %v11133_v30, %v11132_v1  ;;  %v11764_v30 = vrot.slane %v23951_v2, 3  ;;  %v11767_v1 = vrot.slane %v23983_v58, 2  ;;  %v25974_v14 = vshrl.u32 %v23945_v31, 16 }
 0xaac   : > { %18251 = vmatmul.mubr.bf16.vlgmr.msra.gmra.mrb[64].mxu0 %v23589_v52  ;;  %v11776_v2 = vrot.slane %v23989_v28, 3  ;;  %v11783_v11 = vrot.slane %v24012_v41, 3 }
 0xaad   : > { %18283 = vmatpush3.bf16.msra.mxu0 %v23903_v12  ;;  %18254 = vmatprep.mubr.bf16.mxu0 %v23625_v22  ;;  %v11127_v12 = vrot.slane %v24015_v43, 2  ;;  %v11765_v20 = vor.u32 %v11764_v30, %v11763_v17  ;;  %v11786_v17 = vrot.slane %v24034_v39, 2 }
 0xaae   : > { %18284 = vmatprep.subr.bf16.mxu0 %v20271_v40 }
 0xaaf   : > { %v11128_v16 = vor.u32 %v11127_v12, %v11126_v15  ;;  %v11758_v12 = vor.u32 %v11757_v3, %v11756_v4  ;;  %v11779_v4 = vrot.slane %v23992_v26, 3  ;;  %v24143_v19 = vsel %vm6032_vm12, %v11761_v55, %v11765_v20 }
 0xab0   : > { %v11787_v26 = vrot.slane %v24015_v43, 3 }
 0xab1   : > { %18285 = vmatpush3.bf16.msra.mxu0 %v20271_v40  ;;  %v24098_v38 = vsel %vm2151_vm5, %v11124_v24, %v11128_v16  ;;  %v24103_v15 = vsel %vm2151_vm5, %v11128_v16, %v11134_v56  ;;  %v20274_v40 = vld [vmem:[%s25622_s17 + $0xa0] sm:$0xff]   ;;  %v20275_v24 = vld [vmem:[%s25622_s17 + $0xa8] sm:$0xff]   ;;  %v20276_v16 = vld [vmem:[%s25622_s17 + $0xb0] sm:$0xff]   ;;  %v11772_v56 = vrot.slane %v23986_v44, 3  ;;  %v24138_v58 = vsel %vm6032_vm12, %v11758_v12, %v11761_v55 }
 0xab2   : > { %18286 = vmatprep.subr.bf16.mxu0 %v20272_v57  ;;  %v11782_v44 = vrot.slane %v24022_v5, 2  ;;  %v11791_v12 = vrot.slane %v24037_v7, 3  ;;  %v11788_v41 = vor.u32 %v11787_v26, %v11786_v17  ;;  %v10743_v7 = vrot.slane %v23603_v6, 1  ;;  %v20283_v17 = vld [vmem:[%s25622_s17 + $0xe8] sm:$0xff]  }
 0xab3   : > { %v10744_v55 = vrot.slane %v23589_v52, 1 }
 0xab4   : > { %18255 = vmatmul.mubr.bf16.gmra.mrb[68].mxu0 %v23629_v42  ;;  %v11784_v30 = vor.u32 %v11783_v11, %v11782_v44  ;;  %v20282_v44 = vld [vmem:[%s25622_s17 + $0xe0] sm:$0xff]   ;;  %v10757_v11 = vrot.slane %v23756_v13, 1 }
 0xab5   : > { %18258 = vmatprep.mubr.bf16.mxu0 %v23718_v27  ;;  %18287 = vmatpush3.bf16.msra.mxu0 %v20272_v57  ;;  %v20277_v57 = vld [vmem:[%s25622_s17 + $0xb8] sm:$0xff]  }
 0xab6   : > { %18288 = vmatprep.subr.bf16.mxu0 %v20273_v60  ;;  %v24167_v43 = vsel %vm6032_vm12, %v11784_v30, %v11788_v41 }
 0xab7   : > { %25976 = vst [vmem:[#allocation59_spill] sm:$0xff] %v24167_v43  ;;  %v25987_v43 = vld [vmem:[#allocation48_spill] sm:$0xff] }
 0xab9   : > { %18289 = vmatpush3.bf16.msra.mxu0 %v20273_v60  ;;  %v11771_v60 = vrot.slane %v25974_v14, 2  ;;  %v10746_v14 = vrot.slane %v23625_v22, 1 }
 0xaba   : > { %18290 = vmatprep.subr.bf16.mxu0 %v20274_v40 }
 0xabb   : > { %v11773_v3 = vor.u32 %v11772_v56, %v11771_v60  ;;  %v10748_v60 = vrot.slane %v23629_v42, 1  ;;  %v10747_v56 = vsel %vm1841_vm6, %v10744_v55, %v10746_v14 }
 0xabc   : > { %18259 = vmatmul.mubr.bf16.gmra.mrb[72].mxu0 %v23672_v10 }
 0xabd   : > { %18262 = vmatprep.mubr.bf16.mxu0 %v23752_v48  ;;  %18291 = vmatpush3.bf16.msra.mxu0 %v20274_v40  ;;  %v11775_v40 = vrot.slane %v23997_v33, 2 }
 0xabe   : > { %18292 = vmatprep.subr.bf16.mxu0 %v20275_v24 }
 0xabf   : > { %v11777_v49 = vor.u32 %v11776_v2, %v11775_v40  ;;  %v10749_v40 = vsel %vm1841_vm6, %v10746_v14, %v10748_v60  ;;  %v20280_v2 = vld [vmem:[%s25622_s17 + $0xd0] sm:$0xff]   ;;  %v20286_v14 = vld [vmem:[%s25622_s17 + $0x100] sm:$0xff]  }
 0xac1   : > { %18293 = vmatpush3.bf16.msra.mxu0 %v20275_v24  ;;  %v11769_v24 = vor.u32 %v11768_v8, %v11767_v1  ;;  %v10745_v8 = vsel %vm1841_vm6, %v10743_v7, %v10744_v55  ;;  %v20285_v7 = vld [vmem:[%s25622_s17 + $0xf8] sm:$0xff]  }
 0xac2   : > { %18294 = vmatprep.subr.bf16.mxu0 %v20276_v16 }
 0xac3   : > { %v24147_v33 = vsel %vm6032_vm12, %v11765_v20, %v11769_v24  ;;  %v20279_v20 = vld [vmem:[%s25622_s17 + $0xc8] sm:$0xff]  }
 0xac4   : > { %18263 = vmatmul.mubr.bf16.gmra.mrb[76].mxu0 %v23756_v13 }
 0xac5   : > { %18266 = vmatprep.mubr.bf16.mxu0 %v23908_v37  ;;  %18295 = vmatpush3.bf16.msra.mxu0 %v20276_v16  ;;  %v11778_v16 = vrot.slane %v24018_v63, 2  ;;  %v24152_v63 = vsel %vm6032_vm12, %v11769_v24, %v11773_v3  ;;  %v10750_v24 = vrot.slane %v23705_v46, 1  ;;  %v20281_v3 = vld [vmem:[%s25622_s17 + $0xd8] sm:$0xff]  }
 0xac6   : > { %18296 = vmatprep.subr.bf16.mxu0 %v20277_v57 }
 0xac7   : > { %v11780_v28 = vor.u32 %v11779_v4, %v11778_v16  ;;  %v10752_v16 = vrot.slane %v23718_v27, 1  ;;  %v10753_v4 = vrot.slane %v23672_v10, 1 }
 0xac9   : > { %18297 = vmatpush3.bf16.msra.mxu0 %v20277_v57  ;;  %v11790_v57 = vrot.slane %v11130_v50, 2  ;;  %v24160_v5 = vsel %vm6032_vm12, %v11777_v49, %v11780_v28  ;;  %v24164_v1 = vsel %vm6032_vm12, %v11780_v28, %v11784_v30  ;;  %v10754_v49 = vsel %vm1841_vm6, %v10752_v16, %v10753_v4 }
 0xaca   : > { %18330 = vmatprep.subr.bf16.mxu0 %v20278_v45  ;;  %25975 = vst [vmem:[#allocation58_spill] sm:$0xff] %v24164_v1  ;;  %v10755_v28 = vrot.slane %v23752_v48, 1  ;;  %v10759_v30 = vrot.slane %v23860_v9, 1  ;;  %v10771_v16 = vrot.slane %v23958_v25, 1  ;;  %v11084_v1 = vrot.slane %v25987_v43, 1 }
 0xacb   : > { %v11792_v39 = vor.u32 %v11791_v12, %v11790_v57  ;;  %v20284_v12 = vld [vmem:[%s25622_s17 + $0xf0] sm:$0xff]  }
 0xacc   : > { %18267 = vmatmul.mubr.bf16.gmra.mrb[80].mxu0 %v23816_v61  ;;  %v10756_v26 = vsel %vm1841_vm6, %v10753_v4, %v10755_v28  ;;  %v10758_v57 = vsel %vm1841_vm6, %v10755_v28, %v10757_v11  ;;  %v10760_v55 = vsel %vm1841_vm6, %v10757_v11, %v10759_v30  ;;  %v11052_v11 = vrot.slane %v23643_v53, 1 }
 0xacd   : > { %18270 = vmatprep.mubr.bf16.mxu0 %v23875_v0  ;;  %v24170_v50 = vsel %vm6032_vm12, %v11788_v41, %v11792_v39  ;;  %v10761_v41 = vrot.slane %v23908_v37, 1  ;;  %v10762_v39 = vrot.slane %v23816_v61, 1 }
 0xace   : > { %25977 = vst [vmem:[#allocation60_spill] sm:$0xff] %v24170_v50 }
 0xad4   : > { %18271 = vmatmul.mubr.bf16.gmra.mrb[84].mxu0 %v23879_v21 }
 0xad5   : > { %18274 = vmatprep.mubr.bf16.mxu0 %v23967_v34 }
 0xadc   : > { %18275 = vmatmul.mubr.bf16.gmra.mrb[88].mxu0 %v23958_v25 }
 0xadd   : > { %18278 = vmatprep.mubr.bf16.mxu0 %v24004_v54 }
 0xae4   : > { %18279 = vmatmul.mubr.bf16.gmra.mrb[92].mxu0 %v24007_v36 }
 0xae5   : > { %18298 = vmatprep.mubr.bf16.mxu0 %v10745_v8  ;;  %v10763_v8 = vsel %vm1841_vm6, %v10761_v41, %v10762_v39 }
 0xaec   : > { %18299 = vmatmul.mubr.bf16.vlgmr.msra.gmra.mrb[64].mxu0 %v10747_v56 }
 0xaed   : > { %18331 = vmatpush3.bf16.msra.mxu0 %v20278_v45  ;;  %18302 = vmatprep.mubr.bf16.mxu0 %v10749_v40  ;;  %v10751_v45 = vsel %vm1841_vm6, %v10748_v60, %v10750_v24  ;;  %v10764_v60 = vrot.slane %v23875_v0, 1  ;;  %v10770_v24 = vrot.slane %v23967_v34, 1 }
 0xaee   : > { %18332 = vmatprep.subr.bf16.mxu0 %v20279_v20 }
 0xaef   : > { %v10765_v56 = vsel %vm1841_vm6, %v10762_v39, %v10764_v60 }
 0xaf1   : > { %18333 = vmatpush3.bf16.msra.mxu0 %v20279_v20  ;;  %v10766_v20 = vrot.slane %v23879_v21, 1 }
 0xaf2   : > { %18334 = vmatprep.subr.bf16.mxu0 %v20280_v2 }
 0xaf3   : > { %v10767_v40 = vsel %vm1841_vm6, %v10764_v60, %v10766_v20  ;;  %v25978_v60 = vld [vmem:[#allocation14_spill] sm:$0xff] }
 0xaf4   : > { %18303 = vmatmul.mubr.bf16.gmra.mrb[68].mxu0 %v10751_v45  ;;  %v10773_v45 = vrot.slane %v24004_v54, 1 }
 0xaf5   : > { %18306 = vmatprep.mubr.bf16.mxu0 %v10754_v49  ;;  %18335 = vmatpush3.bf16.msra.mxu0 %v20280_v2  ;;  %v10768_v2 = vrot.slane %v23945_v31, 1  ;;  %v10775_v49 = vrot.slane %v24007_v36, 1 }
 0xaf6   : > { %18336 = vmatprep.subr.bf16.mxu0 %v20281_v3 }
 0xaf7   : > { %v10769_v4 = vsel %vm1841_vm6, %v10766_v20, %v10768_v2  ;;  %v10776_v28 = vsel %vm1841_vm6, %v10773_v45, %v10775_v49  ;;  %v11063_v20 = vrot.slane %v25978_v60, 1 }
 0xaf9   : > { %18337 = vmatpush3.bf16.msra.mxu0 %v20281_v3  ;;  %v10772_v3 = vsel %vm1841_vm6, %v10770_v24, %v10771_v16  ;;  %v25795_v24 = vshrl.u32 %v23705_v46, 16 }
 0xafa   : > { %18338 = vmatprep.subr.bf16.mxu0 %v20282_v44 }
 0xafc   : > { %18307 = vmatmul.mubr.bf16.gmra.mrb[72].mxu0 %v10756_v26  ;;  %v11055_v26 = vrot.slane %v23675_v51, 1 }
 0xafd   : > { %18310 = vmatprep.mubr.bf16.mxu0 %v10758_v57  ;;  %18339 = vmatpush3.bf16.msra.mxu0 %v20282_v44  ;;  %v10774_v44 = vsel %vm1841_vm6, %v10771_v16, %v10773_v45  ;;  %v11056_v57 = vrot.slane %v23646_v47, 2  ;;  %v11069_v45 = vrot.slane %v25795_v24, 1 }
 0xafe   : > { %18340 = vmatprep.subr.bf16.mxu0 %v20283_v17 }
 0xaff   : > { %v11057_v41 = vor.u32 %v11056_v57, %v11055_v26  ;;  %v25982_v26 = vld [vmem:[#allocation16_spill] sm:$0xff] }
 0xb00   : > { %v11074_v57 = vrot.slane %v25982_v26, 2 }
 0xb01   : > { %18341 = vmatpush3.bf16.msra.mxu0 %v20283_v17  ;;  %v11053_v17 = vrot.slane %v23620_v59, 2 }
 0xb02   : > { %18342 = vmatprep.subr.bf16.mxu0 %v20284_v12 }
 0xb03   : > { %v11054_v30 = vor.u32 %v11053_v17, %v11052_v11 }
 0xb04   : > { %18311 = vmatmul.mubr.bf16.gmra.mrb[76].mxu0 %v10760_v55  ;;  %v11060_v55 = vrot.slane %v23684_v29, 2 }
 0xb05   : > { %18314 = vmatprep.mubr.bf16.mxu0 %v10763_v8  ;;  %18343 = vmatpush3.bf16.msra.mxu0 %v20284_v12  ;;  %v10777_v12 = vrot.slane %v24030_v32, 1  ;;  %v11058_v8 = vsel %vm2151_vm5, %v11054_v30, %v11057_v41 }
 0xb06   : > { %18344 = vmatprep.subr.bf16.mxu0 %v20285_v7 }
 0xb07   : > { %v10778_v39 = vsel %vm1841_vm6, %v10775_v49, %v10777_v12  ;;  %v25980_v49 = vld [vmem:[#allocation13_spill] sm:$0xff]  ;;  %v25983_v12 = vld [vmem:[#allocation39_spill] sm:$0xff] }
 0xb08   : > { %v11076_v30 = vrot.slane %v25983_v12, 1 }
 0xb09   : > { %18345 = vmatpush3.bf16.msra.mxu0 %v20285_v7  ;;  %v11059_v7 = vrot.slane %v23710_v35, 1 }
 0xb0a   : > { %18378 = vmatprep.subr.bf16.mxu0 %v20286_v14 }
 0xb0b   : > { %v11061_v2 = vor.u32 %v11060_v55, %v11059_v7 }
 0xb0c   : > { %18315 = vmatmul.mubr.bf16.gmra.mrb[80].mxu0 %v10765_v56  ;;  %v25979_v56 = vld [vmem:[#allocation46_spill] sm:$0xff] }
 0xb0d   : > { %18318 = vmatprep.mubr.bf16.mxu0 %v10767_v40  ;;  %v11064_v40 = vrot.slane %v25979_v56, 2 }
 0xb0f   : > { %v11065_v16 = vor.u32 %v11064_v40, %v11063_v20  ;;  %v20289_v40 = vld [vmem:[%s25622_s17 + $0x118] sm:$0xff]  }
 0xb11   : > { %v11066_v17 = vsel %vm2151_vm5, %v11061_v2, %v11065_v16 }
 0xb14   : > { %18319 = vmatmul.mubr.bf16.gmra.mrb[84].mxu0 %v10769_v4  ;;  %v20287_v4 = vld [vmem:[%s25622_s17 + $0x108] sm:$0xff]  }
 0xb15   : > { %18322 = vmatprep.mubr.bf16.mxu0 %v10772_v3  ;;  %v11062_v3 = vsel %vm2151_vm5, %v11057_v41, %v11061_v2  ;;  %v20288_v41 = vld [vmem:[%s25622_s17 + $0x110] sm:$0xff]  }
 0xb1c   : > { %18323 = vmatmul.mubr.bf16.gmra.mrb[88].mxu0 %v10774_v44  ;;  %v11070_v44 = vrot.slane %v25980_v49, 2 }
 0xb1d   : > { %18326 = vmatprep.mubr.bf16.mxu0 %v10776_v28  ;;  %v25981_v28 = vld [vmem:[#allocation25_spill] sm:$0xff] }
 0xb1e   : > { %v11073_v11 = vrot.slane %v25981_v28, 1  ;;  %v11071_v55 = vor.u32 %v11070_v44, %v11069_v45  ;;  %v25988_v45 = vld [vmem:[#allocation40_spill] sm:$0xff] }
 0xb1f   : > { %v11085_v44 = vrot.slane %v25988_v45, 2 }
 0xb20   : > { %v11072_v2 = vsel %vm2151_vm5, %v11065_v16, %v11071_v55  ;;  %v11088_v16 = vshrl.u32 %v23860_v9, 16 }
 0xb24   : > { %18327 = vmatmul.mubr.bf16.gmra.mrb[92].mxu0 %v10778_v39  ;;  %v25984_v39 = vld [vmem:[#allocation26_spill] sm:$0xff] }
 0xb25   : > { %18346 = vmatprep.mubr.bf16.mxu0 %v11058_v8  ;;  %v11077_v7 = vrot.slane %v25984_v39, 2  ;;  %v11075_v8 = vor.u32 %v11074_v57, %v11073_v11  ;;  %v11086_v57 = vor.u32 %v11085_v44, %v11084_v1  ;;  %v20292_v1 = vld [vmem:[%s25622_s17 + $0x130] sm:$0xff]   ;;  %v25991_v44 = vld [vmem:[#allocation56_spill] sm:$0xff] }
 0xb27   : > { %v11078_v20 = vor.u32 %v11077_v7, %v11076_v30  ;;  %v20291_v30 = vld [vmem:[%s25622_s17 + $0x128] sm:$0xff]  }
 0xb29   : > { %v11079_v50 = vsel %vm2151_vm5, %v11075_v8, %v11078_v20 }
 0xb2c   : > { %18347 = vmatmul.mubr.bf16.vlgmr.msra.gmra.mrb[64].mxu0 %v11062_v3  ;;  %v25985_v3 = vld [vmem:[#allocation41_spill] sm:$0xff] }
 0xb2d   : > { %18379 = vmatpush3.bf16.msra.mxu0 %v20286_v14  ;;  %18350 = vmatprep.mubr.bf16.mxu0 %v11066_v17  ;;  %v11080_v24 = vrot.slane %v25985_v3, 1  ;;  %v25986_v14 = vld [vmem:[#allocation36_spill] sm:$0xff] }
 0xb2e   : > { %18380 = vmatprep.subr.bf16.mxu0 %v20287_v4  ;;  %v11081_v17 = vrot.slane %v25986_v14, 2 }
 0xb30   : > { %v11082_v11 = vor.u32 %v11081_v17, %v11080_v24  ;;  %v20294_v17 = vld [vmem:[%s25622_s17 + $0x140] sm:$0xff]  }
 0xb31   : > { %18381 = vmatpush3.bf16.msra.mxu0 %v20287_v4  ;;  %v20290_v4 = vld [vmem:[%s25622_s17 + $0x120] sm:$0xff]  }
 0xb32   : > { %18382 = vmatprep.subr.bf16.mxu0 %v20288_v41  ;;  %v11083_v7 = vsel %vm2151_vm5, %v11078_v20, %v11082_v11  ;;  %v11087_v8 = vsel %vm2151_vm5, %v11082_v11, %v11086_v57  ;;  %v20293_v20 = vld [vmem:[%s25622_s17 + $0x138] sm:$0xff]   ;;  %v11409_v11 = vrot.slane %v23603_v6, 2 }
 0xb34   : > { %18351 = vmatmul.mubr.bf16.gmra.mrb[68].mxu0 %v11072_v2  ;;  %v25990_v2 = vld [vmem:[#allocation55_spill] sm:$0xff] }
 0xb35   : > { %18354 = vmatprep.mubr.bf16.mxu0 %v11079_v50  ;;  %18383 = vmatpush3.bf16.msra.mxu0 %v20288_v41  ;;  %v11090_v50 = vrot.slane %v11088_v16, 1  ;;  %v25989_v41 = vld [vmem:[#allocation51_spill] sm:$0xff] }
 0xb36   : > { %18384 = vmatprep.subr.bf16.mxu0 %v20289_v40  ;;  %v11091_v55 = vrot.slane %v25989_v41, 2 }
 0xb38   : > { %v11092_v24 = vor.u32 %v11091_v55, %v11090_v50  ;;  %v11414_v50 = vrot.slane %v23629_v42, 2  ;;  %v11418_v55 = vrot.slane %v23718_v27, 2 }
 0xb39   : > { %18385 = vmatpush3.bf16.msra.mxu0 %v20289_v40 }
 0xb3a   : > { %18386 = vmatprep.subr.bf16.mxu0 %v20290_v4  ;;  %v11093_v40 = vsel %vm2151_vm5, %v11086_v57, %v11092_v24  ;;  %v11410_v57 = vrot.slane %v23589_v52, 2 }
 0xb3c   : > { %18355 = vmatmul.mubr.bf16.gmra.mrb[72].mxu0 %v11083_v7  ;;  %v11412_v7 = vrot.slane %v23625_v22, 2 }
 0xb3d   : > { %18358 = vmatprep.mubr.bf16.mxu0 %v11087_v8  ;;  %18387 = vmatpush3.bf16.msra.mxu0 %v20290_v4  ;;  %v25992_v4 = vld [vmem:[#allocation57_spill] sm:$0xff]  ;;  %v11419_v8 = vrot.slane %v23672_v10, 2 }
 0xb3e   : > { %18388 = vmatprep.subr.bf16.mxu0 %v20291_v30 }
 0xb41   : > { %18389 = vmatpush3.bf16.msra.mxu0 %v20291_v30  ;;  %v11411_v30 = vsel %vm953_vm0, %v11409_v11, %v11410_v57 }
 0xb42   : > { %18390 = vmatprep.subr.bf16.mxu0 %v20292_v1 }
 0xb44   : > { %18359 = vmatmul.mubr.bf16.gmra.mrb[76].mxu0 %v11093_v40  ;;  %v20298_v40 = vld [vmem:[%s25622_s17 + $0x160] sm:$0xff]  }
 0xb45   : > { %18362 = vmatprep.mubr.bf16.mxu0 %v25990_v2  ;;  %18391 = vmatpush3.bf16.msra.mxu0 %v20292_v1  ;;  %v20297_v1 = vld [vmem:[%s25622_s17 + $0x158] sm:$0xff]   ;;  %v11421_v2 = vrot.slane %v23752_v48, 2 }
 0xb46   : > { %18392 = vmatprep.subr.bf16.mxu0 %v20293_v20 }
 0xb49   : > { %18393 = vmatpush3.bf16.msra.mxu0 %v20293_v20  ;;  %v11420_v20 = vsel %vm953_vm0, %v11418_v55, %v11419_v8  ;;  %v11432_v55 = vrot.slane %v23879_v21, 2 }
 0xb4a   : > { %18426 = vmatprep.subr.bf16.mxu0 %v20294_v17 }
 0xb4c   : > { %18363 = vmatmul.mubr.bf16.gmra.mrb[80].mxu0 %v25991_v44  ;;  %v20299_v44 = vld [vmem:[%s25622_s17 + $0x168] sm:$0xff]  }
 0xb4d   : > { %18366 = vmatprep.mubr.bf16.mxu0 %v25992_v4  ;;  %v11422_v4 = vsel %vm953_vm0, %v11419_v8, %v11421_v2 }
 0xb54   : > { %18367 = vmatmul.mubr.bf16.gmra.mrb[84].mxu0 %v24084_v18  ;;  %v11413_v18 = vsel %vm953_vm0, %v11410_v57, %v11412_v7  ;;  %v20300_v57 = vld [vmem:[%s25622_s17 + $0x170] sm:$0xff]  }
 0xb55   : > { %18370 = vmatprep.mubr.bf16.mxu0 %v24087_v23  ;;  %v20295_v23 = vld [vmem:[%s25622_s17 + $0x148] sm:$0xff]  }
 0xb5c   : > { %18371 = vmatmul.mubr.bf16.gmra.mrb[88].mxu0 %v24090_v62  ;;  %v11415_v62 = vsel %vm953_vm0, %v11412_v7, %v11414_v50  ;;  %v11427_v7 = vrot.slane %v23908_v37, 2 }
 0xb5d   : > { %18374 = vmatprep.mubr.bf16.mxu0 %v24098_v38  ;;  %v20296_v38 = vld [vmem:[%s25622_s17 + $0x150] sm:$0xff]  }
 0xb64   : > { %18375 = vmatmul.mubr.bf16.gmra.mrb[92].mxu0 %v24103_v15  ;;  %v11416_v15 = vrot.slane %v23705_v46, 2 }
 0xb65   : > { %18394 = vmatprep.mubr.bf16.mxu0 %v11411_v30  ;;  %v11425_v30 = vrot.slane %v23860_v9, 2 }
 0xb66   : > { %v11417_v24 = vsel %vm953_vm0, %v11414_v50, %v11416_v15  ;;  %v11428_v50 = vrot.slane %v23816_v61, 2  ;;  %v11430_v15 = vrot.slane %v23875_v0, 2 }
 0xb68   : > { %v11431_v8 = vsel %vm953_vm0, %v11428_v50, %v11430_v15 }
 0xb6c   : > { %18395 = vmatmul.mubr.bf16.vlgmr.msra.gmra.mrb[64].mxu0 %v11413_v18 }
 0xb6d   : > { %18427 = vmatpush3.bf16.msra.mxu0 %v20294_v17  ;;  %18398 = vmatprep.mubr.bf16.mxu0 %v11415_v62  ;;  %v11423_v17 = vrot.slane %v23756_v13, 2  ;;  %v11429_v62 = vsel %vm953_vm0, %v11427_v7, %v11428_v50  ;;  %v11719_v7 = vrot.slane %v23620_v59, 3  ;;  %v11721_v50 = vrot.slane %v23675_v51, 2 }
 0xb6e   : > { %18428 = vmatprep.subr.bf16.mxu0 %v20295_v23  ;;  %v11729_v59 = vrot.slane %v25978_v60, 2  ;;  %v11730_v51 = vrot.slane %v25979_v56, 3  ;;  %v20312_v60 = vld [vmem:[%s25624_s19 + $0x50] sm:$0xff]   ;;  %v20303_v56 = vld [vmem:[%s25622_s17 + $0x188] sm:$0xff]  }
 0xb6f   : > { %v11424_v11 = vsel %vm953_vm0, %v11421_v2, %v11423_v17  ;;  %v11426_v18 = vsel %vm953_vm0, %v11423_v17, %v11425_v30 }
 0xb71   : > { %18429 = vmatpush3.bf16.msra.mxu0 %v20295_v23  ;;  %v20301_v23 = vld [vmem:[%s25622_s17 + $0x178] sm:$0xff]  }
 0xb72   : > { %18430 = vmatprep.subr.bf16.mxu0 %v20296_v38 }
 0xb74   : > { %18399 = vmatmul.mubr.bf16.gmra.mrb[68].mxu0 %v11417_v24  ;;  %v11434_v24 = vrot.slane %v23945_v31, 2 }
 0xb75   : > { %18402 = vmatprep.mubr.bf16.mxu0 %v11420_v20  ;;  %18431 = vmatpush3.bf16.msra.mxu0 %v20296_v38  ;;  %v20302_v38 = vld [vmem:[%s25622_s17 + $0x180] sm:$0xff]   ;;  %v11436_v20 = vrot.slane %v23967_v34, 2 }
 0xb76   : > { %18432 = vmatprep.subr.bf16.mxu0 %v20297_v1  ;;  %v11435_v2 = vsel %vm953_vm0, %v11432_v55, %v11434_v24  ;;  %v20311_v24 = vld [vmem:[%s25624_s19 + $0x48] sm:$0xff]  }
 0xb79   : > { %18433 = vmatpush3.bf16.msra.mxu0 %v20297_v1  ;;  %v11433_v1 = vsel %vm953_vm0, %v11430_v15, %v11432_v55 }
 0xb7a   : > { %18434 = vmatprep.subr.bf16.mxu0 %v20298_v40 }
 0xb7c   : > { %18403 = vmatmul.mubr.bf16.gmra.mrb[72].mxu0 %v11422_v4  ;;  %v11441_v4 = vrot.slane %v24007_v36, 2 }
 0xb7d   : > { %18406 = vmatprep.mubr.bf16.mxu0 %v11424_v11  ;;  %18435 = vmatpush3.bf16.msra.mxu0 %v20298_v40  ;;  %v11437_v40 = vrot.slane %v23958_v25, 2 }
 0xb7e   : > { %18436 = vmatprep.subr.bf16.mxu0 %v20299_v44 }
 0xb7f   : > { %v11438_v17 = vsel %vm953_vm0, %v11436_v20, %v11437_v40 }
 0xb81   : > { %18437 = vmatpush3.bf16.msra.mxu0 %v20299_v44  ;;  %v11439_v44 = vrot.slane %v24004_v54, 2 }
 0xb82   : > { %18438 = vmatprep.subr.bf16.mxu0 %v20300_v57 }
 0xb83   : > { %v11440_v11 = vsel %vm953_vm0, %v11437_v40, %v11439_v44  ;;  %v11442_v30 = vsel %vm953_vm0, %v11439_v44, %v11441_v4  ;;  %v25993_v40 = vshrl.u32 %v23705_v46, 16  ;;  %v11737_v44 = vrot.slane %v25981_v28, 2 }
 0xb84   : > { %18407 = vmatmul.mubr.bf16.gmra.mrb[76].mxu0 %v11426_v18  ;;  %v11443_v18 = vrot.slane %v24030_v32, 2 }
 0xb85   : > { %18410 = vmatprep.mubr.bf16.mxu0 %v11429_v62  ;;  %18439 = vmatpush3.bf16.msra.mxu0 %v20300_v57  ;;  %v11718_v57 = vrot.slane %v23643_v53, 2  ;;  %v11726_v53 = vrot.slane %v23684_v29, 3  ;;  %v11731_v29 = vor.u32 %v11730_v51, %v11729_v59  ;;  %v20308_v51 = vld [vmem:[%s25622_s17 + $0x1b0] sm:$0xff]  }
 0xb86   : > { %18440 = vmatprep.subr.bf16.mxu0 %v20301_v23  ;;  %v11444_v55 = vsel %vm953_vm0, %v11441_v4, %v11443_v18  ;;  %v11745_v18 = vrot.slane %v25986_v14, 3  ;;  %v20307_v14 = vld [vmem:[%s25622_s17 + $0x1a8] sm:$0xff]  }
 0xb87   : > { %v11720_v62 = vor.u32 %v11719_v7, %v11718_v57  ;;  %v11740_v57 = vrot.slane %v25983_v12, 2  ;;  %v20313_v7 = vld [vmem:[%s25624_s19 + $0x58] sm:$0xff]   ;;  %v20314_v12 = vld [vmem:[%s25624_s19 + $0x60] sm:$0xff]  }
 0xb89   : > { %18441 = vmatpush3.bf16.msra.mxu0 %v20301_v23  ;;  %v11722_v23 = vrot.slane %v23646_v47, 3  ;;  %v20310_v47 = vld [vmem:[%s25624_s19 + $0x40] sm:$0xff]  }
 0xb8a   : > { %18474 = vmatprep.subr.bf16.mxu0 %v20302_v38  ;;  %18522 = vmatprep.subr.bf16.mxu1 %v20310_v47 }
 0xb8b   : > { %v11723_v15 = vor.u32 %v11722_v23, %v11721_v50  ;;  %18523 = vmatpush3.bf16.msra.mxu1 %v20310_v47  ;;  %v11744_v23 = vrot.slane %v25985_v3, 2 }
 0xb8c   : > { %18411 = vmatmul.mubr.bf16.gmra.mrb[80].mxu0 %v11431_v8  ;;  %v11725_v8 = vrot.slane %v23710_v35, 2  ;;  %18524 = vmatprep.subr.bf16.mxu1 %v20311_v24 }
 0xb8d   : > { %18414 = vmatprep.mubr.bf16.mxu0 %v11433_v1  ;;  %v11724_v1 = vsel %vm6032_vm12, %v11720_v62, %v11723_v15 }
 0xb8e   : > { %v11727_v35 = vor.u32 %v11726_v53, %v11725_v8  ;;  %v20306_v8 = vld [vmem:[%s25622_s17 + $0x1a0] sm:$0xff]   ;;  %v11746_v53 = vor.u32 %v11745_v18, %v11744_v23 }
 0xb8f   : > { %18525 = vmatpush3.bf16.msra.mxu1 %v20311_v24  ;;  %v20309_v24 = vld [vmem:[%s25622_s17 + $0x1b8] sm:$0xff]  }
 0xb90   : > { %v11728_v20 = vsel %vm6032_vm12, %v11723_v15, %v11727_v35  ;;  %v11732_v4 = vsel %vm6032_vm12, %v11727_v35, %v11731_v29  ;;  %18526 = vmatprep.subr.bf16.mxu1 %v20312_v60  ;;  %v11748_v15 = vrot.slane %v25987_v43, 2  ;;  %v25995_v35 = vld [vmem:[#allocation59_spill] sm:$0xff] }
 0xb93   : > { %18527 = vmatpush3.bf16.msra.mxu1 %v20312_v60  ;;  %v12068_v60 = vrot.slane %v23589_v52, 3  ;;  %v12077_v52 = vrot.slane %v23672_v10, 3  ;;  %v12085_v10 = vrot.slane %v23908_v37, 3  ;;  %v12095_v37 = vrot.slane %v23958_v25, 3 }
 0xb94   : > { %18415 = vmatmul.mubr.bf16.gmra.mrb[84].mxu0 %v11435_v2  ;;  %v11733_v2 = vrot.slane %v25993_v40, 2  ;;  %18528 = vmatprep.subr.bf16.mxu1 %v20313_v7 }
 0xb95   : > { %18418 = vmatprep.mubr.bf16.mxu0 %v11438_v17  ;;  %v11734_v17 = vrot.slane %v25980_v49, 3  ;;  %v20304_v49 = vld [vmem:[%s25622_s17 + $0x190] sm:$0xff]  }
 0xb97   : > { %v11735_v28 = vor.u32 %v11734_v17, %v11733_v2  ;;  %18529 = vmatpush3.bf16.msra.mxu1 %v20313_v7 }
 0xb98   : > { %18530 = vmatprep.subr.bf16.mxu1 %v20314_v12 }
 0xb9b   : > { %18531 = vmatpush3.bf16.msra.mxu1 %v20314_v12 }
 0xb9c   : > { %18419 = vmatmul.mubr.bf16.gmra.mrb[88].mxu0 %v11440_v11  ;;  %v11738_v11 = vrot.slane %v25982_v26, 3 }
 0xb9d   : > { %18422 = vmatprep.mubr.bf16.mxu0 %v11442_v30  ;;  %v11741_v30 = vrot.slane %v25984_v39, 3  ;;  %v20305_v39 = vld [vmem:[%s25622_s17 + $0x198] sm:$0xff]  }
 0xb9e   : > { %v11739_v50 = vor.u32 %v11738_v11, %v11737_v44 }
 0xb9f   : > { %v11742_v26 = vor.u32 %v11741_v30, %v11740_v57 }
 0xba1   : > { %v11743_v62 = vsel %vm6032_vm12, %v11739_v50, %v11742_v26  ;;  %v11747_v43 = vsel %vm6032_vm12, %v11742_v26, %v11746_v53  ;;  %v24489_v26 = vld [vmem:[%s25623_s18] ss:$0 sm:$0xff] }
 0xba4   : > { %18423 = vmatmul.mubr.bf16.gmra.mrb[92].mxu0 %v11444_v55  ;;  %v11749_v55 = vrot.slane %v25988_v45, 3  ;;  %v11752_v45 = vrot.slane %v11088_v16, 2 }
 0xba5   : > { %18442 = vmatprep.mubr.bf16.mxu0 %v11724_v1  ;;  %v11753_v1 = vrot.slane %v25989_v41, 3  ;;  %v25994_v41 = vld [vmem:[#allocation58_spill] sm:$0xff] }
 0xba6   : > { %v11750_v3 = vor.u32 %v11749_v55, %v11748_v15 }
 0xba7   : > { %v11754_v47 = vor.u32 %v11753_v1, %v11752_v45 }
 0xba8   : > { %v11751_v59 = vsel %vm6032_vm12, %v11746_v53, %v11750_v3 }
 0xba9   : > { %v11755_v16 = vsel %vm6032_vm12, %v11750_v3, %v11754_v47 }
 0xbac   : > { %18443 = vmatmul.mubr.bf16.vlgmr.msra.gmra.mrb[64].mxu0 %v11728_v20  ;;  %v12074_v20 = vrot.slane %v23705_v46, 3  ;;  %v12083_v46 = vrot.slane %v23860_v9, 3  ;;  %v12092_v9 = vrot.slane %v23945_v31, 3  ;;  %v12101_v31 = vrot.slane %v24030_v32, 3  ;;  %v24483_v32 = vld [vmem:[%s25624_s19] sm:$0xff]  }
 0xbad   : > { %18475 = vmatpush3.bf16.msra.mxu0 %v20302_v38  ;;  %18446 = vmatprep.mubr.bf16.mxu0 %v11732_v4  ;;  %v11736_v38 = vsel %vm6032_vm12, %v11731_v29, %v11735_v28  ;;  %v12067_v29 = vrot.slane %v23603_v6, 3  ;;  %v12076_v6 = vrot.slane %v23718_v27, 3  ;;  %v12086_v27 = vrot.slane %v23816_v61, 3 }
 0xbae   : > { %18476 = vmatprep.subr.bf16.mxu0 %v20303_v56  ;;  %v12094_v61 = vrot.slane %v23967_v34, 3  ;;  %v20315_v34 = vld [vmem:[%s25624_s19 + $0x68] sm:$0xff]  }
 0xbaf   : > { %v12078_v2 = vsel %vm6382_vm13, %v12076_v6, %v12077_v52  ;;  %v12087_v11 = vsel %vm6382_vm13, %v12085_v10, %v12086_v27  ;;  %18532 = vmatprep.subr.bf16.mxu1 %v20315_v34 }
 0xbb0   : > { %18533 = vmatpush3.bf16.msra.mxu1 %v20315_v34 }
 0xbb1   : > { %18477 = vmatpush3.bf16.msra.mxu0 %v20303_v56  ;;  %v12069_v56 = vsel %vm6382_vm13, %v12067_v29, %v12068_v60 }
 0xbb2   : > { %18478 = vmatprep.subr.bf16.mxu0 %v20304_v49 }
 0xbb4   : > { %18447 = vmatmul.mubr.bf16.gmra.mrb[68].mxu0 %v11736_v38 }
 0xbb5   : > { %18450 = vmatprep.mubr.bf16.mxu0 %v11743_v62  ;;  %18479 = vmatpush3.bf16.msra.mxu0 %v20304_v49  ;;  %v12096_v49 = vsel %vm6382_vm13, %v12094_v61, %v12095_v37 }
 0xbb6   : > { %18480 = vmatprep.subr.bf16.mxu0 %v20305_v39 }
 0xbb9   : > { %18481 = vmatpush3.bf16.msra.mxu0 %v20305_v39 }
 0xbba   : > { %18482 = vmatprep.subr.bf16.mxu0 %v20306_v8 }
 0xbbc   : > { %18451 = vmatmul.mubr.bf16.gmra.mrb[72].mxu0 %v11747_v43 }
 0xbbd   : > { %18454 = vmatprep.mubr.bf16.mxu0 %v11751_v59  ;;  %18483 = vmatpush3.bf16.msra.mxu0 %v20306_v8 }
 0xbbe   : > { %18484 = vmatprep.subr.bf16.mxu0 %v20307_v14 }
 0xbc1   : > { %18485 = vmatpush3.bf16.msra.mxu0 %v20307_v14 }
 0xbc2   : > { %18486 = vmatprep.subr.bf16.mxu0 %v20308_v51 }
 0xbc4   : > { %18455 = vmatmul.mubr.bf16.gmra.mrb[76].mxu0 %v11755_v16 }
 0xbc5   : > { %18458 = vmatprep.mubr.bf16.mxu0 %v24138_v58  ;;  %18487 = vmatpush3.bf16.msra.mxu0 %v20308_v51  ;;  %v25996_v58 = vld [vmem:[#allocation60_spill] sm:$0xff] }
 0xbc6   : > { %18488 = vmatprep.subr.bf16.mxu0 %v20309_v24 }
 0xbc9   : > { %18489 = vmatpush3.bf16.msra.mxu0 %v20309_v24 }
 0xbcc   : > { %18459 = vmatmul.mubr.bf16.gmra.mrb[80].mxu0 %v24143_v19  ;;  %v12070_v19 = vrot.slane %v23625_v22, 3  ;;  %v12079_v22 = vrot.slane %v23752_v48, 3  ;;  %v12088_v48 = vrot.slane %v23875_v0, 3  ;;  %v12097_v0 = vrot.slane %v24004_v54, 3  ;;  %v20316_v54 = vld [vmem:[%s25624_s19 + $0x70] sm:$0xff]  }
 0xbcd   : > { %18462 = vmatprep.mubr.bf16.mxu0 %v24147_v33  ;;  %v12072_v33 = vrot.slane %v23629_v42, 3  ;;  %v12081_v42 = vrot.slane %v23756_v13, 3  ;;  %v12090_v13 = vrot.slane %v23879_v21, 3  ;;  %v12099_v21 = vrot.slane %v24007_v36, 3  ;;  %18534 = vmatprep.subr.bf16.mxu1 %v20316_v54  ;;  %v20317_v36 = vld [vmem:[%s25624_s19 + $0x78] sm:$0xff]  }
 0xbce   : > { %v12080_v17 = vsel %vm6382_vm13, %v12077_v52, %v12079_v22  ;;  %v12089_v57 = vsel %vm6382_vm13, %v12086_v27, %v12088_v48  ;;  %v12098_v28 = vsel %vm6382_vm13, %v12095_v37, %v12097_v0  ;;  %18535 = vmatpush3.bf16.msra.mxu1 %v20316_v54 }
 0xbcf   : > { %v12075_v40 = vsel %vm6382_vm13, %v12072_v33, %v12074_v20  ;;  %v12082_v44 = vsel %vm6382_vm13, %v12079_v22, %v12081_v42  ;;  %v12084_v4 = vsel %vm6382_vm13, %v12081_v42, %v12083_v46  ;;  %v12091_v30 = vsel %vm6382_vm13, %v12088_v48, %v12090_v13  ;;  %18536 = vmatprep.subr.bf16.mxu1 %v20317_v36 }
 0xbd0   : > { %v12093_v7 = vsel %vm6382_vm13, %v12090_v13, %v12092_v9  ;;  %v12100_v50 = vsel %vm6382_vm13, %v12097_v0, %v12099_v21  ;;  %v12102_v25 = vsel %vm6382_vm13, %v12099_v21, %v12101_v31 }
 0xbd2   : > { %18537 = vmatpush3.bf16.msra.mxu1 %v20317_v36 }
 0xbd3   : > { %18570 = vmatprep.subr.bf16.mxu1 %v24483_v32 }
 0xbd4   : > { %18463 = vmatmul.mubr.bf16.gmra.mrb[84].mxu0 %v24152_v63  ;;  %v12071_v63 = vsel %vm6382_vm13, %v12068_v60, %v12070_v19 }
 0xbd5   : > { %18466 = vmatprep.mubr.bf16.mxu0 %v24160_v5  ;;  %v12073_v5 = vsel %vm6382_vm13, %v12070_v19, %v12072_v33 }
 0xbdc   : > { %18467 = vmatmul.mubr.bf16.gmra.mrb[88].mxu0 %v25994_v41 }
 0xbdd   : > { %18470 = vmatprep.mubr.bf16.mxu0 %v25995_v35 }
 0xbe4   : > { %18471 = vmatmul.mubr.bf16.gmra.mrb[92].mxu0 %v25996_v58 }
 0xbe5   : > { %18490 = vmatprep.mubr.bf16.mxu0 %v12069_v56 }
 0xbec   : > { %18491 = vmatmul.mubr.bf16.vlgmr.msra.gmra.mrb[64].mxu0 %v12071_v63 }
 0xbed   : > { %18494 = vmatprep.mubr.bf16.mxu0 %v12073_v5 }
 0xbf4   : > { %18495 = vmatmul.mubr.bf16.gmra.mrb[68].mxu0 %v12075_v40 }
 0xbf5   : > { %18498 = vmatprep.mubr.bf16.mxu0 %v12078_v2 }
 0xbfc   : > { %18499 = vmatmul.mubr.bf16.gmra.mrb[72].mxu0 %v12080_v17 }
 0xbfd   : > { %18502 = vmatprep.mubr.bf16.mxu0 %v12082_v44 }
 0xc04   : > { %18503 = vmatmul.mubr.bf16.gmra.mrb[76].mxu0 %v12084_v4 }
 0xc05   : > { %18506 = vmatprep.mubr.bf16.mxu0 %v12087_v11 }
 0xc0c   : > { %18507 = vmatmul.mubr.bf16.gmra.mrb[80].mxu0 %v12089_v57 }
 0xc0d   : > { %18510 = vmatprep.mubr.bf16.mxu0 %v12091_v30 }
 0xc14   : > { %18511 = vmatmul.mubr.bf16.gmra.mrb[84].mxu0 %v12093_v7 }
 0xc15   : > { %18514 = vmatprep.mubr.bf16.mxu0 %v12096_v49 }
 0xc1c   : > { %18515 = vmatmul.mubr.bf16.gmra.mrb[88].mxu0 %v12098_v28 }
 0xc1d   : > { %18518 = vmatprep.mubr.bf16.mxu0 %v12100_v50 }
 0xc24   : > { %18519 = vmatmul.mubr.bf16.gmra.mrb[92].mxu0 %v12102_v25 }
 0xcbf   : > { %v18492_v12 = vpop.f32.mrb[64].mxu0 }
 0xcc0   : > { %v12385_v39 = vadd.f32 %v18492_v12, %v24489_v26  ;;  %v12217_v38 = vpop.f32.mrb[65].mxu0 }
 0xcc1   : > { %v12383_v23 = vadd.f32 %v24489_v26, %v12217_v38  ;;  %v18493_v18 = vpop.f32.mrb[66].mxu0 }
 0xcc2   : > { %v12386_v62 = vadd.f32 %v18493_v18, %v24489_v26  ;;  %v12220_v15 = vpop.f32.mrb[67].mxu0  ;;  %v12417_v8 = vmax.f32 %v12385_v39, 0.0 }
 0xcc3   : > { %v12384_v55 = vadd.f32 %v24489_v26, %v12220_v15  ;;  %v12415_v3 = vmax.f32 %v12383_v23, 0.0 }
 0xcc4   : > { %v12418_v53 = vmax.f32 %v12386_v62, 0.0 }
 0xcc5   : > { %v12416_v14 = vmax.f32 %v12384_v55, 0.0  ;;  %v20319_v55 = vld [vmem:[%s25624_s19 + $0x8] sm:$0xff]  }
 0xcc6   : > { %v12448_v43 = vpack.c.bf16 %v12418_v53, %v12417_v8 }
 0xcc7   : > { %v12447_v45 = vpack.c.bf16 %v12416_v14, %v12415_v3  ;;  %v18496_v1 = vpop.f32.mrb[68].mxu0 }
 0xcc8   : > { %v12480_v59 = vrot.slane %v12448_v43, 7  ;;  %v12389_v51 = vadd.f32 %v18496_v1, %v24489_v26  ;;  %v12233_v47 = vpop.f32.mrb[69].mxu0 }
 0xcc9   : > { %v24496_v24 = vrot.slane %v12447_v45, 7  ;;  %v12387_v16 = vadd.f32 %v24489_v26, %v12233_v47  ;;  %v18497_v41 = vpop.f32.mrb[70].mxu0 }
 0xcca   : > { %v12390_v35 = vadd.f32 %v18497_v41, %v24489_v26  ;;  %v12236_v29 = vpop.f32.mrb[71].mxu0  ;;  %v12421_v56 = vmax.f32 %v12389_v51, 0.0 }
 0xccb   : > { %v24502_v60 = vsel %vm1182_vm2, %v24496_v24, %v12480_v59  ;;  %v24506_v58 = vsel %vm1182_vm2, 0, %v24496_v24  ;;  %v12388_v19 = vadd.f32 %v24489_v26, %v12236_v29  ;;  %v12419_v6 = vmax.f32 %v12387_v16, 0.0 }
 0xccc   : > { %v12422_v33 = vmax.f32 %v12390_v35, 0.0  ;;  %v12555_v63 = vshrl.u32 %v24506_v58, 16  ;;  %v12557_v5 = vshll.u32 %v24506_v58, 16  ;;  %v12562_v20 = vshll.u32 %v24502_v60, 16 }
 0xccd   : > { %v12420_v52 = vmax.f32 %v12388_v19, 0.0  ;;  %v12566_v21 = vshrl.u32 %v24502_v60, 16 }
 0xcce   : > { %v12450_v40 = vpack.c.bf16 %v12422_v33, %v12421_v56  ;;  %v12559_v2 = vrot.slane %v12557_v5, 1  ;;  %v24512_v22 = vrot.slane %v12555_v63, 1  ;;  %v24514_v44 = vrot.slane %v12557_v5, 2  ;;  %v20320_v5 = vld [vmem:[%s25624_s19 + $0x10] sm:$0xff]  }
 0xccf   : > { %v12449_v42 = vpack.c.bf16 %v12420_v52, %v12419_v6  ;;  %v18500_v17 = vpop.f32.mrb[72].mxu0  ;;  %v12564_v11 = vrot.slane %v12562_v20, 1  ;;  %v13461_v29 = vrot.slane %v12566_v21, 1  ;;  %v13462_v56 = vrot.slane %v12562_v20, 2 }
 0xcd0   : > { %v12484_v46 = vrot.slane %v12450_v40, 7  ;;  %v12393_v10 = vadd.f32 %v18500_v17, %v24489_v26  ;;  %v12249_v27 = vpop.f32.mrb[73].mxu0  ;;  %v12560_v4 = vor.u32 %v12559_v2, %v12555_v63  ;;  %v13460_v30 = vor.u32 %v24514_v44, %v24512_v22  ;;  %v20322_v44 = vld [vmem:[%s25624_s19 + $0x20] sm:$0xff]  }
 0xcd1   : > { %v12482_v48 = vrot.slane %v12449_v42, 7  ;;  %v12391_v13 = vadd.f32 %v24489_v26, %v12249_v27  ;;  %v18501_v57 = vpop.f32.mrb[74].mxu0  ;;  %v12568_v36 = vor.u32 %v12566_v21, %v12564_v11 }
 0xcd2   : > { %v12394_v9 = vadd.f32 %v18501_v57, %v24489_v26  ;;  %v12252_v61 = vpop.f32.mrb[75].mxu0  ;;  %v12565_v37 = vsel %vm1237_vm3, %v12560_v4, %v12564_v11  ;;  %v12425_v28 = vmax.f32 %v12393_v10, 0.0  ;;  %v24533_v12 = vsel %vm1182_vm2, %v12484_v46, 0 }
 0xcd3   : > { %v24523_v7 = vsel %vm1182_vm2, %v12480_v59, %v12482_v48  ;;  %v24526_v49 = vsel %vm1182_vm2, %v12482_v48, %v12484_v46  ;;  %v12392_v0 = vadd.f32 %v24489_v26, %v12252_v61  ;;  %18538 = vmatprep.mubr.bf16.mxu1 %v12565_v37  ;;  %v12423_v34 = vmax.f32 %v12391_v13, 0.0  ;;  %v20321_v13 = vld [vmem:[%s25624_s19 + $0x18] sm:$0xff]  }
 0xcd4   : > { %v12426_v50 = vmax.f32 %v12394_v9, 0.0  ;;  %v12570_v31 = vshll.u32 %v24523_v7, 16  ;;  %v12578_v25 = vshll.u32 %v24526_v49, 16  ;;  %v12574_v23 = vshrl.u32 %v24523_v7, 16 }
 0xcd5   : > { %v12424_v54 = vmax.f32 %v12392_v0, 0.0  ;;  %v12582_v51 = vshrl.u32 %v24526_v49, 16  ;;  %v12585_v47 = vshll.u32 %v24533_v12, 16  ;;  %v24583_v57 = vor.u32 %v13462_v56, %v13461_v29 }
 0xcd6   : > { %v24535_v39 = vpack.c.bf16 %v12426_v50, %v12425_v28  ;;  %v12572_v38 = vrot.slane %v12570_v31, 1  ;;  %v12580_v15 = vrot.slane %v12578_v25, 1 }
 0xcd7   : > { %v12451_v18 = vpack.c.bf16 %v12424_v54, %v12423_v34  ;;  %v18504_v62 = vpop.f32.mrb[76].mxu0  ;;  %v12587_v42 = vrot.slane %v12585_v47, 1  ;;  %v24596_v54 = vsel %vm2151_vm5, %v13460_v30, %v24583_v57 }
 0xcd8   : > { %v12487_v8 = vrot.slane %v24535_v39, 7  ;;  %v12397_v53 = vadd.f32 %v18504_v62, %v24489_v26  ;;  %v12265_v3 = vpop.f32.mrb[77].mxu0  ;;  %v12573_v14 = vsel %vm1237_vm3, %v12568_v36, %v12572_v38  ;;  %v12576_v43 = vor.u32 %v12574_v23, %v12572_v38 }
 0xcd9   : > { %v24550_v45 = vrot.slane %v12451_v18, 7  ;;  %v12395_v1 = vadd.f32 %v24489_v26, %v12265_v3  ;;  %v18505_v59 = vpop.f32.mrb[78].mxu0  ;;  %18539 = vmatmul.mubr.bf16.vlgmr.msra.gmra.mrb[144].mxu1 %v12573_v14 }
 0xcda   : > { %v12398_v16 = vadd.f32 %v18505_v59, %v24489_v26  ;;  %18571 = vmatpush3.bf16.msra.mxu1 %v24483_v32  ;;  %v12268_v41 = vpop.f32.mrb[79].mxu0  ;;  %v12581_v35 = vsel %vm1237_vm3, %v12576_v43, %v12580_v15  ;;  %v12584_v32 = vor.u32 %v12582_v51, %v12580_v15  ;;  %v12429_v20 = vmax.f32 %v12397_v53, 0.0 }
 0xcdb   : > { %v24560_v19 = vsel %vm1182_vm2, %v24550_v45, %v12487_v8  ;;  %v24564_v33 = vsel %vm1182_vm2, 0, %v24550_v45  ;;  %v12396_v63 = vadd.f32 %v24489_v26, %v12268_v41  ;;  %18542 = vmatprep.mubr.bf16.mxu1 %v12581_v35  ;;  %18572 = vmatprep.subr.bf16.mxu1 %v20319_v55  ;;  %v12427_v40 = vmax.f32 %v12395_v1, 0.0 }
 0xcdc   : > { %v12430_v6 = vmax.f32 %v12398_v16, 0.0  ;;  %v12591_v52 = vshll.u32 %v24564_v33, 16  ;;  %v12596_v17 = vshll.u32 %v24560_v19, 16  ;;  %v12589_v10 = vshrl.u32 %v24564_v33, 16 }
 0xcdd   : > { %v12428_v2 = vmax.f32 %v12396_v63, 0.0  ;;  %v12588_v48 = vsel %vm1237_vm3, %v12584_v32, %v12587_v42  ;;  %v12600_v22 = vshrl.u32 %v24560_v19, 16  ;;  %v20323_v63 = vld [vmem:[%s25624_s19 + $0x28] sm:$0xff]  }
 0xcde   : > { %v12454_v46 = vpack.c.bf16 %v12430_v6, %v12429_v20  ;;  %18573 = vmatpush3.bf16.msra.mxu1 %v20319_v55  ;;  %v12593_v27 = vrot.slane %v12591_v52, 1  ;;  %v12598_v21 = vrot.slane %v12596_v17, 1 }
 0xcdf   : > { %v12453_v4 = vpack.c.bf16 %v12428_v2, %v12427_v40  ;;  %v18508_v11 = vpop.f32.mrb[80].mxu0  ;;  %18574 = vmatprep.subr.bf16.mxu1 %v20320_v5 }
 0xce0   : > { %v12491_v9 = vrot.slane %v12454_v46, 7  ;;  %v12401_v61 = vadd.f32 %v18508_v11, %v24489_v26  ;;  %v12281_v37 = vpop.f32.mrb[81].mxu0  ;;  %v12594_v0 = vor.u32 %v12593_v27, %v12589_v10  ;;  %v12602_v43 = vor.u32 %v12600_v22, %v12598_v21 }
 0xce1   : > { %v12489_v28 = vrot.slane %v12453_v4, 7  ;;  %v12399_v50 = vadd.f32 %v24489_v26, %v12281_v37  ;;  %v18509_v34 = vpop.f32.mrb[82].mxu0  ;;  %18543 = vmatmul.mubr.bf16.gmra.mrb[148].mxu1 %v12588_v48  ;;  %v13465_v11 = vrot.slane %v12574_v23, 1 }
 0xce2   : > { %v12402_v36 = vadd.f32 %v18509_v34, %v24489_v26  ;;  %v12284_v39 = vpop.f32.mrb[83].mxu0  ;;  %v12599_v38 = vsel %vm1237_vm3, %v12594_v0, %v12598_v21  ;;  %18575 = vmatpush3.bf16.msra.mxu1 %v20320_v5  ;;  %v12433_v30 = vmax.f32 %v12401_v61, 0.0  ;;  %v24616_v1 = vsel %vm1182_vm2, %v12491_v9, 0 }
 0xce3   : > { %v24601_v18 = vsel %vm1182_vm2, %v12487_v8, %v12489_v28  ;;  %v24604_v62 = vsel %vm1182_vm2, %v12489_v28, %v12491_v9  ;;  %v12400_v15 = vadd.f32 %v24489_v26, %v12284_v39  ;;  %18546 = vmatprep.mubr.bf16.mxu1 %v12599_v38  ;;  %18576 = vmatprep.subr.bf16.mxu1 %v20321_v13  ;;  %v12431_v3 = vmax.f32 %v12399_v50, 0.0  ;;  %v20324_v28 = vld [vmem:[%s25624_s19 + $0x30] sm:$0xff]  }
 0xce4   : > { %v12434_v55 = vmax.f32 %v12402_v36, 0.0  ;;  %v12604_v53 = vshll.u32 %v24601_v18, 16  ;;  %v12612_v8 = vshll.u32 %v24604_v62, 16  ;;  %v12608_v41 = vshrl.u32 %v24601_v18, 16 }
 0xce5   : > { %v12432_v14 = vmax.f32 %v12400_v15, 0.0  ;;  %v12616_v27 = vshrl.u32 %v24604_v62, 16  ;;  %v12619_v4 = vshll.u32 %v24616_v1, 16  ;;  %v13466_v61 = vrot.slane %v12570_v31, 2 }
 0xce6   : > { %v24618_v59 = vpack.c.bf16 %v12434_v55, %v12433_v30  ;;  %v12606_v16 = vrot.slane %v12604_v53, 1  ;;  %18577 = vmatpush3.bf16.msra.mxu1 %v20321_v13  ;;  %v12614_v56 = vrot.slane %v12612_v8, 1 }
 0xce7   : > { %v12455_v35 = vpack.c.bf16 %v12432_v14, %v12431_v3  ;;  %v18512_v29 = vpop.f32.mrb[84].mxu0  ;;  %18578 = vmatprep.subr.bf16.mxu1 %v20322_v44  ;;  %v12621_v38 = vrot.slane %v12619_v4, 1  ;;  %v24665_v3 = vor.u32 %v13466_v61, %v13465_v11 }
 0xce8   : > { %v12494_v32 = vrot.slane %v24618_v59, 7  ;;  %v12405_v5 = vadd.f32 %v18512_v29, %v24489_v26  ;;  %v12297_v20 = vpop.f32.mrb[85].mxu0  ;;  %v12607_v6 = vsel %vm1237_vm3, %v12602_v43, %v12606_v16  ;;  %v12610_v40 = vor.u32 %v12608_v41, %v12606_v16  ;;  %v20325_v16 = vld [vmem:[%s25624_s19 + $0x38] sm:$0xff]  }
 0xce9   : > { %v24633_v2 = vrot.slane %v12455_v35, 7  ;;  %v12403_v42 = vadd.f32 %v24489_v26, %v12297_v20  ;;  %v18513_v46 = vpop.f32.mrb[86].mxu0  ;;  %18547 = vmatmul.mubr.bf16.gmra.mrb[152].mxu1 %v12607_v6  ;;  %v12618_v23 = vor.u32 %v12616_v27, %v12614_v56 }
 0xcea   : > { %v12406_v48 = vadd.f32 %v18513_v46, %v24489_v26  ;;  %v12300_v13 = vpop.f32.mrb[87].mxu0  ;;  %v12615_v9 = vsel %vm1237_vm3, %v12610_v40, %v12614_v56  ;;  %18579 = vmatpush3.bf16.msra.mxu1 %v20322_v44  ;;  %v12437_v31 = vmax.f32 %v12405_v5, 0.0 }
 0xceb   : > { %v24646_v37 = vsel %vm1182_vm2, %v24633_v2, %v12494_v32  ;;  %v24650_v0 = vsel %vm1182_vm2, 0, %v24633_v2  ;;  %v12404_v21 = vadd.f32 %v24489_v26, %v12300_v13  ;;  %18550 = vmatprep.mubr.bf16.mxu1 %v12615_v9  ;;  %18580 = vmatprep.subr.bf16.mxu1 %v20323_v63  ;;  %v12435_v36 = vmax.f32 %v12403_v42, 0.0 }
 0xcec   : > { %v12438_v50 = vmax.f32 %v12406_v48, 0.0  ;;  %v12625_v34 = vshll.u32 %v24650_v0, 16  ;;  %v12630_v15 = vshll.u32 %v24646_v37, 16  ;;  %v12623_v30 = vshrl.u32 %v24650_v0, 16 }
 0xced   : > { %v12436_v39 = vmax.f32 %v12404_v21, 0.0  ;;  %v12622_v59 = vsel %vm1237_vm3, %v12618_v23, %v12621_v38  ;;  %v24680_v42 = vsel %vm2151_vm5, %v24583_v57, %v24665_v3  ;;  %v12634_v21 = vshrl.u32 %v24646_v37, 16  ;;  %v24695_v57 = vld [vmem:[%s25624_s19 + $0x80] sm:$0xff]  }
 0xcee   : > { %v12458_v44 = vpack.c.bf16 %v12438_v50, %v12437_v31  ;;  %v12627_v55 = vrot.slane %v12625_v34, 1  ;;  %18581 = vmatpush3.bf16.msra.mxu1 %v20323_v63  ;;  %v12632_v63 = vrot.slane %v12630_v15, 1 }
 0xcef   : > { %v12457_v14 = vpack.c.bf16 %v12436_v39, %v12435_v36  ;;  %v18516_v43 = vpop.f32.mrb[88].mxu0  ;;  %18582 = vmatprep.subr.bf16.mxu1 %v20324_v28 }
 0xcf0   : > { %v12498_v35 = vrot.slane %v12458_v44, 7  ;;  %v12409_v29 = vadd.f32 %v18516_v43, %v24489_v26  ;;  %v12313_v56 = vpop.f32.mrb[89].mxu0  ;;  %v12628_v5 = vor.u32 %v12627_v55, %v12623_v30  ;;  %v12636_v39 = vor.u32 %v12634_v21, %v12632_v63 }
 0xcf1   : > { %v12496_v20 = vrot.slane %v12457_v14, 7  ;;  %v12407_v6 = vadd.f32 %v24489_v26, %v12313_v56  ;;  %v18517_v40 = vpop.f32.mrb[90].mxu0  ;;  %18551 = vmatmul.mubr.bf16.gmra.mrb[156].mxu1 %v12622_v59 }
 0xcf2   : > { %v12410_v46 = vadd.f32 %v18517_v40, %v24489_v26  ;;  %v12316_v11 = vpop.f32.mrb[91].mxu0  ;;  %v12633_v48 = vsel %vm1237_vm3, %v12628_v5, %v12632_v63  ;;  %18583 = vmatpush3.bf16.msra.mxu1 %v20324_v28  ;;  %v12441_v23 = vmax.f32 %v12409_v29, 0.0  ;;  %v24702_v38 = vsel %vm1182_vm2, %v12498_v35, 0 }
 0xcf3   : > { %v24685_v13 = vsel %vm1182_vm2, %v12494_v32, %v12496_v20  ;;  %v24688_v9 = vsel %vm1182_vm2, %v12496_v20, %v12498_v35  ;;  %v12408_v61 = vadd.f32 %v24489_v26, %v12316_v11  ;;  %18554 = vmatprep.mubr.bf16.mxu1 %v12633_v48  ;;  %18584 = vmatprep.subr.bf16.mxu1 %v20325_v16  ;;  %v12439_v50 = vmax.f32 %v12407_v6, 0.0 }
 0xcf4   : > { %v12442_v31 = vmax.f32 %v12410_v46, 0.0  ;;  %v12638_v28 = vshll.u32 %v24685_v13, 16  ;;  %v25796_v32 = vshll.u32 %v24688_v9, 16  ;;  %v12642_v14 = vshrl.u32 %v24685_v13, 16 }
 0xcf5   : > { %v12440_v36 = vmax.f32 %v12408_v61, 0.0  ;;  %v25801_v46 = vshrl.u32 %v24688_v9, 16  ;;  %v25800_v11 = vshll.u32 %v24702_v38, 16 }
 0xcf6   : > { %v12460_v44 = vpack.c.bf16 %v12442_v31, %v12441_v23  ;;  %v12640_v55 = vrot.slane %v12638_v28, 1  ;;  %18585 = vmatpush3.bf16.msra.mxu1 %v20325_v16  ;;  %v12648_v29 = vrot.slane %v25796_v32, 1  ;;  %v13469_v31 = vrot.slane %v12582_v51, 1 }
 0xcf7   : > { %v12459_v43 = vpack.c.bf16 %v12440_v36, %v12439_v50  ;;  %v18520_v59 = vpop.f32.mrb[92].mxu0  ;;  %18618 = vmatprep.subr.bf16.mxu1 %v24695_v57  ;;  %v13470_v50 = vrot.slane %v12578_v25, 2 }
 0xcf8   : > { %v12501_v56 = vrot.slane %v12460_v44, 7  ;;  %v12413_v5 = vadd.f32 %v18520_v59, %v24489_v26  ;;  %v12329_v63 = vpop.f32.mrb[93].mxu0  ;;  %v12641_v35 = vsel %vm1237_vm3, %v12636_v39, %v12640_v55  ;;  %v12644_v20 = vor.u32 %v12642_v14, %v12640_v55 }
 0xcf9   : > { %v24714_v6 = vrot.slane %v12459_v43, 7  ;;  %v12411_v16 = vadd.f32 %v24489_v26, %v12329_v63  ;;  %v18521_v40 = vpop.f32.mrb[94].mxu0  ;;  %18555 = vmatmul.mubr.bf16.gmra.mrb[160].mxu1 %v12641_v35  ;;  %v12652_v55 = vor.u32 %v25801_v46, %v12648_v29  ;;  %v12655_v35 = vrot.slane %v25800_v11, 1 }
 0xcfa   : > { %v12414_v48 = vadd.f32 %v18521_v40, %v24489_v26  ;;  %v12332_v61 = vpop.f32.mrb[95].mxu0  ;;  %v12649_v23 = vsel %vm1237_vm3, %v12644_v20, %v12648_v29  ;;  %v12445_v43 = vmax.f32 %v12413_v5, 0.0  ;;  %v13473_v5 = vshrl.u32 %v24533_v12, 16 }
 0xcfb   : > { %v24727_v36 = vsel %vm1182_vm2, %v24714_v6, %v12501_v56  ;;  %v24731_v39 = vsel %vm1182_vm2, 0, %v24714_v6  ;;  %v12412_v44 = vadd.f32 %v24489_v26, %v12332_v61  ;;  %18558 = vmatprep.mubr.bf16.mxu1 %v12649_v23  ;;  %v12443_v63 = vmax.f32 %v12411_v16, 0.0 }
 0xcfc   : > { %v12446_v59 = vmax.f32 %v12414_v48, 0.0  ;;  %v25797_v51 = vshll.u32 %v24731_v39, 16  ;;  %v25798_v20 = vshll.u32 %v24727_v36, 16  ;;  %v25799_v32 = vshrl.u32 %v24731_v39, 16 }
 0xcfd   : > { %v12444_v25 = vmax.f32 %v12412_v44, 0.0  ;;  %v13471_v61 = vor.u32 %v13470_v50, %v13469_v31  ;;  %v12656_v29 = vsel %vm1237_vm3, %v12652_v55, %v12655_v35  ;;  %v13476_v31 = vrot.slane %v12585_v47, 2 }
 0xcfe   : > { %v12462_v40 = vpack.c.bf16 %v12446_v59, %v12445_v43  ;;  %v12661_v26 = vrot.slane %v25797_v51, 1  ;;  %v12666_v44 = vrot.slane %v25798_v20, 1  ;;  %v13475_v51 = vrot.slane %v13473_v5, 1 }
 0xcff   : > { %v12461_v23 = vpack.c.bf16 %v12444_v25, %v12443_v63  ;;  %v24751_v43 = vsel %vm2151_vm5, %v24665_v3, %v13471_v61  ;;  %v13479_v63 = vrot.slane %v12589_v10, 1  ;;  %v13480_v25 = vrot.slane %v12591_v52, 2 }
 0xd00   : > { %v12505_v48 = vrot.slane %v12462_v40, 7  ;;  %v12662_v16 = vor.u32 %v12661_v26, %v25799_v32  ;;  %v12668_v47 = vshrl.u32 %v24727_v36, 16  ;;  %v13482_v10 = vrot.slane %v12600_v22, 1 }
 0xd01   : > { %v12503_v59 = vrot.slane %v12461_v23, 7  ;;  %18559 = vmatmul.mubr.bf16.gmra.mrb[164].mxu1 %v12656_v29  ;;  %v13477_v5 = vor.u32 %v13476_v31, %v13475_v51  ;;  %v13486_v51 = vrot.slane %v12608_v41, 1  ;;  %v13487_v31 = vrot.slane %v12604_v53, 2 }
 0xd02   : > { %v24756_v50 = vsel %vm1182_vm2, %v12505_v48, 0  ;;  %v12667_v55 = vsel %vm1237_vm3, %v12662_v16, %v12666_v44  ;;  %v12670_v29 = vor.u32 %v12668_v47, %v12666_v44  ;;  %v13497_v53 = vrot.slane %v12619_v4, 2 }
 0xd03   : > { %v24764_v3 = vsel %vm1182_vm2, %v12501_v56, %v12503_v59  ;;  %v24767_v35 = vsel %vm1182_vm2, %v12503_v59, %v12505_v48  ;;  %18562 = vmatprep.mubr.bf16.mxu1 %v12667_v55  ;;  %v12687_v40 = vshll.u32 %v24756_v50, 16  ;;  %v13481_v59 = vor.u32 %v13480_v25, %v13479_v63 }
 0xd04   : > { %v12672_v26 = vshll.u32 %v24764_v3, 16  ;;  %v12680_v23 = vshll.u32 %v24767_v35, 16  ;;  %v12676_v52 = vshrl.u32 %v24764_v3, 16  ;;  %v12684_v56 = vshrl.u32 %v24767_v35, 16 }
 0xd05   : > { %v13483_v55 = vrot.slane %v12596_v17, 2  ;;  %v12689_v20 = vrot.slane %v12687_v40, 1  ;;  %v24782_v32 = vsel %vm2151_vm5, %v13471_v61, %v13477_v5  ;;  %v13490_v17 = vrot.slane %v12616_v27, 1 }
 0xd06   : > { %v12674_v48 = vrot.slane %v12672_v26, 1  ;;  %v12682_v16 = vrot.slane %v12680_v23, 1  ;;  %v13491_v63 = vrot.slane %v12612_v8, 2  ;;  %v13488_v41 = vor.u32 %v13487_v31, %v13486_v51 }
 0xd07   : > { %v13484_v46 = vor.u32 %v13483_v55, %v13482_v10  ;;  %v13494_v10 = vshrl.u32 %v24616_v1, 16  ;;  %v13500_v27 = vrot.slane %v12623_v30, 1  ;;  %v13501_v8 = vrot.slane %v12625_v34, 2 }
 0xd08   : > { %v12675_v22 = vsel %vm1237_vm3, %v12670_v29, %v12674_v48  ;;  %v12678_v44 = vor.u32 %v12676_v52, %v12674_v48  ;;  %v12686_v11 = vor.u32 %v12684_v56, %v12682_v16  ;;  %v13492_v5 = vor.u32 %v13491_v63, %v13490_v17 }
 0xd09   : > { %18563 = vmatmul.mubr.bf16.gmra.mrb[168].mxu1 %v12675_v22  ;;  %v24796_v29 = vsel %vm2151_vm5, %v13481_v59, %v13484_v46  ;;  %v13496_v48 = vrot.slane %v13494_v10, 1  ;;  %v13507_v4 = vrot.slane %v12642_v14, 1  ;;  %v13508_v30 = vrot.slane %v12638_v28, 2 }
 0xd0a   : > { %v12683_v61 = vsel %vm1237_vm3, %v12678_v44, %v12682_v16  ;;  %v12690_v25 = vsel %vm1237_vm3, %v12686_v11, %v12689_v20  ;;  %v13503_v11 = vrot.slane %v12634_v21, 1  ;;  %v13504_v20 = vrot.slane %v12630_v15, 2 }
 0xd0b   : > { %18566 = vmatprep.mubr.bf16.mxu1 %v12683_v61  ;;  %v24810_v16 = vsel %vm2151_vm5, %v13484_v46, %v13488_v41  ;;  %v24813_v59 = vsel %vm2151_vm5, %v13488_v41, %v13492_v5  ;;  %v13498_v55 = vor.u32 %v13497_v53, %v13496_v48  ;;  %v13502_v34 = vor.u32 %v13501_v8, %v13500_v27 }
 0xd0c   : > { %v13505_v22 = vor.u32 %v13504_v20, %v13503_v11  ;;  %v25997_v21 = vshrl.u32 %v24688_v9, 16  ;;  %v13509_v51 = vor.u32 %v13508_v30, %v13507_v4  ;;  %v25998_v15 = vshll.u32 %v24688_v9, 16 }
 0xd0d   : > { %v13515_v31 = vshrl.u32 %v24702_v38, 16  ;;  %v25999_v17 = vshll.u32 %v24702_v38, 16  ;;  %v24827_v14 = vsel %vm2151_vm5, %v13492_v5, %v13498_v55  ;;  %v26000_v61 = vshrl.u32 %v24731_v39, 16 }
 0xd0e   : > { %v13511_v44 = vrot.slane %v25997_v21, 1  ;;  %v13512_v46 = vrot.slane %v25998_v15, 2  ;;  %v24830_v28 = vsel %vm2151_vm5, %v13502_v34, %v13505_v22  ;;  %v26001_v41 = vshll.u32 %v24731_v39, 16 }
 0xd0f   : > { %v13518_v63 = vrot.slane %v25999_v17, 2  ;;  %v13521_v10 = vrot.slane %v26000_v61, 1  ;;  %v24837_v27 = vsel %vm2151_vm5, %v13505_v22, %v13509_v51  ;;  %v13517_v8 = vrot.slane %v13515_v31, 1  ;;  %v20328_v61 = vld [vmem:[%s25624_s19 + $0x90] sm:$0xff]  }
 0xd10   : > { %v13522_v53 = vrot.slane %v26001_v41, 2  ;;  %v13513_v48 = vor.u32 %v13512_v46, %v13511_v44  ;;  %v13524_v11 = vrot.slane %v12668_v47, 1  ;;  %v26003_v4 = vshll.u32 %v24727_v36, 16  ;;  %v20331_v41 = vld [vmem:[%s25624_s19 + $0xa8] sm:$0xff]  }
 0xd11   : > { %18567 = vmatmul.mubr.bf16.gmra.mrb[172].mxu1 %v12690_v25  ;;  %v13528_v55 = vrot.slane %v12676_v52, 1  ;;  %v13529_v34 = vrot.slane %v12672_v26, 2  ;;  %v13519_v25 = vor.u32 %v13518_v63, %v13517_v8  ;;  %v13532_v15 = vrot.slane %v12684_v56, 1 }
 0xd12   : > { %18586 = vmatprep.mubr.msk.bf16.mxu1 %vm22925_vm14, %v24496_v24  ;;  %v13523_v5 = vor.u32 %v13522_v53, %v13521_v10  ;;  %v13525_v30 = vrot.slane %v26003_v4, 2  ;;  %v24845_v21 = vsel %vm2151_vm5, %v13509_v51, %v13513_v48  ;;  %v13533_v22 = vrot.slane %v12680_v23, 2  ;;  %v20327_v23 = vld [vmem:[%s25624_s19 + $0x88] sm:$0xff]   ;;  %v20329_v10 = vld [vmem:[%s25624_s19 + $0x98] sm:$0xff]  }
 0xd13   : > { %v13530_v44 = vor.u32 %v13529_v34, %v13528_v55  ;;  %v13536_v47 = vshrl.u32 %v24756_v50, 16  ;;  %v13539_v46 = vrot.slane %v12687_v40, 2  ;;  %v24851_v24 = vsel %vm2151_vm5, %v13513_v48, %v13519_v25  ;;  %v20333_v53 = vld [vmem:[%s25624_s19 + $0xb8] sm:$0xff]   ;;  %v20334_v48 = vld [vmem:[%s25624_s19 + $0xc0] sm:$0xff]   ;;  %v20336_v55 = vld [vmem:[%s25624_s19 + $0xd0] sm:$0xff]  }
 0xd14   : > { %v13526_v17 = vor.u32 %v13525_v30, %v13524_v11  ;;  %v13534_v31 = vor.u32 %v13533_v22, %v13532_v15  ;;  %v13150_v8 = vrot.slane %v24502_v60, 1  ;;  %v13154_v4 = vrot.slane %v24526_v49, 1  ;;  %v20337_v22 = vld [vmem:[%s25624_s19 + $0xd8] sm:$0xff]  }
 0xd15   : > { %v13538_v51 = vrot.slane %v13536_v47, 1  ;;  %v13156_v34 = vrot.slane %v24533_v12, 1  ;;  %v13158_v25 = vrot.slane %v24564_v33, 1  ;;  %v13159_v15 = vrot.slane %v24560_v19, 1  ;;  %v20338_v47 = vld [vmem:[%s25624_s19 + $0xe0] sm:$0xff]  }
 0xd16   : > { %v24854_v52 = vsel %vm2151_vm5, %v13523_v5, %v13526_v17  ;;  %v24857_v26 = vsel %vm2151_vm5, %v13526_v17, %v13530_v44  ;;  %v24863_v56 = vsel %vm2151_vm5, %v13530_v44, %v13534_v31  ;;  %v13152_v5 = vrot.slane %v24523_v7, 1 }
 0xd17   : > { %v13540_v63 = vor.u32 %v13539_v46, %v13538_v51  ;;  %v13157_v17 = vsel %vm1841_vm6, %v13154_v4, %v13156_v34  ;;  %v13160_v44 = vsel %vm1841_vm6, %v13158_v25, %v13159_v15  ;;  %v13161_v46 = vrot.slane %v24601_v18, 1  ;;  %v20339_v51 = vld [vmem:[%s25624_s19 + $0xe8] sm:$0xff]  }
 0xd18   : > { %v13153_v20 = vsel %vm1841_vm6, %v13150_v8, %v13152_v5  ;;  %v13155_v30 = vsel %vm1841_vm6, %v13152_v5, %v13154_v4  ;;  %v13179_v25 = vrot.slane %v24764_v3, 1 }
 0xd19   : > { %18587 = vmatmul.mubr.bf16.vlgmr.msra.gmra.mrb[144].mxu1 %v24502_v60  ;;  %v24869_v40 = vsel %vm2151_vm5, %v13534_v31, %v13540_v63  ;;  %v13163_v31 = vrot.slane %v24604_v62, 1 }
 0xd1a   : > { %18619 = vmatpush3.bf16.msra.mxu1 %v24695_v57  ;;  %18590 = vmatprep.mubr.bf16.mxu1 %v24523_v7  ;;  %v20330_v57 = vld [vmem:[%s25624_s19 + $0xa0] sm:$0xff]  }
 0xd1b   : > { %18620 = vmatprep.subr.bf16.mxu1 %v20327_v23  ;;  %v13164_v63 = vsel %vm1841_vm6, %v13161_v46, %v13163_v31 }
 0xd1e   : > { %18621 = vmatpush3.bf16.msra.mxu1 %v20327_v23  ;;  %v13162_v23 = vsel %vm1841_vm6, %v13159_v15, %v13161_v46  ;;  %v13181_v15 = vrot.slane %v24767_v35, 1  ;;  %v20350_v46 = vld [vmem:[%s25626_s21 + $0x40] sm:$0xff]  }
 0xd1f   : > { %18622 = vmatprep.subr.bf16.mxu1 %v20328_v61  ;;  %18762 = vmatprep.subr.bf16.mxu0 %v20350_v46 }
 0xd20   : > { %18763 = vmatpush3.bf16.msra.mxu0 %v20350_v46 }
 0xd21   : > { %18591 = vmatmul.mubr.bf16.gmra.mrb[148].mxu1 %v24526_v49 }
 0xd22   : > { %18594 = vmatprep.mubr.msk.bf16.mxu1 %vm22925_vm14, %v24550_v45  ;;  %18623 = vmatpush3.bf16.msra.mxu1 %v20328_v61  ;;  %v20332_v45 = vld [vmem:[%s25624_s19 + $0xb0] sm:$0xff]  }
 0xd23   : > { %18624 = vmatprep.subr.bf16.mxu1 %v20329_v10  ;;  %v20340_v61 = vld [vmem:[%s25624_s19 + $0xf0] sm:$0xff]  }
 0xd26   : > { %18625 = vmatpush3.bf16.msra.mxu1 %v20329_v10  ;;  %v13165_v10 = vrot.slane %v24616_v1, 1 }
 0xd27   : > { %18626 = vmatprep.subr.bf16.mxu1 %v20330_v57 }
 0xd29   : > { %18595 = vmatmul.mubr.bf16.gmra.mrb[152].mxu1 %v24560_v19 }
 0xd2a   : > { %18598 = vmatprep.mubr.bf16.mxu1 %v24601_v18  ;;  %18627 = vmatpush3.bf16.msra.mxu1 %v20330_v57  ;;  %v13167_v57 = vrot.slane %v24650_v0, 1 }
 0xd2b   : > { %18628 = vmatprep.subr.bf16.mxu1 %v20331_v41 }
 0xd2e   : > { %18629 = vmatpush3.bf16.msra.mxu1 %v20331_v41  ;;  %v13168_v41 = vrot.slane %v24646_v37, 1 }
 0xd2f   : > { %18630 = vmatprep.subr.bf16.mxu1 %v20332_v45 }
 0xd31   : > { %18599 = vmatmul.mubr.bf16.gmra.mrb[156].mxu1 %v24604_v62 }
 0xd32   : > { %18602 = vmatprep.mubr.msk.bf16.mxu1 %vm22925_vm14, %v24633_v2  ;;  %18631 = vmatpush3.bf16.msra.mxu1 %v20332_v45  ;;  %v13149_v2 = vrot.slane %v24506_v58, 1  ;;  %v20341_v45 = vld [vmem:[%s25624_s19 + $0xf8] sm:$0xff]  }
 0xd33   : > { %18632 = vmatprep.subr.bf16.mxu1 %v20333_v53 }
 0xd34   : > { %v13151_v11 = vsel %vm1841_vm6, %v13149_v2, %v13150_v8  ;;  %v20342_v2 = vld [vmem:[%s25624_s19 + $0x100] sm:$0xff]   ;;  %v13170_v8 = vrot.slane %v24685_v13, 1 }
 0xd36   : > { %18633 = vmatpush3.bf16.msra.mxu1 %v20333_v53  ;;  %v13166_v53 = vsel %vm1841_vm6, %v13163_v31, %v13165_v10  ;;  %v13171_v5 = vsel %vm1841_vm6, %v13168_v41, %v13170_v8  ;;  %v20351_v31 = vld [vmem:[%s25626_s21 + $0x48] sm:$0xff]  }
 0xd37   : > { %18666 = vmatprep.subr.bf16.mxu1 %v20334_v48  ;;  %18764 = vmatprep.subr.bf16.mxu0 %v20351_v31  ;;  %v20347_v10 = vld [vmem:[%s25624_s19 + $0x128] sm:$0xff]  }
 0xd38   : > { %18765 = vmatpush3.bf16.msra.mxu0 %v20351_v31 }
 0xd39   : > { %18603 = vmatmul.mubr.bf16.gmra.mrb[160].mxu1 %v24646_v37 }
 0xd3a   : > { %18606 = vmatprep.mubr.bf16.mxu1 %v24685_v13 }
 0xd41   : > { %18607 = vmatmul.mubr.bf16.gmra.mrb[164].mxu1 %v24688_v9 }
 0xd42   : > { %18610 = vmatprep.mubr.msk.bf16.mxu1 %vm22925_vm14, %v24714_v6  ;;  %v20335_v6 = vld [vmem:[%s25624_s19 + $0xc8] sm:$0xff]  }
 0xd49   : > { %18611 = vmatmul.mubr.bf16.gmra.mrb[168].mxu1 %v24727_v36 }
 0xd4a   : > { %18614 = vmatprep.mubr.bf16.mxu1 %v24764_v3 }
 0xd51   : > { %18615 = vmatmul.mubr.bf16.gmra.mrb[172].mxu1 %v24767_v35 }
 0xd52   : > { %18634 = vmatprep.mubr.bf16.mxu1 %v13151_v11  ;;  %v13172_v11 = vrot.slane %v24688_v9, 1 }
 0xd54   : > { %v13173_v4 = vsel %vm1841_vm6, %v13170_v8, %v13172_v11 }
 0xd59   : > { %18635 = vmatmul.mubr.bf16.vlgmr.msra.gmra.mrb[144].mxu1 %v13153_v20  ;;  %v13176_v20 = vrot.slane %v24731_v39, 1 }
 0xd5a   : > { %18667 = vmatpush3.bf16.msra.mxu1 %v20334_v48  ;;  %18638 = vmatprep.mubr.bf16.mxu1 %v13155_v30  ;;  %v13169_v48 = vsel %vm1841_vm6, %v13167_v57, %v13168_v41  ;;  %v13177_v30 = vrot.slane %v24727_v36, 1 }
 0xd5b   : > { %18668 = vmatprep.subr.bf16.mxu1 %v20335_v6 }
 0xd5c   : > { %v13178_v34 = vsel %vm1841_vm6, %v13176_v20, %v13177_v30 }
 0xd5e   : > { %18669 = vmatpush3.bf16.msra.mxu1 %v20335_v6  ;;  %v13174_v6 = vrot.slane %v24702_v38, 1 }
 0xd5f   : > { %18670 = vmatprep.subr.bf16.mxu1 %v20336_v55 }
 0xd61   : > { %18639 = vmatmul.mubr.bf16.gmra.mrb[148].mxu1 %v13157_v17  ;;  %v13182_v17 = vsel %vm1841_vm6, %v13179_v25, %v13181_v15 }
 0xd62   : > { %18642 = vmatprep.mubr.bf16.mxu1 %v13160_v44  ;;  %18671 = vmatpush3.bf16.msra.mxu1 %v20336_v55  ;;  %v13175_v55 = vsel %vm1841_vm6, %v13172_v11, %v13174_v6  ;;  %v13183_v44 = vrot.slane %v24756_v50, 1 }
 0xd63   : > { %18672 = vmatprep.subr.bf16.mxu1 %v20337_v22 }
 0xd66   : > { %18673 = vmatpush3.bf16.msra.mxu1 %v20337_v22  ;;  %v13180_v22 = vsel %vm1841_vm6, %v13177_v30, %v13179_v25 }
 0xd67   : > { %18674 = vmatprep.subr.bf16.mxu1 %v20338_v47 }
 0xd69   : > { %18643 = vmatmul.mubr.bf16.gmra.mrb[152].mxu1 %v13162_v23  ;;  %v20343_v23 = vld [vmem:[%s25624_s19 + $0x108] sm:$0xff]  }
 0xd6a   : > { %18646 = vmatprep.mubr.bf16.mxu1 %v13164_v63  ;;  %18675 = vmatpush3.bf16.msra.mxu1 %v20338_v47  ;;  %v13184_v47 = vsel %vm1841_vm6, %v13181_v15, %v13183_v44  ;;  %v20353_v63 = vld [vmem:[%s25626_s21 + $0x58] sm:$0xff]  }
 0xd6b   : > { %18676 = vmatprep.subr.bf16.mxu1 %v20339_v51 }
 0xd6e   : > { %18677 = vmatpush3.bf16.msra.mxu1 %v20339_v51  ;;  %v20352_v51 = vld [vmem:[%s25626_s21 + $0x50] sm:$0xff]  }
 0xd6f   : > { %18678 = vmatprep.subr.bf16.mxu1 %v20340_v61  ;;  %18766 = vmatprep.subr.bf16.mxu0 %v20352_v51 }
 0xd70   : > { %18767 = vmatpush3.bf16.msra.mxu0 %v20352_v51 }
 0xd71   : > { %18647 = vmatmul.mubr.bf16.gmra.mrb[156].mxu1 %v13166_v53  ;;  %18768 = vmatprep.subr.bf16.mxu0 %v20353_v63 }
 0xd72   : > { %18650 = vmatprep.mubr.bf16.mxu1 %v13169_v48  ;;  %18679 = vmatpush3.bf16.msra.mxu1 %v20340_v61  ;;  %v20354_v61 = vld [vmem:[%s25626_s21 + $0x60] sm:$0xff]  }
 0xd73   : > { %18680 = vmatprep.subr.bf16.mxu1 %v20341_v45 }
 0xd74   : > { %18769 = vmatpush3.bf16.msra.mxu0 %v20353_v63 }
 0xd75   : > { %18770 = vmatprep.subr.bf16.mxu0 %v20354_v61 }
 0xd76   : > { %18681 = vmatpush3.bf16.msra.mxu1 %v20341_v45 }
 0xd77   : > { %18714 = vmatprep.subr.bf16.mxu1 %v20342_v2 }
 0xd78   : > { %18771 = vmatpush3.bf16.msra.mxu0 %v20354_v61 }
 0xd79   : > { %18651 = vmatmul.mubr.bf16.gmra.mrb[160].mxu1 %v13171_v5 }
 0xd7a   : > { %18654 = vmatprep.mubr.bf16.mxu1 %v13173_v4  ;;  %v25077_v4 = vld [vmem:[%s25625_s20] ss:$0 sm:$0xff] }
 0xd81   : > { %18655 = vmatmul.mubr.bf16.gmra.mrb[164].mxu1 %v13175_v55 }
 0xd82   : > { %18658 = vmatprep.mubr.bf16.mxu1 %v13178_v34 }
 0xd89   : > { %18659 = vmatmul.mubr.bf16.gmra.mrb[168].mxu1 %v13180_v22 }
 0xd8a   : > { %18662 = vmatprep.mubr.bf16.mxu1 %v13182_v17 }
 0xd91   : > { %18663 = vmatmul.mubr.bf16.gmra.mrb[172].mxu1 %v13184_v47 }
 0xd92   : > { %18682 = vmatprep.mubr.bf16.mxu1 %v24596_v54  ;;  %v20344_v54 = vld [vmem:[%s25624_s19 + $0x110] sm:$0xff]  }
 0xd99   : > { %18683 = vmatmul.mubr.bf16.vlgmr.msra.gmra.mrb[144].mxu1 %v24680_v42  ;;  %v20345_v42 = vld [vmem:[%s25624_s19 + $0x118] sm:$0xff]  }
 0xd9a   : > { %18715 = vmatpush3.bf16.msra.mxu1 %v20342_v2  ;;  %18686 = vmatprep.mubr.bf16.mxu1 %v24751_v43  ;;  %v20346_v43 = vld [vmem:[%s25624_s19 + $0x120] sm:$0xff]  }
 0xd9b   : > { %18716 = vmatprep.subr.bf16.mxu1 %v20343_v23 }
 0xd9e   : > { %18717 = vmatpush3.bf16.msra.mxu1 %v20343_v23 }
 0xd9f   : > { %18718 = vmatprep.subr.bf16.mxu1 %v20344_v54 }
 0xda1   : > { %18687 = vmatmul.mubr.bf16.gmra.mrb[148].mxu1 %v24782_v32  ;;  %v20348_v32 = vld [vmem:[%s25624_s19 + $0x130] sm:$0xff]  }
 0xda2   : > { %18690 = vmatprep.mubr.bf16.mxu1 %v24796_v29  ;;  %18719 = vmatpush3.bf16.msra.mxu1 %v20344_v54  ;;  %v20349_v29 = vld [vmem:[%s25624_s19 + $0x138] sm:$0xff]  }
 0xda3   : > { %18720 = vmatprep.subr.bf16.mxu1 %v20345_v42 }
 0xda6   : > { %18721 = vmatpush3.bf16.msra.mxu1 %v20345_v42 }
 0xda7   : > { %18722 = vmatprep.subr.bf16.mxu1 %v20346_v43 }
 0xda9   : > { %18691 = vmatmul.mubr.bf16.gmra.mrb[152].mxu1 %v24810_v16  ;;  %v13815_v16 = vrot.slane %v24506_v58, 2  ;;  %v13824_v58 = vrot.slane %v24564_v33, 2  ;;  %v13834_v33 = vrot.slane %v24646_v37, 2  ;;  %v13842_v37 = vrot.slane %v24731_v39, 2  ;;  %v20355_v39 = vld [vmem:[%s25626_s21 + $0x68] sm:$0xff]  }
 0xdaa   : > { %18694 = vmatprep.mubr.bf16.mxu1 %v24813_v59  ;;  %18723 = vmatpush3.bf16.msra.mxu1 %v20346_v43  ;;  %v13816_v59 = vrot.slane %v24502_v60, 2  ;;  %v13825_v60 = vrot.slane %v24560_v19, 2  ;;  %v13833_v19 = vrot.slane %v24650_v0, 2  ;;  %v13843_v0 = vrot.slane %v24727_v36, 2 }
 0xdab   : > { %18724 = vmatprep.subr.bf16.mxu1 %v20347_v10  ;;  %18772 = vmatprep.subr.bf16.mxu0 %v20355_v39 }
 0xdac   : > { %v13835_v45 = vsel %vm953_vm0, %v13833_v19, %v13834_v33  ;;  %v13844_v8 = vsel %vm953_vm0, %v13842_v37, %v13843_v0  ;;  %18773 = vmatpush3.bf16.msra.mxu0 %v20355_v39 }
 0xdae   : > { %18725 = vmatpush3.bf16.msra.mxu1 %v20347_v10 }
 0xdaf   : > { %18726 = vmatprep.subr.bf16.mxu1 %v20348_v32 }
 0xdb1   : > { %18695 = vmatmul.mubr.bf16.gmra.mrb[156].mxu1 %v24827_v14  ;;  %v13817_v14 = vsel %vm953_vm0, %v13815_v16, %v13816_v59 }
 0xdb2   : > { %18698 = vmatprep.mubr.bf16.mxu1 %v24830_v28  ;;  %18727 = vmatpush3.bf16.msra.mxu1 %v20348_v32  ;;  %v13818_v28 = vrot.slane %v24523_v7, 2  ;;  %v13827_v7 = vrot.slane %v24601_v18, 2  ;;  %v13836_v18 = vrot.slane %v24685_v13, 2  ;;  %v13845_v13 = vrot.slane %v24764_v3, 2  ;;  %v20356_v3 = vld [vmem:[%s25626_s21 + $0x70] sm:$0xff]  }
 0xdb3   : > { %18728 = vmatprep.subr.bf16.mxu1 %v20349_v29  ;;  %18774 = vmatprep.subr.bf16.mxu0 %v20356_v3 }
 0xdb4   : > { %v13837_v53 = vsel %vm953_vm0, %v13834_v33, %v13836_v18  ;;  %v13846_v11 = vsel %vm953_vm0, %v13843_v0, %v13845_v13  ;;  %18775 = vmatpush3.bf16.msra.mxu0 %v20356_v3 }
 0xdb6   : > { %18729 = vmatpush3.bf16.msra.mxu1 %v20349_v29 }
 0xdb9   : > { %18699 = vmatmul.mubr.bf16.gmra.mrb[160].mxu1 %v24837_v27  ;;  %v13820_v27 = vrot.slane %v24526_v49, 2  ;;  %v13829_v49 = vrot.slane %v24604_v62, 2  ;;  %v13838_v62 = vrot.slane %v24688_v9, 2  ;;  %v13847_v9 = vrot.slane %v24767_v35, 2  ;;  %v20357_v35 = vld [vmem:[%s25626_s21 + $0x78] sm:$0xff]  }
 0xdba   : > { %18702 = vmatprep.mubr.bf16.mxu1 %v24845_v21  ;;  %v13819_v21 = vsel %vm953_vm0, %v13816_v59, %v13818_v28  ;;  %18776 = vmatprep.subr.bf16.mxu0 %v20357_v35 }
 0xdbb   : > { %v13830_v57 = vsel %vm953_vm0, %v13827_v7, %v13829_v49  ;;  %v13839_v48 = vsel %vm953_vm0, %v13836_v18, %v13838_v62  ;;  %v13848_v5 = vsel %vm953_vm0, %v13845_v13, %v13847_v9  ;;  %18777 = vmatpush3.bf16.msra.mxu0 %v20357_v35 }
 0xdc1   : > { %18703 = vmatmul.mubr.bf16.gmra.mrb[164].mxu1 %v24851_v24  ;;  %v13821_v24 = vsel %vm953_vm0, %v13818_v28, %v13820_v27 }
 0xdc2   : > { %18706 = vmatprep.mubr.bf16.mxu1 %v24854_v52  ;;  %v13822_v52 = vrot.slane %v24533_v12, 2  ;;  %v13831_v12 = vrot.slane %v24616_v1, 2  ;;  %v13840_v1 = vrot.slane %v24702_v38, 2  ;;  %v13849_v38 = vrot.slane %v24756_v50, 2  ;;  %v25071_v50 = vld [vmem:[%s25626_s21] sm:$0xff]  }
 0xdc3   : > { %18810 = vmatprep.subr.bf16.mxu0 %v25071_v50 }
 0xdc4   : > { %v13832_v41 = vsel %vm953_vm0, %v13829_v49, %v13831_v12  ;;  %v13841_v2 = vsel %vm953_vm0, %v13838_v62, %v13840_v1  ;;  %v13850_v36 = vsel %vm953_vm0, %v13847_v9, %v13849_v38  ;;  %v20367_v49 = vld [vmem:[%s25626_s21 + $0x88] sm:$0xff]  }
 0xdc9   : > { %18707 = vmatmul.mubr.bf16.gmra.mrb[168].mxu1 %v24857_v26  ;;  %v13823_v26 = vsel %vm953_vm0, %v13820_v27, %v13822_v52 }
 0xdca   : > { %18710 = vmatprep.mubr.bf16.mxu1 %v24863_v56  ;;  %v13826_v56 = vsel %vm953_vm0, %v13824_v58, %v13825_v60 }
 0xdd1   : > { %18711 = vmatmul.mubr.bf16.gmra.mrb[172].mxu1 %v24869_v40  ;;  %v13828_v40 = vsel %vm953_vm0, %v13825_v60, %v13827_v7 }
 0xdd2   : > { %18730 = vmatprep.mubr.bf16.mxu1 %v13817_v14 }
 0xdd9   : > { %18731 = vmatmul.mubr.bf16.vlgmr.msra.gmra.mrb[144].mxu1 %v13819_v21 }
 0xdda   : > { %18734 = vmatprep.mubr.bf16.mxu1 %v13821_v24 }
 0xde1   : > { %18735 = vmatmul.mubr.bf16.gmra.mrb[148].mxu1 %v13823_v26 }
 0xde2   : > { %18738 = vmatprep.mubr.bf16.mxu1 %v13826_v56 }
 0xde9   : > { %18739 = vmatmul.mubr.bf16.gmra.mrb[152].mxu1 %v13828_v40 }
 0xdea   : > { %18742 = vmatprep.mubr.bf16.mxu1 %v13830_v57 }
 0xdf1   : > { %18743 = vmatmul.mubr.bf16.gmra.mrb[156].mxu1 %v13832_v41 }
 0xdf2   : > { %18746 = vmatprep.mubr.bf16.mxu1 %v13835_v45 }
 0xdf9   : > { %18747 = vmatmul.mubr.bf16.gmra.mrb[160].mxu1 %v13837_v53 }
 0xdfa   : > { %18750 = vmatprep.mubr.bf16.mxu1 %v13839_v48 }
 0xe01   : > { %18751 = vmatmul.mubr.bf16.gmra.mrb[164].mxu1 %v13841_v2 }
 0xe02   : > { %18754 = vmatprep.mubr.bf16.mxu1 %v13844_v8 }
 0xe09   : > { %18755 = vmatmul.mubr.bf16.gmra.mrb[168].mxu1 %v13846_v11 }
 0xe0a   : > { %18758 = vmatprep.mubr.bf16.mxu1 %v13848_v5 }
 0xe11   : > { %18759 = vmatmul.mubr.bf16.gmra.mrb[172].mxu1 %v13850_v36 }
 0xeac   : > { %v18732_v6 = vpop.f32.mrb[144].mxu1 }
 0xead   : > { %v14133_v20 = vadd.f32 %v18732_v6, %v25077_v4  ;;  %v13965_v30 = vpop.f32.mrb[145].mxu1 }
 0xeae   : > { %v14131_v55 = vadd.f32 %v25077_v4, %v13965_v30  ;;  %v18733_v34 = vpop.f32.mrb[146].mxu1 }
 0xeaf   : > { %v14134_v25 = vadd.f32 %v18733_v34, %v25077_v4  ;;  %v13968_v15 = vpop.f32.mrb[147].mxu1  ;;  %v14165_v17 = vmax.f32 %v14133_v20, 0.0 }
 0xeb0   : > { %v14132_v22 = vadd.f32 %v25077_v4, %v13968_v15  ;;  %v14163_v47 = vmax.f32 %v14131_v55, 0.0 }
 0xeb1   : > { %v14166_v44 = vmax.f32 %v14134_v25, 0.0 }
 0xeb2   : > { %v14164_v46 = vmax.f32 %v14132_v22, 0.0 }
 0xeb3   : > { %v14274_v31 = vpack.c.bf16 %v14166_v44, %v14165_v17 }
 0xeb4   : > { %v14273_v51 = vpack.c.bf16 %v14164_v46, %v14163_v47  ;;  %v18736_v23 = vpop.f32.mrb[148].mxu1 }
 0xeb5   : > { %v14297_v63 = vshrl.u32 %v14274_v31, 16  ;;  %v14137_v54 = vadd.f32 %v18736_v23, %v25077_v4  ;;  %v13981_v61 = vpop.f32.mrb[149].mxu1  ;;  %v14300_v29 = vshll.u32 %v14274_v31, 16 }
 0xeb6   : > { %v14290_v42 = vshrl.u32 %v14273_v51, 16  ;;  %v14135_v43 = vadd.f32 %v25077_v4, %v13981_v61  ;;  %v18737_v10 = vpop.f32.mrb[150].mxu1  ;;  %v14293_v28 = vshll.u32 %v14273_v51, 16 }
 0xeb7   : > { %v14299_v32 = vrot.slane %v14297_v63, 7  ;;  %v14138_v16 = vadd.f32 %v18737_v10, %v25077_v4  ;;  %v13984_v59 = vpop.f32.mrb[151].mxu1  ;;  %v14169_v24 = vmax.f32 %v14137_v54, 0.0 }
 0xeb8   : > { %v14292_v14 = vrot.slane %v14290_v42, 7  ;;  %v14136_v27 = vadd.f32 %v25077_v4, %v13984_v59  ;;  %v14167_v60 = vmax.f32 %v14135_v43, 0.0 }
 0xeb9   : > { %v14302_v21 = vor.u32 %v14300_v29, %v14299_v32  ;;  %v14170_v52 = vmax.f32 %v14138_v16, 0.0 }
 0xeba   : > { %v14295_v58 = vor.u32 %v14293_v28, %v14292_v14  ;;  %v14168_v26 = vmax.f32 %v14136_v27, 0.0 }
 0xebb   : > { %v25088_v56 = vsel %vm3092_vm7, %v14292_v14, %v14302_v21  ;;  %v14276_v7 = vpack.c.bf16 %v14170_v52, %v14169_v24 }
 0xebc   : > { %v25092_v40 = vsel %vm21342_vm8, 0, %v14295_v58  ;;  %v14275_v57 = vpack.c.bf16 %v14168_v26, %v14167_v60  ;;  %v18740_v12 = vpop.f32.mrb[152].mxu1  ;;  %v14465_v19 = vshll.u32 %v25088_v56, 16  ;;  %v14469_v18 = vshrl.u32 %v25088_v56, 16  ;;  %v20359_v60 = vld [vmem:[%s25626_s21 + $0x8] sm:$0xff]  }
 0xebd   : > { %v14313_v33 = vshrl.u32 %v14276_v7, 16  ;;  %v14141_v41 = vadd.f32 %v18740_v12, %v25077_v4  ;;  %v13997_v45 = vpop.f32.mrb[153].mxu1  ;;  %v14316_v62 = vshll.u32 %v14276_v7, 16  ;;  %v14460_v37 = vshll.u32 %v25092_v40, 16 }
 0xebe   : > { %v14305_v53 = vshrl.u32 %v14275_v57, 16  ;;  %v14139_v48 = vadd.f32 %v25077_v4, %v13997_v45  ;;  %v18741_v1 = vpop.f32.mrb[154].mxu1  ;;  %v14458_v13 = vshrl.u32 %v25092_v40, 16  ;;  %v14467_v9 = vrot.slane %v14465_v19, 1 }
 0xebf   : > { %v14315_v0 = vrot.slane %v14313_v33, 7  ;;  %v14142_v2 = vadd.f32 %v18741_v1, %v25077_v4  ;;  %v14000_v8 = vpop.f32.mrb[155].mxu1  ;;  %v14308_v5 = vshll.u32 %v14275_v57, 16  ;;  %v14462_v36 = vrot.slane %v14460_v37, 1 }
 0xec0   : > { %v14307_v11 = vrot.slane %v14305_v53, 7  ;;  %v14140_v38 = vadd.f32 %v25077_v4, %v14000_v8  ;;  %v14173_v3 = vmax.f32 %v14141_v41, 0.0  ;;  %v14171_v35 = vmax.f32 %v14139_v48, 0.0  ;;  %v20360_v8 = vld [vmem:[%s25626_s21 + $0x10] sm:$0xff]  }
 0xec1   : > { %v14318_v39 = vor.u32 %v14316_v62, %v14315_v0  ;;  %v14174_v6 = vmax.f32 %v14142_v2, 0.0  ;;  %v25104_v20 = vsel %vm21342_vm8, %v14315_v0, 0  ;;  %v14463_v34 = vor.u32 %v14462_v36, %v14458_v13 }
 0xec2   : > { %v14310_v30 = vor.u32 %v14308_v5, %v14307_v11  ;;  %v14172_v55 = vmax.f32 %v14140_v38, 0.0  ;;  %v14471_v22 = vor.u32 %v14469_v18, %v14467_v9  ;;  %v14489_v61 = vshll.u32 %v25104_v20, 16 }
 0xec3   : > { %v25107_v25 = vsel %vm3092_vm7, %v14307_v11, %v14318_v39  ;;  %v14278_v15 = vpack.c.bf16 %v14174_v6, %v14173_v3  ;;  %v14468_v46 = vsel %vm1237_vm3, %v14463_v34, %v14467_v9 }
 0xec4   : > { %v25110_v17 = vsel %vm3092_vm7, %v14299_v32, %v14310_v30  ;;  %v14277_v44 = vpack.c.bf16 %v14172_v55, %v14171_v35  ;;  %v18744_v47 = vpop.f32.mrb[156].mxu1  ;;  %v14481_v31 = vshll.u32 %v25107_v25, 16  ;;  %18778 = vmatprep.mubr.bf16.mxu0 %v14468_v46  ;;  %v14485_v45 = vshrl.u32 %v25107_v25, 16 }
 0xec5   : > { %v14328_v51 = vshrl.u32 %v14278_v15, 16  ;;  %v14145_v23 = vadd.f32 %v18744_v47, %v25077_v4  ;;  %v14013_v63 = vpop.f32.mrb[157].mxu1  ;;  %v14473_v54 = vshll.u32 %v25110_v17, 16  ;;  %v14331_v42 = vshll.u32 %v14278_v15, 16 }
 0xec6   : > { %v14321_v43 = vshrl.u32 %v14277_v44, 16  ;;  %v14324_v10 = vshll.u32 %v14277_v44, 16  ;;  %v14143_v32 = vadd.f32 %v25077_v4, %v14013_v63  ;;  %v18745_v29 = vpop.f32.mrb[158].mxu1  ;;  %v14477_v27 = vshrl.u32 %v25110_v17, 16 }
 0xec7   : > { %v25118_v16 = vrot.slane %v14328_v51, 7  ;;  %v14146_v59 = vadd.f32 %v18745_v29, %v25077_v4  ;;  %v14016_v14 = vpop.f32.mrb[159].mxu1  ;;  %v14475_v28 = vrot.slane %v14473_v54, 1  ;;  %v14177_v24 = vmax.f32 %v14145_v23, 0.0 }
 0xec8   : > { %v14323_v21 = vrot.slane %v14321_v43, 7  ;;  %v14144_v52 = vadd.f32 %v25077_v4, %v14016_v14  ;;  %v14483_v58 = vrot.slane %v14481_v31, 1  ;;  %v14175_v33 = vmax.f32 %v14143_v32, 0.0  ;;  %v20361_v31 = vld [vmem:[%s25626_s21 + $0x18] sm:$0xff]  }
 0xec9   : > { %v14333_v26 = vor.u32 %v14331_v42, %v25118_v16  ;;  %v14178_v7 = vmax.f32 %v14146_v59, 0.0  ;;  %v14476_v57 = vsel %vm1237_vm3, %v14471_v22, %v14475_v28  ;;  %v14479_v12 = vor.u32 %v14477_v27, %v14475_v28 }
 0xeca   : > { %v14326_v19 = vor.u32 %v14324_v10, %v14323_v21  ;;  %v14176_v41 = vmax.f32 %v14144_v52, 0.0  ;;  %18779 = vmatmul.mubr.bf16.vlgmr.msra.gmra.mrb[96].mxu0 %v14476_v57  ;;  %v14487_v0 = vor.u32 %v14485_v45, %v14483_v58  ;;  %v14491_v5 = vrot.slane %v14489_v61, 1 }
 0xecb   : > { %v25130_v18 = vsel %vm3092_vm7, %v14323_v21, %v14333_v26  ;;  %v14280_v62 = vpack.c.bf16 %v14178_v7, %v14177_v24  ;;  %18811 = vmatpush3.bf16.msra.mxu0 %v25071_v50  ;;  %v14484_v53 = vsel %vm1237_vm3, %v14479_v12, %v14483_v58  ;;  %v20362_v58 = vld [vmem:[%s25626_s21 + $0x20] sm:$0xff]  }
 0xecc   : > { %v25136_v48 = vsel %vm21342_vm8, 0, %v14326_v19  ;;  %v14279_v1 = vpack.c.bf16 %v14176_v41, %v14175_v33  ;;  %v18748_v37 = vpop.f32.mrb[160].mxu1  ;;  %18782 = vmatprep.mubr.bf16.mxu0 %v14484_v53  ;;  %18812 = vmatprep.subr.bf16.mxu0 %v20359_v60  ;;  %v14501_v2 = vshll.u32 %v25130_v18, 16  ;;  %v14492_v34 = vsel %vm1237_vm3, %v14487_v0, %v14491_v5 }
 0xecd   : > { %v14344_v13 = vshrl.u32 %v14280_v62, 16  ;;  %v14347_v9 = vshll.u32 %v14280_v62, 16  ;;  %v14149_v50 = vadd.f32 %v18748_v37, %v25077_v4  ;;  %v14029_v11 = vpop.f32.mrb[161].mxu1  ;;  %v14494_v35 = vshrl.u32 %v25136_v48, 16 }
 0xece   : > { %v14336_v38 = vshrl.u32 %v14279_v1, 16  ;;  %v14339_v36 = vshll.u32 %v14279_v1, 16  ;;  %v14147_v39 = vadd.f32 %v25077_v4, %v14029_v11  ;;  %v18749_v3 = vpop.f32.mrb[162].mxu1  ;;  %v14496_v15 = vshll.u32 %v25136_v48, 16 }
 0xecf   : > { %v14346_v6 = vrot.slane %v14344_v13, 7  ;;  %v14150_v30 = vadd.f32 %v18749_v3, %v25077_v4  ;;  %v14032_v55 = vpop.f32.mrb[163].mxu1  ;;  %18813 = vmatpush3.bf16.msra.mxu0 %v20359_v60  ;;  %v14181_v44 = vmax.f32 %v14149_v50, 0.0  ;;  %v14503_v46 = vrot.slane %v14501_v2, 1 }
 0xed0   : > { %v14338_v22 = vrot.slane %v14336_v38, 7  ;;  %v14148_v47 = vadd.f32 %v25077_v4, %v14032_v55  ;;  %18814 = vmatprep.subr.bf16.mxu0 %v20360_v8  ;;  %v14498_v54 = vrot.slane %v14496_v15, 1  ;;  %v14179_v42 = vmax.f32 %v14147_v39, 0.0 }
 0xed1   : > { %v14349_v51 = vor.u32 %v14347_v9, %v14346_v6  ;;  %v25154_v23 = vsel %vm21342_vm8, %v14346_v6, 0  ;;  %v14182_v63 = vmax.f32 %v14150_v30, 0.0  ;;  %v14505_v10 = vshrl.u32 %v25130_v18, 16 }
 0xed2   : > { %v14341_v61 = vor.u32 %v14339_v36, %v14338_v22  ;;  %v14180_v43 = vmax.f32 %v14148_v47, 0.0  ;;  %18783 = vmatmul.mubr.bf16.gmra.mrb[100].mxu0 %v14492_v34  ;;  %v14499_v59 = vor.u32 %v14498_v54, %v14494_v35  ;;  %v14525_v14 = vshll.u32 %v25154_v23, 16  ;;  %v20363_v36 = vld [vmem:[%s25626_s21 + $0x28] sm:$0xff]  }
 0xed3   : > { %v25158_v32 = vsel %vm3092_vm7, %v14338_v22, %v14349_v51  ;;  %v14282_v29 = vpack.c.bf16 %v14182_v63, %v14181_v44  ;;  %18815 = vmatpush3.bf16.msra.mxu0 %v20360_v8  ;;  %v14507_v24 = vor.u32 %v14505_v10, %v14503_v46 }
 0xed4   : > { %v14281_v28 = vpack.c.bf16 %v14180_v43, %v14179_v42  ;;  %v18752_v27 = vpop.f32.mrb[164].mxu1  ;;  %v25163_v21 = vsel %vm3092_vm7, %v25118_v16, %v14341_v61  ;;  %v14517_v52 = vshll.u32 %v25158_v32, 16  ;;  %18816 = vmatprep.subr.bf16.mxu0 %v20361_v31  ;;  %v14504_v57 = vsel %vm1237_vm3, %v14499_v59, %v14503_v46  ;;  %v20364_v61 = vld [vmem:[%s25626_s21 + $0x30] sm:$0xff]  }
 0xed5   : > { %v14359_v60 = vshrl.u32 %v14282_v29, 16  ;;  %v14362_v26 = vshll.u32 %v14282_v29, 16  ;;  %v14153_v7 = vadd.f32 %v18752_v27, %v25077_v4  ;;  %v14045_v12 = vpop.f32.mrb[165].mxu1  ;;  %18786 = vmatprep.mubr.bf16.mxu0 %v14504_v57  ;;  %v14509_v45 = vshll.u32 %v25163_v21, 16 }
 0xed6   : > { %v14352_v19 = vshrl.u32 %v14281_v28, 16  ;;  %v14355_v33 = vshll.u32 %v14281_v28, 16  ;;  %v14151_v16 = vadd.f32 %v25077_v4, %v14045_v12  ;;  %v18753_v41 = vpop.f32.mrb[166].mxu1  ;;  %v14513_v0 = vshrl.u32 %v25163_v21, 16 }
 0xed7   : > { %v25173_v62 = vrot.slane %v14359_v60, 7  ;;  %v14185_v53 = vmax.f32 %v14153_v7, 0.0  ;;  %v14154_v1 = vadd.f32 %v18753_v41, %v25077_v4  ;;  %v14048_v37 = vpop.f32.mrb[167].mxu1  ;;  %18817 = vmatpush3.bf16.msra.mxu0 %v20361_v31  ;;  %v14511_v9 = vrot.slane %v14509_v45, 1 }
 0xed8   : > { %v14354_v2 = vrot.slane %v14352_v19, 7  ;;  %v14183_v8 = vmax.f32 %v14151_v16, 0.0  ;;  %v14152_v13 = vadd.f32 %v25077_v4, %v14048_v37  ;;  %18818 = vmatprep.subr.bf16.mxu0 %v20362_v58  ;;  %v14519_v5 = vrot.slane %v14517_v52, 1  ;;  %v20365_v16 = vld [vmem:[%s25626_s21 + $0x38] sm:$0xff]  }
 0xed9   : > { %v14364_v50 = vor.u32 %v14362_v26, %v25173_v62  ;;  %v14186_v11 = vmax.f32 %v14154_v1, 0.0  ;;  %v14521_v38 = vshrl.u32 %v25158_v32, 16  ;;  %v14512_v35 = vsel %vm1237_vm3, %v14507_v24, %v14511_v9 }
 0xeda   : > { %v14357_v39 = vor.u32 %v14355_v33, %v14354_v2  ;;  %v14184_v3 = vmax.f32 %v14152_v13, 0.0  ;;  %v14515_v6 = vor.u32 %v14513_v0, %v14511_v9  ;;  %18787 = vmatmul.mubr.bf16.gmra.mrb[104].mxu0 %v14512_v35  ;;  %v14527_v15 = vrot.slane %v14525_v14, 1  ;;  %v25224_v35 = vld [vmem:[%s25626_s21 + $0x80] sm:$0xff]  }
 0xedb   : > { %v25185_v30 = vsel %vm3092_vm7, %v14354_v2, %v14364_v50  ;;  %v14284_v55 = vpack.c.bf16 %v14186_v11, %v14185_v53  ;;  %v14523_v34 = vor.u32 %v14521_v38, %v14519_v5  ;;  %18819 = vmatpush3.bf16.msra.mxu0 %v20362_v58 }
 0xedc   : > { %v25189_v22 = vsel %vm21342_vm8, 0, %v14357_v39  ;;  %v14283_v44 = vpack.c.bf16 %v14184_v3, %v14183_v8  ;;  %v18756_v47 = vpop.f32.mrb[168].mxu1  ;;  %v14520_v46 = vsel %vm1237_vm3, %v14515_v6, %v14519_v5  ;;  %v14537_v31 = vshll.u32 %v25185_v30, 16  ;;  %18820 = vmatprep.subr.bf16.mxu0 %v20363_v36 }
 0xedd   : > { %v14375_v51 = vshrl.u32 %v14284_v55, 16  ;;  %v14157_v63 = vadd.f32 %v18756_v47, %v25077_v4  ;;  %18790 = vmatprep.mubr.bf16.mxu0 %v14520_v46  ;;  %v14061_v54 = vpop.f32.mrb[169].mxu1  ;;  %v14378_v42 = vshll.u32 %v14284_v55, 16  ;;  %v14528_v59 = vsel %vm1237_vm3, %v14523_v34, %v14527_v15 }
 0xede   : > { %v14367_v43 = vshrl.u32 %v14283_v44, 16  ;;  %v14155_v10 = vadd.f32 %v25077_v4, %v14061_v54  ;;  %v18757_v29 = vpop.f32.mrb[170].mxu1  ;;  %v14370_v28 = vshll.u32 %v14283_v44, 16  ;;  %v14532_v52 = vshll.u32 %v25189_v22, 16 }
 0xedf   : > { %v14377_v14 = vrot.slane %v14375_v51, 7  ;;  %v14158_v27 = vadd.f32 %v18757_v29, %v25077_v4  ;;  %v14064_v24 = vpop.f32.mrb[171].mxu1  ;;  %v14530_v26 = vshrl.u32 %v25189_v22, 16  ;;  %v14539_v7 = vrot.slane %v14537_v31, 1  ;;  %18821 = vmatpush3.bf16.msra.mxu0 %v20363_v36 }
 0xee0   : > { %v14369_v58 = vrot.slane %v14367_v43, 7  ;;  %v14156_v60 = vadd.f32 %v25077_v4, %v14064_v24  ;;  %v14189_v12 = vmax.f32 %v14157_v63, 0.0  ;;  %v14534_v33 = vrot.slane %v14532_v52, 1  ;;  %18822 = vmatprep.subr.bf16.mxu0 %v20364_v61 }
 0xee1   : > { %v14380_v57 = vor.u32 %v14378_v42, %v14377_v14  ;;  %v14190_v19 = vmax.f32 %v14158_v27, 0.0  ;;  %v14187_v45 = vmax.f32 %v14155_v10, 0.0  ;;  %v14541_v1 = vshrl.u32 %v25185_v30, 16 }
 0xee2   : > { %v14372_v41 = vor.u32 %v14370_v28, %v14369_v58  ;;  %v14188_v53 = vmax.f32 %v14156_v60, 0.0  ;;  %18791 = vmatmul.mubr.bf16.gmra.mrb[108].mxu0 %v14528_v59  ;;  %v14535_v2 = vor.u32 %v14534_v33, %v14530_v26  ;;  %v25212_v8 = vsel %vm21342_vm8, %v14377_v14, 0 }
 0xee3   : > { %v25208_v37 = vsel %vm3092_vm7, %v14369_v58, %v14380_v57  ;;  %v14286_v0 = vpack.c.bf16 %v14190_v19, %v14189_v12  ;;  %v14543_v11 = vor.u32 %v14541_v1, %v14539_v7  ;;  %18823 = vmatpush3.bf16.msra.mxu0 %v20364_v61 }
 0xee4   : > { %v14285_v13 = vpack.c.bf16 %v14188_v53, %v14187_v45  ;;  %v18760_v9 = vpop.f32.mrb[172].mxu1  ;;  %v25216_v50 = vsel %vm3092_vm7, %v25173_v62, %v14372_v41  ;;  %v14540_v36 = vsel %vm1237_vm3, %v14535_v2, %v14539_v7  ;;  %v14553_v3 = vshll.u32 %v25208_v37, 16  ;;  %18824 = vmatprep.subr.bf16.mxu0 %v20365_v16 }
 0xee5   : > { %v14390_v5 = vshrl.u32 %v14286_v0, 16  ;;  %v14161_v38 = vadd.f32 %v18760_v9, %v25077_v4  ;;  %v14077_v39 = vpop.f32.mrb[173].mxu1  ;;  %v14393_v6 = vshll.u32 %v14286_v0, 16  ;;  %18794 = vmatprep.mubr.bf16.mxu0 %v14540_v36  ;;  %v14545_v15 = vshll.u32 %v25216_v50, 16 }
 0xee6   : > { %v14383_v55 = vshrl.u32 %v14285_v13, 16  ;;  %v14159_v62 = vadd.f32 %v25077_v4, %v14077_v39  ;;  %v18761_v34 = vpop.f32.mrb[174].mxu1  ;;  %v14386_v47 = vshll.u32 %v14285_v13, 16  ;;  %v14549_v42 = vshrl.u32 %v25216_v50, 16 }
 0xee7   : > { %v14392_v44 = vrot.slane %v14390_v5, 7  ;;  %v14193_v46 = vmax.f32 %v14161_v38, 0.0  ;;  %v14162_v31 = vadd.f32 %v18761_v34, %v25077_v4  ;;  %v14080_v51 = vpop.f32.mrb[175].mxu1  ;;  %v14547_v61 = vrot.slane %v14545_v15, 1  ;;  %18825 = vmatpush3.bf16.msra.mxu0 %v20365_v16 }
 0xee8   : > { %v14385_v63 = vrot.slane %v14383_v55, 7  ;;  %v14160_v54 = vadd.f32 %v25077_v4, %v14080_v51  ;;  %v14191_v10 = vmax.f32 %v14159_v62, 0.0  ;;  %v14555_v59 = vrot.slane %v14553_v3, 1  ;;  %18858 = vmatprep.subr.bf16.mxu0 %v25224_v35 }
 0xee9   : > { %v14395_v43 = vor.u32 %v14393_v6, %v14392_v44  ;;  %v14194_v29 = vmax.f32 %v14162_v31, 0.0  ;;  %v14548_v27 = vsel %vm1237_vm3, %v14543_v11, %v14547_v61  ;;  %v14551_v24 = vor.u32 %v14549_v42, %v14547_v61 }
 0xeea   : > { %v14388_v14 = vor.u32 %v14386_v47, %v14385_v63  ;;  %v14192_v28 = vmax.f32 %v14160_v54, 0.0  ;;  %18795 = vmatmul.mubr.bf16.gmra.mrb[112].mxu0 %v14548_v27  ;;  %v14561_v4 = vshll.u32 %v25212_v8, 16  ;;  %v14557_v57 = vshrl.u32 %v25208_v37, 16  ;;  %v20371_v27 = vld [vmem:[%s25626_s21 + $0xa8] sm:$0xff]  }
 0xeeb   : > { %v25234_v52 = vsel %vm3092_vm7, %v14385_v63, %v14395_v43  ;;  %v14288_v58 = vpack.c.bf16 %v14194_v29, %v14193_v46  ;;  %v14556_v7 = vsel %vm1237_vm3, %v14551_v24, %v14555_v59  ;;  %v20372_v24 = vld [vmem:[%s25626_s21 + $0xb0] sm:$0xff]  }
 0xeec   : > { %v25239_v60 = vsel %vm21342_vm8, 0, %v14388_v14  ;;  %v14287_v26 = vpack.c.bf16 %v14192_v28, %v14191_v10  ;;  %18798 = vmatprep.mubr.bf16.mxu0 %v14556_v7  ;;  %v14559_v33 = vor.u32 %v14557_v57, %v14555_v59  ;;  %v14573_v41 = vshll.u32 %v25234_v52, 16  ;;  %v20368_v14 = vld [vmem:[%s25626_s21 + $0x90] sm:$0xff]   ;;  %v20369_v28 = vld [vmem:[%s25626_s21 + $0x98] sm:$0xff]  }
 0xeed   : > { %v14406_v12 = vshrl.u32 %v14288_v58, 16  ;;  %v14568_v16 = vshll.u32 %v25239_v60, 16  ;;  %v14409_v53 = vshll.u32 %v14288_v58, 16  ;;  %v14563_v1 = vrot.slane %v14561_v4, 1  ;;  %v20373_v58 = vld [vmem:[%s25626_s21 + $0xb8] sm:$0xff]  }
 0xeee   : > { %v14398_v19 = vshrl.u32 %v14287_v26, 16  ;;  %v14401_v2 = vshll.u32 %v14287_v26, 16  ;;  %v14566_v13 = vshrl.u32 %v25239_v60, 16  ;;  %v14575_v39 = vrot.slane %v14573_v41, 1 }
 0xeef   : > { %v14408_v45 = vrot.slane %v14406_v12, 7  ;;  %v14570_v9 = vrot.slane %v14568_v16, 1  ;;  %v14564_v38 = vsel %vm1237_vm3, %v14559_v33, %v14563_v1  ;;  %v14577_v62 = vshrl.u32 %v25234_v52, 16 }
 0xef0   : > { %v14400_v0 = vrot.slane %v14398_v19, 7  ;;  %v15059_v4 = vrot.slane %v25092_v40, 1  ;;  %v15060_v26 = vrot.slane %v25088_v56, 1  ;;  %v15062_v57 = vrot.slane %v25110_v17, 1 }
 0xef1   : > { %v14411_v11 = vor.u32 %v14409_v53, %v14408_v45  ;;  %v14571_v36 = vor.u32 %v14570_v9, %v14566_v13  ;;  %v14579_v47 = vor.u32 %v14577_v62, %v14575_v39  ;;  %v25260_v51 = vsel %vm21342_vm8, %v14408_v45, 0 }
 0xef2   : > { %v14403_v5 = vor.u32 %v14401_v2, %v14400_v0  ;;  %18799 = vmatmul.mubr.bf16.gmra.mrb[116].mxu0 %v14564_v38  ;;  %v14597_v43 = vshll.u32 %v25260_v51, 16  ;;  %v15061_v7 = vsel %vm1841_vm6, %v15059_v4, %v15060_v26  ;;  %v15064_v12 = vrot.slane %v25107_v25, 1 }
 0xef3   : > { %v25248_v3 = vsel %vm3092_vm7, %v14400_v0, %v14411_v11  ;;  %v14576_v6 = vsel %vm1237_vm3, %v14571_v36, %v14575_v39  ;;  %v15063_v19 = vsel %vm1841_vm6, %v15060_v26, %v15062_v57  ;;  %v15068_v16 = vrot.slane %v25136_v48, 1  ;;  %v25344_v36 = vld [vmem:[%s25628_s23] ss:$0 sm:$0xff]  ;;  %v26005_v39 = vld [vmem:[#allocation20_spill] sm:$0xff] }
 0xef4   : > { %v25252_v55 = vsel %vm3092_vm7, %v14392_v44, %v14403_v5  ;;  %18802 = vmatprep.mubr.bf16.mxu0 %v14576_v6  ;;  %v14589_v15 = vshll.u32 %v25248_v3, 16  ;;  %v14593_v42 = vshrl.u32 %v25248_v3, 16  ;;  %v14599_v29 = vrot.slane %v14597_v43, 1  ;;  %v26013_v26 = vld [vmem:[#allocation24_spill] sm:$0xff] }
 0xef5   : > { %v14581_v34 = vshll.u32 %v25252_v55, 16  ;;  %v14585_v31 = vshrl.u32 %v25252_v55, 16  ;;  %v15065_v33 = vsel %vm1841_vm6, %v15062_v57, %v15064_v12  ;;  %v15091_v5 = vrot.slane %v25248_v3, 1 }
 0xef6   : > { %v14591_v44 = vrot.slane %v14589_v15, 1  ;;  %v26006_v6 = vmax.f32 %v26005_v39, 0.0  ;;  %v25356_v15 = vld [vmem:[%s25629_s24] ss:$0 sm:$0xff] }
 0xef7   : > { %v14583_v46 = vrot.slane %v14581_v34, 1 }
 0xef8   : > { %v14595_v10 = vor.u32 %v14593_v42, %v14591_v44 }
 0xef9   : > { %v14584_v63 = vsel %vm1237_vm3, %v14579_v47, %v14583_v46  ;;  %v14587_v54 = vor.u32 %v14585_v31, %v14583_v46  ;;  %v25361_v47 = vld [vmem:[%s25627_s22] ss:$0 sm:$0xff]  ;;  %v26009_v46 = vld [vmem:[#allocation23_spill] sm:$0xff] }
 0xefa   : > { %18803 = vmatmul.mubr.bf16.gmra.mrb[120].mxu0 %v14584_v63  ;;  %v14600_v59 = vsel %vm1237_vm3, %v14595_v10, %v14599_v29  ;;  %v26010_v31 = vmax.f32 %v26009_v46, 0.0  ;;  %v26011_v63 = vld [vmem:[#allocation21_spill] sm:$0xff] }
 0xefb   : > { %v14592_v61 = vsel %vm1237_vm3, %v14587_v54, %v14591_v44  ;;  %v26012_v54 = vmax.f32 %v26011_v63, 0.0 }
 0xefc   : > { %18806 = vmatprep.mubr.bf16.mxu0 %v14592_v61 }
 0xefd   : > { %v14203_v44 = vmul.f32 %v25344_v36, %v26012_v54 }
 0xf02   : > { %18807 = vmatmul.mubr.bf16.gmra.mrb[124].mxu0 %v14600_v59 }
 0xf03   : > { %18826 = vmatprep.mubr.bf16.mxu0 %v25092_v40  ;;  %v15069_v40 = vrot.slane %v25130_v18, 1 }
 0xf05   : > { %v15070_v45 = vsel %vm1841_vm6, %v15068_v16, %v15069_v40 }
 0xf0a   : > { %18827 = vmatmul.mubr.bf16.vlgmr.msra.gmra.mrb[96].mxu0 %v25088_v56  ;;  %v15066_v56 = vrot.slane %v25104_v20, 1  ;;  %v15078_v20 = vrot.slane %v25185_v30, 1 }
 0xf0b   : > { %18859 = vmatpush3.bf16.msra.mxu0 %v25224_v35  ;;  %18830 = vmatprep.mubr.bf16.mxu0 %v25110_v17  ;;  %v20370_v35 = vld [vmem:[%s25626_s21 + $0xa0] sm:$0xff]   ;;  %v15073_v17 = vrot.slane %v25158_v32, 1 }
 0xf0c   : > { %18860 = vmatprep.subr.bf16.mxu0 %v20367_v49  ;;  %v15067_v41 = vsel %vm1841_vm6, %v15064_v12, %v15066_v56 }
 0xf0f   : > { %18861 = vmatpush3.bf16.msra.mxu0 %v20367_v49 }
 0xf10   : > { %18862 = vmatprep.subr.bf16.mxu0 %v20368_v14 }
 0xf12   : > { %18831 = vmatmul.mubr.bf16.gmra.mrb[100].mxu0 %v25107_v25  ;;  %v15071_v25 = vrot.slane %v25163_v21, 1 }
 0xf13   : > { %18834 = vmatprep.mubr.bf16.mxu0 %v25136_v48  ;;  %18863 = vmatpush3.bf16.msra.mxu0 %v20368_v14  ;;  %v15075_v48 = vrot.slane %v25154_v23, 1  ;;  %v15087_v23 = vrot.slane %v25234_v52, 1 }
 0xf14   : > { %18864 = vmatprep.subr.bf16.mxu0 %v20369_v28  ;;  %v15072_v53 = vsel %vm1841_vm6, %v15069_v40, %v15071_v25  ;;  %v15074_v1 = vsel %vm1841_vm6, %v15071_v25, %v15073_v17 }
 0xf15   : > { %v15076_v0 = vsel %vm1841_vm6, %v15073_v17, %v15075_v48 }
 0xf17   : > { %18865 = vmatpush3.bf16.msra.mxu0 %v20369_v28 }
 0xf18   : > { %18866 = vmatprep.subr.bf16.mxu0 %v20370_v35 }
 0xf1a   : > { %18835 = vmatmul.mubr.bf16.gmra.mrb[104].mxu0 %v25130_v18  ;;  %v15077_v18 = vrot.slane %v25189_v22, 1 }
 0xf1b   : > { %18838 = vmatprep.mubr.bf16.mxu0 %v25163_v21  ;;  %18867 = vmatpush3.bf16.msra.mxu0 %v20370_v35  ;;  %v15082_v21 = vrot.slane %v25208_v37, 1 }
 0xf1c   : > { %18868 = vmatprep.subr.bf16.mxu0 %v20371_v27  ;;  %v15079_v2 = vsel %vm1841_vm6, %v15077_v18, %v15078_v20 }
 0xf1f   : > { %18869 = vmatpush3.bf16.msra.mxu0 %v20371_v27 }
 0xf20   : > { %18870 = vmatprep.subr.bf16.mxu0 %v20372_v24 }
 0xf22   : > { %18839 = vmatmul.mubr.bf16.gmra.mrb[108].mxu0 %v25158_v32  ;;  %v15080_v32 = vrot.slane %v25216_v50, 1 }
 0xf23   : > { %18842 = vmatprep.mubr.bf16.mxu0 %v25189_v22  ;;  %18871 = vmatpush3.bf16.msra.mxu0 %v20372_v24  ;;  %v15084_v22 = vrot.slane %v25212_v8, 1  ;;  %v15093_v8 = vrot.slane %v25260_v51, 1  ;;  %v14205_v51 = vmul.f32 %v25344_v36, %v26010_v31  ;;  %v26025_v31 = vld [vmem:[#allocation31_spill] sm:$0xff] }
 0xf24   : > { %18872 = vmatprep.subr.bf16.mxu0 %v20373_v58  ;;  %v15081_v13 = vsel %vm1841_vm6, %v15078_v20, %v15080_v32  ;;  %v15083_v9 = vsel %vm1841_vm6, %v15080_v32, %v15082_v21 }
 0xf25   : > { %v15085_v11 = vsel %vm1841_vm6, %v15082_v21, %v15084_v22  ;;  %v14244_v28 = vadd.f32 %v25356_v15, %v14205_v51  ;;  %v26026_v51 = vmax.f32 %v26025_v31, 0.0 }
 0xf27   : > { %18873 = vmatpush3.bf16.msra.mxu0 %v20373_v58  ;;  %v14242_v58 = vadd.f32 %v25356_v15, %v14203_v44  ;;  %v14213_v63 = vmul.f32 %v25344_v36, %v26026_v51  ;;  %v26027_v44 = vld [vmem:[#allocation37_spill] sm:$0xff] }
 0xf2a   : > { %18843 = vmatmul.mubr.bf16.gmra.mrb[112].mxu0 %v25185_v30  ;;  %v15086_v30 = vrot.slane %v25239_v60, 1 }
 0xf2b   : > { %18846 = vmatprep.mubr.bf16.mxu0 %v25216_v50 }
 0xf2c   : > { %v15088_v50 = vsel %vm1841_vm6, %v15086_v30, %v15087_v23 }
 0xf32   : > { %18847 = vmatmul.mubr.bf16.gmra.mrb[116].mxu0 %v25208_v37  ;;  %v15089_v37 = vrot.slane %v25252_v55, 1 }
 0xf33   : > { %18850 = vmatprep.mubr.bf16.mxu0 %v25239_v60 }
 0xf34   : > { %v15090_v38 = vsel %vm1841_vm6, %v15087_v23, %v15089_v37  ;;  %v15092_v60 = vsel %vm1841_vm6, %v15089_v37, %v15091_v5 }
 0xf3a   : > { %18851 = vmatmul.mubr.bf16.gmra.mrb[120].mxu0 %v25234_v52  ;;  %v15094_v52 = vsel %vm1841_vm6, %v15091_v5, %v15093_v8 }
 0xf3b   : > { %18854 = vmatprep.mubr.bf16.mxu0 %v25252_v55  ;;  %v26007_v55 = vld [vmem:[#allocation18_spill] sm:$0xff] }
 0xf3c   : > { %v26008_v62 = vmax.f32 %v26007_v55, 0.0 }
 0xf3e   : > { %v14202_v34 = vmul.f32 %v25344_v36, %v26008_v62 }
 0xf40   : > { %v14241_v29 = vadd.f32 %v25356_v15, %v14202_v34 }
 0xf42   : > { %18855 = vmatmul.mubr.bf16.gmra.mrb[124].mxu0 %v25248_v3  ;;  %v14204_v3 = vmul.f32 %v25344_v36, %v26006_v6 }
 0xf43   : > { %18874 = vmatprep.mubr.bf16.mxu0 %v15061_v7  ;;  %v26014_v7 = vmax.f32 %v26013_v26, 0.0 }
 0xf44   : > { %v14243_v42 = vadd.f32 %v25356_v15, %v14204_v3  ;;  %v26023_v3 = vld [vmem:[#allocation34_spill] sm:$0xff] }
 0xf45   : > { %v14208_v57 = vmul.f32 %v25344_v36, %v26014_v7  ;;  %v26024_v55 = vmax.f32 %v26023_v3, 0.0 }
 0xf47   : > { %v14210_v62 = vmul.f32 %v25344_v36, %v26024_v55 }
 0xf4a   : > { %18875 = vmatmul.mubr.bf16.vlgmr.msra.gmra.mrb[96].mxu0 %v15063_v19 }
 0xf4b   : > { %18878 = vmatprep.mubr.bf16.mxu0 %v15065_v33  ;;  %v26015_v33 = vld [vmem:[#allocation27_spill] sm:$0xff] }
 0xf4c   : > { %v26016_v16 = vmax.f32 %v26015_v33, 0.0 }
 0xf4e   : > { %v14206_v40 = vmul.f32 %v25344_v36, %v26016_v16 }
 0xf52   : > { %18879 = vmatmul.mubr.bf16.gmra.mrb[100].mxu0 %v15067_v41 }
 0xf53   : > { %18882 = vmatprep.mubr.bf16.mxu0 %v15070_v45  ;;  %v26017_v45 = vld [vmem:[#allocation28_spill] sm:$0xff] }
 0xf54   : > { %v26018_v25 = vmax.f32 %v26017_v45, 0.0 }
 0xf56   : > { %v14209_v17 = vmul.f32 %v25344_v36, %v26018_v25 }
 0xf58   : > { %v14248_v22 = vadd.f32 %v25356_v15, %v14209_v17 }
 0xf5a   : > { %18883 = vmatmul.mubr.bf16.gmra.mrb[104].mxu0 %v15072_v53 }
 0xf5b   : > { %18886 = vmatprep.mubr.bf16.mxu0 %v15074_v1  ;;  %v26019_v1 = vld [vmem:[#allocation30_spill] sm:$0xff] }
 0xf5c   : > { %v26020_v18 = vmax.f32 %v26019_v1, 0.0 }
 0xf5e   : > { %v14207_v20 = vmul.f32 %v25344_v36, %v26020_v18 }
 0xf60   : > { %v14246_v5 = vadd.f32 %v25356_v15, %v14207_v20 }
 0xf62   : > { %18887 = vmatmul.mubr.bf16.gmra.mrb[108].mxu0 %v15076_v0 }
 0xf63   : > { %18890 = vmatprep.mubr.bf16.mxu0 %v15079_v2  ;;  %v14247_v2 = vadd.f32 %v25356_v15, %v14208_v57 }
 0xf6a   : > { %18891 = vmatmul.mubr.bf16.gmra.mrb[112].mxu0 %v15081_v13  ;;  %v14245_v13 = vadd.f32 %v25356_v15, %v14206_v40 }
 0xf6b   : > { %18894 = vmatprep.mubr.bf16.mxu0 %v15083_v9 }
 0xf72   : > { %18895 = vmatmul.mubr.bf16.gmra.mrb[116].mxu0 %v15085_v11 }
 0xf73   : > { %18898 = vmatprep.mubr.bf16.mxu0 %v15088_v50 }
 0xf7a   : > { %18899 = vmatmul.mubr.bf16.gmra.mrb[120].mxu0 %v15090_v38 }
 0xf7b   : > { %18902 = vmatprep.mubr.bf16.mxu0 %v15092_v60  ;;  %v26021_v60 = vld [vmem:[#allocation29_spill] sm:$0xff] }
 0xf7c   : > { %v26022_v8 = vmax.f32 %v26021_v60, 0.0 }
 0xf82   : > { %18903 = vmatmul.mubr.bf16.gmra.mrb[124].mxu0 %v15094_v52  ;;  %v14212_v52 = vmul.f32 %v25344_v36, %v26022_v8 }
0x101d   : > { %v18876_v61 = vpop.f32.mrb[96].mxu0 }
0x101e   : > { %v15377_v43 = vadd.f32 %v18876_v61, %v25361_v47  ;;  %v15209_v10 = vpop.f32.mrb[97].mxu0  ;;  %v26028_v61 = vmax.f32 %v26027_v44, 0.0 }
0x101f   : > { %v15375_v59 = vadd.f32 %v25361_v47, %v15209_v10  ;;  %v18877_v49 = vpop.f32.mrb[98].mxu0 }
0x1020   : > { %v15409_v14 = vadd.f32 %v15377_v43, %v14243_v42  ;;  %v15378_v35 = vadd.f32 %v18877_v49, %v25361_v47  ;;  %v15212_v27 = vpop.f32.mrb[99].mxu0  ;;  %v14211_v42 = vmul.f32 %v25344_v36, %v26028_v61 }
0x1021   : > { %v15407_v24 = vadd.f32 %v15375_v59, %v14241_v29  ;;  %v15376_v4 = vadd.f32 %v25361_v47, %v15212_v27  ;;  %v14251_v29 = vadd.f32 %v25356_v15, %v14212_v52 }
0x1022   : > { %v15441_v12 = vmax.f32 %v15409_v14, 0.0  ;;  %v15410_v19 = vadd.f32 %v15378_v35, %v14244_v28  ;;  %v14249_v14 = vadd.f32 %v25356_v15, %v14210_v62  ;;  %v14250_v7 = vadd.f32 %v25356_v15, %v14211_v42 }
0x1023   : > { %v15439_v56 = vmax.f32 %v15407_v24, 0.0  ;;  %v15408_v41 = vadd.f32 %v15376_v4, %v14242_v58  ;;  %v14252_v24 = vadd.f32 %v25356_v15, %v14213_v63 }
0x1024   : > { %15473 = vst [vmem:[%s25388_s0 + $0x10] sm:$0xff] %v15441_v12  ;;  %v15442_v53 = vmax.f32 %v15410_v19, 0.0  ;;  %v26029_v12 = vld [vmem:[#allocation35_spill] sm:$0xff] }
0x1025   : > { %15471 = vst [vmem:[%s25388_s0] sm:$0xff] %v15439_v56  ;;  %v15440_v48 = vmax.f32 %v15408_v41, 0.0  ;;  %v18880_v0 = vpop.f32.mrb[100].mxu0  ;;  %v26030_v19 = vmax.f32 %v26029_v12, 0.0  ;;  %v26031_v56 = vld [vmem:[#allocation42_spill] sm:$0xff] }
0x1026   : > { %15474 = vst [vmem:[%s25388_s0 + $0x18] sm:$0xff] %v15442_v53  ;;  %v15381_v32 = vadd.f32 %v18880_v0, %v25361_v47  ;;  %v15225_v21 = vpop.f32.mrb[101].mxu0  ;;  %v26032_v41 = vmax.f32 %v26031_v56, 0.0  ;;  %v26033_v53 = vld [vmem:[#allocation38_spill] sm:$0xff] }
0x1027   : > { %15472 = vst [vmem:[%s25388_s0 + $0x8] sm:$0xff] %v15440_v48  ;;  %v15379_v9 = vadd.f32 %v25361_v47, %v15225_v21  ;;  %v18881_v30 = vpop.f32.mrb[102].mxu0  ;;  %v14216_v33 = vmul.f32 %v25344_v36, %v26030_v19  ;;  %v26034_v1 = vmax.f32 %v26033_v53, 0.0  ;;  %v26035_v48 = vld [vmem:[#allocation43_spill] sm:$0xff] }
0x1028   : > { %v15413_v23 = vadd.f32 %v15381_v32, %v14247_v2  ;;  %v15382_v11 = vadd.f32 %v18881_v30, %v25361_v47  ;;  %v15228_v50 = vpop.f32.mrb[103].mxu0  ;;  %v14214_v45 = vmul.f32 %v25344_v36, %v26032_v41  ;;  %v26036_v0 = vmax.f32 %v26035_v48, 0.0 }
0x1029   : > { %v15411_v37 = vadd.f32 %v15379_v9, %v14245_v13  ;;  %v15380_v38 = vadd.f32 %v25361_v47, %v15228_v50  ;;  %v14217_v18 = vmul.f32 %v25344_v36, %v26034_v1  ;;  %v14255_v13 = vadd.f32 %v25356_v15, %v14216_v33 }
0x102a   : > { %v15445_v39 = vmax.f32 %v15413_v23, 0.0  ;;  %v15414_v6 = vadd.f32 %v15382_v11, %v14248_v22  ;;  %v14215_v2 = vmul.f32 %v25344_v36, %v26036_v0  ;;  %v14253_v23 = vadd.f32 %v25356_v15, %v14214_v45 }
0x102b   : > { %v15443_v34 = vmax.f32 %v15411_v37, 0.0  ;;  %v15412_v46 = vadd.f32 %v15380_v38, %v14246_v5  ;;  %v14256_v37 = vadd.f32 %v25356_v15, %v14217_v18 }
0x102c   : > { %15477 = vst [vmem:[%s25388_s0 + $0x30] sm:$0xff] %v15445_v39  ;;  %v15446_v54 = vmax.f32 %v15414_v6, 0.0  ;;  %v14254_v8 = vadd.f32 %v25356_v15, %v14215_v2  ;;  %v26037_v39 = vld [vmem:[#allocation44_spill] sm:$0xff] }
0x102d   : > { %15475 = vst [vmem:[%s25388_s0 + $0x20] sm:$0xff] %v15443_v34  ;;  %v15444_v43 = vmax.f32 %v15412_v46, 0.0  ;;  %v18884_v10 = vpop.f32.mrb[104].mxu0  ;;  %v26038_v6 = vmax.f32 %v26037_v39, 0.0  ;;  %v26039_v34 = vld [vmem:[#allocation11_spill] sm:$0xff] }
0x102e   : > { %15478 = vst [vmem:[%s25388_s0 + $0x38] sm:$0xff] %v15446_v54  ;;  %v15385_v59 = vadd.f32 %v18884_v10, %v25361_v47  ;;  %v15241_v49 = vpop.f32.mrb[105].mxu0  ;;  %v26040_v46 = vmax.f32 %v26039_v34, 0.0  ;;  %v26041_v54 = vld [vmem:[#allocation45_spill] sm:$0xff] }
0x102f   : > { %15476 = vst [vmem:[%s25388_s0 + $0x28] sm:$0xff] %v15444_v43  ;;  %v15383_v28 = vadd.f32 %v25361_v47, %v15241_v49  ;;  %v18885_v35 = vpop.f32.mrb[106].mxu0  ;;  %v14220_v3 = vmul.f32 %v25344_v36, %v26038_v6  ;;  %v26042_v44 = vmax.f32 %v26041_v54, 0.0  ;;  %v26043_v43 = vld [vmem:[#allocation10_spill] sm:$0xff] }
0x1030   : > { %v15417_v27 = vadd.f32 %v15385_v59, %v14251_v29  ;;  %v15386_v58 = vadd.f32 %v18885_v35, %v25361_v47  ;;  %v15244_v4 = vpop.f32.mrb[107].mxu0  ;;  %v14218_v31 = vmul.f32 %v25344_v36, %v26040_v46  ;;  %v26044_v10 = vmax.f32 %v26043_v43, 0.0 }
0x1031   : > { %v15415_v26 = vadd.f32 %v15383_v28, %v14249_v14  ;;  %v15384_v57 = vadd.f32 %v25361_v47, %v15244_v4  ;;  %v14221_v61 = vmul.f32 %v25344_v36, %v26042_v44  ;;  %v14259_v14 = vadd.f32 %v25356_v15, %v14220_v3 }
0x1032   : > { %v15449_v16 = vmax.f32 %v15417_v27, 0.0  ;;  %v15418_v40 = vadd.f32 %v15386_v58, %v14252_v24  ;;  %v14219_v29 = vmul.f32 %v25344_v36, %v26044_v10  ;;  %v14257_v27 = vadd.f32 %v25356_v15, %v14218_v31 }
0x1033   : > { %v15447_v25 = vmax.f32 %v15415_v26, 0.0  ;;  %v15416_v17 = vadd.f32 %v15384_v57, %v14250_v7  ;;  %v14260_v26 = vadd.f32 %v25356_v15, %v14221_v61 }
0x1034   : > { %15481 = vst [vmem:[%s25388_s0 + $0x50] sm:$0xff] %v15449_v16  ;;  %v15450_v20 = vmax.f32 %v15418_v40, 0.0  ;;  %v14258_v19 = vadd.f32 %v25356_v15, %v14219_v29  ;;  %v26045_v16 = vld [vmem:[#allocation17_spill] sm:$0xff] }
0x1035   : > { %15479 = vst [vmem:[%s25388_s0 + $0x40] sm:$0xff] %v15447_v25  ;;  %v15448_v32 = vmax.f32 %v15416_v17, 0.0  ;;  %v18888_v21 = vpop.f32.mrb[108].mxu0  ;;  %v26046_v40 = vmax.f32 %v26045_v16, 0.0  ;;  %v26047_v25 = vld [vmem:[#allocation22_spill] sm:$0xff] }
0x1036   : > { %15482 = vst [vmem:[%s25388_s0 + $0x58] sm:$0xff] %v15450_v20  ;;  %v15389_v9 = vadd.f32 %v18888_v21, %v25361_v47  ;;  %v15257_v30 = vpop.f32.mrb[109].mxu0  ;;  %v26048_v17 = vmax.f32 %v26047_v25, 0.0  ;;  %v26049_v20 = vld [vmem:[#allocation19_spill] sm:$0xff] }
0x1037   : > { %15480 = vst [vmem:[%s25388_s0 + $0x48] sm:$0xff] %v15448_v32  ;;  %v15387_v22 = vadd.f32 %v25361_v47, %v15257_v30  ;;  %v18889_v11 = vpop.f32.mrb[110].mxu0  ;;  %v14224_v56 = vmul.f32 %v25344_v36, %v26046_v40  ;;  %v26050_v48 = vmax.f32 %v26049_v20, 0.0  ;;  %v26051_v32 = vld [vmem:[#allocation33_spill] sm:$0xff] }
0x1038   : > { %v15421_v50 = vadd.f32 %v15389_v9, %v14255_v13  ;;  %v15390_v5 = vadd.f32 %v18889_v11, %v25361_v47  ;;  %v15260_v38 = vpop.f32.mrb[111].mxu0  ;;  %v14222_v53 = vmul.f32 %v25344_v36, %v26048_v17  ;;  %v26052_v21 = vmax.f32 %v26051_v32, 0.0 }
0x1039   : > { %v15419_v60 = vadd.f32 %v15387_v22, %v14253_v23  ;;  %v15388_v52 = vadd.f32 %v25361_v47, %v15260_v38  ;;  %v14225_v0 = vmul.f32 %v25344_v36, %v26050_v48  ;;  %v14263_v23 = vadd.f32 %v25356_v15, %v14224_v56 }
0x103a   : > { %v15453_v55 = vmax.f32 %v15421_v50, 0.0  ;;  %v15422_v62 = vadd.f32 %v15390_v5, %v14256_v37  ;;  %v14223_v13 = vmul.f32 %v25344_v36, %v26052_v21  ;;  %v14261_v50 = vadd.f32 %v25356_v15, %v14222_v53 }
0x103b   : > { %v15451_v51 = vmax.f32 %v15419_v60, 0.0  ;;  %v15420_v63 = vadd.f32 %v15388_v52, %v14254_v8  ;;  %v14264_v60 = vadd.f32 %v25356_v15, %v14225_v0 }
0x103c   : > { %15485 = vst [vmem:[%s25388_s0 + $0x70] sm:$0xff] %v15453_v55  ;;  %v15454_v42 = vmax.f32 %v15422_v62, 0.0  ;;  %v14262_v6 = vadd.f32 %v25356_v15, %v14223_v13  ;;  %v26053_v55 = vld [vmem:[#allocation32_spill] sm:$0xff] }
0x103d   : > { %15483 = vst [vmem:[%s25388_s0 + $0x60] sm:$0xff] %v15451_v51  ;;  %v15452_v59 = vmax.f32 %v15420_v63, 0.0  ;;  %v18892_v49 = vpop.f32.mrb[112].mxu0  ;;  %v26054_v62 = vmax.f32 %v26053_v55, 0.0  ;;  %v26055_v51 = vld [vmem:[#allocation12_spill] sm:$0xff] }
0x103e   : > { %15486 = vst [vmem:[%s25388_s0 + $0x78] sm:$0xff] %v15454_v42  ;;  %v15393_v28 = vadd.f32 %v18892_v49, %v25361_v47  ;;  %v15273_v35 = vpop.f32.mrb[113].mxu0  ;;  %v26056_v63 = vmax.f32 %v26055_v51, 0.0  ;;  %v26057_v42 = vld [vmem:[#allocation47_spill] sm:$0xff] }
0x103f   : > { %15484 = vst [vmem:[%s25388_s0 + $0x68] sm:$0xff] %v15452_v59  ;;  %v15391_v24 = vadd.f32 %v25361_v47, %v15273_v35  ;;  %v18893_v58 = vpop.f32.mrb[114].mxu0  ;;  %v14228_v34 = vmul.f32 %v25344_v36, %v26054_v62  ;;  %v26058_v43 = vmax.f32 %v26057_v42, 0.0  ;;  %v26059_v59 = vld [vmem:[#allocation49_spill] sm:$0xff] }
0x1040   : > { %v15425_v4 = vadd.f32 %v15393_v28, %v14259_v14  ;;  %v15394_v7 = vadd.f32 %v18893_v58, %v25361_v47  ;;  %v15276_v57 = vpop.f32.mrb[115].mxu0  ;;  %v14226_v54 = vmul.f32 %v25344_v36, %v26056_v63  ;;  %v26060_v49 = vmax.f32 %v26059_v59, 0.0 }
0x1041   : > { %v15423_v12 = vadd.f32 %v15391_v24, %v14257_v27  ;;  %v15392_v33 = vadd.f32 %v25361_v47, %v15276_v57  ;;  %v14229_v10 = vmul.f32 %v25344_v36, %v26058_v43  ;;  %v14267_v27 = vadd.f32 %v25356_v15, %v14228_v34 }
0x1042   : > { %v15457_v41 = vmax.f32 %v15425_v4, 0.0  ;;  %v15426_v45 = vadd.f32 %v15394_v7, %v14260_v26  ;;  %v14227_v14 = vmul.f32 %v25344_v36, %v26060_v49  ;;  %v14265_v4 = vadd.f32 %v25356_v15, %v14226_v54 }
0x1043   : > { %v15455_v1 = vmax.f32 %v15423_v12, 0.0  ;;  %v15424_v18 = vadd.f32 %v15392_v33, %v14258_v19  ;;  %v14268_v12 = vadd.f32 %v25356_v15, %v14229_v10 }
0x1044   : > { %15489 = vst [vmem:[%s25388_s0 + $0x90] sm:$0xff] %v15457_v41  ;;  %v15458_v2 = vmax.f32 %v15426_v45, 0.0  ;;  %v14266_v40 = vadd.f32 %v25356_v15, %v14227_v14  ;;  %v26061_v41 = vld [vmem:[#allocation50_spill] sm:$0xff] }
0x1045   : > { %15487 = vst [vmem:[%s25388_s0 + $0x80] sm:$0xff] %v15455_v1  ;;  %v15456_v9 = vmax.f32 %v15424_v18, 0.0  ;;  %v18896_v30 = vpop.f32.mrb[116].mxu0  ;;  %v26062_v45 = vmax.f32 %v26061_v41, 0.0  ;;  %v26063_v1 = vld [vmem:[#allocation53_spill] sm:$0xff] }
0x1046   : > { %15490 = vst [vmem:[%s25388_s0 + $0x98] sm:$0xff] %v15458_v2  ;;  %v15397_v22 = vadd.f32 %v18896_v30, %v25361_v47  ;;  %v15289_v11 = vpop.f32.mrb[117].mxu0  ;;  %v26064_v18 = vmax.f32 %v26063_v1, 0.0  ;;  %v26065_v2 = vld [vmem:[#allocation52_spill] sm:$0xff] }
0x1047   : > { %15488 = vst [vmem:[%s25388_s0 + $0x88] sm:$0xff] %v15456_v9  ;;  %v15395_v37 = vadd.f32 %v25361_v47, %v15289_v11  ;;  %v18897_v5 = vpop.f32.mrb[118].mxu0  ;;  %v14232_v25 = vmul.f32 %v25344_v36, %v26062_v45  ;;  %v26066_v32 = vmax.f32 %v26065_v2, 0.0  ;;  %v26067_v9 = vld [vmem:[#allocation54_spill] sm:$0xff] }
0x1048   : > { %v15429_v38 = vadd.f32 %v15397_v22, %v14263_v23  ;;  %v15398_v8 = vadd.f32 %v18897_v5, %v25361_v47  ;;  %v15292_v52 = vpop.f32.mrb[119].mxu0  ;;  %v14230_v20 = vmul.f32 %v25344_v36, %v26064_v18  ;;  %v26068_v30 = vmax.f32 %v26067_v9, 0.0 }
0x1049   : > { %v15427_v39 = vadd.f32 %v15395_v37, %v14261_v50  ;;  %v15396_v3 = vadd.f32 %v25361_v47, %v15292_v52  ;;  %v14233_v21 = vmul.f32 %v25344_v36, %v26066_v32  ;;  %v14271_v50 = vadd.f32 %v25356_v15, %v14232_v25 }
0x104a   : > { %v15461_v46 = vmax.f32 %v15429_v38, 0.0  ;;  %v15430_v31 = vadd.f32 %v15398_v8, %v14264_v60  ;;  %v14231_v23 = vmul.f32 %v25344_v36, %v26068_v30  ;;  %v14269_v38 = vadd.f32 %v25356_v15, %v14230_v20 }
0x104b   : > { %v15459_v44 = vmax.f32 %v15427_v39, 0.0  ;;  %v15428_v61 = vadd.f32 %v15396_v3, %v14262_v6  ;;  %v14272_v36 = vadd.f32 %v25356_v15, %v14233_v21 }
0x104c   : > { %15493 = vst [vmem:[%s25388_s0 + $0xb0] sm:$0xff] %v15461_v46  ;;  %v15462_v29 = vmax.f32 %v15430_v31, 0.0  ;;  %v14270_v55 = vadd.f32 %v25356_v15, %v14231_v23 }
0x104d   : > { %15491 = vst [vmem:[%s25388_s0 + $0xa0] sm:$0xff] %v15459_v44  ;;  %v15460_v28 = vmax.f32 %v15428_v61, 0.0  ;;  %v18900_v35 = vpop.f32.mrb[120].mxu0 }
0x104e   : > { %15494 = vst [vmem:[%s25388_s0 + $0xb8] sm:$0xff] %v15462_v29  ;;  %v15401_v24 = vadd.f32 %v18900_v35, %v25361_v47  ;;  %v15305_v58 = vpop.f32.mrb[121].mxu0 }
0x104f   : > { %15492 = vst [vmem:[%s25388_s0 + $0xa8] sm:$0xff] %v15460_v28  ;;  %v15399_v26 = vadd.f32 %v25361_v47, %v15305_v58  ;;  %v18901_v7 = vpop.f32.mrb[122].mxu0 }
0x1050   : > { %v15433_v57 = vadd.f32 %v15401_v24, %v14267_v27  ;;  %v15402_v19 = vadd.f32 %v18901_v7, %v25361_v47  ;;  %v15308_v33 = vpop.f32.mrb[123].mxu0 }
0x1051   : > { %v15431_v16 = vadd.f32 %v15399_v26, %v14265_v4  ;;  %v15400_v56 = vadd.f32 %v25361_v47, %v15308_v33 }
0x1052   : > { %v15465_v17 = vmax.f32 %v15433_v57, 0.0  ;;  %v15434_v53 = vadd.f32 %v15402_v19, %v14268_v12 }
0x1053   : > { %v15463_v48 = vmax.f32 %v15431_v16, 0.0  ;;  %v15432_v0 = vadd.f32 %v15400_v56, %v14266_v40 }
0x1054   : > { %15497 = vst [vmem:[%s25388_s0 + $0xd0] sm:$0xff] %v15465_v17  ;;  %v15466_v13 = vmax.f32 %v15434_v53, 0.0 }
0x1055   : > { %15495 = vst [vmem:[%s25388_s0 + $0xc0] sm:$0xff] %v15463_v48  ;;  %v15464_v22 = vmax.f32 %v15432_v0, 0.0  ;;  %v18904_v11 = vpop.f32.mrb[124].mxu0 }
0x1056   : > { %15498 = vst [vmem:[%s25388_s0 + $0xd8] sm:$0xff] %v15466_v13  ;;  %v15405_v37 = vadd.f32 %v18904_v11, %v25361_v47  ;;  %v15321_v5 = vpop.f32.mrb[125].mxu0 }
0x1057   : > { %15496 = vst [vmem:[%s25388_s0 + $0xc8] sm:$0xff] %v15464_v22  ;;  %v15403_v60 = vadd.f32 %v25361_v47, %v15321_v5  ;;  %v18905_v8 = vpop.f32.mrb[126].mxu0 }
0x1058   : > { %v15437_v52 = vadd.f32 %v15405_v37, %v14271_v50  ;;  %v15406_v39 = vadd.f32 %v18905_v8, %v25361_v47  ;;  %v15324_v6 = vpop.f32.mrb[127].mxu0 }
0x1059   : > { %v15435_v3 = vadd.f32 %v15403_v60, %v14269_v38  ;;  %v15404_v62 = vadd.f32 %v25361_v47, %v15324_v6 }
0x105a   : > { %v15469_v34 = vmax.f32 %v15437_v52, 0.0  ;;  %v15438_v46 = vadd.f32 %v15406_v39, %v14272_v36 }
0x105b   : > { %v15467_v31 = vmax.f32 %v15435_v3, 0.0  ;;  %v15436_v51 = vadd.f32 %v15404_v62, %v14270_v55 }
0x105c   : > { %15501 = vst [vmem:[%s25388_s0 + $0xf0] sm:$0xff] %v15469_v34  ;;  %v15470_v63 = vmax.f32 %v15438_v46, 0.0 }
0x105d   : > { %15499 = vst [vmem:[%s25388_s0 + $0xe0] sm:$0xff] %v15467_v31  ;;  %v15468_v15 = vmax.f32 %v15436_v51, 0.0 }
0x105e   : > { %15502 = vst [vmem:[%s25388_s0 + $0xf8] sm:$0xff] %v15470_v63 }
0x105f   : > { %15500 = vst [vmem:[%s25388_s0 + $0xe8] sm:$0xff] %v15468_v15 }
0x1060   : > { %20402 = shalt.err (!%p20399_p3)
}
0x1061   : > { %s20403_s8 = scalar_lea.hbm %s25555_s6, 4096  ;;  %s20407_s5 = scalar_lea.hbm %s25630_s25, 8192 }
0x1062   : > { %p20404_p4 = scmp.ne.s32.totalorder %s25555_s6, %s20403_s8  ;;  %p20408_p9 = scmp.lt.u32.totalorder %s25555_s6, %s25630_s25 }
0x1063   : > { %p20409_p10 = scmp.lt.u32.totalorder %s20407_s5, %s20403_s8  ;;  %p20411_p12 = scmp.lt.u32.totalorder %s20403_s8, %s25555_s6 }
0x1064   : > { %p20405_p7 = pnand %p20404_p4, %p20624_p5 }
0x1065   : > { %p20410_p11 = por %p20409_p10, %p20408_p9 }
0x1066   : > { %p20406_p8 = pneg %p20405_p7 }
0x1067   : > { %p20412_p13 = por %p20411_p12, %p20410_p11 }
0x1069   : > { %p20413_p0 = pnand %p20412_p13, %p20406_p8 }
0x106b   : > { %20416 = shalt.err (!%p20413_p0)
}
0x106c   : > { %s20454_s1 = smov 128   ;;  %s20455_s3 = smov 8  }
0x106d   : > { %20065 = dma.vmem_to_hbm [thread:$0]  (%p20624_p5), %s25557_s9, 4096, %s25555_s6, %s25564_s7, %s20454_s1, %s20454_s1, %s20455_s3  }
0x106e PF: > { %p20071_p1 = scmp.ge.s32.totalorder %s20451_s30, 2  ;;  %s15533_s11 = sand.u32 1, %s20439_s29  }
0x106f   : > { %s15534_s8 = scalar_lea.sflag [#allocation3], %s15533_s11 }
0x1070   : > { %p20068_p2 = pnand %p20071_p1, %p20628_p6 }
0x1072   : > { %20434 = dma.done.wait (!%p20068_p2), %s15534_s8, 4096  }
0x1073   : > { %20436 = vsyncadd (!%p20068_p2), %s15534_s8, 4294963200  ;;  %s26070_s30 = sld [smem:[#allocation6_spill]]  ;;  %s26071_s0 = sld [smem:[#allocation5_spill]] }
0x1074   : > { %s26072_s6 = sld [smem:[#allocation7_spill]]  ;;  %s26073_s29 = smov %s20443_s2 }
0x1079   : > { %p35_p3 = scmp.ge.s32.totalorder %s26070_s30, 4   ;;  %s26074_s2 = smov %s26071_s0 }
0x107b   :  { %37 = sbr.rel (!%p35_p3) target bundleno = 16 (0x10), region = 155 }
0x1082   :  { %15539 = vsyncpa [#allocation3], 1 }
0x1083   :  { %15541 = vsyncpa [#allocation3 + $0x1], 1 }

</bundles_post_ra>
